<compile_context>
chip_gen: v6e
topology: v6e:2x2x1
jax: 0.10.0
libtpu: 0.0.40
codegen_flags: <defaults>
</compile_context>

<pallas_src>
import functools

import jax
import jax.numpy as jnp
from jax.experimental import pallas as pl
from jax.experimental.pallas import tpu as pltpu


# ----------------------------------------------------------------------------
# Small helpers
# ----------------------------------------------------------------------------
def _round_up(x, m):
    return (x + m - 1) // m * m


def _pick_row_tile(H, N, NL):
    """Row tile TH: multiple of 8 dividing H, preferring >= 4 total grid steps
    (>= 2 per megacore TC), capped so the f32 accumulator (TH, NL) stays small."""
    cands = [d for d in range(8, H + 1, 8)
             if H % d == 0 and d * NL * 4 <= (1 << 21)]
    if not cands:
        # TODO(synk): masked partial last tile for odd heights instead of a
        # single whole-image tile.
        return H
    ok = [d for d in cands if N * (H // d) >= 4]
    return max(ok) if ok else min(cands)


def pad_fold(x_nhwc, kh, kw):
    """Zero pad (SAME, odd kernel) and fold (W, C) into the lane dim:
    (N, H, W, C) -> (N, H+kh-1, (W+kw-1)*C) float32."""
    N, H, W, C = x_nhwc.shape
    ph, pw = kh // 2, kw // 2
    xp = jnp.pad(x_nhwc.astype(jnp.float32),
                 ((0, 0), (ph, ph), (pw, pw), (0, 0)))
    return xp.reshape(N, H + 2 * ph, (W + 2 * pw) * C)


# ----------------------------------------------------------------------------
# Pallas kernel: block-diagonal row conv (+bias) [+BN partial stats] [+act]
# ----------------------------------------------------------------------------
def _conv_bd_kernel(x_ref, w_ref, b_ref, a_ref, o_ref, *stats_refs,
                    KH, TH, THp, act, emit_stats):
    # x_ref : (Hp, Wp*Cin)  f32 whole padded, folded image (resident per batch)
    # w_ref : (KH, Wp*Cin, W*CoutP) bf16 block-diagonal row-conv weights
    # b_ref : (1, W*CoutP) f32 (bias tiled over W);  a_ref : (1,1) f32 in SMEM
    # o_ref : (TH, W*CoutP) ; optional ssum/ssq : (1, W*CoutP) f32
    t = pl.program_id(1)
    r0 = pl.multiple_of(t * TH, TH)
    win = x_ref[pl.ds(r0, THp), :]                      # 8-aligned dynamic load
    nl = w_ref.shape[2]

    acc = jnp.zeros((TH, nl), jnp.float32)
    for kh in range(KH):                                # KH dense-lane matmuls
        lhs = win[kh:kh + TH, :].astype(jnp.bfloat16)   # static row slice
        acc = acc + jnp.dot(lhs, w_ref[kh],
                            preferred_element_type=jnp.float32)
    acc = acc + b_ref[...]

    if emit_stats:
        ssum_ref, ssq_ref = stats_refs
        ssum_ref[...] = jnp.sum(acc, axis=0, keepdims=True)
        ssq_ref[...] = jnp.sum(acc * acc, axis=0, keepdims=True)

    if act == 'prelu':
        alpha = a_ref[0, 0]
        acc = jnp.where(acc >= 0, acc, alpha * acc)
    elif act == 'tanh_scaled':                          # tanh then (x+1)/2
        acc = (jnp.tanh(acc) + 1.0) * 0.5

    o_ref[...] = acc.astype(o_ref.dtype)                # single dense store


def _block_diag_weights(w, W, CoutP):
    """(KH, KW, Cin, Cout) -> (KH, Wp*Cin, W*CoutP) bf16 block-diagonal weights
    so that a 1-D row conv becomes one matmul over the folded lane dim."""
    KH, KW, Cin, Cout = w.shape
    Wp = W + KW - 1
    wp = jnp.pad(jnp.asarray(w, jnp.float32),
                 ((0, 0), (0, 0), (0, 0), (0, CoutP - Cout)))
    onehot = (jnp.arange(Wp)[None, None, :] ==
              (jnp.arange(W)[:, None, None] + jnp.arange(KW)[None, :, None]))
    onehot = onehot.astype(jnp.float32)                  # (W, KW, Wp)
    bd = jnp.einsum('wkp,hkio->hpiwo', onehot, wp)       # (KH, Wp, Cin, W, CoutP)
    return bd.reshape(KH, Wp * Cin, W * CoutP).astype(jnp.bfloat16)


def conv_layer(xpf, layer_params, *, act='none', emit_stats=False,
               out_dtype=jnp.float32):
    """SAME conv (stride 1) on a padded, folded input.

    xpf: (N, H+KH-1, (W+KW-1)*Cin) f32.
    Returns y: (N, H, W, CoutP) [, per-channel (sum, sumsq) of the conv output].
    """
    w, b, _gamma, _beta, alpha = layer_params
    KH, KW, Cin, Cout = w.shape
    N, Hp, WpC = xpf.shape
    Wp = WpC // Cin
    W = Wp - (KW - 1)
    H = Hp - (KH - 1)
    CoutP = _round_up(Cout, 8)                           # lane-dense output
    NL = W * CoutP

    TH = _pick_row_tile(H, N, NL)
    T = H // TH
    THp = TH + KH - 1

    w_bd = _block_diag_weights(w, W, CoutP)              # (KH, Wp*Cin, NL)
    b_t = jnp.tile(jnp.pad(jnp.asarray(b, jnp.float32).reshape(Cout),
                           (0, CoutP - Cout)), W).reshape(1, NL)
    a2 = jnp.asarray(alpha, jnp.float32).reshape(1, 1)

    kernel = functools.partial(_conv_bd_kernel, KH=KH, TH=TH, THp=THp,
                               act=act, emit_stats=emit_stats)

    y_shape = jax.ShapeDtypeStruct((N, H, NL), out_dtype)
    y_spec = pl.BlockSpec((None, TH, NL), lambda n, t: (n, t, 0))
    in_specs = [
        # Whole padded image per batch (constant across t -> fetched once per n).
        pl.BlockSpec((None, Hp, WpC), lambda n, t: (n, 0, 0)),
        pl.BlockSpec((KH, Wp * Cin, NL), lambda n, t: (0, 0, 0)),   # resident
        pl.BlockSpec((1, NL), lambda n, t: (0, 0)),                 # resident
        pl.BlockSpec((1, 1), lambda n, t: (0, 0),
                     memory_space=pltpu.MemorySpace.SMEM),          # PReLU alpha
    ]
    if emit_stats:
        s_shape = jax.ShapeDtypeStruct((N, T, 1, NL), jnp.float32)
        s_spec = pl.BlockSpec((None, None, 1, NL), lambda n, t: (n, t, 0, 0))
        out_shape = (y_shape, s_shape, s_shape)
        out_specs = (y_spec, s_spec, s_spec)
    else:
        out_shape, out_specs = y_shape, y_spec

    res = pl.pallas_call(
        kernel,
        grid=(N, T),
        in_specs=in_specs,
        out_specs=out_specs,
        out_shape=out_shape,
        compiler_params=pltpu.CompilerParams(
            dimension_semantics=("parallel", "arbitrary")),
    )(xpf, w_bd, b_t, a2)

    if emit_stats:
        y, ssum, ssq = res
        ssum = ssum.reshape(N * T, W, CoutP).sum(axis=(0, 1))[:Cout]
        ssq = ssq.reshape(N * T, W, CoutP).sum(axis=(0, 1))[:Cout]
        stats = (ssum, ssq)
    else:
        y, stats = res, None
    return y.reshape(N, H, W, CoutP), stats


# ----------------------------------------------------------------------------
# Pallas kernel: BN apply (+PReLU) (+residual add) + write padded folded layout
# ----------------------------------------------------------------------------
def _bn_pad_kernel(y_ref, s_ref, t_ref, a_ref, *rest,
                   prelu, add, H, W, C, pho, pwo, phr, pwr):
    # y_ref : (H, W*C) f32 unnormalized conv output (folded, unpadded)
    # s/t   : (1, W*C) per-channel BN scale/shift, tiled over W
    # r_ref : (H+2*phr, (W+2*pwr)*C) residual, already in padded folded layout
    # o_ref : (H+2*pho, (W+2*pwo)*C) padded folded output for the next conv
    if add:
        r_ref, o_ref = rest
    else:
        (o_ref,) = rest
    v = y_ref[...] * s_ref[...] + t_ref[...]
    if prelu:
        alpha = a_ref[0, 0]
        v = jnp.where(v >= 0, v, alpha * v)
    if add:
        rfull = r_ref[...]
        v = v + rfull[phr:phr + H, pwr * C:(pwr + W) * C]
    o_ref[...] = jnp.zeros_like(o_ref)                  # SAME-pad border zeros
    o_ref[pho:pho + H, pwo * C:(pwo + W) * C] = v.astype(o_ref.dtype)


def bn_apply_pad(y_nhwc, stats, gamma, beta, *, alpha=None, prelu=False,
                 residual_pad=None, out_pads=(1, 1), eps=1e-5):
    """Training-mode BatchNorm2d (batch stats) + optional PReLU + optional
    fused residual add; output already padded & folded for the next 3x3 conv."""
    N, H, W, C = y_nhwc.shape
    M = N * H * W
    ssum, ssq = stats
    mean = ssum / M
    var = jnp.maximum(ssq / M - mean * mean, 0.0)        # cancellation guard
    scale = jnp.reshape(gamma, (C,)) * jax.lax.rsqrt(var + eps)
    shift = jnp.reshape(beta, (C,)) - mean * scale
    s_t = jnp.tile(scale, W).reshape(1, W * C).astype(jnp.float32)
    t_t = jnp.tile(shift, W).reshape(1, W * C).astype(jnp.float32)
    a = alpha if alpha is not None else jnp.zeros((1,), jnp.float32)
    a2 = jnp.asarray(a, jnp.float32).reshape(1, 1)

    pho, pwo = out_pads
    Hpo, Lpo = H + 2 * pho, (W + 2 * pwo) * C
    add = residual_pad is not None
    if add:
        _, Hpr, Lpr = residual_pad.shape
        phr = (Hpr - H) // 2
        pwr = (Lpr // C - W) // 2
    else:
        phr = pwr = 0

    kernel = functools.partial(_bn_pad_kernel, prelu=prelu, add=add,
                               H=H, W=W, C=C, pho=pho, pwo=pwo,
                               phr=phr, pwr=pwr)

    in_specs = [
        pl.BlockSpec((None, H, W * C), lambda n: (n, 0, 0)),
        pl.BlockSpec((1, W * C), lambda n: (0, 0)),
        pl.BlockSpec((1, W * C), lambda n: (0, 0)),
        pl.BlockSpec((1, 1), lambda n: (0, 0),
                     memory_space=pltpu.MemorySpace.SMEM),
    ]
    args = [y_nhwc.reshape(N, H, W * C), s_t, t_t, a2]
    if add:
        in_specs.append(pl.BlockSpec((None, Hpr, Lpr), lambda n: (n, 0, 0)))
        args.append(residual_pad)

    return pl.pallas_call(
        kernel,
        grid=(N,),
        in_specs=in_specs,
        out_specs=pl.BlockSpec((None, Hpo, Lpo), lambda n: (n, 0, 0)),
        out_shape=jax.ShapeDtypeStruct((N, Hpo, Lpo), jnp.float32),
        compiler_params=pltpu.CompilerParams(dimension_semantics=("parallel",)),
    )(*args)


# ----------------------------------------------------------------------------
# Glue ops (pure data movement, left to XLA)
# ----------------------------------------------------------------------------
def pixel_shuffle_nhwc(x, r):
    """Matches nn.PixelShuffle semantics (channel index = c*r*r + i*r + j)."""
    N, H, W, C = x.shape
    c = C // (r * r)
    x = x.reshape(N, H, W, c, r, r)
    x = jnp.transpose(x, (0, 1, 4, 2, 5, 3))
    return x.reshape(N, H * r, W * r, c)


# ----------------------------------------------------------------------------
# Deterministic parameter init (synthetic; mirrors PyTorch shapes/defaults)
# ----------------------------------------------------------------------------
def init_conv_params(key, kh, kw, cin, cout):
    k1, k2 = jax.random.split(key)
    fan_in = cin * kh * kw
    bound = 1.0 / (float(fan_in) ** 0.5)
    w = jax.random.uniform(k1, (kh, kw, cin, cout), jnp.float32, -bound, bound)
    b = jax.random.uniform(k2, (1, cout), jnp.float32, -bound, bound)
    gamma = jnp.ones((1, cout), jnp.float32)    # BatchNorm weight
    beta = jnp.zeros((1, cout), jnp.float32)    # BatchNorm bias
    alpha = jnp.full((1,), 0.25, jnp.float32)   # nn.PReLU default init
    return (w, b, gamma, beta, alpha)


def init_srresnet(key, *, scaling_factor=2, in_channels=3, depth_channels=16,
                  lkernel_size=9, skernel_size=3, block_count=2):
    assert scaling_factor in (2, 4, 8)
    n_sub = {2: 1, 4: 2, 8: 3}[scaling_factor]
    n_layers = 1 + 2 * block_count + 1 + n_sub + 1
    keys = iter(jax.random.split(key, n_layers))

    params = {}
    params['block1'] = init_conv_params(next(keys), lkernel_size, lkernel_size,
                                        in_channels, depth_channels)
    params['block2'] = [
        (init_conv_params(next(keys), skernel_size, skernel_size,
                          depth_channels, depth_channels),
         init_conv_params(next(keys), skernel_size, skernel_size,
                          depth_channels, depth_channels))
        for _ in range(block_count)
    ]
    params['block3'] = init_conv_params(next(keys), skernel_size, skernel_size,
                                        depth_channels, depth_channels)
    params['block4'] = [
        init_conv_params(next(keys), skernel_size, skernel_size,
                         depth_channels, depth_channels * 4)
        for _ in range(n_sub)
    ]
    params['block5'] = init_conv_params(next(keys), lkernel_size, lkernel_size,
                                        depth_channels, in_channels)
    return params


# ----------------------------------------------------------------------------
# Forward pass (matches SRResNet.forward)
# ----------------------------------------------------------------------------
def srresnet_forward(x_nchw, params):
    x = jnp.transpose(x_nchw, (0, 2, 3, 1)).astype(jnp.float32)   # NCHW -> NHWC
    sk = params['block3'][0].shape[0]                             # trunk kernel

    # block1: 9x9 conv + PReLU (fused in-kernel)
    w1 = params['block1'][0]
    p1, _ = conv_layer(pad_fold(x, w1.shape[0], w1.shape[1]),
                       params['block1'], act='prelu')
    # p1 in the 3x3-padded folded layout: first resblock input and all residuals.
    p1_pad = pad_fold(p1, sk, sk)

    # block2: residual blocks (conv+BN+PReLU, conv+BN, fused skip add + re-pad)
    h_pad = p1_pad
    for c1, c2 in params['block2']:
        y, st = conv_layer(h_pad, c1, emit_stats=True)
        z_pad = bn_apply_pad(y, st, c1[2], c1[3], alpha=c1[4], prelu=True)
        y, st = conv_layer(z_pad, c2, emit_stats=True)
        h_pad = bn_apply_pad(y, st, c2[2], c2[3], residual_pad=h_pad)

    # block3: 3x3 conv + BN ; P3 = P1 + P2 fused into the BN/pad kernel
    y, st = conv_layer(h_pad, params['block3'], emit_stats=True)
    cur_pad = bn_apply_pad(y, st, params['block3'][2], params['block3'][3],
                           residual_pad=p1_pad)

    # block4: sub-pixel convs (conv -> PixelShuffle -> PReLU).  Single shared
    # alpha PReLU commutes with PixelShuffle, so it is fused into the conv.
    shuf = None
    n_sub = len(params['block4'])
    for i, sp in enumerate(params['block4']):
        t4, _ = conv_layer(cur_pad, sp, act='prelu')
        shuf = pixel_shuffle_nhwc(t4, 2)
        if i + 1 < n_sub:
            cur_pad = pad_fold(shuf, sp[0].shape[0], sp[0].shape[1])

    # block5: 9x9 conv + tanh with (x+1)/2 fused; Cout padded 3 -> 8 in-kernel
    w5 = params['block5'][0]
    out, _ = conv_layer(pad_fold(shuf, w5.shape[0], w5.shape[1]),
                        params['block5'], act='tanh_scaled')
    out = out[..., :w5.shape[3]]                        # drop Cout padding
    return jnp.transpose(out, (0, 3, 1, 2))             # NHWC -> NCHW


# ----------------------------------------------------------------------------
if __name__ == "__main__":
    key = jax.random.PRNGKey(0)
    kx, kp = jax.random.split(key)

    # N=2, in_channels=3, 16x16 input, depth_channels=16, block_count=2,
    # scaling_factor=2 -> output (2, 3, 32, 32).
    x = jax.random.normal(kx, (2, 3, 16, 16), jnp.float32)
    params = init_srresnet(kp, scaling_factor=2, in_channels=3,
                           depth_channels=16, lkernel_size=9,
                           skernel_size=3, block_count=2)

    fwd = jax.jit(lambda inp: srresnet_forward(inp, params))
    out = jax.block_until_ready(fwd(x))

    assert out.shape == (2, 3, 32, 32), out.shape
    assert out.dtype == jnp.float32
    print("KERNEL_OK")
</pallas_src>

<mosaic_0001>
module attributes {stable_mosaic.version = 11 : i64} {
  func.func @_conv_bd_kernel(%arg0: i32, %arg1: i32, %arg2: memref<1x24x72xf32, #tpu.memory_space<vmem>>, %arg3: memref<9x72x256xbf16, #tpu.memory_space<vmem>>, %arg4: memref<1x256xf32, #tpu.memory_space<vmem>>, %arg5: memref<1x1xf32, #tpu.memory_space<smem>>, %arg6: memref<1x8x256xf32, #tpu.memory_space<vmem>>) attributes {dimension_semantics = [#tpu.dimension_semantics<parallel>, #tpu.dimension_semantics<arbitrary>], iteration_bounds = array<i64: 2, 2>, scalar_prefetch = 0 : i64, scratch_operands = 0 : i64, tpu.core_type = #tpu.core_type<tc>, window_params = [{transform_indices = @transform_0, window_bounds = array<i64: 1, 24, 72>}, {pipeline_mode = #tpu.pipeline_mode<synchronous>, transform_indices = @transform_1, window_bounds = array<i64: 9, 72, 256>}, {pipeline_mode = #tpu.pipeline_mode<synchronous>, transform_indices = @transform_2, window_bounds = array<i64: 1, 256>}, {transform_indices = @transform_3, window_bounds = array<i64: 1, 1>}, {transform_indices = @transform_4, window_bounds = array<i64: 1, 8, 256>}]} {
    %c8_i32 = arith.constant 8 : i32
    %0 = arith.muli %arg1, %c8_i32 : i32
    %1 = tpu.assume_multiple %0, 8 : i32
    %c0 = arith.constant 0 : index
    %2 = arith.index_cast %1 : i32 to index
    %c0_0 = arith.constant 0 : index
    %3 = vector.load %arg2[%c0, %2, %c0_0] : memref<1x24x72xf32, #tpu.memory_space<vmem>>, vector<1x16x72xf32>
    %4 = vector.shape_cast %3 : vector<1x16x72xf32> to vector<16x72xf32>
    %cst = arith.constant 0.000000e+00 : f32
    %5 = vector.broadcast %cst : f32 to vector<8x256xf32>
    %6 = vector.extract_strided_slice %4 {offsets = [0, 0], sizes = [8, 72], strides = [1, 1]} : vector<16x72xf32> to vector<8x72xf32>
    %7 = arith.truncf %6 : vector<8x72xf32> to vector<8x72xbf16>
    %c0_1 = arith.constant 0 : index
    %c0_2 = arith.constant 0 : index
    %c0_3 = arith.constant 0 : index
    %8 = vector.load %arg3[%c0_1, %c0_2, %c0_3] : memref<9x72x256xbf16, #tpu.memory_space<vmem>>, vector<1x72x256xbf16>
    %9 = vector.shape_cast %8 : vector<1x72x256xbf16> to vector<72x256xbf16>
    %cst_4 = arith.constant dense<0.000000e+00> : vector<8x256xf32>
    %10 = tpu.matmul %7, %9, %cst_4 {dimension_numbers = #tpu.dot_dimension_numbers<[1], [0], [0], [1], [0, 0, 1, 1], [], []>} : vector<8x72xbf16>, vector<72x256xbf16>, vector<8x256xf32> -> vector<8x256xf32>
    %11 = arith.addf %5, %10 : vector<8x256xf32>
    %12 = vector.extract_strided_slice %4 {offsets = [1, 0], sizes = [8, 72], strides = [1, 1]} : vector<16x72xf32> to vector<8x72xf32>
    %13 = arith.truncf %12 : vector<8x72xf32> to vector<8x72xbf16>
    %c1 = arith.constant 1 : index
    %c0_5 = arith.constant 0 : index
    %c0_6 = arith.constant 0 : index
    %14 = vector.load %arg3[%c1, %c0_5, %c0_6] : memref<9x72x256xbf16, #tpu.memory_space<vmem>>, vector<1x72x256xbf16>
    %15 = vector.shape_cast %14 : vector<1x72x256xbf16> to vector<72x256xbf16>
    %cst_7 = arith.constant dense<0.000000e+00> : vector<8x256xf32>
    %16 = tpu.matmul %13, %15, %cst_7 {dimension_numbers = #tpu.dot_dimension_numbers<[1], [0], [0], [1], [0, 0, 1, 1], [], []>} : vector<8x72xbf16>, vector<72x256xbf16>, vector<8x256xf32> -> vector<8x256xf32>
    %17 = arith.addf %11, %16 : vector<8x256xf32>
    %18 = vector.extract_strided_slice %4 {offsets = [2, 0], sizes = [8, 72], strides = [1, 1]} : vector<16x72xf32> to vector<8x72xf32>
    %19 = arith.truncf %18 : vector<8x72xf32> to vector<8x72xbf16>
    %c2 = arith.constant 2 : index
    %c0_8 = arith.constant 0 : index
    %c0_9 = arith.constant 0 : index
    %20 = vector.load %arg3[%c2, %c0_8, %c0_9] : memref<9x72x256xbf16, #tpu.memory_space<vmem>>, vector<1x72x256xbf16>
    %21 = vector.shape_cast %20 : vector<1x72x256xbf16> to vector<72x256xbf16>
    %cst_10 = arith.constant dense<0.000000e+00> : vector<8x256xf32>
    %22 = tpu.matmul %19, %21, %cst_10 {dimension_numbers = #tpu.dot_dimension_numbers<[1], [0], [0], [1], [0, 0, 1, 1], [], []>} : vector<8x72xbf16>, vector<72x256xbf16>, vector<8x256xf32> -> vector<8x256xf32>
    %23 = arith.addf %17, %22 : vector<8x256xf32>
    %24 = vector.extract_strided_slice %4 {offsets = [3, 0], sizes = [8, 72], strides = [1, 1]} : vector<16x72xf32> to vector<8x72xf32>
    %25 = arith.truncf %24 : vector<8x72xf32> to vector<8x72xbf16>
    %c3 = arith.constant 3 : index
    %c0_11 = arith.constant 0 : index
    %c0_12 = arith.constant 0 : index
    %26 = vector.load %arg3[%c3, %c0_11, %c0_12] : memref<9x72x256xbf16, #tpu.memory_space<vmem>>, vector<1x72x256xbf16>
    %27 = vector.shape_cast %26 : vector<1x72x256xbf16> to vector<72x256xbf16>
    %cst_13 = arith.constant dense<0.000000e+00> : vector<8x256xf32>
    %28 = tpu.matmul %25, %27, %cst_13 {dimension_numbers = #tpu.dot_dimension_numbers<[1], [0], [0], [1], [0, 0, 1, 1], [], []>} : vector<8x72xbf16>, vector<72x256xbf16>, vector<8x256xf32> -> vector<8x256xf32>
    %29 = arith.addf %23, %28 : vector<8x256xf32>
    %30 = vector.extract_strided_slice %4 {offsets = [4, 0], sizes = [8, 72], strides = [1, 1]} : vector<16x72xf32> to vector<8x72xf32>
    %31 = arith.truncf %30 : vector<8x72xf32> to vector<8x72xbf16>
    %c4 = arith.constant 4 : index
    %c0_14 = arith.constant 0 : index
    %c0_15 = arith.constant 0 : index
    %32 = vector.load %arg3[%c4, %c0_14, %c0_15] : memref<9x72x256xbf16, #tpu.memory_space<vmem>>, vector<1x72x256xbf16>
    %33 = vector.shape_cast %32 : vector<1x72x256xbf16> to vector<72x256xbf16>
    %cst_16 = arith.constant dense<0.000000e+00> : vector<8x256xf32>
    %34 = tpu.matmul %31, %33, %cst_16 {dimension_numbers = #tpu.dot_dimension_numbers<[1], [0], [0], [1], [0, 0, 1, 1], [], []>} : vector<8x72xbf16>, vector<72x256xbf16>, vector<8x256xf32> -> vector<8x256xf32>
    %35 = arith.addf %29, %34 : vector<8x256xf32>
    %36 = vector.extract_strided_slice %4 {offsets = [5, 0], sizes = [8, 72], strides = [1, 1]} : vector<16x72xf32> to vector<8x72xf32>
    %37 = arith.truncf %36 : vector<8x72xf32> to vector<8x72xbf16>
    %c5 = arith.constant 5 : index
    %c0_17 = arith.constant 0 : index
    %c0_18 = arith.constant 0 : index
    %38 = vector.load %arg3[%c5, %c0_17, %c0_18] : memref<9x72x256xbf16, #tpu.memory_space<vmem>>, vector<1x72x256xbf16>
    %39 = vector.shape_cast %38 : vector<1x72x256xbf16> to vector<72x256xbf16>
    %cst_19 = arith.constant dense<0.000000e+00> : vector<8x256xf32>
    %40 = tpu.matmul %37, %39, %cst_19 {dimension_numbers = #tpu.dot_dimension_numbers<[1], [0], [0], [1], [0, 0, 1, 1], [], []>} : vector<8x72xbf16>, vector<72x256xbf16>, vector<8x256xf32> -> vector<8x256xf32>
    %41 = arith.addf %35, %40 : vector<8x256xf32>
    %42 = vector.extract_strided_slice %4 {offsets = [6, 0], sizes = [8, 72], strides = [1, 1]} : vector<16x72xf32> to vector<8x72xf32>
    %43 = arith.truncf %42 : vector<8x72xf32> to vector<8x72xbf16>
    %c6 = arith.constant 6 : index
    %c0_20 = arith.constant 0 : index
    %c0_21 = arith.constant 0 : index
    %44 = vector.load %arg3[%c6, %c0_20, %c0_21] : memref<9x72x256xbf16, #tpu.memory_space<vmem>>, vector<1x72x256xbf16>
    %45 = vector.shape_cast %44 : vector<1x72x256xbf16> to vector<72x256xbf16>
    %cst_22 = arith.constant dense<0.000000e+00> : vector<8x256xf32>
    %46 = tpu.matmul %43, %45, %cst_22 {dimension_numbers = #tpu.dot_dimension_numbers<[1], [0], [0], [1], [0, 0, 1, 1], [], []>} : vector<8x72xbf16>, vector<72x256xbf16>, vector<8x256xf32> -> vector<8x256xf32>
    %47 = arith.addf %41, %46 : vector<8x256xf32>
    %48 = vector.extract_strided_slice %4 {offsets = [7, 0], sizes = [8, 72], strides = [1, 1]} : vector<16x72xf32> to vector<8x72xf32>
    %49 = arith.truncf %48 : vector<8x72xf32> to vector<8x72xbf16>
    %c7 = arith.constant 7 : index
    %c0_23 = arith.constant 0 : index
    %c0_24 = arith.constant 0 : index
    %50 = vector.load %arg3[%c7, %c0_23, %c0_24] : memref<9x72x256xbf16, #tpu.memory_space<vmem>>, vector<1x72x256xbf16>
    %51 = vector.shape_cast %50 : vector<1x72x256xbf16> to vector<72x256xbf16>
    %cst_25 = arith.constant dense<0.000000e+00> : vector<8x256xf32>
    %52 = tpu.matmul %49, %51, %cst_25 {dimension_numbers = #tpu.dot_dimension_numbers<[1], [0], [0], [1], [0, 0, 1, 1], [], []>} : vector<8x72xbf16>, vector<72x256xbf16>, vector<8x256xf32> -> vector<8x256xf32>
    %53 = arith.addf %47, %52 : vector<8x256xf32>
    %54 = vector.extract_strided_slice %4 {offsets = [8, 0], sizes = [8, 72], strides = [1, 1]} : vector<16x72xf32> to vector<8x72xf32>
    %55 = arith.truncf %54 : vector<8x72xf32> to vector<8x72xbf16>
    %c8 = arith.constant 8 : index
    %c0_26 = arith.constant 0 : index
    %c0_27 = arith.constant 0 : index
    %56 = vector.load %arg3[%c8, %c0_26, %c0_27] : memref<9x72x256xbf16, #tpu.memory_space<vmem>>, vector<1x72x256xbf16>
    %57 = vector.shape_cast %56 : vector<1x72x256xbf16> to vector<72x256xbf16>
    %cst_28 = arith.constant dense<0.000000e+00> : vector<8x256xf32>
    %58 = tpu.matmul %55, %57, %cst_28 {dimension_numbers = #tpu.dot_dimension_numbers<[1], [0], [0], [1], [0, 0, 1, 1], [], []>} : vector<8x72xbf16>, vector<72x256xbf16>, vector<8x256xf32> -> vector<8x256xf32>
    %59 = arith.addf %53, %58 : vector<8x256xf32>
    %c0_29 = arith.constant 0 : index
    %c0_30 = arith.constant 0 : index
    %60 = vector.load %arg4[%c0_29, %c0_30] : memref<1x256xf32, #tpu.memory_space<vmem>>, vector<1x256xf32>
    %61 = vector.broadcast %60 : vector<1x256xf32> to vector<8x256xf32>
    %62 = arith.addf %59, %61 : vector<8x256xf32>
    %c0_31 = arith.constant 0 : index
    %c0_32 = arith.constant 0 : index
    %63 = memref.load %arg5[%c0_31, %c0_32] : memref<1x1xf32, #tpu.memory_space<smem>>
    %cst_33 = arith.constant 0.000000e+00 : f32
    %64 = vector.broadcast %cst_33 : f32 to vector<8x256xf32>
    %65 = arith.cmpf oge, %62, %64 : vector<8x256xf32>
    %66 = vector.broadcast %63 : f32 to vector<8x256xf32>
    %67 = arith.mulf %66, %62 : vector<8x256xf32>
    %68 = arith.select %65, %62, %67 : vector<8x256xi1>, vector<8x256xf32>
    %c0_34 = arith.constant 0 : index
    %c0_35 = arith.constant 0 : index
    %c0_36 = arith.constant 0 : index
    %69 = vector.load %arg6[%c0_34, %c0_35, %c0_36] : memref<1x8x256xf32, #tpu.memory_space<vmem>>, vector<1x8x256xf32>
    %70 = vector.shape_cast %69 : vector<1x8x256xf32> to vector<8x256xf32>
    %71 = vector.shape_cast %68 : vector<8x256xf32> to vector<1x8x256xf32>
    tpu.vector_store %arg6[%c0_34, %c0_35, %c0_36], %71 {strides = array<i32>} : memref<1x8x256xf32, #tpu.memory_space<vmem>>, vector<1x8x256xf32>,
    return
  }
  func.func @transform_0(%arg0: i32, %arg1: i32) -> (i32, i32, i32) {
    %c0_i32 = arith.constant 0 : i32
    %c0_i32_0 = arith.constant 0 : i32
    %c0_i32_1 = arith.constant 0 : i32
    return %arg0, %c0_i32, %c0_i32_0 : i32, i32, i32
  }
  func.func @transform_1(%arg0: i32, %arg1: i32) -> (i32, i32, i32) {
    %c0_i32 = arith.constant 0 : i32
    %c0_i32_0 = arith.constant 0 : i32
    %c0_i32_1 = arith.constant 0 : i32
    %c0_i32_2 = arith.constant 0 : i32
    return %c0_i32, %c0_i32_0, %c0_i32_1 : i32, i32, i32
  }
  func.func @transform_2(%arg0: i32, %arg1: i32) -> (i32, i32) {
    %c0_i32 = arith.constant 0 : i32
    %c0_i32_0 = arith.constant 0 : i32
    %c0_i32_1 = arith.constant 0 : i32
    return %c0_i32, %c0_i32_0 : i32, i32
  }
  func.func @transform_3(%arg0: i32, %arg1: i32) -> (i32, i32) {
    %c0_i32 = arith.constant 0 : i32
    %c0_i32_0 = arith.constant 0 : i32
    %c0_i32_1 = arith.constant 0 : i32
    return %c0_i32, %c0_i32_0 : i32, i32
  }
  func.func @transform_4(%arg0: i32, %arg1: i32) -> (i32, i32, i32) {
    %c0_i32 = arith.constant 0 : i32
    %c0_i32_0 = arith.constant 0 : i32
    return %arg0, %arg1, %c0_i32 : i32, i32, i32
  }
}

module attributes {stable_mosaic.version = 11 : i64} {
  func.func @_conv_bd_kernel(%arg0: i32, %arg1: i32, %arg2: memref<1x18x288xf32, #tpu.memory_space<vmem>>, %arg3: memref<3x288x256xbf16, #tpu.memory_space<vmem>>, %arg4: memref<1x256xf32, #tpu.memory_space<vmem>>, %arg5: memref<1x1xf32, #tpu.memory_space<smem>>, %arg6: memref<1x8x256xf32, #tpu.memory_space<vmem>>, %arg7: memref<1x1x1x256xf32, #tpu.memory_space<vmem>>, %arg8: memref<1x1x1x256xf32, #tpu.memory_space<vmem>>) attributes {dimension_semantics = [#tpu.dimension_semantics<parallel>, #tpu.dimension_semantics<arbitrary>], iteration_bounds = array<i64: 2, 2>, scalar_prefetch = 0 : i64, scratch_operands = 0 : i64, tpu.core_type = #tpu.core_type<tc>, window_params = [{transform_indices = @transform_0, window_bounds = array<i64: 1, 18, 288>}, {pipeline_mode = #tpu.pipeline_mode<synchronous>, transform_indices = @transform_1, window_bounds = array<i64: 3, 288, 256>}, {pipeline_mode = #tpu.pipeline_mode<synchronous>, transform_indices = @transform_2, window_bounds = array<i64: 1, 256>}, {transform_indices = @transform_3, window_bounds = array<i64: 1, 1>}, {transform_indices = @transform_4, window_bounds = array<i64: 1, 8, 256>}, {transform_indices = @transform_5, window_bounds = array<i64: 1, 1, 1, 256>}, {transform_indices = @transform_6, window_bounds = array<i64: 1, 1, 1, 256>}]} {
    %c8_i32 = arith.constant 8 : i32
    %0 = arith.muli %arg1, %c8_i32 : i32
    %1 = tpu.assume_multiple %0, 8 : i32
    %c0 = arith.constant 0 : index
    %2 = arith.index_cast %1 : i32 to index
    %c0_0 = arith.constant 0 : index
    %3 = vector.load %arg2[%c0, %2, %c0_0] : memref<1x18x288xf32, #tpu.memory_space<vmem>>, vector<1x10x288xf32>
    %4 = vector.shape_cast %3 : vector<1x10x288xf32> to vector<10x288xf32>
    %cst = arith.constant 0.000000e+00 : f32
    %5 = vector.broadcast %cst : f32 to vector<8x256xf32>
    %6 = vector.extract_strided_slice %4 {offsets = [0, 0], sizes = [8, 288], strides = [1, 1]} : vector<10x288xf32> to vector<8x288xf32>
    %7 = arith.truncf %6 : vector<8x288xf32> to vector<8x288xbf16>
    %c0_1 = arith.constant 0 : index
    %c0_2 = arith.constant 0 : index
    %c0_3 = arith.constant 0 : index
    %8 = vector.load %arg3[%c0_1, %c0_2, %c0_3] : memref<3x288x256xbf16, #tpu.memory_space<vmem>>, vector<1x288x256xbf16>
    %9 = vector.shape_cast %8 : vector<1x288x256xbf16> to vector<288x256xbf16>
    %cst_4 = arith.constant dense<0.000000e+00> : vector<8x256xf32>
    %10 = tpu.matmul %7, %9, %cst_4 {dimension_numbers = #tpu.dot_dimension_numbers<[1], [0], [0], [1], [0, 0, 1, 1], [], []>} : vector<8x288xbf16>, vector<288x256xbf16>, vector<8x256xf32> -> vector<8x256xf32>
    %11 = arith.addf %5, %10 : vector<8x256xf32>
    %12 = vector.extract_strided_slice %4 {offsets = [1, 0], sizes = [8, 288], strides = [1, 1]} : vector<10x288xf32> to vector<8x288xf32>
    %13 = arith.truncf %12 : vector<8x288xf32> to vector<8x288xbf16>
    %c1 = arith.constant 1 : index
    %c0_5 = arith.constant 0 : index
    %c0_6 = arith.constant 0 : index
    %14 = vector.load %arg3[%c1, %c0_5, %c0_6] : memref<3x288x256xbf16, #tpu.memory_space<vmem>>, vector<1x288x256xbf16>
    %15 = vector.shape_cast %14 : vector<1x288x256xbf16> to vector<288x256xbf16>
    %cst_7 = arith.constant dense<0.000000e+00> : vector<8x256xf32>
    %16 = tpu.matmul %13, %15, %cst_7 {dimension_numbers = #tpu.dot_dimension_numbers<[1], [0], [0], [1], [0, 0, 1, 1], [], []>} : vector<8x288xbf16>, vector<288x256xbf16>, vector<8x256xf32> -> vector<8x256xf32>
    %17 = arith.addf %11, %16 : vector<8x256xf32>
    %18 = vector.extract_strided_slice %4 {offsets = [2, 0], sizes = [8, 288], strides = [1, 1]} : vector<10x288xf32> to vector<8x288xf32>
    %19 = arith.truncf %18 : vector<8x288xf32> to vector<8x288xbf16>
    %c2 = arith.constant 2 : index
    %c0_8 = arith.constant 0 : index
    %c0_9 = arith.constant 0 : index
    %20 = vector.load %arg3[%c2, %c0_8, %c0_9] : memref<3x288x256xbf16, #tpu.memory_space<vmem>>, vector<1x288x256xbf16>
    %21 = vector.shape_cast %20 : vector<1x288x256xbf16> to vector<288x256xbf16>
    %cst_10 = arith.constant dense<0.000000e+00> : vector<8x256xf32>
    %22 = tpu.matmul %19, %21, %cst_10 {dimension_numbers = #tpu.dot_dimension_numbers<[1], [0], [0], [1], [0, 0, 1, 1], [], []>} : vector<8x288xbf16>, vector<288x256xbf16>, vector<8x256xf32> -> vector<8x256xf32>
    %23 = arith.addf %17, %22 : vector<8x256xf32>
    %c0_11 = arith.constant 0 : index
    %c0_12 = arith.constant 0 : index
    %24 = vector.load %arg4[%c0_11, %c0_12] : memref<1x256xf32, #tpu.memory_space<vmem>>, vector<1x256xf32>
    %25 = vector.broadcast %24 : vector<1x256xf32> to vector<8x256xf32>
    %26 = arith.addf %23, %25 : vector<8x256xf32>
    %cst_13 = arith.constant dense<0.000000e+00> : vector<256xf32>
    %27 = vector.multi_reduction <add>, %26, %cst_13 [0] : vector<8x256xf32> to vector<256xf32>
    %28 = vector.shape_cast %27 : vector<256xf32> to vector<1x256xf32>
    %c0_14 = arith.constant 0 : index
    %c0_15 = arith.constant 0 : index
    %c0_16 = arith.constant 0 : index
    %c0_17 = arith.constant 0 : index
    %29 = vector.load %arg7[%c0_14, %c0_15, %c0_16, %c0_17] : memref<1x1x1x256xf32, #tpu.memory_space<vmem>>, vector<1x1x1x256xf32>
    %30 = vector.shape_cast %29 : vector<1x1x1x256xf32> to vector<1x256xf32>
    %31 = vector.shape_cast %28 : vector<1x256xf32> to vector<1x1x1x256xf32>
    tpu.vector_store %arg7[%c0_14, %c0_15, %c0_16, %c0_17], %31 {strides = array<i32>} : memref<1x1x1x256xf32, #tpu.memory_space<vmem>>, vector<1x1x1x256xf32>,
    %32 = arith.mulf %26, %26 : vector<8x256xf32>
    %cst_18 = arith.constant dense<0.000000e+00> : vector<256xf32>
    %33 = vector.multi_reduction <add>, %32, %cst_18 [0] : vector<8x256xf32> to vector<256xf32>
    %34 = vector.shape_cast %33 : vector<256xf32> to vector<1x256xf32>
    %c0_19 = arith.constant 0 : index
    %c0_20 = arith.constant 0 : index
    %c0_21 = arith.constant 0 : index
    %c0_22 = arith.constant 0 : index
    %35 = vector.load %arg8[%c0_19, %c0_20, %c0_21, %c0_22] : memref<1x1x1x256xf32, #tpu.memory_space<vmem>>, vector<1x1x1x256xf32>
    %36 = vector.shape_cast %35 : vector<1x1x1x256xf32> to vector<1x256xf32>
    %37 = vector.shape_cast %34 : vector<1x256xf32> to vector<1x1x1x256xf32>
    tpu.vector_store %arg8[%c0_19, %c0_20, %c0_21, %c0_22], %37 {strides = array<i32>} : memref<1x1x1x256xf32, #tpu.memory_space<vmem>>, vector<1x1x1x256xf32>,
    %c0_23 = arith.constant 0 : index
    %c0_24 = arith.constant 0 : index
    %c0_25 = arith.constant 0 : index
    %38 = vector.load %arg6[%c0_23, %c0_24, %c0_25] : memref<1x8x256xf32, #tpu.memory_space<vmem>>, vector<1x8x256xf32>
    %39 = vector.shape_cast %38 : vector<1x8x256xf32> to vector<8x256xf32>
    %40 = vector.shape_cast %26 : vector<8x256xf32> to vector<1x8x256xf32>
    tpu.vector_store %arg6[%c0_23, %c0_24, %c0_25], %40 {strides = array<i32>} : memref<1x8x256xf32, #tpu.memory_space<vmem>>, vector<1x8x256xf32>,
    return
  }
  func.func @transform_0(%arg0: i32, %arg1: i32) -> (i32, i32, i32) {
    %c0_i32 = arith.constant 0 : i32
    %c0_i32_0 = arith.constant 0 : i32
    %c0_i32_1 = arith.constant 0 : i32
    return %arg0, %c0_i32, %c0_i32_0 : i32, i32, i32
  }
  func.func @transform_1(%arg0: i32, %arg1: i32) -> (i32, i32, i32) {
    %c0_i32 = arith.constant 0 : i32
    %c0_i32_0 = arith.constant 0 : i32
    %c0_i32_1 = arith.constant 0 : i32
    %c0_i32_2 = arith.constant 0 : i32
    return %c0_i32, %c0_i32_0, %c0_i32_1 : i32, i32, i32
  }
  func.func @transform_2(%arg0: i32, %arg1: i32) -> (i32, i32) {
    %c0_i32 = arith.constant 0 : i32
    %c0_i32_0 = arith.constant 0 : i32
    %c0_i32_1 = arith.constant 0 : i32
    return %c0_i32, %c0_i32_0 : i32, i32
  }
  func.func @transform_3(%arg0: i32, %arg1: i32) -> (i32, i32) {
    %c0_i32 = arith.constant 0 : i32
    %c0_i32_0 = arith.constant 0 : i32
    %c0_i32_1 = arith.constant 0 : i32
    return %c0_i32, %c0_i32_0 : i32, i32
  }
  func.func @transform_4(%arg0: i32, %arg1: i32) -> (i32, i32, i32) {
    %c0_i32 = arith.constant 0 : i32
    %c0_i32_0 = arith.constant 0 : i32
    return %arg0, %arg1, %c0_i32 : i32, i32, i32
  }
  func.func @transform_5(%arg0: i32, %arg1: i32) -> (i32, i32, i32, i32) {
    %c0_i32 = arith.constant 0 : i32
    %c0_i32_0 = arith.constant 0 : i32
    %c0_i32_1 = arith.constant 0 : i32
    return %arg0, %arg1, %c0_i32, %c0_i32_0 : i32, i32, i32, i32
  }
  func.func @transform_6(%arg0: i32, %arg1: i32) -> (i32, i32, i32, i32) {
    %c0_i32 = arith.constant 0 : i32
    %c0_i32_0 = arith.constant 0 : i32
    %c0_i32_1 = arith.constant 0 : i32
    return %arg0, %arg1, %c0_i32, %c0_i32_0 : i32, i32, i32, i32
  }
}

module attributes {stable_mosaic.version = 11 : i64} {
  func.func @_bn_pad_kernel(%arg0: i32, %arg1: memref<1x16x256xf32, #tpu.memory_space<vmem>>, %arg2: memref<1x256xf32, #tpu.memory_space<vmem>>, %arg3: memref<1x256xf32, #tpu.memory_space<vmem>>, %arg4: memref<1x1xf32, #tpu.memory_space<smem>>, %arg5: memref<1x18x288xf32, #tpu.memory_space<vmem>>) attributes {dimension_semantics = [#tpu.dimension_semantics<parallel>], iteration_bounds = array<i64: 2>, scalar_prefetch = 0 : i64, scratch_operands = 0 : i64, tpu.core_type = #tpu.core_type<tc>, window_params = [{transform_indices = @transform_0, window_bounds = array<i64: 1, 16, 256>}, {pipeline_mode = #tpu.pipeline_mode<synchronous>, transform_indices = @transform_1, window_bounds = array<i64: 1, 256>}, {pipeline_mode = #tpu.pipeline_mode<synchronous>, transform_indices = @transform_2, window_bounds = array<i64: 1, 256>}, {transform_indices = @transform_3, window_bounds = array<i64: 1, 1>}, {transform_indices = @transform_4, window_bounds = array<i64: 1, 18, 288>}]} {
    %c0 = arith.constant 0 : index
    %c0_0 = arith.constant 0 : index
    %c0_1 = arith.constant 0 : index
    %0 = vector.load %arg1[%c0, %c0_0, %c0_1] : memref<1x16x256xf32, #tpu.memory_space<vmem>>, vector<1x16x256xf32>
    %1 = vector.shape_cast %0 : vector<1x16x256xf32> to vector<16x256xf32>
    %c0_2 = arith.constant 0 : index
    %c0_3 = arith.constant 0 : index
    %2 = vector.load %arg2[%c0_2, %c0_3] : memref<1x256xf32, #tpu.memory_space<vmem>>, vector<1x256xf32>
    %3 = vector.broadcast %2 : vector<1x256xf32> to vector<16x256xf32>
    %4 = arith.mulf %1, %3 : vector<16x256xf32>
    %c0_4 = arith.constant 0 : index
    %c0_5 = arith.constant 0 : index
    %5 = vector.load %arg3[%c0_4, %c0_5] : memref<1x256xf32, #tpu.memory_space<vmem>>, vector<1x256xf32>
    %6 = vector.broadcast %5 : vector<1x256xf32> to vector<16x256xf32>
    %7 = arith.addf %4, %6 : vector<16x256xf32>
    %c0_6 = arith.constant 0 : index
    %c0_7 = arith.constant 0 : index
    %8 = memref.load %arg4[%c0_6, %c0_7] : memref<1x1xf32, #tpu.memory_space<smem>>
    %cst = arith.constant 0.000000e+00 : f32
    %9 = vector.broadcast %cst : f32 to vector<16x256xf32>
    %10 = arith.cmpf oge, %7, %9 : vector<16x256xf32>
    %11 = vector.broadcast %8 : f32 to vector<16x256xf32>
    %12 = arith.mulf %11, %7 : vector<16x256xf32>
    %13 = arith.select %10, %7, %12 : vector<16x256xi1>, vector<16x256xf32>
    %cst_8 = arith.constant 0.000000e+00 : f32
    %14 = vector.broadcast %cst_8 : f32 to vector<18x288xf32>
    %c0_9 = arith.constant 0 : index
    %c0_10 = arith.constant 0 : index
    %c0_11 = arith.constant 0 : index
    %15 = vector.load %arg5[%c0_9, %c0_10, %c0_11] : memref<1x18x288xf32, #tpu.memory_space<vmem>>, vector<1x18x288xf32>
    %16 = vector.shape_cast %15 : vector<1x18x288xf32> to vector<18x288xf32>
    %17 = vector.shape_cast %14 : vector<18x288xf32> to vector<1x18x288xf32>
    tpu.vector_store %arg5[%c0_9, %c0_10, %c0_11], %17 {strides = array<i32>} : memref<1x18x288xf32, #tpu.memory_space<vmem>>, vector<1x18x288xf32>,
    %c0_12 = arith.constant 0 : index
    %c1 = arith.constant 1 : index
    %c16 = arith.constant 16 : index
    %18 = vector.load %arg5[%c0_12, %c1, %c16] : memref<1x18x288xf32, #tpu.memory_space<vmem>>, vector<1x16x256xf32>
    %19 = vector.shape_cast %18 : vector<1x16x256xf32> to vector<16x256xf32>
    %20 = vector.shape_cast %13 : vector<16x256xf32> to vector<1x16x256xf32>
    tpu.vector_store %arg5[%c0_12, %c1, %c16], %20 {strides = array<i32>} : memref<1x18x288xf32, #tpu.memory_space<vmem>>, vector<1x16x256xf32>,
    return
  }
  func.func @transform_0(%arg0: i32) -> (i32, i32, i32) {
    %c0_i32 = arith.constant 0 : i32
    %c0_i32_0 = arith.constant 0 : i32
    %c0_i32_1 = arith.constant 0 : i32
    return %arg0, %c0_i32, %c0_i32_0 : i32, i32, i32
  }
  func.func @transform_1(%arg0: i32) -> (i32, i32) {
    %c0_i32 = arith.constant 0 : i32
    %c0_i32_0 = arith.constant 0 : i32
    %c0_i32_1 = arith.constant 0 : i32
    return %c0_i32, %c0_i32_0 : i32, i32
  }
  func.func @transform_2(%arg0: i32) -> (i32, i32) {
    %c0_i32 = arith.constant 0 : i32
    %c0_i32_0 = arith.constant 0 : i32
    %c0_i32_1 = arith.constant 0 : i32
    return %c0_i32, %c0_i32_0 : i32, i32
  }
  func.func @transform_3(%arg0: i32) -> (i32, i32) {
    %c0_i32 = arith.constant 0 : i32
    %c0_i32_0 = arith.constant 0 : i32
    %c0_i32_1 = arith.constant 0 : i32
    return %c0_i32, %c0_i32_0 : i32, i32
  }
  func.func @transform_4(%arg0: i32) -> (i32, i32, i32) {
    %c0_i32 = arith.constant 0 : i32
    %c0_i32_0 = arith.constant 0 : i32
    %c0_i32_1 = arith.constant 0 : i32
    return %arg0, %c0_i32, %c0_i32_0 : i32, i32, i32
  }
}

module attributes {stable_mosaic.version = 11 : i64} {
  func.func @_bn_pad_kernel(%arg0: i32, %arg1: memref<1x16x256xf32, #tpu.memory_space<vmem>>, %arg2: memref<1x256xf32, #tpu.memory_space<vmem>>, %arg3: memref<1x256xf32, #tpu.memory_space<vmem>>, %arg4: memref<1x1xf32, #tpu.memory_space<smem>>, %arg5: memref<1x18x288xf32, #tpu.memory_space<vmem>>, %arg6: memref<1x18x288xf32, #tpu.memory_space<vmem>>) attributes {dimension_semantics = [#tpu.dimension_semantics<parallel>], iteration_bounds = array<i64: 2>, scalar_prefetch = 0 : i64, scratch_operands = 0 : i64, tpu.core_type = #tpu.core_type<tc>, window_params = [{transform_indices = @transform_0, window_bounds = array<i64: 1, 16, 256>}, {pipeline_mode = #tpu.pipeline_mode<synchronous>, transform_indices = @transform_1, window_bounds = array<i64: 1, 256>}, {pipeline_mode = #tpu.pipeline_mode<synchronous>, transform_indices = @transform_2, window_bounds = array<i64: 1, 256>}, {transform_indices = @transform_3, window_bounds = array<i64: 1, 1>}, {transform_indices = @transform_4, window_bounds = array<i64: 1, 18, 288>}, {transform_indices = @transform_5, window_bounds = array<i64: 1, 18, 288>}]} {
    %c0 = arith.constant 0 : index
    %c0_0 = arith.constant 0 : index
    %c0_1 = arith.constant 0 : index
    %0 = vector.load %arg1[%c0, %c0_0, %c0_1] : memref<1x16x256xf32, #tpu.memory_space<vmem>>, vector<1x16x256xf32>
    %1 = vector.shape_cast %0 : vector<1x16x256xf32> to vector<16x256xf32>
    %c0_2 = arith.constant 0 : index
    %c0_3 = arith.constant 0 : index
    %2 = vector.load %arg2[%c0_2, %c0_3] : memref<1x256xf32, #tpu.memory_space<vmem>>, vector<1x256xf32>
    %3 = vector.broadcast %2 : vector<1x256xf32> to vector<16x256xf32>
    %4 = arith.mulf %1, %3 : vector<16x256xf32>
    %c0_4 = arith.constant 0 : index
    %c0_5 = arith.constant 0 : index
    %5 = vector.load %arg3[%c0_4, %c0_5] : memref<1x256xf32, #tpu.memory_space<vmem>>, vector<1x256xf32>
    %6 = vector.broadcast %5 : vector<1x256xf32> to vector<16x256xf32>
    %7 = arith.addf %4, %6 : vector<16x256xf32>
    %c0_6 = arith.constant 0 : index
    %c0_7 = arith.constant 0 : index
    %c0_8 = arith.constant 0 : index
    %8 = vector.load %arg5[%c0_6, %c0_7, %c0_8] : memref<1x18x288xf32, #tpu.memory_space<vmem>>, vector<1x18x288xf32>
    %9 = vector.shape_cast %8 : vector<1x18x288xf32> to vector<18x288xf32>
    %10 = vector.extract_strided_slice %9 {offsets = [1, 16], sizes = [16, 256], strides = [1, 1]} : vector<18x288xf32> to vector<16x256xf32>
    %11 = arith.addf %7, %10 : vector<16x256xf32>
    %cst = arith.constant 0.000000e+00 : f32
    %12 = vector.broadcast %cst : f32 to vector<18x288xf32>
    %c0_9 = arith.constant 0 : index
    %c0_10 = arith.constant 0 : index
    %c0_11 = arith.constant 0 : index
    %13 = vector.load %arg6[%c0_9, %c0_10, %c0_11] : memref<1x18x288xf32, #tpu.memory_space<vmem>>, vector<1x18x288xf32>
    %14 = vector.shape_cast %13 : vector<1x18x288xf32> to vector<18x288xf32>
    %15 = vector.shape_cast %12 : vector<18x288xf32> to vector<1x18x288xf32>
    tpu.vector_store %arg6[%c0_9, %c0_10, %c0_11], %15 {strides = array<i32>} : memref<1x18x288xf32, #tpu.memory_space<vmem>>, vector<1x18x288xf32>,
    %c0_12 = arith.constant 0 : index
    %c1 = arith.constant 1 : index
    %c16 = arith.constant 16 : index
    %16 = vector.load %arg6[%c0_12, %c1, %c16] : memref<1x18x288xf32, #tpu.memory_space<vmem>>, vector<1x16x256xf32>
    %17 = vector.shape_cast %16 : vector<1x16x256xf32> to vector<16x256xf32>
    %18 = vector.shape_cast %11 : vector<16x256xf32> to vector<1x16x256xf32>
    tpu.vector_store %arg6[%c0_12, %c1, %c16], %18 {strides = array<i32>} : memref<1x18x288xf32, #tpu.memory_space<vmem>>, vector<1x16x256xf32>,
    return
  }
  func.func @transform_0(%arg0: i32) -> (i32, i32, i32) {
    %c0_i32 = arith.constant 0 : i32
    %c0_i32_0 = arith.constant 0 : i32
    %c0_i32_1 = arith.constant 0 : i32
    return %arg0, %c0_i32, %c0_i32_0 : i32, i32, i32
  }
  func.func @transform_1(%arg0: i32) -> (i32, i32) {
    %c0_i32 = arith.constant 0 : i32
    %c0_i32_0 = arith.constant 0 : i32
    %c0_i32_1 = arith.constant 0 : i32
    return %c0_i32, %c0_i32_0 : i32, i32
  }
  func.func @transform_2(%arg0: i32) -> (i32, i32) {
    %c0_i32 = arith.constant 0 : i32
    %c0_i32_0 = arith.constant 0 : i32
    %c0_i32_1 = arith.constant 0 : i32
    return %c0_i32, %c0_i32_0 : i32, i32
  }
  func.func @transform_3(%arg0: i32) -> (i32, i32) {
    %c0_i32 = arith.constant 0 : i32
    %c0_i32_0 = arith.constant 0 : i32
    %c0_i32_1 = arith.constant 0 : i32
    return %c0_i32, %c0_i32_0 : i32, i32
  }
  func.func @transform_4(%arg0: i32) -> (i32, i32, i32) {
    %c0_i32 = arith.constant 0 : i32
    %c0_i32_0 = arith.constant 0 : i32
    %c0_i32_1 = arith.constant 0 : i32
    return %arg0, %c0_i32, %c0_i32_0 : i32, i32, i32
  }
  func.func @transform_5(%arg0: i32) -> (i32, i32, i32) {
    %c0_i32 = arith.constant 0 : i32
    %c0_i32_0 = arith.constant 0 : i32
    %c0_i32_1 = arith.constant 0 : i32
    return %arg0, %c0_i32, %c0_i32_0 : i32, i32, i32
  }
}

module attributes {stable_mosaic.version = 11 : i64} {
  func.func @_conv_bd_kernel(%arg0: i32, %arg1: i32, %arg2: memref<1x18x288xf32, #tpu.memory_space<vmem>>, %arg3: memref<3x288x1024xbf16, #tpu.memory_space<vmem>>, %arg4: memref<1x1024xf32, #tpu.memory_space<vmem>>, %arg5: memref<1x1xf32, #tpu.memory_space<smem>>, %arg6: memref<1x8x1024xf32, #tpu.memory_space<vmem>>) attributes {dimension_semantics = [#tpu.dimension_semantics<parallel>, #tpu.dimension_semantics<arbitrary>], iteration_bounds = array<i64: 2, 2>, scalar_prefetch = 0 : i64, scratch_operands = 0 : i64, tpu.core_type = #tpu.core_type<tc>, window_params = [{transform_indices = @transform_0, window_bounds = array<i64: 1, 18, 288>}, {pipeline_mode = #tpu.pipeline_mode<synchronous>, transform_indices = @transform_1, window_bounds = array<i64: 3, 288, 1024>}, {pipeline_mode = #tpu.pipeline_mode<synchronous>, transform_indices = @transform_2, window_bounds = array<i64: 1, 1024>}, {transform_indices = @transform_3, window_bounds = array<i64: 1, 1>}, {transform_indices = @transform_4, window_bounds = array<i64: 1, 8, 1024>}]} {
    %c8_i32 = arith.constant 8 : i32
    %0 = arith.muli %arg1, %c8_i32 : i32
    %1 = tpu.assume_multiple %0, 8 : i32
    %c0 = arith.constant 0 : index
    %2 = arith.index_cast %1 : i32 to index
    %c0_0 = arith.constant 0 : index
    %3 = vector.load %arg2[%c0, %2, %c0_0] : memref<1x18x288xf32, #tpu.memory_space<vmem>>, vector<1x10x288xf32>
    %4 = vector.shape_cast %3 : vector<1x10x288xf32> to vector<10x288xf32>
    %cst = arith.constant 0.000000e+00 : f32
    %5 = vector.broadcast %cst : f32 to vector<8x1024xf32>
    %6 = vector.extract_strided_slice %4 {offsets = [0, 0], sizes = [8, 288], strides = [1, 1]} : vector<10x288xf32> to vector<8x288xf32>
    %7 = arith.truncf %6 : vector<8x288xf32> to vector<8x288xbf16>
    %c0_1 = arith.constant 0 : index
    %c0_2 = arith.constant 0 : index
    %c0_3 = arith.constant 0 : index
    %8 = vector.load %arg3[%c0_1, %c0_2, %c0_3] : memref<3x288x1024xbf16, #tpu.memory_space<vmem>>, vector<1x288x1024xbf16>
    %9 = vector.shape_cast %8 : vector<1x288x1024xbf16> to vector<288x1024xbf16>
    %cst_4 = arith.constant dense<0.000000e+00> : vector<8x1024xf32>
    %10 = tpu.matmul %7, %9, %cst_4 {dimension_numbers = #tpu.dot_dimension_numbers<[1], [0], [0], [1], [0, 0, 1, 1], [], []>} : vector<8x288xbf16>, vector<288x1024xbf16>, vector<8x1024xf32> -> vector<8x1024xf32>
    %11 = arith.addf %5, %10 : vector<8x1024xf32>
    %12 = vector.extract_strided_slice %4 {offsets = [1, 0], sizes = [8, 288], strides = [1, 1]} : vector<10x288xf32> to vector<8x288xf32>
    %13 = arith.truncf %12 : vector<8x288xf32> to vector<8x288xbf16>
    %c1 = arith.constant 1 : index
    %c0_5 = arith.constant 0 : index
    %c0_6 = arith.constant 0 : index
    %14 = vector.load %arg3[%c1, %c0_5, %c0_6] : memref<3x288x1024xbf16, #tpu.memory_space<vmem>>, vector<1x288x1024xbf16>
    %15 = vector.shape_cast %14 : vector<1x288x1024xbf16> to vector<288x1024xbf16>
    %cst_7 = arith.constant dense<0.000000e+00> : vector<8x1024xf32>
    %16 = tpu.matmul %13, %15, %cst_7 {dimension_numbers = #tpu.dot_dimension_numbers<[1], [0], [0], [1], [0, 0, 1, 1], [], []>} : vector<8x288xbf16>, vector<288x1024xbf16>, vector<8x1024xf32> -> vector<8x1024xf32>
    %17 = arith.addf %11, %16 : vector<8x1024xf32>
    %18 = vector.extract_strided_slice %4 {offsets = [2, 0], sizes = [8, 288], strides = [1, 1]} : vector<10x288xf32> to vector<8x288xf32>
    %19 = arith.truncf %18 : vector<8x288xf32> to vector<8x288xbf16>
    %c2 = arith.constant 2 : index
    %c0_8 = arith.constant 0 : index
    %c0_9 = arith.constant 0 : index
    %20 = vector.load %arg3[%c2, %c0_8, %c0_9] : memref<3x288x1024xbf16, #tpu.memory_space<vmem>>, vector<1x288x1024xbf16>
    %21 = vector.shape_cast %20 : vector<1x288x1024xbf16> to vector<288x1024xbf16>
    %cst_10 = arith.constant dense<0.000000e+00> : vector<8x1024xf32>
    %22 = tpu.matmul %19, %21, %cst_10 {dimension_numbers = #tpu.dot_dimension_numbers<[1], [0], [0], [1], [0, 0, 1, 1], [], []>} : vector<8x288xbf16>, vector<288x1024xbf16>, vector<8x1024xf32> -> vector<8x1024xf32>
    %23 = arith.addf %17, %22 : vector<8x1024xf32>
    %c0_11 = arith.constant 0 : index
    %c0_12 = arith.constant 0 : index
    %24 = vector.load %arg4[%c0_11, %c0_12] : memref<1x1024xf32, #tpu.memory_space<vmem>>, vector<1x1024xf32>
    %25 = vector.broadcast %24 : vector<1x1024xf32> to vector<8x1024xf32>
    %26 = arith.addf %23, %25 : vector<8x1024xf32>
    %c0_13 = arith.constant 0 : index
    %c0_14 = arith.constant 0 : index
    %27 = memref.load %arg5[%c0_13, %c0_14] : memref<1x1xf32, #tpu.memory_space<smem>>
    %cst_15 = arith.constant 0.000000e+00 : f32
    %28 = vector.broadcast %cst_15 : f32 to vector<8x1024xf32>
    %29 = arith.cmpf oge, %26, %28 : vector<8x1024xf32>
    %30 = vector.broadcast %27 : f32 to vector<8x1024xf32>
    %31 = arith.mulf %30, %26 : vector<8x1024xf32>
    %32 = arith.select %29, %26, %31 : vector<8x1024xi1>, vector<8x1024xf32>
    %c0_16 = arith.constant 0 : index
    %c0_17 = arith.constant 0 : index
    %c0_18 = arith.constant 0 : index
    %33 = vector.load %arg6[%c0_16, %c0_17, %c0_18] : memref<1x8x1024xf32, #tpu.memory_space<vmem>>, vector<1x8x1024xf32>
    %34 = vector.shape_cast %33 : vector<1x8x1024xf32> to vector<8x1024xf32>
    %35 = vector.shape_cast %32 : vector<8x1024xf32> to vector<1x8x1024xf32>
    tpu.vector_store %arg6[%c0_16, %c0_17, %c0_18], %35 {strides = array<i32>} : memref<1x8x1024xf32, #tpu.memory_space<vmem>>, vector<1x8x1024xf32>,
    return
  }
  func.func @transform_0(%arg0: i32, %arg1: i32) -> (i32, i32, i32) {
    %c0_i32 = arith.constant 0 : i32
    %c0_i32_0 = arith.constant 0 : i32
    %c0_i32_1 = arith.constant 0 : i32
    return %arg0, %c0_i32, %c0_i32_0 : i32, i32, i32
  }
  func.func @transform_1(%arg0: i32, %arg1: i32) -> (i32, i32, i32) {
    %c0_i32 = arith.constant 0 : i32
    %c0_i32_0 = arith.constant 0 : i32
    %c0_i32_1 = arith.constant 0 : i32
    %c0_i32_2 = arith.constant 0 : i32
    return %c0_i32, %c0_i32_0, %c0_i32_1 : i32, i32, i32
  }
  func.func @transform_2(%arg0: i32, %arg1: i32) -> (i32, i32) {
    %c0_i32 = arith.constant 0 : i32
    %c0_i32_0 = arith.constant 0 : i32
    %c0_i32_1 = arith.constant 0 : i32
    return %c0_i32, %c0_i32_0 : i32, i32
  }
  func.func @transform_3(%arg0: i32, %arg1: i32) -> (i32, i32) {
    %c0_i32 = arith.constant 0 : i32
    %c0_i32_0 = arith.constant 0 : i32
    %c0_i32_1 = arith.constant 0 : i32
    return %c0_i32, %c0_i32_0 : i32, i32
  }
  func.func @transform_4(%arg0: i32, %arg1: i32) -> (i32, i32, i32) {
    %c0_i32 = arith.constant 0 : i32
    %c0_i32_0 = arith.constant 0 : i32
    return %arg0, %arg1, %c0_i32 : i32, i32, i32
  }
}

module attributes {stable_mosaic.version = 11 : i64} {
  func.func @_conv_bd_kernel(%arg0: i32, %arg1: i32, %arg2: memref<1x40x640xf32, #tpu.memory_space<vmem>>, %arg3: memref<9x640x256xbf16, #tpu.memory_space<vmem>>, %arg4: memref<1x256xf32, #tpu.memory_space<vmem>>, %arg5: memref<1x1xf32, #tpu.memory_space<smem>>, %arg6: memref<1x16x256xf32, #tpu.memory_space<vmem>>) attributes {dimension_semantics = [#tpu.dimension_semantics<parallel>, #tpu.dimension_semantics<arbitrary>], iteration_bounds = array<i64: 2, 2>, scalar_prefetch = 0 : i64, scratch_operands = 0 : i64, tpu.core_type = #tpu.core_type<tc>, window_params = [{transform_indices = @transform_0, window_bounds = array<i64: 1, 40, 640>}, {pipeline_mode = #tpu.pipeline_mode<synchronous>, transform_indices = @transform_1, window_bounds = array<i64: 9, 640, 256>}, {pipeline_mode = #tpu.pipeline_mode<synchronous>, transform_indices = @transform_2, window_bounds = array<i64: 1, 256>}, {transform_indices = @transform_3, window_bounds = array<i64: 1, 1>}, {transform_indices = @transform_4, window_bounds = array<i64: 1, 16, 256>}]} {
    %c16_i32 = arith.constant 16 : i32
    %0 = arith.muli %arg1, %c16_i32 : i32
    %1 = tpu.assume_multiple %0, 16 : i32
    %c0 = arith.constant 0 : index
    %2 = arith.index_cast %1 : i32 to index
    %c0_0 = arith.constant 0 : index
    %3 = vector.load %arg2[%c0, %2, %c0_0] : memref<1x40x640xf32, #tpu.memory_space<vmem>>, vector<1x24x640xf32>
    %4 = vector.shape_cast %3 : vector<1x24x640xf32> to vector<24x640xf32>
    %cst = arith.constant 0.000000e+00 : f32
    %5 = vector.broadcast %cst : f32 to vector<16x256xf32>
    %6 = vector.extract_strided_slice %4 {offsets = [0, 0], sizes = [16, 640], strides = [1, 1]} : vector<24x640xf32> to vector<16x640xf32>
    %7 = arith.truncf %6 : vector<16x640xf32> to vector<16x640xbf16>
    %c0_1 = arith.constant 0 : index
    %c0_2 = arith.constant 0 : index
    %c0_3 = arith.constant 0 : index
    %8 = vector.load %arg3[%c0_1, %c0_2, %c0_3] : memref<9x640x256xbf16, #tpu.memory_space<vmem>>, vector<1x640x256xbf16>
    %9 = vector.shape_cast %8 : vector<1x640x256xbf16> to vector<640x256xbf16>
    %cst_4 = arith.constant dense<0.000000e+00> : vector<16x256xf32>
    %10 = tpu.matmul %7, %9, %cst_4 {dimension_numbers = #tpu.dot_dimension_numbers<[1], [0], [0], [1], [0, 0, 1, 1], [], []>} : vector<16x640xbf16>, vector<640x256xbf16>, vector<16x256xf32> -> vector<16x256xf32>
    %11 = arith.addf %5, %10 : vector<16x256xf32>
    %12 = vector.extract_strided_slice %4 {offsets = [1, 0], sizes = [16, 640], strides = [1, 1]} : vector<24x640xf32> to vector<16x640xf32>
    %13 = arith.truncf %12 : vector<16x640xf32> to vector<16x640xbf16>
    %c1 = arith.constant 1 : index
    %c0_5 = arith.constant 0 : index
    %c0_6 = arith.constant 0 : index
    %14 = vector.load %arg3[%c1, %c0_5, %c0_6] : memref<9x640x256xbf16, #tpu.memory_space<vmem>>, vector<1x640x256xbf16>
    %15 = vector.shape_cast %14 : vector<1x640x256xbf16> to vector<640x256xbf16>
    %cst_7 = arith.constant dense<0.000000e+00> : vector<16x256xf32>
    %16 = tpu.matmul %13, %15, %cst_7 {dimension_numbers = #tpu.dot_dimension_numbers<[1], [0], [0], [1], [0, 0, 1, 1], [], []>} : vector<16x640xbf16>, vector<640x256xbf16>, vector<16x256xf32> -> vector<16x256xf32>
    %17 = arith.addf %11, %16 : vector<16x256xf32>
    %18 = vector.extract_strided_slice %4 {offsets = [2, 0], sizes = [16, 640], strides = [1, 1]} : vector<24x640xf32> to vector<16x640xf32>
    %19 = arith.truncf %18 : vector<16x640xf32> to vector<16x640xbf16>
    %c2 = arith.constant 2 : index
    %c0_8 = arith.constant 0 : index
    %c0_9 = arith.constant 0 : index
    %20 = vector.load %arg3[%c2, %c0_8, %c0_9] : memref<9x640x256xbf16, #tpu.memory_space<vmem>>, vector<1x640x256xbf16>
    %21 = vector.shape_cast %20 : vector<1x640x256xbf16> to vector<640x256xbf16>
    %cst_10 = arith.constant dense<0.000000e+00> : vector<16x256xf32>
    %22 = tpu.matmul %19, %21, %cst_10 {dimension_numbers = #tpu.dot_dimension_numbers<[1], [0], [0], [1], [0, 0, 1, 1], [], []>} : vector<16x640xbf16>, vector<640x256xbf16>, vector<16x256xf32> -> vector<16x256xf32>
    %23 = arith.addf %17, %22 : vector<16x256xf32>
    %24 = vector.extract_strided_slice %4 {offsets = [3, 0], sizes = [16, 640], strides = [1, 1]} : vector<24x640xf32> to vector<16x640xf32>
    %25 = arith.truncf %24 : vector<16x640xf32> to vector<16x640xbf16>
    %c3 = arith.constant 3 : index
    %c0_11 = arith.constant 0 : index
    %c0_12 = arith.constant 0 : index
    %26 = vector.load %arg3[%c3, %c0_11, %c0_12] : memref<9x640x256xbf16, #tpu.memory_space<vmem>>, vector<1x640x256xbf16>
    %27 = vector.shape_cast %26 : vector<1x640x256xbf16> to vector<640x256xbf16>
    %cst_13 = arith.constant dense<0.000000e+00> : vector<16x256xf32>
    %28 = tpu.matmul %25, %27, %cst_13 {dimension_numbers = #tpu.dot_dimension_numbers<[1], [0], [0], [1], [0, 0, 1, 1], [], []>} : vector<16x640xbf16>, vector<640x256xbf16>, vector<16x256xf32> -> vector<16x256xf32>
    %29 = arith.addf %23, %28 : vector<16x256xf32>
    %30 = vector.extract_strided_slice %4 {offsets = [4, 0], sizes = [16, 640], strides = [1, 1]} : vector<24x640xf32> to vector<16x640xf32>
    %31 = arith.truncf %30 : vector<16x640xf32> to vector<16x640xbf16>
    %c4 = arith.constant 4 : index
    %c0_14 = arith.constant 0 : index
    %c0_15 = arith.constant 0 : index
    %32 = vector.load %arg3[%c4, %c0_14, %c0_15] : memref<9x640x256xbf16, #tpu.memory_space<vmem>>, vector<1x640x256xbf16>
    %33 = vector.shape_cast %32 : vector<1x640x256xbf16> to vector<640x256xbf16>
    %cst_16 = arith.constant dense<0.000000e+00> : vector<16x256xf32>
    %34 = tpu.matmul %31, %33, %cst_16 {dimension_numbers = #tpu.dot_dimension_numbers<[1], [0], [0], [1], [0, 0, 1, 1], [], []>} : vector<16x640xbf16>, vector<640x256xbf16>, vector<16x256xf32> -> vector<16x256xf32>
    %35 = arith.addf %29, %34 : vector<16x256xf32>
    %36 = vector.extract_strided_slice %4 {offsets = [5, 0], sizes = [16, 640], strides = [1, 1]} : vector<24x640xf32> to vector<16x640xf32>
    %37 = arith.truncf %36 : vector<16x640xf32> to vector<16x640xbf16>
    %c5 = arith.constant 5 : index
    %c0_17 = arith.constant 0 : index
    %c0_18 = arith.constant 0 : index
    %38 = vector.load %arg3[%c5, %c0_17, %c0_18] : memref<9x640x256xbf16, #tpu.memory_space<vmem>>, vector<1x640x256xbf16>
    %39 = vector.shape_cast %38 : vector<1x640x256xbf16> to vector<640x256xbf16>
    %cst_19 = arith.constant dense<0.000000e+00> : vector<16x256xf32>
    %40 = tpu.matmul %37, %39, %cst_19 {dimension_numbers = #tpu.dot_dimension_numbers<[1], [0], [0], [1], [0, 0, 1, 1], [], []>} : vector<16x640xbf16>, vector<640x256xbf16>, vector<16x256xf32> -> vector<16x256xf32>
    %41 = arith.addf %35, %40 : vector<16x256xf32>
    %42 = vector.extract_strided_slice %4 {offsets = [6, 0], sizes = [16, 640], strides = [1, 1]} : vector<24x640xf32> to vector<16x640xf32>
    %43 = arith.truncf %42 : vector<16x640xf32> to vector<16x640xbf16>
    %c6 = arith.constant 6 : index
    %c0_20 = arith.constant 0 : index
    %c0_21 = arith.constant 0 : index
    %44 = vector.load %arg3[%c6, %c0_20, %c0_21] : memref<9x640x256xbf16, #tpu.memory_space<vmem>>, vector<1x640x256xbf16>
    %45 = vector.shape_cast %44 : vector<1x640x256xbf16> to vector<640x256xbf16>
    %cst_22 = arith.constant dense<0.000000e+00> : vector<16x256xf32>
    %46 = tpu.matmul %43, %45, %cst_22 {dimension_numbers = #tpu.dot_dimension_numbers<[1], [0], [0], [1], [0, 0, 1, 1], [], []>} : vector<16x640xbf16>, vector<640x256xbf16>, vector<16x256xf32> -> vector<16x256xf32>
    %47 = arith.addf %41, %46 : vector<16x256xf32>
    %48 = vector.extract_strided_slice %4 {offsets = [7, 0], sizes = [16, 640], strides = [1, 1]} : vector<24x640xf32> to vector<16x640xf32>
    %49 = arith.truncf %48 : vector<16x640xf32> to vector<16x640xbf16>
    %c7 = arith.constant 7 : index
    %c0_23 = arith.constant 0 : index
    %c0_24 = arith.constant 0 : index
    %50 = vector.load %arg3[%c7, %c0_23, %c0_24] : memref<9x640x256xbf16, #tpu.memory_space<vmem>>, vector<1x640x256xbf16>
    %51 = vector.shape_cast %50 : vector<1x640x256xbf16> to vector<640x256xbf16>
    %cst_25 = arith.constant dense<0.000000e+00> : vector<16x256xf32>
    %52 = tpu.matmul %49, %51, %cst_25 {dimension_numbers = #tpu.dot_dimension_numbers<[1], [0], [0], [1], [0, 0, 1, 1], [], []>} : vector<16x640xbf16>, vector<640x256xbf16>, vector<16x256xf32> -> vector<16x256xf32>
    %53 = arith.addf %47, %52 : vector<16x256xf32>
    %54 = vector.extract_strided_slice %4 {offsets = [8, 0], sizes = [16, 640], strides = [1, 1]} : vector<24x640xf32> to vector<16x640xf32>
    %55 = arith.truncf %54 : vector<16x640xf32> to vector<16x640xbf16>
    %c8 = arith.constant 8 : index
    %c0_26 = arith.constant 0 : index
    %c0_27 = arith.constant 0 : index
    %56 = vector.load %arg3[%c8, %c0_26, %c0_27] : memref<9x640x256xbf16, #tpu.memory_space<vmem>>, vector<1x640x256xbf16>
    %57 = vector.shape_cast %56 : vector<1x640x256xbf16> to vector<640x256xbf16>
    %cst_28 = arith.constant dense<0.000000e+00> : vector<16x256xf32>
    %58 = tpu.matmul %55, %57, %cst_28 {dimension_numbers = #tpu.dot_dimension_numbers<[1], [0], [0], [1], [0, 0, 1, 1], [], []>} : vector<16x640xbf16>, vector<640x256xbf16>, vector<16x256xf32> -> vector<16x256xf32>
    %59 = arith.addf %53, %58 : vector<16x256xf32>
    %c0_29 = arith.constant 0 : index
    %c0_30 = arith.constant 0 : index
    %60 = vector.load %arg4[%c0_29, %c0_30] : memref<1x256xf32, #tpu.memory_space<vmem>>, vector<1x256xf32>
    %61 = vector.broadcast %60 : vector<1x256xf32> to vector<16x256xf32>
    %62 = arith.addf %59, %61 : vector<16x256xf32>
    %63 = math.tanh %62 : vector<16x256xf32>
    %cst_31 = arith.constant 1.000000e+00 : f32
    %64 = vector.broadcast %cst_31 : f32 to vector<16x256xf32>
    %65 = arith.addf %63, %64 : vector<16x256xf32>
    %cst_32 = arith.constant 5.000000e-01 : f32
    %66 = vector.broadcast %cst_32 : f32 to vector<16x256xf32>
    %67 = arith.mulf %65, %66 : vector<16x256xf32>
    %c0_33 = arith.constant 0 : index
    %c0_34 = arith.constant 0 : index
    %c0_35 = arith.constant 0 : index
    %68 = vector.load %arg6[%c0_33, %c0_34, %c0_35] : memref<1x16x256xf32, #tpu.memory_space<vmem>>, vector<1x16x256xf32>
    %69 = vector.shape_cast %68 : vector<1x16x256xf32> to vector<16x256xf32>
    %70 = vector.shape_cast %67 : vector<16x256xf32> to vector<1x16x256xf32>
    tpu.vector_store %arg6[%c0_33, %c0_34, %c0_35], %70 {strides = array<i32>} : memref<1x16x256xf32, #tpu.memory_space<vmem>>, vector<1x16x256xf32>,
    return
  }
  func.func @transform_0(%arg0: i32, %arg1: i32) -> (i32, i32, i32) {
    %c0_i32 = arith.constant 0 : i32
    %c0_i32_0 = arith.constant 0 : i32
    %c0_i32_1 = arith.constant 0 : i32
    return %arg0, %c0_i32, %c0_i32_0 : i32, i32, i32
  }
  func.func @transform_1(%arg0: i32, %arg1: i32) -> (i32, i32, i32) {
    %c0_i32 = arith.constant 0 : i32
    %c0_i32_0 = arith.constant 0 : i32
    %c0_i32_1 = arith.constant 0 : i32
    %c0_i32_2 = arith.constant 0 : i32
    return %c0_i32, %c0_i32_0, %c0_i32_1 : i32, i32, i32
  }
  func.func @transform_2(%arg0: i32, %arg1: i32) -> (i32, i32) {
    %c0_i32 = arith.constant 0 : i32
    %c0_i32_0 = arith.constant 0 : i32
    %c0_i32_1 = arith.constant 0 : i32
    return %c0_i32, %c0_i32_0 : i32, i32
  }
  func.func @transform_3(%arg0: i32, %arg1: i32) -> (i32, i32) {
    %c0_i32 = arith.constant 0 : i32
    %c0_i32_0 = arith.constant 0 : i32
    %c0_i32_1 = arith.constant 0 : i32
    return %c0_i32, %c0_i32_0 : i32, i32
  }
  func.func @transform_4(%arg0: i32, %arg1: i32) -> (i32, i32, i32) {
    %c0_i32 = arith.constant 0 : i32
    %c0_i32_0 = arith.constant 0 : i32
    return %arg0, %arg1, %c0_i32 : i32, i32, i32
  }
}

</mosaic_0001>

<bundles_post_ra>
// kernel: tile.93
= control target key start
LH: loop header
LB: loop body
LE: loop exit
PB: predicated region body
PF: predicated region fallthrough
CT: control target
= control target key end

     0   :  { %s28_s0 = inlined_call_operand.vmem [shape: f32[16], index: 0, kind: input, shape index: {}]   ;;  %s29_s1 = inlined_call_operand.vmem [shape: f32[16,16], index: 1, kind: output, shape index: {}]  }
   0x1   :  { %v4_v0 = vld [vmem:[%s28_s0] ss:$0 sm:$0xff] }
   0x2   :  { %5 = vst [vmem:[%s29_s1] sm:$0xff] %v4_v0  ;;  %8 = vst [vmem:[%s29_s1 + $0x8] sm:$0xff] %v4_v0 }

// kernel: tile.94
= control target key start
LH: loop header
LB: loop body
LE: loop exit
PB: predicated region body
PF: predicated region fallthrough
CT: control target
= control target key end

     0   :  { %s7_s6 = smov 3  ;;  %s21_s9 = smov 3  ;;  %vm4_vm0 = vcmask 130048   ;;  %vm11_vm1 = vcmask 1048448   ;;  %vm18_vm2 = vcmask 917248   ;;  %vm25_vm3 = vcmask 786048   ;;  %s131_s0 = inlined_call_operand.vmem [shape: f32[16,16], index: 0, kind: input, shape index: {}]   ;;  %s132_s1 = inlined_call_operand.vmem [shape: f32[1,256], index: 1, kind: output, shape index: {}]  }
   0x1   :  { %v69_v0 = vld [vmem:[%s131_s0 + $0x7] ss:$8 sm:%s7_s6]   ;;  %s84_s10 = smov 112   ;;  %v71_v1 = vld [vmem:[%s131_s0 + $0x5] ss:$8 sm:%s21_s9]   ;;  %s14_s13 = smov 3 }
   0x2   :  { %9 = vrot.lane.b32.xlu0 %v69_v0, %s84_s10  ;;  %s85_s14 = smov 80   ;;  %v70_v2 = vld [vmem:[%s131_s0 + $0x6] ss:$8 sm:%s14_s13]   ;;  %s28_s17 = smov 3  ;;  %vm32_vm4 = vcmask 654848   ;;  %vm39_vm5 = vcmask 523648  }
   0x3   :  { %23 = vrot.lane.b32.xlu1 %v71_v1, %s85_s14  ;;  %v72_v3 = vld [vmem:[%s131_s0 + $0x4] ss:$8 sm:%s28_s17]   ;;  %s35_s20 = smov 3  ;;  %s42_s21 = smov 3  ;;  %vm46_vm6 = vcmask 392448   ;;  %vm53_vm7 = vcmask 261248  }
   0x4   :  { %s86_s22 = smov 96   ;;  %s87_s23 = smov 64   ;;  %v73_v4 = vld [vmem:[%s131_s0 + $0x3] ss:$8 sm:%s35_s20]   ;;  %v74_v5 = vld [vmem:[%s131_s0 + $0x2] ss:$8 sm:%s42_s21]  }
   0x5   :  { %s2_s26 = smov 3  ;;  %s49_s29 = smov 3 }
   0x6   :  { %16 = vrot.lane.b32.xlu0 %v70_v2, %s86_s22  ;;  %v3_v6 = vld [vmem:[%s131_s0] ss:$8 sm:%s2_s26]   ;;  %s88_s3 = smov 48   ;;  %s89_s4 = smov 32  }
   0x7   :  { %30 = vrot.lane.b32.xlu1 %v72_v3, %s87_s23  ;;  %5 = vst.msk [vmem:[#allocation0] ss:$8 sm:$0x3] %vm4_vm0, %v3_v6   ;;  %v75_v7 = vld [vmem:[%s131_s0 + $0x1] ss:$8 sm:%s49_s29]   ;;  %s90_s0 = smov 16  }
   0xa   :  { %37 = vrot.lane.b32.xlu0 %v73_v4, %s88_s3 }
   0xb   :  { %44 = vrot.lane.b32.xlu1 %v74_v5, %s89_s4 }
   0xe   :  { %51 = vrot.lane.b32.xlu0 %v75_v7, %s90_s0 }
  0x74   :  { %v10_v8 = vpop.permute.xlu0 %9  }
  0x75   :  { %12 = vst.msk [vmem:[#allocation0] ss:$8 sm:$0x3] %vm11_vm1, %v10_v8   ;;  %v24_v9 = vpop.permute.xlu1 %23  }
  0x78   :  { %v17_v10 = vpop.permute.xlu0 %16  }
  0x79   :  { %19 = vst.msk [vmem:[#allocation0] ss:$8 sm:$0x3] %vm18_vm2, %v17_v10   ;;  %v31_v11 = vpop.permute.xlu1 %30  }
  0x7a   :  { %26 = vst.msk [vmem:[#allocation0] ss:$8 sm:$0x3] %vm25_vm3, %v24_v9  }
  0x7b   :  { %33 = vst.msk [vmem:[#allocation0] ss:$8 sm:$0x3] %vm32_vm4, %v31_v11  }
  0x7c   :  { %v38_v12 = vpop.permute.xlu0 %37  }
  0x7d   :  { %40 = vst.msk [vmem:[#allocation0] ss:$8 sm:$0x3] %vm39_vm5, %v38_v12   ;;  %v45_v13 = vpop.permute.xlu1 %44  }
  0x7e   :  { %47 = vst.msk [vmem:[#allocation0] ss:$8 sm:$0x3] %vm46_vm6, %v45_v13  }
  0x80   :  { %v52_v14 = vpop.permute.xlu0 %51  }
  0x81   :  { %54 = vst.msk [vmem:[#allocation0] ss:$8 sm:$0x3] %vm53_vm7, %v52_v14  }
  0x88   :  { %v59_v15 = vld [vmem:[#allocation0] sm:$0x1]  ;;  %v64_v16 = vld [vmem:[#allocation0 + $0x8] sm:$0x1] }
  0x89   :  { %62 = vst [vmem:[%s132_s1] sm:$0x1] %v59_v15  ;;  %76 = vst [vmem:[%s132_s1 + $0x1] sm:$0x1] %v64_v16 }

// kernel: _lambda_.13
= control target key start
LH: loop header
LB: loop body
LE: loop exit
PB: predicated region body
PF: predicated region fallthrough
CT: control target
= control target key end

     0   :  { %s1750_s17 = smov 0   ;;  %s1752_s18 = smov 0   ;;  %s2116_s0 = inlined_call_operand.vmem [shape: f32[2,24,72], index: 0, kind: input, shape index: {}]   ;;  %s2117_s1 = inlined_call_operand.vmem [shape: bf16[9,72,256], index: 1, kind: input, shape index: {}]   ;;  %s2118_s2 = inlined_call_operand.vmem [shape: f32[1,256], index: 2, kind: input, shape index: {}]   ;;  %s2119_s3 = inlined_call_operand.<no memory space> [shape: f32[1,1], index: 3, kind: input, shape index: {}]   ;;  %s2120_s4 = inlined_call_operand.vmem [shape: f32[2,16,256], index: 4, kind: output, shape index: {}]  }
   0x1   :  { %9 = sst [smem:[#allocation2]] %s2119_s3  ;;  %s1754_s19 = smov 0  }
   0x2   :  { %s1756_s20 = smov 0   ;;  %s1758_s21 = smov 0  }
   0x3 LB: > { %s24_s3 = sadd.s32 1, %s1711_s19  ;;  %s27_s22 = sadd.s32 1, %s1715_s20  ;;  %s1719_s21 = sphi %s1758_s21, %s15_s21   ;;  %s1715_s20 = sphi %s1756_s20, %s2124_s20   ;;  %s1711_s19 = sphi %s1754_s19, %s2123_s19   ;;  %s1707_s18 = sphi %s1752_s18, %s2122_s18   ;;  %s1703_s17 = sphi %s1750_s17, %s2121_s17  }
   0x4   : > { %p25_p0 = scmp.ge.s32.totalorder %s24_s3, 2  ;;  %p1325_p1 = scmp.ge.s32.totalorder %s1719_s21, 1 }
   0x5   : > { %p177_p2 = scmp.lt.s32.totalorder %s1719_s21, 5 }
   0x6   : > { %s2126_s3 = smov (%p25_p0, %s24_s3), 0  ;;  %s2128_s22 = smov (!%p25_p0, %s27_s22), %s1715_s20 }
   0x7   : > { %p178_p3 = pnand %p1325_p1, %p177_p2  ;;  %p29_p4 = scmp.ge.s32.totalorder %s2128_s22, 2 }
   0x8   : > { %p207_p5 = scmp.lt.s32.totalorder (!%p178_p3), %s1707_s18, 1  ;;  %s1330_s14 = sshll.u32 (!%p178_p3), %s1703_s17, 3 }
   0x9   : > { %s2130_s22 = smov (%p29_p4, %s2128_s22), 0  ;;  %181 = sbr.rel (%p178_p3) target bundleno = 320 (0x140), region = 36 }
   0xa   : > { %p214_p6 = scmp.lt.s32.totalorder (!%p178_p3), %s1703_s17, 1  ;;  %s1223_s5 = sld [smem:[#allocation2]] (!%p178_p3) }
   0xe   : > { %v1339_v0 = vld [vmem:[%s2117_s1 + $0x88] sm:$0xff]  ;;  %vm303_vm0 = vcmask 1043456   ;;  %v235_v1 = vld [vmem:[%s2117_s1 + $0x40] sm:$0xff]  ;;  %v1721_v7 = vmov 0   ;;  %v1561_v8 = vld [vmem:[%s2117_s1 + $0x34] ss:$8 sps:$4 sm:$0xff]  }
   0xf   : > { %v1349_v2 = vcombine.high %v1339_v0, %v1339_v0  ;;  %v1361_v3 = vcombine.high %v235_v1, %v235_v1  ;;  %v1348_v4 = vcombine.low %v1339_v0, %v1339_v0  ;;  %v1360_v5 = vcombine.low %v235_v1, %v235_v1  ;;  %v1559_v6 = vld [vmem:[%s2117_s1 + $0x7c] ss:$8 sps:$4 sm:$0xff]   ;;  %342 = vmatprep.mubr.bf16.mxu0 %v1721_v7  ;;  %s2132_s18 = smov (!%p207_p5, %s1707_s18), 1  ;;  %v1563_v11 = vld [vmem:[%s2117_s1 + $0x78] ss:$8 sps:$4 sm:$0xff]   ;;  %v1372_v26 = vld [vmem:[%s2117_s1 + $0xd0] sm:$0xff] }
  0x10   : > { %437 = vmatprep.mubr.bf16.mxu1 %v1721_v7  ;;  %v1564_v12 = vld [vmem:[%s2117_s1 + $0x30] ss:$8 sps:$4 sm:$0xff]   ;;  %s1513_s9 = smul.u32 24, %s2132_s18  ;;  %v1565_v13 = vld [vmem:[%s2117_s1 + $0x6c] ss:$8 sps:$4 sm:$0xff]   ;;  %v1382_v33 = vcombine.high %v1372_v26, %v1372_v26  ;;  %v1381_v34 = vcombine.low %v1372_v26, %v1372_v26  ;;  %vm299_vm1 = vcmask 588800  }
  0x11   : > { %1350 = vmatprep.subr.msk.bf16.mxu0 %vm303_vm0, %v1349_v2  ;;  %1362 = vmatprep.subr.msk.bf16.mxu1 %vm303_vm0, %v1361_v3  ;;  %v305_v9 = vsel %vm303_vm0, %v1348_v4, 0  ;;  %v400_v10 = vsel %vm303_vm0, %v1360_v5, 0  ;;  %v1567_v14 = vld [vmem:[%s2117_s1 + $0x24] ss:$8 sps:$4 sm:$0xff]   ;;  %v1569_v15 = vld [vmem:[%s2117_s1 + $0x68] ss:$8 sps:$4 sm:$0xff]  }
  0x12   : > { %317 = vmatpush1.bf16.msra.mxu0 %v305_v9  ;;  %412 = vmatpush1.bf16.msra.mxu1 %v400_v10  ;;  %s211_s23 = scalar_lea.vmem %s2116_s0, %s1513_s9  ;;  %v1570_v16 = vld [vmem:[%s2117_s1 + $0x20] ss:$8 sps:$4 sm:$0xff]   ;;  %v1571_v17 = vld [vmem:[%s2117_s1 + $0x5c] ss:$8 sps:$4 sm:$0xff]   ;;  %v1576_v22 = vld [vmem:[%s2117_s1 + $0x10] ss:$8 sps:$4 sm:$0xff]  }
  0x13   : > { %318 = vmatprep.subr.bf16.mxu0 %v1559_v6  ;;  %413 = vmatprep.subr.bf16.mxu1 %v1561_v8  ;;  %s223_s30 = scalar_lea.vmem %s211_s23, %s1330_s14  ;;  %v1573_v18 = vld [vmem:[%s2117_s1 + $0x14] ss:$8 sps:$4 sm:$0xff]   ;;  %v1575_v19 = vld [vmem:[%s2117_s1 + $0x58] ss:$8 sps:$4 sm:$0xff]   ;;  %v1579_v25 = vld [vmem:[%s2117_s1 + $0x4] ss:$8 sps:$4 sm:$0xff]  }
  0x14   : > { %v224_v20 = vld [vmem:[%s223_s30] sm:$0xff]  ;;  %v1834_v21 = vld [vmem:[%s223_s30 + $0x8] sm:$0xff]  ;;  %v1393_v28 = vld [vmem:[%s2117_s1 + $0x118] sm:$0xff]  ;;  %v507_v40 = vsel %vm303_vm0, %v1381_v34, 0  ;;  %s2134_s17 = smov (!%p214_p6, %s1703_s17), 1  ;;  %s1328_s7 = sshll.u32 %s2132_s18, 2 }
  0x15   : > { %v1577_v23 = vld [vmem:[%s2117_s1 + $0x4c] ss:$8 sps:$4 sm:$0xff]   ;;  %v1843_v24 = vpack.c.bf16 %v1834_v21, %v224_v20  ;;  %v1581_v30 = vld [vmem:[%s2117_s1 + $0x48] ss:$8 sps:$4 sm:$0xff]   ;;  %v1403_v35 = vcombine.high %v1393_v28, %v1393_v28  ;;  %v1402_v36 = vcombine.low %v1393_v28, %v1393_v28  ;;  %v226_v38 = vpack.c.bf16 %v224_v20, %v224_v20  ;;  %v1598_v46 = vld [vmem:[%s2117_s1 + $0xfc] ss:$8 sps:$4 sm:$0xff]  }
  0x16   : > { %319 = vmatpush1.bf16.msra.mxu0 %v1563_v11  ;;  %414 = vmatpush1.bf16.msra.mxu1 %v1564_v12  ;;  %v1582_v31 = vld [vmem:[%s2117_s1] ss:$8 sps:$4 sm:$0xff]   ;;  %v1589_v39 = vld [vmem:[%s2117_s1 + $0xc4] ss:$8 sps:$4 sm:$0xff]   ;;  %v1595_v45 = vld [vmem:[%s2117_s1 + $0xb4] ss:$8 sps:$4 sm:$0xff]  }
  0x17   : > { %320 = vmatprep.subr.bf16.mxu0 %v1565_v13  ;;  %415 = vmatprep.subr.bf16.mxu1 %v1567_v14  ;;  %v1852_v27 = vshll.u32 %v1843_v24, 16  ;;  %v1858_v29 = vshrl.u32 %v1843_v24, 16  ;;  %v617_v41 = vsel %vm303_vm0, %v1402_v36, 0  ;;  %v1592_v42 = vld [vmem:[%s2117_s1 + $0x10c] ss:$8 sps:$4 sm:$0xff]   ;;  %v1414_v55 = vld [vmem:[%s2117_s1 + $0x160] sm:$0xff] }
  0x18   : > { %v1587_v43 = vld [vmem:[%s2117_s1 + $0xc0] ss:$8 sps:$4 sm:$0xff]   ;;  %v1593_v47 = vld [vmem:[%s2117_s1 + $0xb0] ss:$8 sps:$4 sm:$0xff]   ;;  %v1601_v49 = vld [vmem:[%s2117_s1 + $0xa4] ss:$8 sps:$4 sm:$0xff]   ;;  %v1424_v61 = vcombine.high %v1414_v55, %v1414_v55  ;;  %v1423_v62 = vcombine.low %v1414_v55, %v1414_v55 }
  0x19   : > { %v252_v32 = vrot.slane %v1852_v27, 1  ;;  %v1590_v44 = vld [vmem:[%s2117_s1 + $0x108] ss:$8 sps:$4 sm:$0xff]   ;;  %v1596_v48 = vld [vmem:[%s2117_s1 + $0xf8] ss:$8 sps:$4 sm:$0xff]   ;;  %v565_v57 = vrot.slane %v1858_v29, 1 }
  0x1a   : > { %321 = vmatpush1.bf16.msra.mxu0 %v1569_v15  ;;  %416 = vmatpush1.bf16.msra.mxu1 %v1570_v16  ;;  %v1604_v50 = vld [vmem:[%s2117_s1 + $0xec] ss:$8 sps:$4 sm:$0xff]   ;;  %v1599_v51 = vld [vmem:[%s2117_s1 + $0xa0] ss:$8 sps:$4 sm:$0xff]   ;;  %v1610_v54 = vld [vmem:[%s2117_s1 + $0xdc] ss:$8 sps:$4 sm:$0xff]  }
  0x1b   : > { %322 = vmatprep.subr.bf16.mxu0 %v1571_v17  ;;  %417 = vmatprep.subr.bf16.mxu1 %v1573_v18  ;;  %v253_v37 = vor.u32 %v252_v32, %v1858_v29  ;;  %v1602_v52 = vld [vmem:[%s2117_s1 + $0xe8] ss:$8 sps:$4 sm:$0xff]   ;;  %v1607_v53 = vld [vmem:[%s2117_s1 + $0x94] ss:$8 sps:$4 sm:$0xff]   ;;  %v566_v58 = vrot.slane %v1852_v27, 2  ;;  %v457_v1 = vrot.slane %v1843_v24, 1 }
  0x1c   : > { %v1435_v56 = vld [vmem:[%s2117_s1 + $0x1a8] sm:$0xff]  ;;  %v1605_v59 = vld [vmem:[%s2117_s1 + $0x90] ss:$8 sps:$4 sm:$0xff]   ;;  %v1617_v3 = vld [vmem:[%s2117_s1 + $0x154] ss:$8 sps:$4 sm:$0xff]   ;;  %v725_v4 = vsel %vm303_vm0, %v1423_v62, 0 }
  0x1d   : > { %v1608_v60 = vld [vmem:[%s2117_s1 + $0xd8] ss:$8 sps:$4 sm:$0xff]   ;;  %v1445_v63 = vcombine.high %v1435_v56, %v1435_v56  ;;  %v1444_v0 = vcombine.low %v1435_v56, %v1435_v56  ;;  %v567_v2 = vor.u32 %v566_v58, %v565_v57  ;;  %v1620_v6 = vld [vmem:[%s2117_s1 + $0x19c] ss:$8 sps:$4 sm:$0xff]   ;;  %v1626_v11 = vld [vmem:[%s2117_s1 + $0x18c] ss:$8 sps:$4 sm:$0xff]  }
  0x1e   : > { %323 = vmatpush1.bf16.msra.mxu0 %v1575_v19  ;;  %418 = vmatpush1.bf16.msra.mxu1 %v1576_v22  ;;  %v1615_v8 = vld [vmem:[%s2117_s1 + $0x150] ss:$8 sps:$4 sm:$0xff]   ;;  %v1623_v10 = vld [vmem:[%s2117_s1 + $0x144] ss:$8 sps:$4 sm:$0xff]   ;;  %v1621_v12 = vld [vmem:[%s2117_s1 + $0x140] ss:$8 sps:$4 sm:$0xff]  }
  0x1f   : > { %324 = vmatprep.subr.bf16.mxu0 %v1577_v23  ;;  %419 = vmatprep.subr.bf16.mxu1 %v1579_v25  ;;  %v835_v5 = vsel %vm303_vm0, %v1444_v0, 0  ;;  %v1618_v9 = vld [vmem:[%s2117_s1 + $0x198] ss:$8 sps:$4 sm:$0xff]   ;;  %v1624_v13 = vld [vmem:[%s2117_s1 + $0x188] ss:$8 sps:$4 sm:$0xff]   ;;  %v783_v23 = vrot.slane %v1858_v29, 2 }
  0x20   : > { %v1629_v14 = vld [vmem:[%s2117_s1 + $0x134] ss:$8 sps:$4 sm:$0xff]   ;;  %v1627_v16 = vld [vmem:[%s2117_s1 + $0x130] ss:$8 sps:$4 sm:$0xff]   ;;  %v1635_v18 = vld [vmem:[%s2117_s1 + $0x124] ss:$8 sps:$4 sm:$0xff]  }
  0x21   : > { %v1632_v15 = vld [vmem:[%s2117_s1 + $0x17c] ss:$8 sps:$4 sm:$0xff]   ;;  %v1630_v17 = vld [vmem:[%s2117_s1 + $0x178] ss:$8 sps:$4 sm:$0xff]   ;;  %v1638_v19 = vld [vmem:[%s2117_s1 + $0x16c] ss:$8 sps:$4 sm:$0xff]  }
  0x22   : > { %325 = vmatpush1.bf16.msra.mxu0 %v1581_v30  ;;  %420 = vmatpush1.bf16.msra.mxu1 %v1582_v31  ;;  %v1456_v20 = vld [vmem:[%s2117_s1 + $0x1f0] sm:$0xff]  ;;  %v1477_v22 = vld [vmem:[%s2117_s1 + $0x238] sm:$0xff]  ;;  %v784_v25 = vrot.slane %v1852_v27, 3  ;;  %v1633_v26 = vld [vmem:[%s2117_s1 + $0x120] ss:$8 sps:$4 sm:$0xff]   ;;  %v675_v34 = vrot.slane %v1843_v24, 2 }
  0x23   : > { %1383 = vmatprep.subr.msk.bf16.mxu0 %vm303_vm0, %v1382_v33  ;;  %1404 = vmatprep.subr.msk.bf16.mxu1 %vm303_vm0, %v1403_v35  ;;  %v1636_v28 = vld [vmem:[%s2117_s1 + $0x168] ss:$8 sps:$4 sm:$0xff]   ;;  %v1466_v30 = vcombine.high %v1456_v20, %v1456_v20  ;;  %v1465_v31 = vcombine.low %v1456_v20, %v1456_v20  ;;  %v1487_v32 = vcombine.high %v1477_v22, %v1477_v22  ;;  %v1664_v56 = vld [vmem:[%s2117_s1 + $0x1f8] ss:$8 sps:$4 sm:$0xff]   ;;  %v1680_v0 = vld [vmem:[%s2117_s1 + $0x244] ss:$8 sps:$4 sm:$0xff]  }
  0x24   : > { %v1486_v33 = vcombine.low %v1477_v22, %v1477_v22  ;;  %v785_v35 = vor.u32 %v784_v25, %v783_v23  ;;  %v1661_v55 = vld [vmem:[%s2117_s1 + $0x1b0] ss:$8 sps:$4 sm:$0xff]   ;;  %v1672_v62 = vld [vmem:[%s2117_s1 + $0x260] ss:$8 sps:$4 sm:$0xff]   ;;  %s1327_s6 = sshll.u32 %s2134_s17, 1 }
  0x25   : > { %1351 = vmatmul.mubr.msk.bf16.vlgmr.msra.gmra.mxu0 %vm299_vm1, %v253_v37  ;;  %1363 = vmatmul.mubr.msk.bf16.vlgmr.msra.gmra.mxu1 %vm299_vm1, %v226_v38  ;;  %v943_v36 = vsel %vm303_vm0, %v1465_v31, 0  ;;  %v1645_v38 = vld [vmem:[%s2117_s1 + $0x1e4] ss:$8 sps:$4 sm:$0xff]   ;;  %s218_s10 = sadd.s32 %s1328_s7, %s1327_s6 }
  0x26   : > { %519 = vmatpush1.bf16.msra.mxu0 %v507_v40  ;;  %629 = vmatpush1.bf16.msra.mxu1 %v617_v41  ;;  %v1053_v37 = vsel %vm303_vm0, %v1486_v33, 0  ;;  %v1643_v40 = vld [vmem:[%s2117_s1 + $0x1e0] ss:$8 sps:$4 sm:$0xff]   ;;  %s1329_s11 = sshll.u32 %s218_s10, 3 }
  0x27   : > { %520 = vmatprep.subr.bf16.mxu0 %v1589_v39  ;;  %630 = vmatprep.subr.bf16.mxu1 %v1592_v42  ;;  %v1648_v39 = vld [vmem:[%s2117_s1 + $0x22c] ss:$8 sps:$4 sm:$0xff]   ;;  %v1646_v41 = vld [vmem:[%s2117_s1 + $0x228] ss:$8 sps:$4 sm:$0xff]   ;;  %s220_s12 = scalar_lea.vmem %s2120_s4, %s1329_s11 }
  0x28   : > { %544 = vmatprep.mubr.bf16.mxu0 %v1721_v7  ;;  %654 = vmatprep.mubr.bf16.mxu1 %v1721_v7  ;;  %v1651_v42 = vld [vmem:[%s2117_s1 + $0x1d4] ss:$8 sps:$4 sm:$0xff]  }
  0x2a   : > { %521 = vmatpush1.bf16.msra.mxu0 %v1587_v43  ;;  %631 = vmatpush1.bf16.msra.mxu1 %v1590_v44  ;;  %v1654_v43 = vld [vmem:[%s2117_s1 + $0x21c] ss:$8 sps:$4 sm:$0xff]   ;;  %v1649_v44 = vld [vmem:[%s2117_s1 + $0x1d0] ss:$8 sps:$4 sm:$0xff]  }
  0x2b   : > { %522 = vmatprep.subr.bf16.mxu0 %v1595_v45  ;;  %632 = vmatprep.subr.bf16.mxu1 %v1598_v46  ;;  %v1652_v45 = vld [vmem:[%s2117_s1 + $0x218] ss:$8 sps:$4 sm:$0xff]   ;;  %v1657_v46 = vld [vmem:[%s2117_s1 + $0x1c4] ss:$8 sps:$4 sm:$0xff]  }
  0x2e   : > { %523 = vmatpush1.bf16.msra.mxu0 %v1593_v47  ;;  %633 = vmatpush1.bf16.msra.mxu1 %v1596_v48  ;;  %v1660_v47 = vld [vmem:[%s2117_s1 + $0x20c] ss:$8 sps:$4 sm:$0xff]   ;;  %v1655_v48 = vld [vmem:[%s2117_s1 + $0x1c0] ss:$8 sps:$4 sm:$0xff]  }
  0x2f   : > { %524 = vmatprep.subr.bf16.mxu0 %v1601_v49  ;;  %634 = vmatprep.subr.bf16.mxu1 %v1604_v50  ;;  %v1658_v49 = vld [vmem:[%s2117_s1 + $0x208] ss:$8 sps:$4 sm:$0xff]   ;;  %v1663_v50 = vld [vmem:[%s2117_s1 + $0x1b4] ss:$8 sps:$4 sm:$0xff]  }
  0x32   : > { %525 = vmatpush1.bf16.msra.mxu0 %v1599_v51  ;;  %635 = vmatpush1.bf16.msra.mxu1 %v1602_v52  ;;  %v1666_v51 = vld [vmem:[%s2117_s1 + $0x1fc] ss:$8 sps:$4 sm:$0xff]  }
  0x33   : > { %526 = vmatprep.subr.bf16.mxu0 %v1607_v53  ;;  %636 = vmatprep.subr.bf16.mxu1 %v1610_v54  ;;  %v1498_v52 = vld [vmem:[%s2117_s1 + $0x280] sm:$0xff]  ;;  %v1001_v53 = vrot.slane %v1858_v29, 3  ;;  %v1002_v54 = vrot.slane %v1852_v27, 4  ;;  %v1671_v29 = vld [vmem:[%s2117_s1 + $0x274] ss:$8 sps:$4 sm:$0xff]  }
  0x34   : > { %v1508_v57 = vcombine.high %v1498_v52, %v1498_v52  ;;  %v1507_v58 = vcombine.low %v1498_v52, %v1498_v52 }
  0x36   : > { %527 = vmatpush1.bf16.msra.mxu0 %v1605_v59  ;;  %637 = vmatpush1.bf16.msra.mxu1 %v1608_v60  ;;  %v893_v59 = vrot.slane %v1843_v24, 3  ;;  %v1003_v60 = vor.u32 %v1002_v54, %v1001_v53  ;;  %v1161_v27 = vsel %vm303_vm0, %v1507_v58, 0  ;;  %v1669_v24 = vld [vmem:[%s2117_s1 + $0x270] ss:$8 sps:$4 sm:$0xff]   ;;  %v1209_v53 = vld [vmem:[%s2118_s2] sm:$0x3] }
  0x37   : > { %1425 = vmatprep.subr.msk.bf16.mxu0 %vm303_vm0, %v1424_v61  ;;  %1446 = vmatprep.subr.msk.bf16.mxu1 %vm303_vm0, %v1445_v63  ;;  %v1674_v61 = vld [vmem:[%s2117_s1 + $0x264] ss:$8 sps:$4 sm:$0xff]   ;;  %v1677_v63 = vld [vmem:[%s2117_s1 + $0x254] ss:$8 sps:$4 sm:$0xff]  }
  0x39   : > { %1384 = vmatmul.mubr.msk.bf16.vlgmr.msra.gmra.mxu0 %vm299_vm1, %v457_v1  ;;  %1405 = vmatmul.mubr.msk.bf16.vlgmr.msra.gmra.mxu1 %vm299_vm1, %v567_v2  ;;  %v1678_v1 = vld [vmem:[%s2117_s1 + $0x240] ss:$8 sps:$4 sm:$0xff]   ;;  %v1101_v2 = vpack.c.bf16 %v1834_v21, %v1834_v21 }
  0x3a   : > { %737 = vmatpush1.bf16.msra.mxu0 %v725_v4  ;;  %847 = vmatpush1.bf16.msra.mxu1 %v835_v5 }
  0x3b   : > { %738 = vmatprep.subr.bf16.mxu0 %v1617_v3  ;;  %848 = vmatprep.subr.bf16.mxu1 %v1620_v6 }
  0x3c   : > { %762 = vmatprep.mubr.bf16.mxu0 %v1721_v7  ;;  %872 = vmatprep.mubr.bf16.mxu1 %v1721_v7 }
  0x3e   : > { %739 = vmatpush1.bf16.msra.mxu0 %v1615_v8  ;;  %849 = vmatpush1.bf16.msra.mxu1 %v1618_v9 }
  0x3f   : > { %740 = vmatprep.subr.bf16.mxu0 %v1623_v10  ;;  %850 = vmatprep.subr.bf16.mxu1 %v1626_v11 }
  0x42   : > { %741 = vmatpush1.bf16.msra.mxu0 %v1621_v12  ;;  %851 = vmatpush1.bf16.msra.mxu1 %v1624_v13 }
  0x43   : > { %742 = vmatprep.subr.bf16.mxu0 %v1629_v14  ;;  %852 = vmatprep.subr.bf16.mxu1 %v1632_v15 }
  0x46   : > { %743 = vmatpush1.bf16.msra.mxu0 %v1627_v16  ;;  %853 = vmatpush1.bf16.msra.mxu1 %v1630_v17 }
  0x47   : > { %744 = vmatprep.subr.bf16.mxu0 %v1635_v18  ;;  %854 = vmatprep.subr.bf16.mxu1 %v1638_v19 }
  0x4a   : > { %745 = vmatpush1.bf16.msra.mxu0 %v1633_v26  ;;  %855 = vmatpush1.bf16.msra.mxu1 %v1636_v28 }
  0x4b   : > { %1467 = vmatprep.subr.msk.bf16.mxu0 %vm303_vm0, %v1466_v30  ;;  %1488 = vmatprep.subr.msk.bf16.mxu1 %vm303_vm0, %v1487_v32 }
  0x4d   : > { %1426 = vmatmul.mubr.msk.bf16.vlgmr.msra.gmra.mxu0 %vm299_vm1, %v675_v34  ;;  %1447 = vmatmul.mubr.msk.bf16.vlgmr.msra.gmra.mxu1 %vm299_vm1, %v785_v35 }
  0x4e   : > { %955 = vmatpush1.bf16.msra.mxu0 %v943_v36  ;;  %1065 = vmatpush1.bf16.msra.mxu1 %v1053_v37 }
  0x4f   : > { %956 = vmatprep.subr.bf16.mxu0 %v1645_v38  ;;  %1066 = vmatprep.subr.bf16.mxu1 %v1648_v39 }
  0x50   : > { %980 = vmatprep.mubr.bf16.mxu0 %v1721_v7  ;;  %1090 = vmatprep.mubr.bf16.mxu1 %v1721_v7 }
  0x52   : > { %957 = vmatpush1.bf16.msra.mxu0 %v1643_v40  ;;  %1067 = vmatpush1.bf16.msra.mxu1 %v1646_v41 }
  0x53   : > { %958 = vmatprep.subr.bf16.mxu0 %v1651_v42  ;;  %1068 = vmatprep.subr.bf16.mxu1 %v1654_v43 }
  0x56   : > { %959 = vmatpush1.bf16.msra.mxu0 %v1649_v44  ;;  %1069 = vmatpush1.bf16.msra.mxu1 %v1652_v45  ;;  %v1211_v44 = vlaneseq }
  0x57   : > { %960 = vmatprep.subr.bf16.mxu0 %v1657_v46  ;;  %1070 = vmatprep.subr.bf16.mxu1 %v1660_v47 }
  0x5a   : > { %961 = vmatpush1.bf16.msra.mxu0 %v1655_v48  ;;  %1071 = vmatpush1.bf16.msra.mxu1 %v1658_v49  ;;  %v1212_v48 = vshrl.u32 %v1211_v44, 7 }
  0x5b   : > { %962 = vmatprep.subr.bf16.mxu0 %v1663_v50  ;;  %1072 = vmatprep.subr.bf16.mxu1 %v1666_v51 }
  0x5c   : > { %v1213_v52 = vsub.s32 0, %v1212_v48 }
  0x5e   : > { %963 = vmatpush1.bf16.msra.mxu0 %v1661_v55  ;;  %1073 = vmatpush1.bf16.msra.mxu1 %v1664_v56  ;;  %v1217_v55 = vsub.s32 1, %v1212_v48 }
  0x5f   : > { %1509 = vmatprep.subr.msk.bf16.mxu0 %vm303_vm0, %v1508_v57  ;;  %v1214_v57 = vrot.slane %v1209_v53, %v1213_v52 }
  0x61   : > { %1468 = vmatmul.mubr.msk.bf16.vlgmr.msra.gmra.mxu0 %vm299_vm1, %v893_v59  ;;  %1489 = vmatmul.mubr.msk.bf16.vlgmr.msra.gmra.mxu1 %vm299_vm1, %v1003_v60 }
  0x62   : > { %1173 = vmatpush1.bf16.msra.mxu0 %v1161_v27  ;;  %1198 = vmatprep.mubr.bf16.mxu0 %v1721_v7  ;;  %v1675_v7 = vld [vmem:[%s2117_s1 + $0x250] ss:$8 sps:$4 sm:$0xff]   ;;  %v1218_v27 = vrot.slane %v1209_v53, %v1217_v55 }
  0x63   : > { %1174 = vmatprep.subr.bf16.mxu0 %v1671_v29  ;;  %v1226_v29 = vstv %s1223_s5 }
  0x66   : > { %1175 = vmatpush1.bf16.msra.mxu0 %v1669_v24 }
  0x67   : > { %1176 = vmatprep.subr.bf16.mxu0 %v1674_v61 }
  0x6a   : > { %1177 = vmatpush1.bf16.msra.mxu0 %v1672_v62 }
  0x6b   : > { %1178 = vmatprep.subr.bf16.mxu0 %v1677_v63 }
  0x6e   : > { %1179 = vmatpush1.bf16.msra.mxu0 %v1675_v7 }
  0x6f   : > { %1180 = vmatprep.subr.bf16.mxu0 %v1680_v0 }
  0x72   : > { %1181 = vmatpush1.bf16.msra.mxu0 %v1678_v1 }
  0x75   : > { %1510 = vmatmul.mubr.msk.bf16.vlgmr.msra.gmra.mxu0 %vm299_vm1, %v1101_v2 }
  0xe5   : > { %v344_v3 = vpop.f32.mrf.mxu0  ;;  %v439_v4 = vpop.f32.mrf.mxu1 }
  0xe6   : > { %v440_v5 = vadd.f32 %v439_v4, %v344_v3 }
  0xe7   : > { %v346_v6 = vpop.f32.mrf.mxu0  ;;  %v441_v8 = vpop.f32.mrf.mxu1 }
  0xe8   : > { %v442_v9 = vadd.f32 %v441_v8, %v346_v6 }
  0xe9   : > { %v348_v10 = vpop.f32.mrf.mxu0  ;;  %v443_v11 = vpop.f32.mrf.mxu1 }
  0xeb   : > { %v349_v12 = vpop.f32.mrf.mxu0  ;;  %v444_v13 = vpop.f32.mrf.mxu1 }
  0xf9   : > { %v546_v14 = vpop.f32.mrf.mxu0  ;;  %v656_v15 = vpop.f32.mrf.mxu1 }
  0xfa   : > { %v553_v37 = vadd.f32 %v546_v14, %v440_v5 }
  0xfb   : > { %v548_v16 = vpop.f32.mrf.mxu0  ;;  %v658_v17 = vpop.f32.mrf.mxu1 }
  0xfc   : > { %v554_v40 = vadd.f32 %v548_v16, %v442_v9  ;;  %v663_v43 = vadd.f32 %v656_v15, %v553_v37 }
  0xfd   : > { %v550_v18 = vpop.f32.mrf.mxu0  ;;  %v660_v19 = vpop.f32.mrf.mxu1 }
  0xfe   : > { %v664_v45 = vadd.f32 %v658_v17, %v554_v40 }
  0xff   : > { %v551_v21 = vpop.f32.mrf.mxu0  ;;  %v661_v20 = vpop.f32.mrf.mxu1 }
 0x10d   : > { %v764_v22 = vpop.f32.mrf.mxu0  ;;  %v874_v23 = vpop.f32.mrf.mxu1 }
 0x10e   : > { %v771_v46 = vadd.f32 %v764_v22, %v663_v43 }
 0x10f   : > { %v766_v25 = vpop.f32.mrf.mxu0  ;;  %v876_v26 = vpop.f32.mrf.mxu1 }
 0x110   : > { %v772_v47 = vadd.f32 %v766_v25, %v664_v45  ;;  %v881_v49 = vadd.f32 %v874_v23, %v771_v46 }
 0x111   : > { %v768_v28 = vpop.f32.mrf.mxu0  ;;  %v878_v30 = vpop.f32.mrf.mxu1 }
 0x112   : > { %v882_v50 = vadd.f32 %v876_v26, %v772_v47 }
 0x113   : > { %v769_v31 = vpop.f32.mrf.mxu0  ;;  %v879_v32 = vpop.f32.mrf.mxu1 }
 0x121   : > { %v982_v33 = vpop.f32.mrf.mxu0  ;;  %v1092_v34 = vpop.f32.mrf.mxu1 }
 0x122   : > { %v989_v51 = vadd.f32 %v982_v33, %v881_v49 }
 0x123   : > { %v984_v35 = vpop.f32.mrf.mxu0  ;;  %v1094_v36 = vpop.f32.mrf.mxu1 }
 0x124   : > { %v990_v54 = vadd.f32 %v984_v35, %v882_v50  ;;  %v1099_v56 = vadd.f32 %v1092_v34, %v989_v51 }
 0x125   : > { %v986_v38 = vpop.f32.mrf.mxu0  ;;  %v1096_v39 = vpop.f32.mrf.mxu1 }
 0x126   : > { %v1100_v59 = vadd.f32 %v1094_v36, %v990_v54 }
 0x127   : > { %v987_v41 = vpop.f32.mrf.mxu0  ;;  %v1097_v42 = vpop.f32.mrf.mxu1 }
 0x135   : > { %v1200_v58 = vpop.f32.mrf.mxu0 }
 0x136   : > { %v1207_v60 = vadd.f32 %v1200_v58, %v1099_v56 }
 0x137   : > { %v1202_v24 = vpop.f32.mrf.mxu0 }
 0x138   : > { %v1221_v61 = vadd.f32 %v1214_v57, %v1207_v60  ;;  %v1208_v62 = vadd.f32 %v1202_v24, %v1100_v59 }
 0x139   : > { %v1204_v63 = vpop.f32.mrf.mxu0 }
 0x13a   : > { %vm1224_vm2 = vcmp.ge.f32.partialorder %v1221_v61, 0.0  ;;  %v1227_v7 = vmul.f32 %v1226_v29, %v1221_v61  ;;  %v1222_v0 = vadd.f32 %v1218_v27, %v1208_v62 }
 0x13b   : > { %v1205_v1 = vpop.f32.mrf.mxu0 }
 0x13c   : > { %v1229_v2 = vsel %vm1224_vm2, %v1221_v61, %v1227_v7  ;;  %vm1225_vm3 = vcmp.ge.f32.partialorder %v1222_v0, 0.0  ;;  %v1228_v3 = vmul.f32 %v1226_v29, %v1222_v0 }
 0x13d   : > { %1231 = vst [vmem:[%s220_s12] sm:$0xff] %v1229_v2 }
 0x13e   : > { %v1230_v4 = vsel %vm1225_vm3, %v1222_v0, %v1228_v3 }
 0x13f   : > { %1232 = vst [vmem:[%s220_s12 + $0x8] sm:$0xff] %v1230_v4 }
 0x140 PF: > { %s15_s21 = sadd.s32 1, %s1719_s21   ;;  %s2121_s17 = smov %s1711_s19 }
 0x141   : > { %p12_p7 = scmp.ge.s32.totalorder %s15_s21, 6   ;;  %s2122_s18 = smov %s1715_s20 }
 0x142   : > { %s2123_s19 = smov %s2126_s3  ;;  %s2124_s20 = smov %s2130_s22 }
 0x143   :  { %14 = sbr.rel (!%p12_p7) target bundleno = 3 (0x3), region = 75 }

// kernel: _lambda_.15
= control target key start
LH: loop header
LB: loop body
LE: loop exit
PB: predicated region body
PF: predicated region fallthrough
CT: control target
= control target key end

     0   :  { %s425_s17 = smov 0   ;;  %s472_s0 = inlined_call_operand.vmem [shape: f32[2,16,256], index: 0, kind: input, shape index: {}]   ;;  %s473_s1 = inlined_call_operand.vmem [shape: f32[1,256], index: 1, kind: input, shape index: {}]   ;;  %s474_s2 = inlined_call_operand.vmem [shape: f32[1,256], index: 2, kind: input, shape index: {}]   ;;  %s475_s3 = inlined_call_operand.<no memory space> [shape: f32[1,1], index: 3, kind: input, shape index: {}]   ;;  %s476_s4 = inlined_call_operand.vmem [shape: f32[2,18,288], index: 4, kind: output, shape index: {}]  }
   0x1   :  { %9 = sst [smem:[#allocation2]] %s475_s3 }
   0x2 LB: > { %s365_s18 = sadd.s32 4294967295, %s393_s17   ;;  %p369_p0 = scmp.ge.s32.totalorder %s393_s17, 1  ;;  %s393_s17 = sphi %s425_s17, %s15_s17  }
   0x3   : > { %p163_p1 = scmp.lt.s32.totalorder %s393_s17, 3 }
   0x5   : > { %p164_p2 = pnand %p369_p0, %p163_p1 }
   0x6   : > { %p189_p3 = scmp.lt.s32.totalorder (!%p164_p2), %s365_s18, 1  ;;  %s433_s19 = sld [smem:[#allocation2]] (!%p164_p2) }
   0x7   : > { %167 = sbr.rel (%p164_p2) target bundleno = 155 (0x9b), region = 36  ;;  %s396_s5 = smov (!%p164_p2), 16  }
   0xc   : > { %v205_v0 = vlaneseq  ;;  %s478_s18 = smov (!%p189_p3, %s365_s18), 1  ;;  %v203_v2 = vld [vmem:[%s473_s1] sm:$0x3]  ;;  %vm251_vm0 = vcmask 261120   ;;  %v395_v14 = vmov 0.0   ;;  %v240_v19 = vstv %s433_s19 }
   0xd   : > { %v219_v3 = vld [vmem:[%s474_s2] sm:$0x3]  ;;  %s375_s23 = sshll.u32 %s478_s18, 5  ;;  %s376_s24 = smul.u32 72, %s478_s18  ;;  %vm258_vm1 = vcmask 254976   ;;  %vm264_vm6 = vcmask 1040384  }
   0xe   : > { %v206_v1 = vshrl.u32 %v205_v0, 7  ;;  %s193_s27 = scalar_lea.vmem %s472_s0, %s375_s23  ;;  %vm296_vm7 = vcmask 1047681   ;;  %vm301_vm8 = vcmask 1047680   ;;  %vm283_vm9 = vcmask 130048  }
   0xf   : > { %s447_s30 = scalar_lea.vmem %s476_s4, %s376_s24  ;;  %v199_v6 = vld [vmem:[%s193_s27] sm:$0xff]  ;;  %v201_v11 = vld [vmem:[%s193_s27 + $0x10] sm:$0xff]  ;;  %v200_v12 = vld [vmem:[%s193_s27 + $0x8] sm:$0xff]  ;;  %vm299_vm10 = vcmask 130049   ;;  %vm305_vm11 = vcmask 1040512   ;;  %vm308_vm12 = vcmask 122880  }
  0x10   : > { %v207_v4 = vsub.s32 0, %v206_v1  ;;  %v211_v5 = vsub.s32 1, %v206_v1  ;;  %v202_v13 = vld [vmem:[%s193_s27 + $0x18] sm:$0xff]  ;;  %249 = vst [vmem:[%s447_s30] sm:$0xff] %v395_v14  ;;  %250 = vst [vmem:[%s447_s30 + $0x8] sm:$0xff] %v395_v14 }
  0x11   : > { %253 = vst [vmem:[%s447_s30 + $0x18] sm:$0xff] %v395_v14  ;;  %256 = vst [vmem:[%s447_s30 + $0x30] sm:$0x3] %v395_v14 }
  0x12   : > { %v208_v7 = vrot.slane %v203_v2, %v207_v4  ;;  %v212_v8 = vrot.slane %v203_v2, %v211_v5  ;;  %v224_v9 = vrot.slane %v219_v3, %v207_v4  ;;  %v228_v10 = vrot.slane %v219_v3, %v211_v5  ;;  %257 = vst [vmem:[%s447_s30 + $0x38] sm:$0x3] %v395_v14 }
  0x13   : > { %252 = vst.msk [vmem:[%s447_s30 + $0x10] sm:$0xff] %vm251_vm0, %v395_v14  ;;  %255 = vst.msk [vmem:[%s447_s30 + $0x28] sm:$0xff] %vm251_vm0, %v395_v14 }
  0x14   : > { %v215_v15 = vmul.f32 %v208_v7, %v199_v6  ;;  %v217_v16 = vmul.f32 %v208_v7, %v201_v11  ;;  %v216_v17 = vmul.f32 %v212_v8, %v200_v12  ;;  %v218_v18 = vmul.f32 %v212_v8, %v202_v13  ;;  %259 = vst.msk [vmem:[%s447_s30 + $0x40] sm:$0x3] %vm258_vm1, %v395_v14 }
  0x16   : > { %v231_v20 = vadd.f32 %v224_v9, %v215_v15  ;;  %v233_v21 = vadd.f32 %v224_v9, %v217_v16  ;;  %v232_v22 = vadd.f32 %v228_v10, %v216_v17  ;;  %v234_v23 = vadd.f32 %v228_v10, %v218_v18 }
  0x18   : > { %vm236_vm2 = vcmp.ge.f32.partialorder %v231_v20, 0.0  ;;  %v241_v24 = vmul.f32 %v240_v19, %v231_v20  ;;  %vm238_vm3 = vcmp.ge.f32.partialorder %v233_v21, 0.0  ;;  %v243_v25 = vmul.f32 %v240_v19, %v233_v21 }
  0x19   : > { %vm237_vm4 = vcmp.ge.f32.partialorder %v232_v22, 0.0  ;;  %v242_v26 = vmul.f32 %v240_v19, %v232_v22  ;;  %vm239_vm5 = vcmp.ge.f32.partialorder %v234_v23, 0.0  ;;  %v244_v27 = vmul.f32 %v240_v19, %v234_v23 }
  0x1a   : > { %v245_v28 = vsel %vm236_vm2, %v231_v20, %v241_v24  ;;  %v247_v29 = vsel %vm238_vm3, %v233_v21, %v243_v25 }
  0x1b   : > { %v265_v30 = vrot.slane %v245_v28, 7  ;;  %v267_v31 = vrot.slane %v247_v29, 7  ;;  %v246_v32 = vsel %vm237_vm4, %v232_v22, %v242_v26  ;;  %v248_v33 = vsel %vm239_vm5, %v234_v23, %v244_v27 }
  0x1c   : > { %v266_v34 = vrot.slane %v246_v32, 7  ;;  %v269_v35 = vrot.slane %v248_v33, 7 }
  0x1d   : > { %271 = vrot.lane.b32.xlu0 %v265_v30, %s396_s5  ;;  %v268_v36 = vsel %vm264_vm6, %v265_v30, %v267_v31 }
  0x1e   : > { %275 = vrot.lane.b32.xlu1 %v268_v36, %s396_s5  ;;  %v270_v37 = vsel %vm264_vm6, %v266_v34, %v269_v35 }
  0x21   : > { %273 = vrot.lane.b32.xlu0 %v266_v34, %s396_s5 }
  0x22   : > { %277 = vrot.lane.b32.xlu1 %v270_v37, %s396_s5 }
  0x25   : > { %279 = vrot.lane.b32.xlu0 %v267_v31, %s396_s5 }
  0x26   : > { %281 = vrot.lane.b32.xlu1 %v269_v35, %s396_s5 }
  0x8f   : > { %v272_v38 = vpop.permute.xlu0 %271 }
  0x90   : > { %297 = vst.msk [vmem:[%s447_s30] sm:$0xfe] %vm296_vm7, %v272_v38  ;;  %v276_v39 = vpop.permute.xlu1 %275 }
  0x91   : > { %302 = vst.msk [vmem:[%s447_s30 + $0x18] sm:$0xff] %vm301_vm8, %v276_v39 }
  0x93   : > { %v274_v40 = vpop.permute.xlu0 %273 }
  0x94   : > { %v284_v41 = vsel %vm283_vm9, %v272_v38, %v274_v40  ;;  %300 = vst.msk [vmem:[%s447_s30 + $0x10] sm:$0xfe] %vm299_vm10, %v274_v40  ;;  %v278_v42 = vpop.permute.xlu1 %277 }
  0x95   : > { %298 = vst [vmem:[%s447_s30 + $0x8] sm:$0xfe] %v284_v41  ;;  %v285_v43 = vsel %vm283_vm9, %v276_v39, %v278_v42  ;;  %304 = vst.msk [vmem:[%s447_s30 + $0x28] sm:$0xff] %vm283_vm9, %v278_v42 }
  0x96   : > { %303 = vst [vmem:[%s447_s30 + $0x20] sm:$0xff] %v285_v43 }
  0x97   : > { %v280_v44 = vpop.permute.xlu0 %279 }
  0x98   : > { %306 = vst.msk [vmem:[%s447_s30 + $0x30] sm:$0x1] %vm305_vm11, %v280_v44  ;;  %v282_v45 = vpop.permute.xlu1 %281 }
  0x99   : > { %v286_v46 = vsel %vm283_vm9, %v280_v44, %v282_v45  ;;  %309 = vst.msk [vmem:[%s447_s30 + $0x40] sm:$0x1] %vm308_vm12, %v282_v45 }
  0x9a   : > { %307 = vst [vmem:[%s447_s30 + $0x38] sm:$0x1] %v286_v46 }
  0x9b PF: > { %s15_s17 = sadd.s32 1, %s393_s17  }
  0x9c   : > { %p12_p4 = scmp.ge.s32.totalorder %s15_s17, 4  }
  0x9e   :  { %14 = sbr.rel (!%p12_p4) target bundleno = 2 (0x2), region = 66 }

// kernel: _lambda_.14
= control target key start
LH: loop header
LB: loop body
LE: loop exit
PB: predicated region body
PF: predicated region fallthrough
CT: control target
= control target key end

     0   :  { %s2023_s21 = smov 0   ;;  %s2025_s22 = smov 0   ;;  %s2462_s0 = inlined_call_operand.vmem [shape: f32[2,18,288], index: 0, kind: input, shape index: {}]   ;;  %s2463_s1 = inlined_call_operand.vmem [shape: bf16[3,288,256], index: 1, kind: input, shape index: {}]   ;;  %s2464_s2 = inlined_call_operand.vmem [shape: f32[1,256], index: 2, kind: input, shape index: {}]   ;;  %s2465_s3 = inlined_call_operand.<no memory space> [shape: f32[1,1], index: 3, kind: input, shape index: {}]   ;;  %s2466_s4 = inlined_call_operand.vmem [shape: f32[2,16,256], index: 4, kind: output, shape index: {0}]   ;;  %s2467_s5 = inlined_call_operand.vmem [shape: f32[2,2,1,256], index: 5, kind: output, shape index: {1}]   ;;  %s2468_s6 = inlined_call_operand.vmem [shape: f32[2,2,1,256], index: 6, kind: output, shape index: {2}]  }
   0x1   :  { %s2027_s23 = smov 0   ;;  %s2029_s24 = smov 0  }
   0x2   :  { %s2031_s25 = smov 0  }
   0x3 LB: > { %s27_s3 = sadd.s32 1, %s1976_s23  ;;  %s30_s26 = sadd.s32 1, %s1980_s24  ;;  %s1984_s25 = sphi %s2031_s25, %s18_s25   ;;  %s1980_s24 = sphi %s2029_s24, %s2472_s24   ;;  %s1976_s23 = sphi %s2027_s23, %s2471_s23   ;;  %s1972_s22 = sphi %s2025_s22, %s2470_s22   ;;  %s1968_s21 = sphi %s2023_s21, %s2469_s21  }
   0x4   : > { %p28_p0 = scmp.ge.s32.totalorder %s27_s3, 2  ;;  %p1544_p1 = scmp.ge.s32.totalorder %s1984_s25, 1 }
   0x5   : > { %p236_p2 = scmp.lt.s32.totalorder %s1984_s25, 5 }
   0x6   : > { %s2474_s3 = smov (%p28_p0, %s27_s3), 0  ;;  %s2476_s26 = smov (!%p28_p0, %s30_s26), %s1980_s24 }
   0x7   : > { %p237_p3 = pnand %p1544_p1, %p236_p2  ;;  %p32_p4 = scmp.ge.s32.totalorder %s2476_s26, 2 }
   0x8   : > { %p286_p5 = scmp.lt.s32.totalorder (!%p237_p3), %s1972_s22, 1  ;;  %s1553_s7 = sshll.u32 (!%p237_p3), %s1968_s21, 3 }
   0x9   : > { %s2478_s26 = smov (%p32_p4, %s2476_s26), 0  ;;  %240 = sbr.rel (%p237_p3) target bundleno = 365 (0x16d), region = 36 }
   0xa   : > { %s318_s16 = sshra.s32 (!%p237_p3), %s1553_s7, 3  ;;  %p293_p6 = scmp.lt.s32.totalorder (!%p237_p3), %s1968_s21, 1 }
   0xb   : > { %s1740_s20 = smul.u32 (!%p237_p3), 24, %s318_s16 }
   0xe   : > { %v1784_v0 = vld [vmem:[%s2463_s1 + $0x194] ss:$8 sps:$4 sm:$0xff]   ;;  %v1786_v1 = vld [vmem:[%s2463_s1 + $0x190] ss:$8 sps:$4 sm:$0xff]   ;;  %v1986_v2 = vmov 0   ;;  %s2480_s22 = smov (!%p286_p5, %s1972_s22), 1 }
   0xf   : > { %688 = vmatprep.mubr.bf16.mxu1 %v1986_v2  ;;  %615 = vmatprep.subr.bf16.mxu0 %v1784_v0  ;;  %v1787_v3 = vld [vmem:[%s2463_s1 + $0x184] ss:$8 sps:$4 sm:$0xff]   ;;  %v1789_v4 = vld [vmem:[%s2463_s1 + $0x180] ss:$8 sps:$4 sm:$0xff]   ;;  %v1790_v5 = vld [vmem:[%s2463_s1 + $0x234] ss:$8 sps:$4 sm:$0xff]  }
  0x10   : > { %616 = vmatpush1.bf16.msra.mxu0 %v1786_v1  ;;  %v1792_v6 = vld [vmem:[%s2463_s1 + $0x230] ss:$8 sps:$4 sm:$0xff]   ;;  %v1793_v7 = vld [vmem:[%s2463_s1 + $0x174] ss:$8 sps:$4 sm:$0xff]   ;;  %s1741_s19 = smul.u32 72, %s2480_s22  ;;  %668 = vmatprep.subr.bf16.mxu1 %v1790_v5  ;;  %vm611_vm0 = vcmask 261120  }
  0x11   : > { %617 = vmatprep.subr.bf16.mxu0 %v1787_v3  ;;  %669 = vmatpush1.bf16.msra.mxu1 %v1792_v6  ;;  %v1796_v8 = vld [vmem:[%s2463_s1 + $0x224] ss:$8 sps:$4 sm:$0xff]   ;;  %v1798_v9 = vld [vmem:[%s2463_s1 + $0x220] ss:$8 sps:$4 sm:$0xff]   ;;  %v1795_v10 = vld [vmem:[%s2463_s1 + $0x170] ss:$8 sps:$4 sm:$0xff]  }
  0x12   : > { %s290_s7 = scalar_lea.vmem %s2462_s0, %s1741_s19  ;;  %670 = vmatprep.subr.bf16.mxu1 %v1796_v8  ;;  %v1799_v11 = vld [vmem:[%s2463_s1 + $0x164] ss:$8 sps:$4 sm:$0xff]   ;;  %v1804_v12 = vld [vmem:[%s2463_s1 + $0x74] ss:$8 sps:$4 sm:$0xff]   ;;  %v1801_v16 = vld [vmem:[%s2463_s1 + $0x160] ss:$8 sps:$4 sm:$0xff]  }
  0x13   : > { %s2093_s12 = scalar_lea.vmem %s290_s7, %s1740_s20  ;;  %v1805_v19 = vld [vmem:[%s2463_s1 + $0x154] ss:$8 sps:$4 sm:$0xff]   ;;  %v1802_v21 = vld [vmem:[%s2463_s1 + $0x70] ss:$8 sps:$4 sm:$0xff]   ;;  %v1810_v24 = vld [vmem:[%s2463_s1 + $0x64] ss:$8 sps:$4 sm:$0xff]  }
  0x14   : > { %618 = vmatpush1.bf16.msra.mxu0 %v1789_v4  ;;  %v2102_v13 = vld [vmem:[%s2093_s12 + $0x10] sm:$0xff]  ;;  %v328_v14 = vld [vmem:[%s2093_s12 + $0x28] sm:$0x3]  ;;  %v1811_v25 = vld [vmem:[%s2463_s1 + $0x144] ss:$8 sps:$4 sm:$0xff]   ;;  %s2482_s21 = smov (!%p293_p6, %s1968_s21), 1 }
  0x15   : > { %619 = vmatprep.subr.bf16.mxu0 %v1793_v7  ;;  %671 = vmatpush1.bf16.msra.mxu1 %v1798_v9  ;;  %v2106_v15 = vpack.c.bf16 %v328_v14, %v2102_v13  ;;  %v1807_v22 = vld [vmem:[%s2463_s1 + $0x150] ss:$8 sps:$4 sm:$0xff]   ;;  %v1808_v26 = vld [vmem:[%s2463_s1 + $0x60] ss:$8 sps:$4 sm:$0xff]   ;;  %v1816_v28 = vld [vmem:[%s2463_s1 + $0x54] ss:$8 sps:$4 sm:$0xff]  }
  0x16   : > { %880 = vmatprep.subr.bf16.mxu1 %v1804_v12  ;;  %v1813_v27 = vld [vmem:[%s2463_s1 + $0x140] ss:$8 sps:$4 sm:$0xff]   ;;  %v1817_v29 = vld [vmem:[%s2463_s1 + $0x134] ss:$8 sps:$4 sm:$0xff]   ;;  %v1814_v30 = vld [vmem:[%s2463_s1 + $0x50] ss:$8 sps:$4 sm:$0xff]  }
  0x17   : > { %v423_v17 = vshrl.u32 %v2106_v15, 16  ;;  %v425_v18 = vshll.u32 %v2106_v15, 16  ;;  %v1819_v31 = vld [vmem:[%s2463_s1 + $0x130] ss:$8 sps:$4 sm:$0xff]   ;;  %v1822_v32 = vld [vmem:[%s2463_s1 + $0x44] ss:$8 sps:$4 sm:$0xff]  }
  0x18   : > { %620 = vmatpush1.bf16.msra.mxu0 %v1795_v10  ;;  %v1823_v33 = vld [vmem:[%s2463_s1 + $0x124] ss:$8 sps:$4 sm:$0xff]   ;;  %v1820_v34 = vld [vmem:[%s2463_s1 + $0x40] ss:$8 sps:$4 sm:$0xff]   ;;  %v1828_v36 = vld [vmem:[%s2463_s1 + $0x34] ss:$8 sps:$4 sm:$0xff]  }
  0x19   : > { %621 = vmatprep.subr.bf16.mxu0 %v1799_v11  ;;  %v427_v20 = vrot.slane %v425_v18, 1  ;;  %v1825_v35 = vld [vmem:[%s2463_s1 + $0x120] ss:$8 sps:$4 sm:$0xff]   ;;  %v1829_v37 = vld [vmem:[%s2463_s1 + $0x214] ss:$8 sps:$4 sm:$0xff]   ;;  %s1546_s15 = sshll.u32 %s2482_s21, 1 }
  0x1a   : > { %v1826_v38 = vld [vmem:[%s2463_s1 + $0x30] ss:$8 sps:$4 sm:$0xff]   ;;  %v1834_v40 = vld [vmem:[%s2463_s1 + $0x24] ss:$8 sps:$4 sm:$0xff]   ;;  %v1832_v42 = vld [vmem:[%s2463_s1 + $0x20] ss:$8 sps:$4 sm:$0xff]  }
  0x1b   : > { %v428_v23 = vor.u32 %v427_v20, %v423_v17  ;;  %v1831_v39 = vld [vmem:[%s2463_s1 + $0x210] ss:$8 sps:$4 sm:$0xff]   ;;  %v1835_v41 = vld [vmem:[%s2463_s1 + $0x204] ss:$8 sps:$4 sm:$0xff]   ;;  %v1837_v43 = vld [vmem:[%s2463_s1 + $0x200] ss:$8 sps:$4 sm:$0xff]  }
  0x1c   : > { %622 = vmatpush1.bf16.msra.mxu0 %v1801_v16  ;;  %v1840_v44 = vld [vmem:[%s2463_s1 + $0x14] ss:$8 sps:$4 sm:$0xff]   ;;  %v1838_v46 = vld [vmem:[%s2463_s1 + $0x10] ss:$8 sps:$4 sm:$0xff]   ;;  %v1846_v48 = vld [vmem:[%s2463_s1 + $0x4] ss:$8 sps:$4 sm:$0xff]  }
  0x1d   : > { %623 = vmatprep.subr.bf16.mxu0 %v1805_v19  ;;  %1627 = vmatmul.mubr.msk.bf16.vlgmr.msra.gmra.mxu1 %vm611_vm0, %v428_v23  ;;  %v1841_v45 = vld [vmem:[%s2463_s1 + $0x1f4] ss:$8 sps:$4 sm:$0xff]   ;;  %v1843_v47 = vld [vmem:[%s2463_s1 + $0x1f0] ss:$8 sps:$4 sm:$0xff]   ;;  %v1847_v49 = vld [vmem:[%s2463_s1 + $0x1e4] ss:$8 sps:$4 sm:$0xff]  }
  0x1e   : > { %881 = vmatpush1.bf16.msra.mxu1 %v1802_v21  ;;  %v324_v50 = vld [vmem:[%s2093_s12 + $0x8] sm:$0xff]  ;;  %v327_v51 = vld [vmem:[%s2093_s12 + $0x20] sm:$0x3]  ;;  %v1852_v56 = vld [vmem:[%s2463_s1 + $0xf4] ss:$8 sps:$4 sm:$0xff]   ;;  %s1547_s16 = sshll.u32 %s2480_s22, 2 }
  0x1f   : > { %882 = vmatprep.subr.bf16.mxu1 %v1810_v24  ;;  %v1844_v52 = vld [vmem:[%s2463_s1] ss:$8 sps:$4 sm:$0xff]   ;;  %v2209_v54 = vpack.c.bf16 %v327_v51, %v324_v50  ;;  %v330_v55 = vpack.c.bf16 %v324_v50, %v324_v50  ;;  %v1853_v57 = vld [vmem:[%s2463_s1 + $0x1d4] ss:$8 sps:$4 sm:$0xff]   ;;  %v1850_v58 = vld [vmem:[%s2463_s1 + $0xf0] ss:$8 sps:$4 sm:$0xff]   ;;  %v331_v50 = vpack.c.bf16 %v2102_v13, %v2102_v13  ;;  %s2429_s17 = sadd.s32 %s1547_s16, %s1546_s15 }
  0x20   : > { %624 = vmatpush1.bf16.msra.mxu0 %v1807_v22  ;;  %v1849_v53 = vld [vmem:[%s2463_s1 + $0x1e0] ss:$8 sps:$4 sm:$0xff]   ;;  %v1855_v61 = vld [vmem:[%s2463_s1 + $0x1d0] ss:$8 sps:$4 sm:$0xff]   ;;  %v1858_v1 = vld [vmem:[%s2463_s1 + $0xe4] ss:$8 sps:$4 sm:$0xff]   ;;  %s307_s30 = scalar_lea.vmem %s2467_s5, %s2429_s17 }
  0x21   : > { %625 = vmatprep.subr.bf16.mxu0 %v1811_v25  ;;  %v416_v59 = vshrl.u32 %v2209_v54, 16  ;;  %v418_v60 = vshll.u32 %v2209_v54, 16  ;;  %912 = vmatprep.mubr.bf16.mxu1 %v330_v55  ;;  %v2226_v63 = vld [vmem:[%s2093_s12] sm:$0xff]  ;;  %v326_v0 = vld [vmem:[%s2093_s12 + $0x18] sm:$0x3]  ;;  %s1548_s20 = sshll.u32 %s2429_s17, 3  ;;  %s315_s12 = scalar_lea.vmem %s2468_s6, %s2429_s17 }
  0x22   : > { %883 = vmatpush1.bf16.msra.mxu1 %v1808_v26  ;;  %v1859_v3 = vld [vmem:[%s2463_s1 + $0x1c4] ss:$8 sps:$4 sm:$0xff]   ;;  %v2236_v5 = vpack.c.bf16 %v326_v0, %v2226_v63  ;;  %v1856_v6 = vld [vmem:[%s2463_s1 + $0xe0] ss:$8 sps:$4 sm:$0xff]   ;;  %v1864_v8 = vld [vmem:[%s2463_s1 + $0xd4] ss:$8 sps:$4 sm:$0xff]   ;;  %s299_s27 = scalar_lea.vmem %s2466_s4, %s1548_s20 }
  0x23   : > { %884 = vmatprep.subr.bf16.mxu1 %v1816_v28  ;;  %v420_v62 = vrot.slane %v418_v60, 1  ;;  %v1861_v7 = vld [vmem:[%s2463_s1 + $0x1c0] ss:$8 sps:$4 sm:$0xff]   ;;  %v1865_v9 = vld [vmem:[%s2463_s1 + $0x1b4] ss:$8 sps:$4 sm:$0xff]   ;;  %v1003_v28 = vrot.slane %v2209_v54, 1 }
  0x24   : > { %626 = vmatpush1.bf16.msra.mxu0 %v1813_v27  ;;  %v411_v10 = vshll.u32 %v2236_v5, 16  ;;  %v1862_v11 = vld [vmem:[%s2463_s1 + $0xd0] ss:$8 sps:$4 sm:$0xff]   ;;  %v1870_v14 = vld [vmem:[%s2463_s1 + $0xc4] ss:$8 sps:$4 sm:$0xff]   ;;  %v409_v17 = vshrl.u32 %v2236_v5, 16 }
  0x25   : > { %627 = vmatprep.subr.bf16.mxu0 %v1817_v29  ;;  %v421_v4 = vor.u32 %v420_v62, %v416_v59  ;;  %v1867_v12 = vld [vmem:[%s2463_s1 + $0x1b0] ss:$8 sps:$4 sm:$0xff]   ;;  %v1871_v16 = vld [vmem:[%s2463_s1 + $0x1a4] ss:$8 sps:$4 sm:$0xff]   ;;  %v1868_v19 = vld [vmem:[%s2463_s1 + $0xc0] ss:$8 sps:$4 sm:$0xff]  }
  0x26   : > { %885 = vmatpush1.bf16.msra.mxu1 %v1814_v30  ;;  %v413_v18 = vrot.slane %v411_v10, 1  ;;  %v1873_v20 = vld [vmem:[%s2463_s1 + $0x1a0] ss:$8 sps:$4 sm:$0xff]   ;;  %v1876_v21 = vld [vmem:[%s2463_s1 + $0xb4] ss:$8 sps:$4 sm:$0xff]  }
  0x27   : > { %886 = vmatprep.subr.bf16.mxu1 %v1822_v32  ;;  %647 = vmatprep.mubr.bf16.mxu0 %v421_v4  ;;  %v1879_v22 = vld [vmem:[%s2463_s1 + $0x2b4] ss:$8 sps:$4 sm:$0xff]   ;;  %v1874_v24 = vld [vmem:[%s2463_s1 + $0xb0] ss:$8 sps:$4 sm:$0xff]   ;;  %v1882_v26 = vld [vmem:[%s2463_s1 + $0xa4] ss:$8 sps:$4 sm:$0xff]  }
  0x28   : > { %628 = vmatpush1.bf16.msra.mxu0 %v1819_v31  ;;  %v414_v23 = vor.u32 %v413_v18, %v409_v17  ;;  %v1877_v25 = vld [vmem:[%s2463_s1 + $0x2b0] ss:$8 sps:$4 sm:$0xff]   ;;  %v1885_v27 = vld [vmem:[%s2463_s1 + $0x2a4] ss:$8 sps:$4 sm:$0xff]   ;;  %v1880_v29 = vld [vmem:[%s2463_s1 + $0xa0] ss:$8 sps:$4 sm:$0xff]  }
  0x29   : > { %629 = vmatprep.subr.bf16.mxu0 %v1823_v33  ;;  %v1883_v30 = vld [vmem:[%s2463_s1 + $0x2a0] ss:$8 sps:$4 sm:$0xff]   ;;  %v1888_v31 = vld [vmem:[%s2463_s1 + $0x94] ss:$8 sps:$4 sm:$0xff]   ;;  %v1886_v33 = vld [vmem:[%s2463_s1 + $0x90] ss:$8 sps:$4 sm:$0xff]  }
  0x2a   : > { %887 = vmatpush1.bf16.msra.mxu1 %v1820_v34  ;;  %v1891_v32 = vld [vmem:[%s2463_s1 + $0x294] ss:$8 sps:$4 sm:$0xff]   ;;  %v1889_v34 = vld [vmem:[%s2463_s1 + $0x290] ss:$8 sps:$4 sm:$0xff]   ;;  %v1939_v13 = vld [vmem:[%s2463_s1 + $0x344] ss:$8 sps:$4 sm:$0xff]  }
  0x2b   : > { %888 = vmatprep.subr.bf16.mxu1 %v1828_v36  ;;  %v1897_v36 = vld [vmem:[%s2463_s1 + $0x284] ss:$8 sps:$4 sm:$0xff]   ;;  %v1910_v51 = vld [vmem:[%s2463_s1 + $0x250] ss:$8 sps:$4 sm:$0xff]   ;;  %v1913_v54 = vld [vmem:[%s2463_s1 + $0x240] ss:$8 sps:$4 sm:$0xff]  }
  0x2c   : > { %630 = vmatpush1.bf16.msra.mxu0 %v1825_v35  ;;  %v1894_v35 = vld [vmem:[%s2463_s1 + $0x84] ss:$8 sps:$4 sm:$0xff]   ;;  %v1937_v55 = vld [vmem:[%s2463_s1 + $0x340] ss:$8 sps:$4 sm:$0xff]   ;;  %v1922_v60 = vld [vmem:[%s2463_s1 + $0x310] ss:$8 sps:$4 sm:$0xff]  }
  0x2d   : > { %631 = vmatprep.subr.bf16.mxu0 %v1829_v37  ;;  %v1892_v37 = vld [vmem:[%s2463_s1 + $0x80] ss:$8 sps:$4 sm:$0xff]   ;;  %v1921_v59 = vld [vmem:[%s2463_s1 + $0x324] ss:$8 sps:$4 sm:$0xff]   ;;  %v1928_v0 = vld [vmem:[%s2463_s1 + $0x2f0] ss:$8 sps:$4 sm:$0xff]  }
  0x2e   : > { %889 = vmatpush1.bf16.msra.mxu1 %v1826_v38  ;;  %v1895_v38 = vld [vmem:[%s2463_s1 + $0x280] ss:$8 sps:$4 sm:$0xff]   ;;  %v1942_v4 = vld [vmem:[%s2463_s1 + $0x2d4] ss:$8 sps:$4 sm:$0xff]  }
  0x2f   : > { %890 = vmatprep.subr.bf16.mxu1 %v1834_v40  ;;  %v1903_v40 = vld [vmem:[%s2463_s1 + $0x274] ss:$8 sps:$4 sm:$0xff]   ;;  %v1925_v62 = vld [vmem:[%s2463_s1 + $0x300] ss:$8 sps:$4 sm:$0xff]  }
  0x30   : > { %632 = vmatpush2.bf16.msra.mxu0 %v1831_v39  ;;  %v1900_v39 = vld [vmem:[%s2463_s1 + $0x114] ss:$8 sps:$4 sm:$0xff]  }
  0x31   : > { %633 = vmatprep.subr.bf16.mxu0 %v1835_v41  ;;  %v329_v41 = vpack.c.bf16 %v2226_v63, %v2226_v63  ;;  %v1930_v63 = vld [vmem:[%s2463_s1 + $0x2f4] ss:$8 sps:$4 sm:$0xff]  }
  0x32   : > { %891 = vmatpush1.bf16.msra.mxu1 %v1832_v42  ;;  %v1898_v42 = vld [vmem:[%s2463_s1 + $0x110] ss:$8 sps:$4 sm:$0xff]  }
  0x33   : > { %892 = vmatprep.subr.bf16.mxu1 %v1840_v44  ;;  %v1906_v44 = vld [vmem:[%s2463_s1 + $0x104] ss:$8 sps:$4 sm:$0xff]  }
  0x34   : > { %634 = vmatpush2.bf16.msra.mxu0 %v1837_v43  ;;  %v1901_v43 = vld [vmem:[%s2463_s1 + $0x270] ss:$8 sps:$4 sm:$0xff]  }
  0x35   : > { %635 = vmatprep.subr.bf16.mxu0 %v1841_v45  ;;  %v1909_v45 = vld [vmem:[%s2463_s1 + $0x264] ss:$8 sps:$4 sm:$0xff]  }
  0x36   : > { %893 = vmatpush1.bf16.msra.mxu1 %v1838_v46  ;;  %v1904_v46 = vld [vmem:[%s2463_s1 + $0x100] ss:$8 sps:$4 sm:$0xff]  }
  0x37   : > { %894 = vmatprep.subr.bf16.mxu1 %v1846_v48  ;;  %v1912_v48 = vld [vmem:[%s2463_s1 + $0x254] ss:$8 sps:$4 sm:$0xff]  }
  0x38   : > { %636 = vmatpush2.bf16.msra.mxu0 %v1843_v47  ;;  %v1907_v47 = vld [vmem:[%s2463_s1 + $0x260] ss:$8 sps:$4 sm:$0xff]  }
  0x39   : > { %637 = vmatprep.subr.bf16.mxu0 %v1847_v49  ;;  %v1933_v49 = vld [vmem:[%s2463_s1 + $0x354] ss:$8 sps:$4 sm:$0xff]  }
  0x3a   : > { %895 = vmatpush1.bf16.msra.mxu1 %v1844_v52  ;;  %v1931_v52 = vld [vmem:[%s2463_s1 + $0x350] ss:$8 sps:$4 sm:$0xff]  }
  0x3b   : > { %896 = vmatprep.subr.bf16.mxu1 %v1852_v56  ;;  %v1918_v56 = vld [vmem:[%s2463_s1 + $0x334] ss:$8 sps:$4 sm:$0xff]  }
  0x3c   : > { %638 = vmatpush2.bf16.msra.mxu0 %v1849_v53  ;;  %v1915_v53 = vld [vmem:[%s2463_s1 + $0x244] ss:$8 sps:$4 sm:$0xff]  }
  0x3d   : > { %639 = vmatprep.subr.bf16.mxu0 %v1853_v57  ;;  %v1004_v57 = vrot.slane %v2106_v15, 1  ;;  %v1924_v15 = vld [vmem:[%s2463_s1 + $0x314] ss:$8 sps:$4 sm:$0xff]  }
  0x3e   : > { %897 = vmatpush2.bf16.msra.mxu1 %v1850_v58  ;;  %v1916_v58 = vld [vmem:[%s2463_s1 + $0x330] ss:$8 sps:$4 sm:$0xff]  }
  0x3f   : > { %898 = vmatprep.subr.bf16.mxu1 %v1858_v1  ;;  %v1936_v1 = vld [vmem:[%s2463_s1 + $0x2e4] ss:$8 sps:$4 sm:$0xff]  }
  0x40   : > { %640 = vmatpush2.bf16.msra.mxu0 %v1855_v61  ;;  %v1927_v61 = vld [vmem:[%s2463_s1 + $0x304] ss:$8 sps:$4 sm:$0xff]  }
  0x41   : > { %641 = vmatprep.subr.bf16.mxu0 %v1859_v3  ;;  %v1934_v3 = vld [vmem:[%s2463_s1 + $0x2e0] ss:$8 sps:$4 sm:$0xff]  }
  0x42   : > { %899 = vmatpush2.bf16.msra.mxu1 %v1856_v6  ;;  %v1940_v6 = vld [vmem:[%s2463_s1 + $0x2d0] ss:$8 sps:$4 sm:$0xff]  }
  0x43   : > { %900 = vmatprep.subr.bf16.mxu1 %v1864_v8  ;;  %v1943_v8 = vld [vmem:[%s2463_s1 + $0x2c0] ss:$8 sps:$4 sm:$0xff]  }
  0x44   : > { %642 = vmatpush2.bf16.msra.mxu0 %v1861_v7  ;;  %v1945_v7 = vld [vmem:[%s2463_s1 + $0x2c4] ss:$8 sps:$4 sm:$0xff]  }
  0x45   : > { %643 = vmatprep.subr.bf16.mxu0 %v1865_v9  ;;  %v1002_v9 = vrot.slane %v2236_v5, 1 }
  0x46   : > { %901 = vmatpush2.bf16.msra.mxu1 %v1862_v11 }
  0x47   : > { %902 = vmatprep.subr.bf16.mxu1 %v1870_v14 }
  0x48   : > { %644 = vmatpush2.bf16.msra.mxu0 %v1867_v12 }
  0x49   : > { %645 = vmatprep.subr.bf16.mxu0 %v1871_v16 }
  0x4a   : > { %903 = vmatpush2.bf16.msra.mxu1 %v1868_v19 }
  0x4b   : > { %904 = vmatprep.subr.bf16.mxu1 %v1876_v21 }
  0x4c   : > { %646 = vmatpush2.bf16.msra.mxu0 %v1873_v20 }
  0x4d   : > { %1190 = vmatprep.subr.bf16.mxu0 %v1879_v22 }
  0x4e   : > { %905 = vmatpush2.bf16.msra.mxu1 %v1874_v24 }
  0x4f   : > { %648 = vmatmul.mubr.bf16.vlgmr.msra.gmra.mxu0 %v414_v23  ;;  %906 = vmatprep.subr.bf16.mxu1 %v1882_v26 }
  0x50   : > { %1191 = vmatpush1.bf16.msra.mxu0 %v1877_v25  ;;  %1222 = vmatprep.mubr.bf16.mxu0 %v1003_v28 }
  0x51   : > { %1192 = vmatprep.subr.bf16.mxu0 %v1885_v27 }
  0x52   : > { %907 = vmatpush2.bf16.msra.mxu1 %v1880_v29 }
  0x53   : > { %908 = vmatprep.subr.bf16.mxu1 %v1888_v31  ;;  %v1276_v31 = vlaneseq }
  0x54   : > { %1193 = vmatpush1.bf16.msra.mxu0 %v1883_v30 }
  0x55   : > { %1194 = vmatprep.subr.bf16.mxu0 %v1891_v32  ;;  %v1277_v32 = vshrl.u32 %v1276_v31, 7  ;;  %vm1320_vm1 = vcmp.lt.s32.totalorder %v1276_v31, 256 }
  0x56   : > { %909 = vmatpush2.bf16.msra.mxu1 %v1886_v33 }
  0x57   : > { %910 = vmatprep.subr.bf16.mxu1 %v1894_v35  ;;  %v1274_v35 = vld [vmem:[%s2464_s2] sm:$0x3] }
  0x58   : > { %1195 = vmatpush1.bf16.msra.mxu0 %v1889_v34  ;;  %v1278_v34 = vsub.s32 0, %v1277_v32 }
  0x59   : > { %1196 = vmatprep.subr.bf16.mxu0 %v1897_v36 }
  0x5a   : > { %911 = vmatpush2.bf16.msra.mxu1 %v1892_v37 }
  0x5b   : > { %933 = vmatprep.subr.bf16.mxu1 %v1900_v39 }
  0x5c   : > { %1197 = vmatpush1.bf16.msra.mxu0 %v1895_v38  ;;  %v1282_v38 = vsub.s32 1, %v1277_v32 }
  0x5d   : > { %1198 = vmatprep.subr.bf16.mxu0 %v1903_v40  ;;  %913 = vmatmul.mubr.bf16.vlgmr.msra.gmra.mxu1 %v329_v41 }
  0x5e   : > { %934 = vmatpush1.bf16.msra.mxu1 %v1898_v42  ;;  %953 = vmatprep.mubr.bf16.mxu1 %v1986_v2 }
  0x5f   : > { %935 = vmatprep.subr.bf16.mxu1 %v1906_v44 }
  0x60   : > { %1199 = vmatpush1.bf16.msra.mxu0 %v1901_v43  ;;  %v1279_v43 = vrot.slane %v1274_v35, %v1278_v34 }
  0x61   : > { %1200 = vmatprep.subr.bf16.mxu0 %v1909_v45 }
  0x62   : > { %936 = vmatpush1.bf16.msra.mxu1 %v1904_v46 }
  0x63   : > { %1243 = vmatprep.subr.bf16.mxu1 %v1933_v49 }
  0x64   : > { %1201 = vmatpush1.bf16.msra.mxu0 %v1907_v47 }
  0x65   : > { %1202 = vmatprep.subr.bf16.mxu0 %v1912_v48  ;;  %1664 = vmatmul.mubr.msk.bf16.vlgmr.msra.gmra.mxu1 %vm611_vm0, %v331_v50  ;;  %v1283_v48 = vrot.slane %v1274_v35, %v1282_v38 }
  0x66   : > { %1244 = vmatpush1.bf16.msra.mxu1 %v1931_v52  ;;  %1263 = vmatprep.mubr.bf16.mxu1 %v1986_v2  ;;  %v1919_v2 = vld [vmem:[%s2463_s1 + $0x320] ss:$8 sps:$4 sm:$0xff]  }
  0x67   : > { %1245 = vmatprep.subr.bf16.mxu1 %v1939_v13 }
  0x68   : > { %1203 = vmatpush1.bf16.msra.mxu0 %v1910_v51 }
  0x69   : > { %1204 = vmatprep.subr.bf16.mxu0 %v1915_v53 }
  0x6a   : > { %1246 = vmatpush1.bf16.msra.mxu1 %v1937_v55 }
  0x6c   : > { %1205 = vmatpush1.bf16.msra.mxu0 %v1913_v54 }
  0x6d   : > { %1206 = vmatprep.subr.bf16.mxu0 %v1918_v56  ;;  %1737 = vmatmul.mubr.msk.bf16.vlgmr.msra.gmra.mxu1 %vm611_vm0, %v1004_v57 }
  0x70   : > { %1207 = vmatpush2.bf16.msra.mxu0 %v1916_v58 }
  0x71   : > { %1208 = vmatprep.subr.bf16.mxu0 %v1921_v59  ;;  %v1987_v59 = vmov 1966171168  }
  0x74   : > { %1209 = vmatpush2.bf16.msra.mxu0 %v1919_v2  ;;  %v1304_v2 = vunpack.c.l.s4 %v1987_v59 }
  0x75   : > { %1210 = vmatprep.subr.bf16.mxu0 %v1924_v15 }
  0x78   : > { %1211 = vmatpush2.bf16.msra.mxu0 %v1922_v60 }
  0x79   : > { %1212 = vmatprep.subr.bf16.mxu0 %v1927_v61 }
  0x7c   : > { %1213 = vmatpush2.bf16.msra.mxu0 %v1925_v62 }
  0x7d   : > { %1214 = vmatprep.subr.bf16.mxu0 %v1930_v63 }
  0x80   : > { %1215 = vmatpush2.bf16.msra.mxu0 %v1928_v0 }
  0x81   : > { %1216 = vmatprep.subr.bf16.mxu0 %v1936_v1 }
  0x84   : > { %1217 = vmatpush2.bf16.msra.mxu0 %v1934_v3 }
  0x85   : > { %1218 = vmatprep.subr.bf16.mxu0 %v1942_v4  ;;  %v1305_v4 = vunpack.c.0.s8 %v1304_v2 }
  0x88   : > { %1219 = vmatpush2.bf16.msra.mxu0 %v1940_v6 }
  0x89   : > { %1220 = vmatprep.subr.bf16.mxu0 %v1945_v7 }
  0x8c   : > { %1221 = vmatpush2.bf16.msra.mxu0 %v1943_v8 }
  0x8f   : > { %1223 = vmatmul.mubr.bf16.vlgmr.msra.gmra.mxu0 %v1002_v9 }
  0xdd   : > { %v690_v10 = vpop.f32.mrf.mxu1 }
  0xdf   : > { %v692_v11 = vpop.f32.mrf.mxu1 }
  0xe1   : > { %v694_v12 = vpop.f32.mrf.mxu1 }
  0xe3   : > { %v695_v14 = vpop.f32.mrf.mxu1 }
 0x10f   : > { %v649_v16 = vpop.f32.mrf.mxu0 }
 0x110   : > { %v691_v33 = vadd.f32 %v690_v10, %v649_v16  ;;  %v1308_v16 = vsub.s32 %v1305_v4, %v1277_v32 }
 0x111   : > { %v651_v17 = vpop.f32.mrf.mxu0 }
 0x112   : > { %v693_v36 = vadd.f32 %v692_v11, %v651_v17 }
 0x113   : > { %v653_v18 = vpop.f32.mrf.mxu0 }
 0x115   : > { %v654_v19 = vpop.f32.mrf.mxu0 }
 0x11d   : > { %v914_v20 = vpop.f32.mrf.mxu1 }
 0x11e   : > { %v915_v37 = vadd.f32 %v914_v20, %v691_v33 }
 0x11f   : > { %v916_v21 = vpop.f32.mrf.mxu1 }
 0x120   : > { %v917_v40 = vadd.f32 %v916_v21, %v693_v36 }
 0x121   : > { %v918_v22 = vpop.f32.mrf.mxu1 }
 0x123   : > { %v919_v23 = vpop.f32.mrf.mxu1 }
 0x125   : > { %v955_v24 = vpop.f32.mrf.mxu1 }
 0x126   : > { %v956_v41 = vadd.f32 %v955_v24, %v915_v37 }
 0x127   : > { %v957_v25 = vpop.f32.mrf.mxu1 }
 0x128   : > { %v958_v45 = vadd.f32 %v957_v25, %v917_v40 }
 0x129   : > { %v959_v5 = vpop.f32.mrf.mxu1 }
 0x12b   : > { %v960_v26 = vpop.f32.mrf.mxu1 }
 0x12d   : > { %v1265_v27 = vpop.f32.mrf.mxu1 }
 0x12f   : > { %v1267_v28 = vpop.f32.mrf.mxu1 }
 0x131   : > { %v1269_v29 = vpop.f32.mrf.mxu1 }
 0x133   : > { %v1270_v30 = vpop.f32.mrf.mxu1 }
 0x14f   : > { %v1224_v39 = vpop.f32.mrf.mxu0 }
 0x150   : > { %v1266_v42 = vadd.f32 %v1265_v27, %v1224_v39 }
 0x151   : > { %v1226_v44 = vpop.f32.mrf.mxu0 }
 0x152   : > { %v1272_v46 = vadd.f32 %v1266_v42, %v956_v41  ;;  %v1268_v47 = vadd.f32 %v1267_v28, %v1226_v44 }
 0x153   : > { %v1228_v49 = vpop.f32.mrf.mxu0 }
 0x154   : > { %v1286_v50 = vadd.f32 %v1279_v43, %v1272_v46  ;;  %v1273_v51 = vadd.f32 %v1268_v47, %v958_v45 }
 0x155   : > { %v1229_v52 = vpop.f32.mrf.mxu0 }
 0x156   : > { %v1288_v53 = vrot.slane %v1286_v50, 4  ;;  %v1323_v13 = vmul.f32 %v1286_v50, %v1286_v50  ;;  %1356 = vst [vmem:[%s299_s27] sm:$0xff] %v1286_v50  ;;  %v1287_v54 = vadd.f32 %v1283_v48, %v1273_v51 }
 0x158   : > { %v1289_v55 = vadd.f32 %v1288_v53, %v1286_v50  ;;  %v1325_v56 = vrot.slane %v1323_v13, 4  ;;  %v1294_v57 = vrot.slane %v1287_v54, 4  ;;  %v1324_v58 = vmul.f32 %v1287_v54, %v1287_v54  ;;  %1357 = vst [vmem:[%s299_s27 + $0x8] sm:$0xff] %v1287_v54 }
 0x15a   : > { %v1290_v15 = vrot.slane %v1289_v55, 2  ;;  %v1326_v60 = vadd.f32 %v1325_v56, %v1323_v13  ;;  %v1295_v61 = vadd.f32 %v1294_v57, %v1287_v54  ;;  %v1331_v62 = vrot.slane %v1324_v58, 4 }
 0x15c   : > { %v1291_v63 = vadd.f32 %v1290_v15, %v1289_v55  ;;  %v1327_v0 = vrot.slane %v1326_v60, 2  ;;  %v1296_v1 = vrot.slane %v1295_v61, 2  ;;  %v1332_v3 = vadd.f32 %v1331_v62, %v1324_v58 }
 0x15e   : > { %v1292_v6 = vrot.slane %v1291_v63, 1  ;;  %v1328_v7 = vadd.f32 %v1327_v0, %v1326_v60  ;;  %v1297_v8 = vadd.f32 %v1296_v1, %v1295_v61  ;;  %v1333_v9 = vrot.slane %v1332_v3, 2 }
 0x160   : > { %v1329_v10 = vrot.slane %v1328_v7, 1  ;;  %v1298_v11 = vrot.slane %v1297_v8, 1  ;;  %v1334_v12 = vadd.f32 %v1333_v9, %v1332_v3  ;;  %v1293_v14 = vadd.f32 %v1292_v6, %v1291_v63 }
 0x162   : > { %v1299_v17 = vadd.f32 %v1298_v11, %v1297_v8  ;;  %v1335_v18 = vrot.slane %v1334_v12, 1  ;;  %v1330_v19 = vadd.f32 %v1329_v10, %v1328_v7 }
 0x164   : > { %v1302_v20 = vcombine.low %v1293_v14, %v1299_v17  ;;  %v1336_v21 = vadd.f32 %v1335_v18, %v1334_v12 }
 0x166   : > { %v1309_v22 = vrot.slane %v1302_v20, %v1308_v16  ;;  %v1339_v23 = vcombine.low %v1330_v19, %v1336_v21 }
 0x168   : > { %v1316_v24 = vrot.slane %v1309_v22, %v1308_v16  ;;  %v1346_v25 = vrot.slane %v1339_v23, %v1308_v16 }
 0x16a   : > { %1322 = vst.msk [vmem:[%s307_s30] sm:$0x3] %vm1320_vm1, %v1316_v24  ;;  %v1353_v5 = vrot.slane %v1346_v25, %v1308_v16 }
 0x16c   : > { %1355 = vst.msk [vmem:[%s315_s12] sm:$0x3] %vm1320_vm1, %v1353_v5 }
 0x16d PF: > { %s18_s25 = sadd.s32 1, %s1984_s25   ;;  %s2469_s21 = smov %s1976_s23 }
 0x16e   : > { %p15_p7 = scmp.ge.s32.totalorder %s18_s25, 6   ;;  %s2470_s22 = smov %s1980_s24 }
 0x16f   : > { %s2471_s23 = smov %s2474_s3  ;;  %s2472_s24 = smov %s2478_s26 }
 0x170   :  { %17 = sbr.rel (!%p15_p7) target bundleno = 3 (0x3), region = 93 }

// kernel: _lambda_.17
= control target key start
LH: loop header
LB: loop body
LE: loop exit
PB: predicated region body
PF: predicated region fallthrough
CT: control target
= control target key end

     0   :  { %s534_s18 = smov 0   ;;  %s597_s0 = inlined_call_operand.vmem [shape: f32[2,16,256], index: 0, kind: input, shape index: {}]   ;;  %s598_s1 = inlined_call_operand.vmem [shape: f32[1,256], index: 1, kind: input, shape index: {}]   ;;  %s599_s2 = inlined_call_operand.vmem [shape: f32[1,256], index: 2, kind: input, shape index: {}]   ;;  %s600_s3 = inlined_call_operand.<no memory space> [shape: f32[1,1], index: 3, kind: input, shape index: {}]   ;;  %s601_s4 = inlined_call_operand.vmem [shape: f32[2,18,288], index: 4, kind: input, shape index: {}]   ;;  %s602_s5 = inlined_call_operand.vmem [shape: f32[2,18,288], index: 5, kind: output, shape index: {}]  }
   0x1 LB: > { %s469_s19 = sadd.s32 4294967295, %s499_s18   ;;  %p473_p0 = scmp.ge.s32.totalorder %s499_s18, 1  ;;  %s499_s18 = sphi %s534_s18, %s16_s18  }
   0x2   : > { %p198_p1 = scmp.lt.s32.totalorder %s499_s18, 3 }
   0x4   : > { %p199_p2 = pnand %p473_p0, %p198_p1 }
   0x5   : > { %p231_p3 = scmp.lt.s32.totalorder (!%p199_p2), %s469_s19, 1  ;;  %s501_s23 = smov (!%p199_p2), 112  }
   0x6   : > { %202 = sbr.rel (%p199_p2) target bundleno = 270 (0x10e), region = 40  ;;  %s503_s10 = smov (!%p199_p2), 16  }
   0xb   : > { %s604_s19 = smov (!%p231_p3, %s469_s19), 1  ;;  %vm300_vm0 = vcmask 1046528   ;;  %vm343_vm1 = vcmask 261120   ;;  %v502_v24 = vmov 0.0   ;;  %v252_v25 = vlaneseq  ;;  %v250_v29 = vld [vmem:[%s598_s1] sm:$0x3] }
   0xc   : > { %s481_s3 = smul.u32 72, %s604_s19  ;;  %s480_s27 = sshll.u32 %s604_s19, 5  ;;  %v266_v32 = vld [vmem:[%s599_s2] sm:$0x3]  ;;  %vm328_vm2 = vcmask 916480   ;;  %vm350_vm3 = vcmask 254976  }
   0xd   : > { %v253_v26 = vshrl.u32 %v252_v25, 7  ;;  %s235_s7 = scalar_lea.vmem %s597_s0, %s480_s27  ;;  %vm356_vm4 = vcmask 1040384   ;;  %vm391_vm5 = vcmask 130049   ;;  %vm375_vm6 = vcmask 130048  }
   0xe   : > { %s240_s22 = scalar_lea.vmem %s601_s4, %s481_s3  ;;  %s555_s26 = scalar_lea.vmem %s602_s5, %s481_s3  ;;  %v246_v33 = vld [vmem:[%s235_s7] sm:$0xff]  ;;  %v247_v34 = vld [vmem:[%s235_s7 + $0x8] sm:$0xff]  ;;  %v248_v40 = vld [vmem:[%s235_s7 + $0x10] sm:$0xff]  ;;  %vm388_vm7 = vcmask 1047681   ;;  %vm393_vm8 = vcmask 1047680   ;;  %vm400_vm9 = vcmask 122880  }
   0xf   : > { %v284_v0 = vld [vmem:[%s240_s22 + $0x10] sm:$0xff]  ;;  %v287_v1 = vld [vmem:[%s240_s22 + $0x28] sm:$0xff]  ;;  %v282_v2 = vld [vmem:[%s240_s22] sm:$0xff]  ;;  %344 = vst.msk [vmem:[%s555_s26 + $0x10] sm:$0xff] %vm343_vm1, %v502_v24  ;;  %v254_v27 = vsub.s32 0, %v253_v26  ;;  %v258_v28 = vsub.s32 1, %v253_v26 }
  0x10   : > { %v307_v3 = vrot.slane %v284_v0, 1  ;;  %v308_v4 = vrot.slane %v287_v1, 1  ;;  %v285_v5 = vld [vmem:[%s240_s22 + $0x18] sm:$0xff]  ;;  %v301_v6 = vrot.slane %v282_v2, 1  ;;  %v288_v7 = vld [vmem:[%s240_s22 + $0x30] sm:$0x3]  ;;  %341 = vst [vmem:[%s555_s26] sm:$0xff] %v502_v24 }
  0x11   : > { %v302_v8 = vrot.slane %v285_v5, 1  ;;  %v310_v9 = vrot.slane %v288_v7, 1  ;;  %v283_v10 = vld [vmem:[%s240_s22 + $0x8] sm:$0xff]  ;;  %v286_v11 = vld [vmem:[%s240_s22 + $0x20] sm:$0xff]  ;;  %v289_v16 = vld [vmem:[%s240_s22 + $0x38] sm:$0x3]  ;;  %v255_v30 = vrot.slane %v250_v29, %v254_v27  ;;  %v259_v31 = vrot.slane %v250_v29, %v258_v28 }
  0x12   : > { %v290_v12 = vld [vmem:[%s240_s22 + $0x40] sm:$0x3]  ;;  %v309_v13 = vsel %vm300_vm0, %v307_v3, %v308_v4  ;;  %v304_v14 = vrot.slane %v283_v10, 1  ;;  %v305_v15 = vrot.slane %v286_v11, 1  ;;  %v312_v21 = vrot.slane %v289_v16, 1  ;;  %342 = vst [vmem:[%s555_s26 + $0x8] sm:$0xff] %v502_v24 }
  0x13   : > { %320 = vrot.lane.b32.xlu1 %v309_v13, %s501_s23  ;;  %v303_v17 = vsel %vm300_vm0, %v301_v6, %v302_v8  ;;  %v311_v18 = vsel %vm300_vm0, %v302_v8, %v310_v9  ;;  %v314_v19 = vrot.slane %v290_v12, 1  ;;  %345 = vst [vmem:[%s555_s26 + $0x18] sm:$0xff] %v502_v24  ;;  %347 = vst.msk [vmem:[%s555_s26 + $0x28] sm:$0xff] %vm343_vm1, %v502_v24  ;;  %v249_v41 = vld [vmem:[%s235_s7 + $0x18] sm:$0xff]  ;;  %vm397_vm10 = vcmask 1040512  }
  0x14   : > { %316 = vrot.lane.b32.xlu0 %v303_v17, %s501_s23  ;;  %v306_v20 = vsel %vm300_vm0, %v304_v14, %v305_v15  ;;  %v313_v23 = vsel %vm300_vm0, %v305_v15, %v312_v21  ;;  %348 = vst [vmem:[%s555_s26 + $0x30] sm:$0x3] %v502_v24  ;;  %349 = vst [vmem:[%s555_s26 + $0x38] sm:$0x3] %v502_v24  ;;  %v271_v35 = vrot.slane %v266_v32, %v254_v27 }
  0x15   : > { %v315_v22 = vsel %vm300_vm0, %v308_v4, %v314_v19  ;;  %v275_v36 = vrot.slane %v266_v32, %v258_v28  ;;  %v262_v37 = vmul.f32 %v255_v30, %v246_v33  ;;  %v263_v38 = vmul.f32 %v259_v31, %v247_v34  ;;  %351 = vst.msk [vmem:[%s555_s26 + $0x40] sm:$0x3] %vm350_vm3, %v502_v24 }
  0x16   : > { %v264_v45 = vmul.f32 %v255_v30, %v248_v40  ;;  %v265_v46 = vmul.f32 %v259_v31, %v249_v41 }
  0x17   : > { %322 = vrot.lane.b32.xlu1 %v311_v18, %s501_s23  ;;  %v278_v43 = vadd.f32 %v271_v35, %v262_v37  ;;  %v279_v44 = vadd.f32 %v275_v36, %v263_v38 }
  0x18   : > { %318 = vrot.lane.b32.xlu0 %v306_v20, %s501_s23  ;;  %v280_v53 = vadd.f32 %v271_v35, %v264_v45  ;;  %v281_v54 = vadd.f32 %v275_v36, %v265_v46 }
  0x1b   : > { %326 = vrot.lane.b32.xlu1 %v315_v22, %s501_s23 }
  0x1c   : > { %324 = vrot.lane.b32.xlu0 %v313_v23, %s501_s23 }
  0x85   : > { %v321_v39 = vpop.permute.xlu1 %320 }
  0x86   : > { %v317_v42 = vpop.permute.xlu0 %316 }
  0x89   : > { %v323_v47 = vpop.permute.xlu1 %322 }
  0x8a   : > { %v319_v48 = vpop.permute.xlu0 %318 }
  0x8b   : > { %v329_v49 = vsel %vm328_vm2, %v317_v42, %v319_v48  ;;  %v330_v50 = vsel %vm328_vm2, %v319_v48, %v321_v39 }
  0x8c   : > { %v337_v51 = vadd.f32 %v329_v49, %v278_v43  ;;  %v338_v52 = vadd.f32 %v330_v50, %v279_v44 }
  0x8d   : > { %v327_v55 = vpop.permute.xlu1 %326 }
  0x8e   : > { %v357_v56 = vrot.slane %v337_v51, 7  ;;  %v358_v57 = vrot.slane %v338_v52, 7  ;;  %v325_v58 = vpop.permute.xlu0 %324 }
  0x8f   : > { %v331_v59 = vsel %vm328_vm2, %v323_v47, %v325_v58  ;;  %v332_v60 = vsel %vm328_vm2, %v325_v58, %v327_v55 }
  0x90   : > { %v339_v61 = vadd.f32 %v331_v59, %v280_v53  ;;  %v340_v62 = vadd.f32 %v332_v60, %v281_v54  ;;  %365 = vrot.lane.b32.xlu1 %v358_v57, %s503_s10  ;;  %363 = vrot.lane.b32.xlu0 %v357_v56, %s503_s10 }
  0x92   : > { %v359_v63 = vrot.slane %v339_v61, 7  ;;  %v361_v0 = vrot.slane %v340_v62, 7 }
  0x94   : > { %v362_v1 = vsel %vm356_vm4, %v358_v57, %v361_v0  ;;  %v360_v2 = vsel %vm356_vm4, %v357_v56, %v359_v63 }
  0x95   : > { %369 = vrot.lane.b32.xlu1 %v362_v1, %s503_s10  ;;  %367 = vrot.lane.b32.xlu0 %v360_v2, %s503_s10 }
  0x99   : > { %373 = vrot.lane.b32.xlu1 %v361_v0, %s503_s10  ;;  %371 = vrot.lane.b32.xlu0 %v359_v63, %s503_s10 }
 0x102   : > { %v366_v3 = vpop.permute.xlu1 %365  ;;  %v364_v4 = vpop.permute.xlu0 %363 }
 0x103   : > { %392 = vst.msk [vmem:[%s555_s26 + $0x10] sm:$0xfe] %vm391_vm5, %v366_v3  ;;  %v376_v5 = vsel %vm375_vm6, %v364_v4, %v366_v3 }
 0x104   : > { %389 = vst.msk [vmem:[%s555_s26] sm:$0xfe] %vm388_vm7, %v364_v4  ;;  %390 = vst [vmem:[%s555_s26 + $0x8] sm:$0xfe] %v376_v5 }
 0x107   : > { %v370_v6 = vpop.permute.xlu1 %369  ;;  %v368_v7 = vpop.permute.xlu0 %367 }
 0x108   : > { %396 = vst.msk [vmem:[%s555_s26 + $0x28] sm:$0xff] %vm375_vm6, %v370_v6  ;;  %v377_v8 = vsel %vm375_vm6, %v368_v7, %v370_v6 }
 0x109   : > { %394 = vst.msk [vmem:[%s555_s26 + $0x18] sm:$0xff] %vm393_vm8, %v368_v7  ;;  %395 = vst [vmem:[%s555_s26 + $0x20] sm:$0xff] %v377_v8 }
 0x10b   : > { %v374_v9 = vpop.permute.xlu1 %373  ;;  %v372_v10 = vpop.permute.xlu0 %371 }
 0x10c   : > { %401 = vst.msk [vmem:[%s555_s26 + $0x40] sm:$0x1] %vm400_vm9, %v374_v9  ;;  %v378_v11 = vsel %vm375_vm6, %v372_v10, %v374_v9 }
 0x10d   : > { %398 = vst.msk [vmem:[%s555_s26 + $0x30] sm:$0x1] %vm397_vm10, %v372_v10  ;;  %399 = vst [vmem:[%s555_s26 + $0x38] sm:$0x1] %v378_v11 }
 0x10e PF: > { %s16_s18 = sadd.s32 1, %s499_s18  }
 0x10f   : > { %p13_p4 = scmp.ge.s32.totalorder %s16_s18, 4  }
 0x111   :  { %15 = sbr.rel (!%p13_p4) target bundleno = 1 (0x1), region = 73 }

// kernel: tile.173
= control target key start
LH: loop header
LB: loop body
LE: loop exit
PB: predicated region body
PF: predicated region fallthrough
CT: control target
= control target key end

     0   :  { %s28_s0 = inlined_call_operand.vmem [shape: f32[64], index: 0, kind: input, shape index: {}]   ;;  %s29_s1 = inlined_call_operand.vmem [shape: f32[16,64], index: 1, kind: output, shape index: {}]  }
   0x1   :  { %v4_v0 = vld [vmem:[%s28_s0] ss:$0 sm:$0xff] }
   0x2   :  { %5 = vst [vmem:[%s29_s1] sm:$0xff] %v4_v0  ;;  %8 = vst [vmem:[%s29_s1 + $0x8] sm:$0xff] %v4_v0 }

// kernel: tile.174
= control target key start
LH: loop header
LB: loop body
LE: loop exit
PB: predicated region body
PF: predicated region fallthrough
CT: control target
= control target key end

     0   :  { %vm3_vm0 = vcmask 523264   ;;  %vm10_vm1 = vcmask 1048064   ;;  %s125_s0 = inlined_call_operand.vmem [shape: f32[16,64], index: 0, kind: input, shape index: {}]   ;;  %s126_s1 = inlined_call_operand.vmem [shape: f32[1,1024], index: 1, kind: output, shape index: {}]  }
   0x1   :  { %v75_v0 = vld [vmem:[%s125_s0 + $0x1] ss:$2 sm:$0xff]   ;;  %v2_v1 = vld [vmem:[%s125_s0] ss:$2 sm:$0xff]   ;;  %s84_s0 = smov 64  }
   0x2   :  { %8 = vrot.lane.b32.xlu0 %v75_v0, %s84_s0  ;;  %4 = vst.msk [vmem:[#allocation0] ss:$8 sm:$0xf] %vm3_vm0, %v2_v1   ;;  %5 = vst.msk [vmem:[#allocation0] ss:$8 sm:$0xf0] %vm3_vm0, %v2_v1  }
  0x74   :  { %v9_v2 = vpop.permute.xlu0 %8  }
  0x75   :  { %11 = vst.msk [vmem:[#allocation0] ss:$8 sm:$0xf] %vm10_vm1, %v9_v2   ;;  %12 = vst.msk [vmem:[#allocation0] ss:$8 sm:$0xf0] %vm10_vm1, %v9_v2  }
  0x7c   :  { %v17_v3 = vld [vmem:[#allocation0] sm:$0x1]  ;;  %v22_v4 = vld [vmem:[#allocation0 + $0x8] sm:$0x1]  ;;  %v28_v5 = vld [vmem:[#allocation0 + $0x10] sm:$0x1] }
  0x7d   :  { %20 = vst [vmem:[%s126_s1] sm:$0x1] %v17_v3  ;;  %76 = vst [vmem:[%s126_s1 + $0x1] sm:$0x1] %v22_v4  ;;  %v35_v6 = vld [vmem:[#allocation0 + $0x18] sm:$0x1] }
  0x7e   :  { %77 = vst [vmem:[%s126_s1 + $0x2] sm:$0x1] %v28_v5  ;;  %v42_v7 = vld [vmem:[#allocation0 + $0x20] sm:$0x1]  ;;  %v49_v8 = vld [vmem:[#allocation0 + $0x28] sm:$0x1] }
  0x7f   :  { %78 = vst [vmem:[%s126_s1 + $0x3] sm:$0x1] %v35_v6  ;;  %79 = vst [vmem:[%s126_s1 + $0x4] sm:$0x1] %v42_v7  ;;  %v56_v9 = vld [vmem:[#allocation0 + $0x30] sm:$0x1] }
  0x80   :  { %80 = vst [vmem:[%s126_s1 + $0x5] sm:$0x1] %v49_v8  ;;  %v63_v10 = vld [vmem:[#allocation0 + $0x38] sm:$0x1]  ;;  %81 = vst [vmem:[%s126_s1 + $0x6] sm:$0x1] %v56_v9 }
  0x81   :  { %82 = vst [vmem:[%s126_s1 + $0x7] sm:$0x1] %v63_v10 }

// kernel: _lambda_.24
= control target key start
LH: loop header
LB: loop body
LE: loop exit
PB: predicated region body
PF: predicated region fallthrough
CT: control target
= control target key end

     0   :  { %s4896_s17 = smov 0   ;;  %s4898_s18 = smov 0   ;;  %s6483_s0 = inlined_call_operand.vmem [shape: f32[2,18,288], index: 0, kind: input, shape index: {}]   ;;  %s6484_s1 = inlined_call_operand.vmem [shape: bf16[3,288,1024], index: 1, kind: input, shape index: {}]   ;;  %s6485_s2 = inlined_call_operand.vmem [shape: f32[1,1024], index: 2, kind: input, shape index: {}]   ;;  %s6486_s3 = inlined_call_operand.<no memory space> [shape: f32[1,1], index: 3, kind: input, shape index: {}]   ;;  %s6487_s4 = inlined_call_operand.vmem [shape: f32[2,16,1024], index: 4, kind: output, shape index: {}]  }
   0x1   :  { %9 = sst [smem:[#allocation2]] %s6486_s3  ;;  %s4900_s19 = smov 0  }
   0x2   :  { %s4902_s20 = smov 0   ;;  %s4904_s21 = smov 0  }
   0x3 LB: > { %s24_s3 = sadd.s32 1, %s4857_s19  ;;  %s27_s22 = sadd.s32 1, %s4861_s20  ;;  %s4865_s21 = sphi %s4904_s21, %s15_s21   ;;  %s4861_s20 = sphi %s4902_s20, %s6491_s20   ;;  %s4857_s19 = sphi %s4900_s19, %s6490_s19   ;;  %s4853_s18 = sphi %s4898_s18, %s6489_s18   ;;  %s4849_s17 = sphi %s4896_s17, %s6488_s17  }
   0x4   : > { %p25_p0 = scmp.ge.s32.totalorder %s24_s3, 2  ;;  %p4043_p1 = scmp.ge.s32.totalorder %s4865_s21, 1 }
   0x5   : > { %p177_p2 = scmp.lt.s32.totalorder %s4865_s21, 5 }
   0x6   : > { %s6493_s3 = smov (%p25_p0, %s24_s3), 0  ;;  %s6495_s22 = smov (!%p25_p0, %s27_s22), %s4861_s20 }
   0x7   : > { %p178_p3 = pnand %p4043_p1, %p177_p2  ;;  %p29_p4 = scmp.ge.s32.totalorder %s6495_s22, 2 }
   0x8   : > { %p207_p5 = scmp.lt.s32.totalorder (!%p178_p3), %s4853_s18, 1  ;;  %s4048_s29 = sshll.u32 (!%p178_p3), %s4849_s17, 3 }
   0x9   : > { %s6497_s22 = smov (%p29_p4, %s6495_s22), 0  ;;  %181 = sbr.rel (%p178_p3) target bundleno = 660 (0x294), region = 36 }
   0xa   : > { %s223_s10 = sshra.s32 (!%p178_p3), %s4048_s29, 3  ;;  %p214_p6 = scmp.lt.s32.totalorder (!%p178_p3), %s4849_s17, 1 }
   0xb   : > { %s4784_s25 = smul.u32 (!%p178_p3), 24, %s223_s10  ;;  %s3917_s13 = sld [smem:[#allocation2]] (!%p178_p3) }
   0xe   : > { %v4106_v0 = vld [vmem:[%s6484_s1 + $0x640] sm:$0xff]  ;;  %v4867_v8 = vmov 0   ;;  %s6499_s18 = smov (!%p207_p5, %s4853_s18), 1  ;;  %v4107_v18 = vld [vmem:[%s6484_s1 + $0x648] sm:$0xff]  ;;  %vm1272_vm0 = vcmask 261120   ;;  %s6501_s17 = smov (!%p214_p6, %s4849_s17), 1 }
   0xf   : > { %v4110_v1 = vld [vmem:[%s6484_s1 + $0x660] sm:$0xff]  ;;  %1349 = vmatprep.mubr.bf16.mxu1 %v4867_v8  ;;  %v4111_v19 = vld [vmem:[%s6484_s1 + $0x668] sm:$0xff]  ;;  %s4785_s30 = smul.u32 72, %s6499_s18  ;;  %s4045_s14 = sshll.u32 %s6501_s17, 3 }
  0x10   : > { %v4098_v2 = vld [vmem:[%s6484_s1 + $0x600] sm:$0xff]  ;;  %v4251_v3 = vcombine.high %v4106_v0, %v4110_v1  ;;  %v4250_v4 = vcombine.low %v4106_v0, %v4110_v1  ;;  %v4253_v24 = vcombine.high %v4107_v18, %v4111_v19  ;;  %v4099_v35 = vld [vmem:[%s6484_s1 + $0x608] sm:$0xff]  ;;  %v4252_v39 = vcombine.low %v4107_v18, %v4111_v19  ;;  %s4046_s15 = sshll.u32 %s6499_s18, 4 }
  0x11   : > { %v4102_v5 = vld [vmem:[%s6484_s1 + $0x620] sm:$0xff]  ;;  %s211_s11 = scalar_lea.vmem %s6483_s0, %s4785_s30  ;;  %v4103_v36 = vld [vmem:[%s6484_s1 + $0x628] sm:$0xff]  ;;  %s218_s24 = sadd.s32 %s4046_s15, %s4045_s14 }
  0x12   : > { %v4186_v6 = vld [vmem:[%s6484_s1 + $0x8c0] sm:$0xff]  ;;  %v4243_v9 = vcombine.high %v4098_v2, %v4102_v5  ;;  %1276 = vmatprep.subr.bf16.mxu0 %v4251_v3  ;;  %v4242_v16 = vcombine.low %v4098_v2, %v4102_v5  ;;  %s4984_s12 = scalar_lea.vmem %s211_s11, %s4784_s25  ;;  %v4245_v43 = vcombine.high %v4099_v35, %v4103_v36  ;;  %v4091_v45 = vld [vmem:[%s6484_s1 + $0x5c8] sm:$0xff]  ;;  %v4244_v48 = vcombine.low %v4099_v35, %v4103_v36  ;;  %s4047_s17 = sshll.u32 %s218_s24, 3 }
  0x13   : > { %v4190_v7 = vld [vmem:[%s6484_s1 + $0x8e0] sm:$0xff]  ;;  %1277 = vmatpush1.bf16.msra.mxu0 %v4250_v4  ;;  %v4987_v26 = vld [vmem:[%s4984_s12 + $0x10] sm:$0xff]  ;;  %v233_v27 = vld [vmem:[%s4984_s12 + $0x28] sm:$0x3]  ;;  %s6432_s26 = scalar_lea.vmem %s6487_s4, %s4047_s17 }
  0x14   : > { %v4331_v10 = vcombine.high %v4186_v6, %v4190_v7  ;;  %v4330_v11 = vcombine.low %v4186_v6, %v4190_v7  ;;  %v4090_v12 = vld [vmem:[%s6484_s1 + $0x5c0] sm:$0xff]  ;;  %1278 = vmatprep.subr.bf16.mxu0 %v4243_v9  ;;  %v4991_v29 = vpack.c.bf16 %v233_v27, %v4987_v26  ;;  %v4095_v46 = vld [vmem:[%s6484_s1 + $0x5e8] sm:$0xff] }
  0x15   : > { %v4094_v13 = vld [vmem:[%s6484_s1 + $0x5e0] sm:$0xff]  ;;  %v4237_v51 = vcombine.high %v4091_v45, %v4095_v46  ;;  %v4083_v53 = vld [vmem:[%s6484_s1 + $0x588] sm:$0xff]  ;;  %v4236_v58 = vcombine.low %v4091_v45, %v4095_v46 }
  0x16   : > { %v4178_v14 = vld [vmem:[%s6484_s1 + $0x880] sm:$0xff]  ;;  %1329 = vmatprep.subr.bf16.mxu1 %v4331_v10  ;;  %v4235_v20 = vcombine.high %v4090_v12, %v4094_v13  ;;  %v4234_v25 = vcombine.low %v4090_v12, %v4094_v13  ;;  %v544_v32 = vshrl.u32 %v4991_v29, 16  ;;  %v546_v33 = vshll.u32 %v4991_v29, 16  ;;  %v4087_v54 = vld [vmem:[%s6484_s1 + $0x5a8] sm:$0xff] }
  0x17   : > { %v4182_v15 = vld [vmem:[%s6484_s1 + $0x8a0] sm:$0xff]  ;;  %1330 = vmatpush1.bf16.msra.mxu1 %v4330_v11  ;;  %1279 = vmatpush1.bf16.msra.mxu0 %v4242_v16  ;;  %v5036_v56 = vld [vmem:[%s4984_s12 + $0x8] sm:$0xff]  ;;  %v4229_v62 = vcombine.high %v4083_v53, %v4087_v54  ;;  %v4228_v5 = vcombine.low %v4083_v53, %v4087_v54 }
  0x18   : > { %v4323_v17 = vcombine.high %v4178_v14, %v4182_v15  ;;  %v4322_v21 = vcombine.low %v4178_v14, %v4182_v15  ;;  %v4082_v22 = vld [vmem:[%s6484_s1 + $0x580] sm:$0xff]  ;;  %1280 = vmatprep.subr.bf16.mxu0 %v4235_v20  ;;  %v548_v37 = vrot.slane %v546_v33, 1  ;;  %v4075_v0 = vld [vmem:[%s6484_s1 + $0x548] sm:$0xff] }
  0x19   : > { %v4086_v23 = vld [vmem:[%s6484_s1 + $0x5a0] sm:$0xff]  ;;  %v4079_v1 = vld [vmem:[%s6484_s1 + $0x568] sm:$0xff] }
  0x1a   : > { %1331 = vmatprep.subr.bf16.mxu1 %v4323_v17  ;;  %v4227_v28 = vcombine.high %v4082_v22, %v4086_v23  ;;  %v4074_v30 = vld [vmem:[%s6484_s1 + $0x540] sm:$0xff]  ;;  %v4226_v34 = vcombine.low %v4082_v22, %v4086_v23  ;;  %v5013_v42 = vor.u32 %v548_v37, %v544_v32  ;;  %v4221_v10 = vcombine.high %v4075_v0, %v4079_v1  ;;  %v4067_v12 = vld [vmem:[%s6484_s1 + $0x508] sm:$0xff] }
  0x1b   : > { %1332 = vmatpush1.bf16.msra.mxu1 %v4322_v21  ;;  %v4078_v31 = vld [vmem:[%s6484_s1 + $0x560] sm:$0xff]  ;;  %1281 = vmatpush1.bf16.msra.mxu0 %v4234_v25  ;;  %v4071_v13 = vld [vmem:[%s6484_s1 + $0x528] sm:$0xff]  ;;  %v4220_v16 = vcombine.low %v4075_v0, %v4079_v1 }
  0x1c   : > { %1358 = vmatprep.subr.bf16.mxu1 %v4253_v24  ;;  %1282 = vmatprep.subr.bf16.mxu0 %v4227_v28  ;;  %v4219_v38 = vcombine.high %v4074_v30, %v4078_v31  ;;  %v4066_v40 = vld [vmem:[%s6484_s1 + $0x500] sm:$0xff]  ;;  %v4218_v44 = vcombine.low %v4074_v30, %v4078_v31  ;;  %v4213_v19 = vcombine.high %v4067_v12, %v4071_v13  ;;  %v4059_v21 = vld [vmem:[%s6484_s1 + $0x4c8] sm:$0xff] }
  0x1d   : > { %v4070_v41 = vld [vmem:[%s6484_s1 + $0x520] sm:$0xff]  ;;  %v4063_v22 = vld [vmem:[%s6484_s1 + $0x4e8] sm:$0xff]  ;;  %v4212_v24 = vcombine.low %v4067_v12, %v4071_v13 }
  0x1e   : > { %4338 = vmatmul.mubr.msk.bf16.vlgmr.msra.gmra.mxu1 %vm1272_vm0, %v5013_v42  ;;  %v4211_v47 = vcombine.high %v4066_v40, %v4070_v41  ;;  %v4058_v49 = vld [vmem:[%s6484_s1 + $0x4c0] sm:$0xff]  ;;  %v4210_v52 = vcombine.low %v4066_v40, %v4070_v41  ;;  %v4205_v28 = vcombine.high %v4059_v21, %v4063_v22  ;;  %v4051_v31 = vld [vmem:[%s6484_s1 + $0x488] sm:$0xff] }
  0x1f   : > { %1283 = vmatpush1.bf16.msra.mxu0 %v4226_v34  ;;  %1359 = vmatpush1.bf16.msra.mxu1 %v4252_v39  ;;  %v4062_v50 = vld [vmem:[%s6484_s1 + $0x4e0] sm:$0xff]  ;;  %v4055_v32 = vld [vmem:[%s6484_s1 + $0x4a8] sm:$0xff]  ;;  %v4204_v34 = vcombine.low %v4059_v21, %v4063_v22 }
  0x20   : > { %1284 = vmatprep.subr.bf16.mxu0 %v4219_v38  ;;  %1360 = vmatprep.subr.bf16.mxu1 %v4245_v43  ;;  %v4203_v55 = vcombine.high %v4058_v49, %v4062_v50  ;;  %v232_v57 = vld [vmem:[%s4984_s12 + $0x20] sm:$0x3]  ;;  %v4202_v63 = vcombine.low %v4058_v49, %v4062_v50  ;;  %v4197_v37 = vcombine.high %v4051_v31, %v4055_v32  ;;  %v4171_v39 = vld [vmem:[%s6484_s1 + $0x848] sm:$0xff] }
  0x21   : > { %v4050_v59 = vld [vmem:[%s6484_s1 + $0x480] sm:$0xff]  ;;  %v5046_v61 = vpack.c.bf16 %v232_v57, %v5036_v56  ;;  %v4175_v40 = vld [vmem:[%s6484_s1 + $0x868] sm:$0xff]  ;;  %v4196_v43 = vcombine.low %v4051_v31, %v4055_v32 }
  0x22   : > { %v4054_v60 = vld [vmem:[%s6484_s1 + $0x4a0] sm:$0xff]  ;;  %v4317_v46 = vcombine.high %v4171_v39, %v4175_v40  ;;  %v4167_v49 = vld [vmem:[%s6484_s1 + $0x828] sm:$0xff] }
  0x23   : > { %1285 = vmatpush1.bf16.msra.mxu0 %v4218_v44  ;;  %1361 = vmatpush1.bf16.msra.mxu1 %v4244_v48  ;;  %v537_v2 = vshrl.u32 %v5046_v61, 16  ;;  %v539_v3 = vshll.u32 %v5046_v61, 16  ;;  %v4195_v4 = vcombine.high %v4050_v59, %v4054_v60  ;;  %v4170_v6 = vld [vmem:[%s6484_s1 + $0x840] sm:$0xff]  ;;  %v4194_v11 = vcombine.low %v4050_v59, %v4054_v60  ;;  %v4163_v48 = vld [vmem:[%s6484_s1 + $0x808] sm:$0xff]  ;;  %v231_v60 = vld [vmem:[%s4984_s12 + $0x18] sm:$0x3] }
  0x24   : > { %1286 = vmatprep.subr.bf16.mxu0 %v4211_v47  ;;  %1362 = vmatprep.subr.bf16.mxu1 %v4237_v51  ;;  %v4174_v7 = vld [vmem:[%s6484_s1 + $0x860] sm:$0xff]  ;;  %v4316_v51 = vcombine.low %v4171_v39, %v4175_v40  ;;  %v4309_v54 = vcombine.high %v4163_v48, %v4167_v49  ;;  %v4191_v21 = vld [vmem:[%s6484_s1 + $0x8e8] sm:$0xff] }
  0x25   : > { %v541_v9 = vrot.slane %v539_v3, 1  ;;  %v4315_v15 = vcombine.high %v4170_v6, %v4174_v7  ;;  %v4162_v17 = vld [vmem:[%s6484_s1 + $0x800] sm:$0xff]  ;;  %v4314_v20 = vcombine.low %v4170_v6, %v4174_v7  ;;  %v4151_v6 = vld [vmem:[%s6484_s1 + $0x7a8] sm:$0xff] }
  0x26   : > { %v4166_v18 = vld [vmem:[%s6484_s1 + $0x820] sm:$0xff]  ;;  %v4179_v32 = vld [vmem:[%s6484_s1 + $0x888] sm:$0xff] }
  0x27   : > { %1287 = vmatpush1.bf16.msra.mxu0 %v4210_v52  ;;  %1363 = vmatpush1.bf16.msra.mxu1 %v4236_v58  ;;  %v5068_v14 = vor.u32 %v541_v9, %v537_v2  ;;  %v4307_v23 = vcombine.high %v4162_v17, %v4166_v18  ;;  %v4154_v25 = vld [vmem:[%s6484_s1 + $0x7c0] sm:$0xff]  ;;  %v4306_v30 = vcombine.low %v4162_v17, %v4166_v18  ;;  %v4159_v58 = vld [vmem:[%s6484_s1 + $0x7e8] sm:$0xff] }
  0x28   : > { %1288 = vmatprep.subr.bf16.mxu0 %v4203_v55  ;;  %1364 = vmatprep.subr.bf16.mxu1 %v4229_v62  ;;  %v4158_v27 = vld [vmem:[%s6484_s1 + $0x7e0] sm:$0xff]  ;;  %v4155_v55 = vld [vmem:[%s6484_s1 + $0x7c8] sm:$0xff] }
  0x29   : > { %1308 = vmatprep.mubr.bf16.mxu0 %v5068_v14  ;;  %1390 = vmatprep.mubr.bf16.mxu1 %v5068_v14  ;;  %v4299_v33 = vcombine.high %v4154_v25, %v4158_v27  ;;  %v4146_v35 = vld [vmem:[%s6484_s1 + $0x780] sm:$0xff]  ;;  %v4298_v38 = vcombine.low %v4154_v25, %v4158_v27  ;;  %v4301_v2 = vcombine.high %v4155_v55, %v4159_v58  ;;  %v4143_v17 = vld [vmem:[%s6484_s1 + $0x768] sm:$0xff] }
  0x2a   : > { %v4150_v36 = vld [vmem:[%s6484_s1 + $0x7a0] sm:$0xff]  ;;  %v4300_v9 = vcombine.low %v4155_v55, %v4159_v58  ;;  %v4131_v27 = vld [vmem:[%s6484_s1 + $0x708] sm:$0xff]  ;;  %v4192_v55 = vld [vmem:[%s6484_s1 + $0x8f0] sm:$0xff] }
  0x2b   : > { %1289 = vmatpush1.bf16.msra.mxu0 %v4202_v63  ;;  %1365 = vmatpush1.bf16.msra.mxu1 %v4228_v5  ;;  %v4291_v41 = vcombine.high %v4146_v35, %v4150_v36  ;;  %v4138_v44 = vld [vmem:[%s6484_s1 + $0x740] sm:$0xff]  ;;  %v4290_v47 = vcombine.low %v4146_v35, %v4150_v36  ;;  %v4308_v63 = vcombine.low %v4163_v48, %v4167_v49  ;;  %v4147_v5 = vld [vmem:[%s6484_s1 + $0x788] sm:$0xff] }
  0x2c   : > { %1290 = vmatprep.subr.bf16.mxu0 %v4195_v4  ;;  %1366 = vmatprep.subr.bf16.mxu1 %v4221_v10  ;;  %v4142_v45 = vld [vmem:[%s6484_s1 + $0x760] sm:$0xff]  ;;  %v4293_v12 = vcombine.high %v4147_v5, %v4151_v6 }
  0x2d   : > { %v4283_v50 = vcombine.high %v4138_v44, %v4142_v45  ;;  %v4130_v52 = vld [vmem:[%s6484_s1 + $0x700] sm:$0xff]  ;;  %v4282_v57 = vcombine.low %v4138_v44, %v4142_v45 }
  0x2e   : > { %v4134_v53 = vld [vmem:[%s6484_s1 + $0x720] sm:$0xff] }
  0x2f   : > { %1291 = vmatpush1.bf16.msra.mxu0 %v4194_v11  ;;  %1367 = vmatpush1.bf16.msra.mxu1 %v4220_v16  ;;  %v5133_v59 = vld [vmem:[%s4984_s12] sm:$0xff]  ;;  %v4275_v62 = vcombine.high %v4130_v52, %v4134_v53  ;;  %v4274_v4 = vcombine.low %v4130_v52, %v4134_v53  ;;  %v4139_v16 = vld [vmem:[%s6484_s1 + $0x748] sm:$0xff] }
  0x30   : > { %1292 = vmatprep.subr.bf16.mxu0 %v4315_v15  ;;  %1368 = vmatprep.subr.bf16.mxu1 %v4213_v19  ;;  %v4122_v0 = vld [vmem:[%s6484_s1 + $0x6c0] sm:$0xff]  ;;  %v5143_v3 = vpack.c.bf16 %v231_v60, %v5133_v59  ;;  %v4292_v19 = vcombine.low %v4147_v5, %v4151_v6  ;;  %v4285_v22 = vcombine.high %v4139_v16, %v4143_v17  ;;  %v4092_v60 = vld [vmem:[%s6484_s1 + $0x5d0] sm:$0xff] }
  0x31   : > { %v4126_v1 = vld [vmem:[%s6484_s1 + $0x6e0] sm:$0xff]  ;;  %v4284_v31 = vcombine.low %v4139_v16, %v4143_v17  ;;  %v4084_v6 = vld [vmem:[%s6484_s1 + $0x590] sm:$0xff] }
  0x32   : > { %v4267_v7 = vcombine.high %v4122_v0, %v4126_v1  ;;  %v4114_v10 = vld [vmem:[%s6484_s1 + $0x680] sm:$0xff]  ;;  %v532_v13 = vshll.u32 %v5143_v3, 16  ;;  %v4266_v15 = vcombine.low %v4122_v0, %v4126_v1  ;;  %v4180_v1 = vld [vmem:[%s6484_s1 + $0x890] sm:$0xff] }
  0x33   : > { %1293 = vmatpush2.bf16.msra.mxu0 %v4314_v20  ;;  %1369 = vmatpush1.bf16.msra.mxu1 %v4212_v24  ;;  %v4118_v11 = vld [vmem:[%s6484_s1 + $0x6a0] sm:$0xff]  ;;  %v4187_v20 = vld [vmem:[%s6484_s1 + $0x8c8] sm:$0xff]  ;;  %v4076_v16 = vld [vmem:[%s6484_s1 + $0x550] sm:$0xff] }
  0x34   : > { %1294 = vmatprep.subr.bf16.mxu0 %v4307_v23  ;;  %1370 = vmatprep.subr.bf16.mxu1 %v4205_v28  ;;  %v4259_v18 = vcombine.high %v4114_v10, %v4118_v11  ;;  %v530_v23 = vshrl.u32 %v5143_v3, 16  ;;  %v534_v24 = vrot.slane %v532_v13, 1  ;;  %v4258_v25 = vcombine.low %v4114_v10, %v4118_v11  ;;  %v4135_v28 = vld [vmem:[%s6484_s1 + $0x728] sm:$0xff]  ;;  %v4109_v11 = vld [vmem:[%s6484_s1 + $0x658] sm:$0xff]  ;;  %v4080_v17 = vld [vmem:[%s6484_s1 + $0x570] sm:$0xff] }
  0x35   : > { %v4277_v35 = vcombine.high %v4131_v27, %v4135_v28  ;;  %v4332_v36 = vcombine.low %v4187_v20, %v4191_v21  ;;  %v4276_v40 = vcombine.low %v4131_v27, %v4135_v28  ;;  %v4222_v28 = vcombine.low %v4076_v16, %v4080_v17 }
  0x37   : > { %1295 = vmatpush2.bf16.msra.mxu0 %v4306_v30  ;;  %1371 = vmatpush1.bf16.msra.mxu1 %v4204_v34  ;;  %v4333_v30 = vcombine.high %v4187_v20, %v4191_v21  ;;  %v5183_v34 = vor.u32 %v534_v24, %v530_v23  ;;  %v4101_v20 = vld [vmem:[%s6484_s1 + $0x618] sm:$0xff]  ;;  %v4068_v24 = vld [vmem:[%s6484_s1 + $0x510] sm:$0xff] }
  0x38   : > { %1296 = vmatprep.subr.bf16.mxu0 %v4299_v33  ;;  %1372 = vmatprep.subr.bf16.mxu1 %v4197_v37  ;;  %v4183_v33 = vld [vmem:[%s6484_s1 + $0x8a8] sm:$0xff]  ;;  %v4105_v21 = vld [vmem:[%s6484_s1 + $0x638] sm:$0xff] }
  0x39   : > { %v4123_v37 = vld [vmem:[%s6484_s1 + $0x6c8] sm:$0xff]  ;;  %v4325_v39 = vcombine.high %v4179_v32, %v4183_v33  ;;  %v4324_v45 = vcombine.low %v4179_v32, %v4183_v33  ;;  %v4249_v27 = vcombine.high %v4101_v20, %v4105_v21  ;;  %v4248_v33 = vcombine.low %v4101_v20, %v4105_v21  ;;  %v4173_v21 = vld [vmem:[%s6484_s1 + $0x858] sm:$0xff] }
  0x3b   : > { %1297 = vmatpush2.bf16.msra.mxu0 %v4298_v38  ;;  %1373 = vmatpush1.bf16.msra.mxu1 %v4196_v43  ;;  %v4127_v38 = vld [vmem:[%s6484_s1 + $0x6e8] sm:$0xff]  ;;  %v4112_v43 = vld [vmem:[%s6484_s1 + $0x670] sm:$0xff] }
  0x3c   : > { %1298 = vmatprep.subr.bf16.mxu0 %v4291_v41  ;;  %1374 = vmatprep.subr.bf16.mxu1 %v4317_v46  ;;  %v4108_v41 = vld [vmem:[%s6484_s1 + $0x650] sm:$0xff]  ;;  %v4269_v44 = vcombine.high %v4123_v37, %v4127_v38  ;;  %v4115_v46 = vld [vmem:[%s6484_s1 + $0x688] sm:$0xff]  ;;  %v4268_v49 = vcombine.low %v4123_v37, %v4127_v38 }
  0x3d   : > { %v4255_v48 = vcombine.high %v4108_v41, %v4112_v43  ;;  %v4254_v53 = vcombine.low %v4108_v41, %v4112_v43 }
  0x3f   : > { %1299 = vmatpush2.bf16.msra.mxu0 %v4290_v47  ;;  %1375 = vmatpush2.bf16.msra.mxu1 %v4316_v51  ;;  %v4119_v47 = vld [vmem:[%s6484_s1 + $0x6a8] sm:$0xff]  ;;  %v4104_v51 = vld [vmem:[%s6484_s1 + $0x630] sm:$0xff] }
  0x40   : > { %1300 = vmatprep.subr.bf16.mxu0 %v4283_v50  ;;  %1376 = vmatprep.subr.bf16.mxu1 %v4309_v54  ;;  %v4100_v50 = vld [vmem:[%s6484_s1 + $0x610] sm:$0xff]  ;;  %v4261_v52 = vcombine.high %v4115_v46, %v4119_v47  ;;  %v4260_v58 = vcombine.low %v4115_v46, %v4119_v47  ;;  %v4077_v47 = vld [vmem:[%s6484_s1 + $0x558] sm:$0xff] }
  0x41   : > { %v4188_v54 = vld [vmem:[%s6484_s1 + $0x8d0] sm:$0xff]  ;;  %v4246_v0 = vcombine.low %v4100_v50, %v4104_v51 }
  0x42   : > { %v4334_v5 = vcombine.low %v4188_v54, %v4192_v55 }
  0x43   : > { %1301 = vmatpush2.bf16.msra.mxu0 %v4282_v57  ;;  %1377 = vmatpush2.bf16.msra.mxu1 %v4308_v63  ;;  %v4247_v57 = vcombine.high %v4100_v50, %v4104_v51  ;;  %v4335_v63 = vcombine.high %v4188_v54, %v4192_v55  ;;  %v4172_v51 = vld [vmem:[%s6484_s1 + $0x850] sm:$0xff]  ;;  %v4069_v55 = vld [vmem:[%s6484_s1 + $0x518] sm:$0xff] }
  0x44   : > { %1302 = vmatprep.subr.bf16.mxu0 %v4275_v62  ;;  %1378 = vmatprep.subr.bf16.mxu1 %v4301_v2  ;;  %v4096_v62 = vld [vmem:[%s6484_s1 + $0x5f0] sm:$0xff] }
  0x45   : > { %v4184_v2 = vld [vmem:[%s6484_s1 + $0x8b0] sm:$0xff]  ;;  %v4238_v10 = vcombine.low %v4092_v60, %v4096_v62 }
  0x47   : > { %1303 = vmatpush2.bf16.msra.mxu0 %v4274_v4  ;;  %1379 = vmatpush2.bf16.msra.mxu1 %v4300_v9  ;;  %v4239_v4 = vcombine.high %v4092_v60, %v4096_v62  ;;  %v4327_v9 = vcombine.high %v4180_v1, %v4184_v2  ;;  %v4164_v62 = vld [vmem:[%s6484_s1 + $0x810] sm:$0xff] }
  0x48   : > { %1304 = vmatprep.subr.bf16.mxu0 %v4267_v7  ;;  %1380 = vmatprep.subr.bf16.mxu1 %v4293_v12  ;;  %v4088_v7 = vld [vmem:[%s6484_s1 + $0x5b0] sm:$0xff]  ;;  %v4113_v12 = vld [vmem:[%s6484_s1 + $0x678] sm:$0xff] }
  0x49   : > { %v4231_v13 = vcombine.high %v4084_v6, %v4088_v7  ;;  %v4256_v23 = vcombine.low %v4109_v11, %v4113_v12 }
  0x4b   : > { %1305 = vmatpush2.bf16.msra.mxu0 %v4266_v15  ;;  %1381 = vmatpush2.bf16.msra.mxu1 %v4292_v19  ;;  %v4326_v15 = vcombine.low %v4180_v1, %v4184_v2  ;;  %v4230_v19 = vcombine.low %v4084_v6, %v4088_v7  ;;  %v4061_v2 = vld [vmem:[%s6484_s1 + $0x4d8] sm:$0xff]  ;;  %v4156_v7 = vld [vmem:[%s6484_s1 + $0x7d0] sm:$0xff] }
  0x4c   : > { %1306 = vmatprep.subr.bf16.mxu0 %v4259_v18  ;;  %1382 = vmatprep.subr.bf16.mxu1 %v4285_v22  ;;  %v4257_v18 = vcombine.high %v4109_v11, %v4113_v12  ;;  %v4223_v22 = vcombine.high %v4076_v16, %v4080_v17  ;;  %v4053_v12 = vld [vmem:[%s6484_s1 + $0x498] sm:$0xff]  ;;  %v4148_v17 = vld [vmem:[%s6484_s1 + $0x790] sm:$0xff] }
  0x4f   : > { %1307 = vmatpush2.bf16.msra.mxu0 %v4258_v25  ;;  %1383 = vmatpush2.bf16.msra.mxu1 %v4284_v31  ;;  %v4072_v25 = vld [vmem:[%s6484_s1 + $0x530] sm:$0xff]  ;;  %v4097_v31 = vld [vmem:[%s6484_s1 + $0x5f8] sm:$0xff] }
  0x50   : > { %1411 = vmatprep.subr.bf16.mxu0 %v4333_v30  ;;  %1384 = vmatprep.subr.bf16.mxu1 %v4277_v35  ;;  %v4093_v30 = vld [vmem:[%s6484_s1 + $0x5d8] sm:$0xff]  ;;  %v4215_v32 = vcombine.high %v4068_v24, %v4072_v25  ;;  %v4060_v35 = vld [vmem:[%s6484_s1 + $0x4d0] sm:$0xff]  ;;  %v4214_v38 = vcombine.low %v4068_v24, %v4072_v25 }
  0x51   : > { %v4241_v37 = vcombine.high %v4093_v30, %v4097_v31  ;;  %v4240_v43 = vcombine.low %v4093_v30, %v4097_v31  ;;  %v4140_v25 = vld [vmem:[%s6484_s1 + $0x750] sm:$0xff]  ;;  %v4165_v31 = vld [vmem:[%s6484_s1 + $0x818] sm:$0xff] }
  0x52   : > { %1309 = vmatmul.mubr.bf16.vlgmr.msra.gmra.mxu0 %v5183_v34 }
  0x53   : > { %1412 = vmatpush1.bf16.msra.mxu0 %v4332_v36  ;;  %1431 = vmatprep.mubr.bf16.mxu0 %v4867_v8  ;;  %v4064_v36 = vld [vmem:[%s6484_s1 + $0x4f0] sm:$0xff] }
  0x54   : > { %1413 = vmatprep.subr.bf16.mxu0 %v4325_v39  ;;  %1385 = vmatpush2.bf16.msra.mxu1 %v4276_v40  ;;  %v4085_v39 = vld [vmem:[%s6484_s1 + $0x598] sm:$0xff]  ;;  %v4207_v41 = vcombine.high %v4060_v35, %v4064_v36  ;;  %v4206_v46 = vcombine.low %v4060_v35, %v4064_v36  ;;  %v4132_v36 = vld [vmem:[%s6484_s1 + $0x710] sm:$0xff] }
  0x55   : > { %1386 = vmatprep.subr.bf16.mxu1 %v4269_v44  ;;  %v4089_v40 = vld [vmem:[%s6484_s1 + $0x5b8] sm:$0xff]  ;;  %v4056_v44 = vld [vmem:[%s6484_s1 + $0x4b0] sm:$0xff] }
  0x56   : > { %v4232_v50 = vcombine.low %v4085_v39, %v4089_v40 }
  0x57   : > { %1414 = vmatpush1.bf16.msra.mxu0 %v4324_v45  ;;  %v4233_v45 = vcombine.high %v4085_v39, %v4089_v40  ;;  %v4157_v40 = vld [vmem:[%s6484_s1 + $0x7d8] sm:$0xff] }
  0x58   : > { %1440 = vmatprep.subr.bf16.mxu0 %v4255_v48  ;;  %1387 = vmatpush2.bf16.msra.mxu1 %v4268_v49  ;;  %v4081_v48 = vld [vmem:[%s6484_s1 + $0x578] sm:$0xff] }
  0x59   : > { %1388 = vmatprep.subr.bf16.mxu1 %v4261_v52  ;;  %v4176_v52 = vld [vmem:[%s6484_s1 + $0x870] sm:$0xff]  ;;  %v4224_v60 = vcombine.low %v4077_v47, %v4081_v48 }
  0x5a   : > { %4339 = vmatmul.mubr.msk.bf16.vlgmr.msra.gmra.mxu0 %vm1272_vm0, %v5013_v42  ;;  %v4318_v1 = vcombine.low %v4172_v51, %v4176_v52 }
  0x5b   : > { %1441 = vmatpush1.bf16.msra.mxu0 %v4254_v53  ;;  %1472 = vmatprep.mubr.bf16.mxu0 %v5068_v14  ;;  %v4225_v53 = vcombine.high %v4077_v47, %v4081_v48  ;;  %v4149_v48 = vld [vmem:[%s6484_s1 + $0x798] sm:$0xff] }
  0x5c   : > { %1442 = vmatprep.subr.bf16.mxu0 %v4247_v57  ;;  %1389 = vmatpush2.bf16.msra.mxu1 %v4260_v58  ;;  %v4073_v57 = vld [vmem:[%s6484_s1 + $0x538] sm:$0xff]  ;;  %v4319_v58 = vcombine.high %v4172_v51, %v4176_v52  ;;  %v4116_v52 = vld [vmem:[%s6484_s1 + $0x690] sm:$0xff] }
  0x5d   : > { %1493 = vmatprep.subr.bf16.mxu1 %v4335_v63  ;;  %v4168_v63 = vld [vmem:[%s6484_s1 + $0x830] sm:$0xff]  ;;  %v4216_v6 = vcombine.low %v4069_v55, %v4073_v57 }
  0x5e   : > { %v4310_v11 = vcombine.low %v4164_v62, %v4168_v63 }
  0x5f   : > { %1443 = vmatpush1.bf16.msra.mxu0 %v4246_v0  ;;  %1391 = vmatmul.mubr.bf16.vlgmr.msra.gmra.mxu1 %v5183_v34  ;;  %v4217_v0 = vcombine.high %v4069_v55, %v4073_v57  ;;  %v4141_v57 = vld [vmem:[%s6484_s1 + $0x758] sm:$0xff] }
  0x60   : > { %1444 = vmatprep.subr.bf16.mxu0 %v4239_v4  ;;  %1494 = vmatpush1.bf16.msra.mxu1 %v4334_v5  ;;  %v4065_v4 = vld [vmem:[%s6484_s1 + $0x4f8] sm:$0xff]  ;;  %v4311_v5 = vcombine.high %v4164_v62, %v4168_v63 }
  0x61   : > { %1513 = vmatprep.mubr.bf16.mxu1 %v4867_v8  ;;  %1495 = vmatprep.subr.bf16.mxu1 %v4327_v9  ;;  %v4160_v9 = vld [vmem:[%s6484_s1 + $0x7f0] sm:$0xff]  ;;  %v4208_v16 = vcombine.low %v4061_v2, %v4065_v4  ;;  %v4189_v63 = vld [vmem:[%s6484_s1 + $0x8d8] sm:$0xff] }
  0x62   : > { %v4302_v20 = vcombine.low %v4156_v7, %v4160_v9 }
  0x63   : > { %1445 = vmatpush1.bf16.msra.mxu0 %v4238_v10  ;;  %v4209_v10 = vcombine.high %v4061_v2, %v4065_v4  ;;  %v4133_v4 = vld [vmem:[%s6484_s1 + $0x718] sm:$0xff] }
  0x64   : > { %1446 = vmatprep.subr.bf16.mxu0 %v4231_v13  ;;  %1496 = vmatpush1.bf16.msra.mxu1 %v4326_v15  ;;  %v4057_v13 = vld [vmem:[%s6484_s1 + $0x4b8] sm:$0xff]  ;;  %v4303_v15 = vcombine.high %v4156_v7, %v4160_v9 }
  0x65   : > { %1522 = vmatprep.subr.bf16.mxu1 %v4257_v18  ;;  %v4152_v18 = vld [vmem:[%s6484_s1 + $0x7b0] sm:$0xff]  ;;  %v4200_v24 = vcombine.low %v4053_v12, %v4057_v13  ;;  %v4181_v9 = vld [vmem:[%s6484_s1 + $0x898] sm:$0xff] }
  0x66   : > { %v4294_v30 = vcombine.low %v4148_v17, %v4152_v18 }
  0x67   : > { %1447 = vmatpush1.bf16.msra.mxu0 %v4230_v19  ;;  %4340 = vmatmul.mubr.msk.bf16.vlgmr.msra.gmra.mxu1 %vm1272_vm0, %v5013_v42  ;;  %v4201_v19 = vcombine.high %v4053_v12, %v4057_v13  ;;  %v4125_v13 = vld [vmem:[%s6484_s1 + $0x6d8] sm:$0xff] }
  0x68   : > { %1448 = vmatprep.subr.bf16.mxu0 %v4223_v22  ;;  %1523 = vmatpush1.bf16.msra.mxu1 %v4256_v23  ;;  %v4177_v22 = vld [vmem:[%s6484_s1 + $0x878] sm:$0xff]  ;;  %v4295_v23 = vcombine.high %v4148_v17, %v4152_v18  ;;  %v293_v18 = vld [vmem:[%s6484_s1 + $0x1c0] sm:$0xff] }
  0x69   : > { %1554 = vmatprep.mubr.bf16.mxu1 %v5068_v14  ;;  %1524 = vmatprep.subr.bf16.mxu1 %v4249_v27  ;;  %v4052_v14 = vld [vmem:[%s6484_s1 + $0x490] sm:$0xff]  ;;  %v4320_v35 = vcombine.low %v4173_v21, %v4177_v22 }
  0x6a   : > { %v4199_v49 = vcombine.high %v4052_v14, %v4056_v44  ;;  %v4198_v54 = vcombine.low %v4052_v14, %v4056_v44  ;;  %v4144_v27 = vld [vmem:[%s6484_s1 + $0x770] sm:$0xff] }
  0x6b   : > { %1449 = vmatpush1.bf16.msra.mxu0 %v4222_v28  ;;  %v4321_v28 = vcombine.high %v4173_v21, %v4177_v22  ;;  %v4286_v39 = vcombine.low %v4140_v25, %v4144_v27  ;;  %v4124_v44 = vld [vmem:[%s6484_s1 + $0x6d0] sm:$0xff]  ;;  %v4117_v22 = vld [vmem:[%s6484_s1 + $0x698] sm:$0xff] }
  0x6c   : > { %1450 = vmatprep.subr.bf16.mxu0 %v4215_v32  ;;  %1525 = vmatpush1.bf16.msra.mxu1 %v4248_v33  ;;  %v4169_v32 = vld [vmem:[%s6484_s1 + $0x838] sm:$0xff]  ;;  %v4287_v33 = vcombine.high %v4140_v25, %v4144_v27  ;;  %v285_v27 = vld [vmem:[%s6484_s1 + $0x180] sm:$0xff] }
  0x6d   : > { %1526 = vmatprep.subr.bf16.mxu1 %v4241_v37  ;;  %v4136_v37 = vld [vmem:[%s6484_s1 + $0x730] sm:$0xff]  ;;  %v4312_v14 = vcombine.low %v4165_v31, %v4169_v32 }
  0x6e   : > { %v4278_v47 = vcombine.low %v4132_v36, %v4136_v37 }
  0x6f   : > { %1451 = vmatpush1.bf16.msra.mxu0 %v4214_v38  ;;  %v4313_v38 = vcombine.high %v4165_v31, %v4169_v32  ;;  %v373_v32 = vld [vmem:[%s6484_s1 + $0x440] sm:$0xff] }
  0x70   : > { %1452 = vmatprep.subr.bf16.mxu0 %v4207_v41  ;;  %1527 = vmatpush1.bf16.msra.mxu1 %v4240_v43  ;;  %v4161_v41 = vld [vmem:[%s6484_s1 + $0x7f8] sm:$0xff]  ;;  %v4279_v43 = vcombine.high %v4132_v36, %v4136_v37 }
  0x71   : > { %1528 = vmatprep.subr.bf16.mxu1 %v4233_v45  ;;  %v4128_v45 = vld [vmem:[%s6484_s1 + $0x6f0] sm:$0xff]  ;;  %v4304_v51 = vcombine.low %v4157_v40, %v4161_v41 }
  0x72   : > { %v4270_v55 = vcombine.low %v4124_v44, %v4128_v45 }
  0x73   : > { %1453 = vmatpush1.bf16.msra.mxu0 %v4206_v46  ;;  %v4305_v46 = vcombine.high %v4157_v40, %v4161_v41  ;;  %v365_v41 = vld [vmem:[%s6484_s1 + $0x400] sm:$0xff] }
  0x74   : > { %1454 = vmatprep.subr.bf16.mxu0 %v4199_v49  ;;  %1529 = vmatpush1.bf16.msra.mxu1 %v4232_v50  ;;  %v4153_v49 = vld [vmem:[%s6484_s1 + $0x7b8] sm:$0xff]  ;;  %v4271_v50 = vcombine.high %v4124_v44, %v4128_v45  ;;  %v273_v45 = vld [vmem:[%s6484_s1 + $0x120] sm:$0xff] }
  0x75   : > { %1530 = vmatprep.subr.bf16.mxu1 %v4225_v53  ;;  %v4120_v53 = vld [vmem:[%s6484_s1 + $0x6b0] sm:$0xff]  ;;  %v4296_v62 = vcombine.low %v4149_v48, %v4153_v49 }
  0x76   : > { %v4262_v2 = vcombine.low %v4116_v52, %v4120_v53 }
  0x77   : > { %1455 = vmatpush1.bf16.msra.mxu0 %v4198_v54  ;;  %v4297_v54 = vcombine.high %v4149_v48, %v4153_v49  ;;  %v294_v48 = vld [vmem:[%s6484_s1 + $0x1c8] sm:$0xff] }
  0x78   : > { %1456 = vmatprep.subr.bf16.mxu0 %v4319_v58  ;;  %1531 = vmatpush1.bf16.msra.mxu1 %v4224_v60  ;;  %v4145_v58 = vld [vmem:[%s6484_s1 + $0x778] sm:$0xff]  ;;  %v4263_v60 = vcombine.high %v4116_v52, %v4120_v53  ;;  %v298_v49 = vld [vmem:[%s6484_s1 + $0x1e8] sm:$0xff]  ;;  %v261_v52 = vld [vmem:[%s6484_s1 + $0xc0] sm:$0xff] }
  0x79   : > { %1532 = vmatprep.subr.bf16.mxu1 %v4217_v0  ;;  %v4193_v0 = vld [vmem:[%s6484_s1 + $0x8f8] sm:$0xff]  ;;  %v4288_v7 = vcombine.low %v4141_v57, %v4145_v58  ;;  %v265_v53 = vld [vmem:[%s6484_s1 + $0xe0] sm:$0xff] }
  0x7a   : > { %v4336_v12 = vcombine.low %v4189_v63, %v4193_v0 }
  0x7b   : > { %1457 = vmatpush2.bf16.msra.mxu0 %v4318_v1  ;;  %v4289_v1 = vcombine.high %v4141_v57, %v4145_v58  ;;  %v290_v57 = vld [vmem:[%s6484_s1 + $0x1a8] sm:$0xff]  ;;  %v5490_v58 = vpack.c.bf16 %v4987_v26, %v4987_v26 }
  0x7c   : > { %1458 = vmatprep.subr.bf16.mxu0 %v4311_v5  ;;  %1533 = vmatpush1.bf16.msra.mxu1 %v4216_v6  ;;  %v4137_v5 = vld [vmem:[%s6484_s1 + $0x738] sm:$0xff]  ;;  %v4337_v6 = vcombine.high %v4189_v63, %v4193_v0  ;;  %v253_v63 = vld [vmem:[%s6484_s1 + $0x80] sm:$0xff]  ;;  %v278_v26 = vld [vmem:[%s6484_s1 + $0x148] sm:$0xff] }
  0x7d   : > { %1534 = vmatprep.subr.bf16.mxu1 %v4209_v10  ;;  %v4185_v10 = vld [vmem:[%s6484_s1 + $0x8b8] sm:$0xff]  ;;  %v4280_v17 = vcombine.low %v4133_v4, %v4137_v5  ;;  %v257_v0 = vld [vmem:[%s6484_s1 + $0xa0] sm:$0xff] }
  0x7e   : > { %v4328_v21 = vcombine.low %v4181_v9, %v4185_v10 }
  0x7f   : > { %1459 = vmatpush2.bf16.msra.mxu0 %v4310_v11  ;;  %v4281_v11 = vcombine.high %v4133_v4, %v4137_v5  ;;  %v282_v4 = vld [vmem:[%s6484_s1 + $0x168] sm:$0xff]  ;;  %v4359_v5 = vcombine.high %v253_v63, %v257_v0 }
  0x80   : > { %1460 = vmatprep.subr.bf16.mxu0 %v4303_v15  ;;  %1535 = vmatpush1.bf16.msra.mxu1 %v4208_v16  ;;  %v4129_v15 = vld [vmem:[%s6484_s1 + $0x6f8] sm:$0xff]  ;;  %v4329_v16 = vcombine.high %v4181_v9, %v4185_v10  ;;  %v249_v9 = vld [vmem:[%s6484_s1 + $0x60] sm:$0xff]  ;;  %v4385_v10 = vcombine.high %v278_v26, %v282_v4 }
  0x81   : > { %1536 = vmatprep.subr.bf16.mxu1 %v4201_v19  ;;  %v297_v19 = vld [vmem:[%s6484_s1 + $0x1e0] sm:$0xff]  ;;  %v4272_v25 = vcombine.low %v4125_v13, %v4129_v15 }
  0x82   : > { %v4398_v31 = vcombine.low %v293_v18, %v297_v19 }
  0x83   : > { %1461 = vmatpush2.bf16.msra.mxu0 %v4302_v20  ;;  %v4273_v20 = vcombine.high %v4125_v13, %v4129_v15  ;;  %v274_v13 = vld [vmem:[%s6484_s1 + $0x128] sm:$0xff] }
  0x84   : > { %1462 = vmatprep.subr.bf16.mxu0 %v4295_v23  ;;  %1537 = vmatpush1.bf16.msra.mxu1 %v4200_v24  ;;  %v4121_v23 = vld [vmem:[%s6484_s1 + $0x6b8] sm:$0xff]  ;;  %v4399_v24 = vcombine.high %v293_v18, %v297_v19  ;;  %v241_v18 = vld [vmem:[%s6484_s1 + $0x20] sm:$0xff] }
  0x85   : > { %1538 = vmatprep.subr.bf16.mxu1 %v4321_v28  ;;  %v289_v28 = vld [vmem:[%s6484_s1 + $0x1a0] sm:$0xff]  ;;  %v4264_v37 = vcombine.low %v4117_v22, %v4121_v23 }
  0x86   : > { %v4391_v36 = vcombine.high %v285_v27, %v289_v28 }
  0x87   : > { %1463 = vmatpush2.bf16.msra.mxu0 %v4294_v30  ;;  %v4265_v30 = vcombine.high %v4117_v22, %v4121_v23  ;;  %v266_v22 = vld [vmem:[%s6484_s1 + $0xe8] sm:$0xff] }
  0x88   : > { %1464 = vmatprep.subr.bf16.mxu0 %v4287_v33  ;;  %1539 = vmatpush2.bf16.msra.mxu1 %v4320_v35  ;;  %v377_v33 = vld [vmem:[%s6484_s1 + $0x460] sm:$0xff]  ;;  %v5445_v35 = vpack.c.bf16 %v5036_v56, %v5036_v56  ;;  %v4390_v56 = vcombine.low %v285_v27, %v289_v28 }
  0x89   : > { %1540 = vmatprep.subr.bf16.mxu1 %v4313_v38  ;;  %v277_v38 = vld [vmem:[%s6484_s1 + $0x140] sm:$0xff]  ;;  %v4479_v40 = vcombine.high %v373_v32, %v377_v33  ;;  %v4478_v44 = vcombine.low %v373_v32, %v377_v33  ;;  %v258_v32 = vld [vmem:[%s6484_s1 + $0xa8] sm:$0xff] }
  0x8a   : > { %v361_v27 = vld [vmem:[%s6484_s1 + $0x3e0] sm:$0xff] }
  0x8b   : > { %1465 = vmatpush2.bf16.msra.mxu0 %v4286_v39  ;;  %v281_v39 = vld [vmem:[%s6484_s1 + $0x160] sm:$0xff] }
  0x8c   : > { %1466 = vmatprep.subr.bf16.mxu0 %v4279_v43  ;;  %1541 = vmatpush2.bf16.msra.mxu1 %v4312_v14  ;;  %v369_v43 = vld [vmem:[%s6484_s1 + $0x420] sm:$0xff]  ;;  %v4383_v14 = vcombine.high %v277_v38, %v281_v39 }
  0x8d   : > { %1542 = vmatprep.subr.bf16.mxu1 %v4305_v46  ;;  %v4471_v46 = vcombine.high %v365_v41, %v369_v43 }
  0x8f   : > { %1467 = vmatpush2.bf16.msra.mxu0 %v4278_v47  ;;  %v4382_v47 = vcombine.low %v277_v38, %v281_v39  ;;  %v353_v38 = vld [vmem:[%s6484_s1 + $0x3a0] sm:$0xff] }
  0x90   : > { %1468 = vmatprep.subr.bf16.mxu0 %v4271_v50  ;;  %1543 = vmatpush2.bf16.msra.mxu1 %v4304_v51  ;;  %v4470_v51 = vcombine.low %v365_v41, %v369_v43  ;;  %v250_v41 = vld [vmem:[%s6484_s1 + $0x68] sm:$0xff] }
  0x91   : > { %1544 = vmatprep.subr.bf16.mxu1 %v4297_v54  ;;  %v4401_v54 = vcombine.high %v294_v48, %v298_v49 }
  0x93   : > { %1469 = vmatpush2.bf16.msra.mxu0 %v4270_v55 }
  0x94   : > { %1470 = vmatprep.subr.bf16.mxu0 %v4263_v60  ;;  %1545 = vmatpush2.bf16.msra.mxu1 %v4296_v62  ;;  %v4367_v60 = vcombine.high %v261_v52, %v265_v53  ;;  %v4400_v62 = vcombine.low %v294_v48, %v298_v49  ;;  %v242_v48 = vld [vmem:[%s6484_s1 + $0x28] sm:$0xff] }
  0x95   : > { %1546 = vmatprep.subr.bf16.mxu1 %v4289_v1 }
  0x97   : > { %1471 = vmatpush2.bf16.msra.mxu0 %v4262_v2  ;;  %v4366_v2 = vcombine.low %v261_v52, %v265_v53  ;;  %v337_v52 = vld [vmem:[%s6484_s1 + $0x320] sm:$0xff] }
  0x98   : > { %1575 = vmatprep.subr.bf16.mxu0 %v4337_v6  ;;  %1547 = vmatpush2.bf16.msra.mxu1 %v4288_v7  ;;  %v245_v7 = vld [vmem:[%s6484_s1 + $0x40] sm:$0xff] }
  0x99   : > { %1548 = vmatprep.subr.bf16.mxu1 %v4281_v11  ;;  %v4358_v11 = vcombine.low %v253_v63, %v257_v0  ;;  %v4351_v15 = vcombine.high %v245_v7, %v249_v9  ;;  %v329_v63 = vld [vmem:[%s6484_s1 + $0x2e0] sm:$0xff] }
  0x9a   : > { %1473 = vmatmul.mubr.bf16.vlgmr.msra.gmra.mxu0 %v5183_v34 }
  0x9b   : > { %1576 = vmatpush1.bf16.msra.mxu0 %v4336_v12  ;;  %1595 = vmatprep.mubr.bf16.mxu0 %v4867_v8  ;;  %v270_v12 = vld [vmem:[%s6484_s1 + $0x108] sm:$0xff] }
  0x9c   : > { %1577 = vmatprep.subr.bf16.mxu0 %v4329_v16  ;;  %1549 = vmatpush2.bf16.msra.mxu1 %v4280_v17  ;;  %v4384_v16 = vcombine.low %v278_v26, %v282_v4  ;;  %v237_v17 = vld [vmem:[%s6484_s1] sm:$0xff]  ;;  %v4377_v19 = vcombine.high %v270_v12, %v274_v13  ;;  %v354_v26 = vld [vmem:[%s6484_s1 + $0x3a8] sm:$0xff] }
  0x9d   : > { %1550 = vmatprep.subr.bf16.mxu1 %v4273_v20  ;;  %v4350_v20 = vcombine.low %v245_v7, %v249_v9  ;;  %v4343_v23 = vcombine.high %v237_v17, %v241_v18  ;;  %v321_v7 = vld [vmem:[%s6484_s1 + $0x2a0] sm:$0xff] }
  0x9f   : > { %1578 = vmatpush1.bf16.msra.mxu0 %v4328_v21  ;;  %v262_v21 = vld [vmem:[%s6484_s1 + $0xc8] sm:$0xff] }
  0xa0   : > { %2327 = vmatprep.subr.bf16.mxu0 %v4399_v24  ;;  %1551 = vmatpush2.bf16.msra.mxu1 %v4272_v25  ;;  %v4376_v24 = vcombine.low %v270_v12, %v274_v13  ;;  %v357_v25 = vld [vmem:[%s6484_s1 + $0x3c0] sm:$0xff]  ;;  %v4369_v28 = vcombine.high %v262_v21, %v266_v22  ;;  %v346_v12 = vld [vmem:[%s6484_s1 + $0x368] sm:$0xff] }
  0xa1   : > { %1552 = vmatprep.subr.bf16.mxu1 %v4265_v30  ;;  %v4342_v30 = vcombine.low %v237_v17, %v241_v18  ;;  %v4463_v33 = vcombine.high %v357_v25, %v361_v27  ;;  %v313_v17 = vld [vmem:[%s6484_s1 + $0x260] sm:$0xff] }
  0xa2   : > { %4341 = vmatmul.mubr.msk.bf16.vlgmr.msra.gmra.mxu0 %vm1272_vm0, %v5013_v42  ;;  %v269_v42 = vld [vmem:[%s6484_s1 + $0x100] sm:$0xff] }
  0xa3   : > { %2328 = vmatpush1.bf16.msra.mxu0 %v4398_v31  ;;  %2359 = vmatprep.mubr.bf16.mxu0 %v5445_v35  ;;  %v4375_v50 = vcombine.high %v269_v42, %v273_v45  ;;  %v4374_v55 = vcombine.low %v269_v42, %v273_v45  ;;  %v254_v31 = vld [vmem:[%s6484_s1 + $0x88] sm:$0xff]  ;;  %v345_v42 = vld [vmem:[%s6484_s1 + $0x360] sm:$0xff] }
  0xa4   : > { %2329 = vmatprep.subr.bf16.mxu0 %v4391_v36  ;;  %1553 = vmatpush2.bf16.msra.mxu1 %v4264_v37  ;;  %v4368_v36 = vcombine.low %v262_v21, %v266_v22  ;;  %v349_v37 = vld [vmem:[%s6484_s1 + $0x380] sm:$0xff]  ;;  %v4361_v39 = vcombine.high %v254_v31, %v258_v32  ;;  %v338_v21 = vld [vmem:[%s6484_s1 + $0x328] sm:$0xff] }
  0xa5   : > { %2380 = vmatprep.subr.bf16.mxu1 %v4479_v40  ;;  %v4462_v40 = vcombine.low %v357_v25, %v361_v27  ;;  %v4455_v43 = vcombine.high %v349_v37, %v353_v38  ;;  %v305_v25 = vld [vmem:[%s6484_s1 + $0x220] sm:$0xff] }
  0xa7   : > { %2330 = vmatpush1.bf16.msra.mxu0 %v4390_v56  ;;  %1555 = vmatmul.mubr.bf16.vlgmr.msra.gmra.mxu1 %v5183_v34  ;;  %v286_v34 = vld [vmem:[%s6484_s1 + $0x188] sm:$0xff] }
  0xa8   : > { %2331 = vmatprep.subr.bf16.mxu0 %v4383_v14  ;;  %2381 = vmatpush1.bf16.msra.mxu1 %v4478_v44  ;;  %v4393_v1 = vcombine.high %v286_v34, %v290_v57  ;;  %v4392_v6 = vcombine.low %v286_v34, %v290_v57  ;;  %v246_v56 = vld [vmem:[%s6484_s1 + $0x48] sm:$0xff]  ;;  %v4360_v14 = vcombine.low %v254_v31, %v258_v32  ;;  %v341_v44 = vld [vmem:[%s6484_s1 + $0x340] sm:$0xff] }
  0xa9   : > { %2400 = vmatprep.mubr.bf16.mxu1 %v4867_v8  ;;  %2382 = vmatprep.subr.bf16.mxu1 %v4471_v46  ;;  %v4353_v45 = vcombine.high %v246_v56, %v250_v41  ;;  %v4454_v46 = vcombine.low %v349_v37, %v353_v38  ;;  %v4447_v49 = vcombine.high %v341_v44, %v345_v42  ;;  %v362_v34 = vld [vmem:[%s6484_s1 + $0x3e8] sm:$0xff] }
  0xaa   : > { %v330_v31 = vld [vmem:[%s6484_s1 + $0x2e8] sm:$0xff] }
  0xab   : > { %2332 = vmatpush1.bf16.msra.mxu0 %v4382_v47  ;;  %v238_v47 = vld [vmem:[%s6484_s1 + $0x8] sm:$0xff] }
  0xac   : > { %2333 = vmatprep.subr.bf16.mxu0 %v4375_v50  ;;  %2383 = vmatpush1.bf16.msra.mxu1 %v4470_v51  ;;  %v4352_v50 = vcombine.low %v246_v56, %v250_v41  ;;  %v333_v51 = vld [vmem:[%s6484_s1 + $0x300] sm:$0xff]  ;;  %v4345_v53 = vcombine.high %v238_v47, %v242_v48  ;;  %v378_v37 = vld [vmem:[%s6484_s1 + $0x468] sm:$0xff] }
  0xad   : > { %2409 = vmatprep.subr.bf16.mxu1 %v4401_v54  ;;  %v4446_v54 = vcombine.low %v341_v44, %v345_v42  ;;  %v4439_v57 = vcombine.high %v333_v51, %v337_v52  ;;  %v322_v56 = vld [vmem:[%s6484_s1 + $0x2a8] sm:$0xff]  ;;  %v5647_v42 = vpack.c.bf16 %v5133_v59, %v5133_v59  ;;  %v295_v59 = vld [vmem:[%s6484_s1 + $0x1d0] sm:$0xff] }
  0xae   : > { %v370_v44 = vld [vmem:[%s6484_s1 + $0x428] sm:$0xff] }
  0xaf   : > { %2334 = vmatpush1.bf16.msra.mxu0 %v4374_v55  ;;  %4486 = vmatmul.mubr.msk.bf16.vlgmr.msra.gmra.mxu1 %vm1272_vm0, %v5490_v58  ;;  %v358_v55 = vld [vmem:[%s6484_s1 + $0x3c8] sm:$0xff] }
  0xb0   : > { %2335 = vmatprep.subr.bf16.mxu0 %v4367_v60  ;;  %2410 = vmatpush1.bf16.msra.mxu1 %v4400_v62  ;;  %v4344_v60 = vcombine.low %v238_v47, %v242_v48  ;;  %v325_v62 = vld [vmem:[%s6484_s1 + $0x2c0] sm:$0xff]  ;;  %v4465_v0 = vcombine.high %v358_v55, %v362_v34  ;;  %v310_v47 = vld [vmem:[%s6484_s1 + $0x248] sm:$0xff] }
  0xb1   : > { %2441 = vmatprep.mubr.bf16.mxu1 %v5445_v35  ;;  %2411 = vmatprep.subr.bf16.mxu1 %v4393_v1  ;;  %v4438_v1 = vcombine.low %v333_v51, %v337_v52  ;;  %v4431_v4 = vcombine.high %v325_v62, %v329_v63  ;;  %v314_v48 = vld [vmem:[%s6484_s1 + $0x268] sm:$0xff]  ;;  %v299_v52 = vld [vmem:[%s6484_s1 + $0x1f0] sm:$0xff] }
  0xb3   : > { %2336 = vmatpush1.bf16.msra.mxu0 %v4366_v2  ;;  %v350_v2 = vld [vmem:[%s6484_s1 + $0x388] sm:$0xff] }
  0xb4   : > { %2337 = vmatprep.subr.bf16.mxu0 %v4359_v5  ;;  %2412 = vmatpush1.bf16.msra.mxu1 %v4392_v6  ;;  %v4464_v5 = vcombine.low %v358_v55, %v362_v34  ;;  %v317_v6 = vld [vmem:[%s6484_s1 + $0x280] sm:$0xff]  ;;  %v4457_v9 = vcombine.high %v350_v2, %v354_v26  ;;  %v302_v34 = vld [vmem:[%s6484_s1 + $0x208] sm:$0xff] }
  0xb5   : > { %2413 = vmatprep.subr.bf16.mxu1 %v4385_v10  ;;  %v4430_v10 = vcombine.low %v325_v62, %v329_v63  ;;  %v4423_v13 = vcombine.high %v317_v6, %v321_v7  ;;  %v4403_v62 = vcombine.high %v295_v59, %v299_v52  ;;  %v4416_v63 = vcombine.low %v310_v47, %v314_v48 }
  0xb7   : > { %2338 = vmatpush1.bf16.msra.mxu0 %v4358_v11  ;;  %v342_v11 = vld [vmem:[%s6484_s1 + $0x348] sm:$0xff] }
  0xb8   : > { %2339 = vmatprep.subr.bf16.mxu0 %v4351_v15  ;;  %2414 = vmatpush1.bf16.msra.mxu1 %v4384_v16  ;;  %v4456_v15 = vcombine.low %v350_v2, %v354_v26  ;;  %v309_v16 = vld [vmem:[%s6484_s1 + $0x240] sm:$0xff]  ;;  %v4449_v18 = vcombine.high %v342_v11, %v346_v12 }
  0xb9   : > { %2415 = vmatprep.subr.bf16.mxu1 %v4377_v19  ;;  %v4422_v19 = vcombine.low %v317_v6, %v321_v7  ;;  %v4415_v22 = vcombine.high %v309_v16, %v313_v17  ;;  %v379_v6 = vld [vmem:[%s6484_s1 + $0x470] sm:$0xff] }
  0xbb   : > { %2340 = vmatpush1.bf16.msra.mxu0 %v4350_v20  ;;  %v334_v20 = vld [vmem:[%s6484_s1 + $0x308] sm:$0xff] }
  0xbc   : > { %2341 = vmatprep.subr.bf16.mxu0 %v4343_v23  ;;  %2416 = vmatpush1.bf16.msra.mxu1 %v4376_v24  ;;  %v4448_v23 = vcombine.low %v342_v11, %v346_v12  ;;  %v301_v24 = vld [vmem:[%s6484_s1 + $0x200] sm:$0xff]  ;;  %v4441_v27 = vcombine.high %v334_v20, %v338_v21  ;;  %v283_v11 = vld [vmem:[%s6484_s1 + $0x170] sm:$0xff] }
  0xbd   : > { %2417 = vmatprep.subr.bf16.mxu1 %v4369_v28  ;;  %v4414_v28 = vcombine.low %v309_v16, %v313_v17  ;;  %v4407_v32 = vcombine.high %v301_v24, %v305_v25  ;;  %v371_v16 = vld [vmem:[%s6484_s1 + $0x430] sm:$0xff] }
  0xbf   : > { %2342 = vmatpush1.bf16.msra.mxu0 %v4342_v30  ;;  %v326_v30 = vld [vmem:[%s6484_s1 + $0x2c8] sm:$0xff] }
  0xc0   : > { %2343 = vmatprep.subr.bf16.mxu0 %v4463_v33  ;;  %2418 = vmatpush1.bf16.msra.mxu1 %v4368_v36  ;;  %v4440_v33 = vcombine.low %v334_v20, %v338_v21  ;;  %v374_v36 = vld [vmem:[%s6484_s1 + $0x448] sm:$0xff]  ;;  %v4433_v38 = vcombine.high %v326_v30, %v330_v31  ;;  %v275_v20 = vld [vmem:[%s6484_s1 + $0x130] sm:$0xff] }
  0xc1   : > { %2419 = vmatprep.subr.bf16.mxu1 %v4361_v39  ;;  %v4406_v39 = vcombine.low %v301_v24, %v305_v25  ;;  %v4481_v41 = vcombine.high %v374_v36, %v378_v37  ;;  %v300_v24 = vld [vmem:[%s6484_s1 + $0x1f8] sm:$0xff] }
  0xc3   : > { %2344 = vmatpush2.bf16.msra.mxu0 %v4462_v40  ;;  %v318_v40 = vld [vmem:[%s6484_s1 + $0x288] sm:$0xff] }
  0xc4   : > { %2345 = vmatprep.subr.bf16.mxu0 %v4455_v43  ;;  %2420 = vmatpush1.bf16.msra.mxu1 %v4360_v14  ;;  %v4432_v43 = vcombine.low %v326_v30, %v330_v31  ;;  %v366_v14 = vld [vmem:[%s6484_s1 + $0x408] sm:$0xff]  ;;  %v4424_v51 = vcombine.low %v318_v40, %v322_v56  ;;  %v267_v30 = vld [vmem:[%s6484_s1 + $0xf0] sm:$0xff] }
  0xc5   : > { %2421 = vmatprep.subr.bf16.mxu1 %v4353_v45  ;;  %v4425_v45 = vcombine.high %v318_v40, %v322_v56  ;;  %v4472_v55 = vcombine.low %v366_v14, %v370_v44  ;;  %v259_v40 = vld [vmem:[%s6484_s1 + $0xb0] sm:$0xff] }
  0xc7   : > { %2346 = vmatpush2.bf16.msra.mxu0 %v4454_v46  ;;  %v4480_v46 = vcombine.low %v374_v36, %v378_v37  ;;  %v292_v36 = vld [vmem:[%s6484_s1 + $0x1b8] sm:$0xff] }
  0xc8   : > { %2347 = vmatprep.subr.bf16.mxu0 %v4447_v49  ;;  %2422 = vmatpush1.bf16.msra.mxu1 %v4352_v50  ;;  %v4473_v50 = vcombine.high %v366_v14, %v370_v44  ;;  %v284_v14 = vld [vmem:[%s6484_s1 + $0x178] sm:$0xff] }
  0xc9   : > { %2423 = vmatprep.subr.bf16.mxu1 %v4345_v53 }
  0xcb   : > { %2348 = vmatpush2.bf16.msra.mxu0 %v4446_v54  ;;  %v4417_v54 = vcombine.high %v310_v47, %v314_v48  ;;  %v251_v47 = vld [vmem:[%s6484_s1 + $0x70] sm:$0xff] }
  0xcc   : > { %2349 = vmatprep.subr.bf16.mxu0 %v4439_v57  ;;  %2424 = vmatpush1.bf16.msra.mxu1 %v4344_v60  ;;  %v306_v57 = vld [vmem:[%s6484_s1 + $0x228] sm:$0xff] }
  0xcd   : > { %2425 = vmatprep.subr.bf16.mxu1 %v4465_v0  ;;  %v287_v0 = vld [vmem:[%s6484_s1 + $0x190] sm:$0xff]  ;;  %v4409_v26 = vcombine.high %v302_v34, %v306_v57 }
  0xcf   : > { %2350 = vmatpush2.bf16.msra.mxu0 %v4438_v1  ;;  %v291_v1 = vld [vmem:[%s6484_s1 + $0x1b0] sm:$0xff] }
  0xd0   : > { %2351 = vmatprep.subr.bf16.mxu0 %v4431_v4  ;;  %2426 = vmatpush2.bf16.msra.mxu1 %v4464_v5  ;;  %v4402_v4 = vcombine.low %v295_v59, %v299_v52  ;;  %v375_v5 = vld [vmem:[%s6484_s1 + $0x450] sm:$0xff]  ;;  %v4395_v7 = vcombine.high %v287_v0, %v291_v1  ;;  %v276_v59 = vld [vmem:[%s6484_s1 + $0x138] sm:$0xff] }
  0xd1   : > { %2427 = vmatprep.subr.bf16.mxu1 %v4457_v9  ;;  %v4408_v9 = vcombine.low %v302_v34, %v306_v57  ;;  %v4483_v12 = vcombine.high %v375_v5, %v379_v6 }
  0xd3   : > { %2352 = vmatpush2.bf16.msra.mxu0 %v4430_v10  ;;  %v279_v10 = vld [vmem:[%s6484_s1 + $0x150] sm:$0xff] }
  0xd4   : > { %2353 = vmatprep.subr.bf16.mxu0 %v4423_v13  ;;  %2428 = vmatpush2.bf16.msra.mxu1 %v4456_v15  ;;  %v4394_v13 = vcombine.low %v287_v0, %v291_v1  ;;  %v367_v15 = vld [vmem:[%s6484_s1 + $0x410] sm:$0xff]  ;;  %v4387_v17 = vcombine.high %v279_v10, %v283_v11 }
  0xd5   : > { %2429 = vmatprep.subr.bf16.mxu1 %v4449_v18  ;;  %v4482_v18 = vcombine.low %v375_v5, %v379_v6  ;;  %v4475_v21 = vcombine.high %v367_v15, %v371_v16  ;;  %v359_v1 = vld [vmem:[%s6484_s1 + $0x3d0] sm:$0xff]  ;;  %v256_v5 = vld [vmem:[%s6484_s1 + $0x98] sm:$0xff] }
  0xd6   : > { %v260_v6 = vld [vmem:[%s6484_s1 + $0xb8] sm:$0xff] }
  0xd7   : > { %2354 = vmatpush2.bf16.msra.mxu0 %v4422_v19  ;;  %v271_v19 = vld [vmem:[%s6484_s1 + $0x110] sm:$0xff] }
  0xd8   : > { %2355 = vmatprep.subr.bf16.mxu0 %v4415_v22  ;;  %2430 = vmatpush2.bf16.msra.mxu1 %v4448_v23  ;;  %v4386_v22 = vcombine.low %v279_v10, %v283_v11  ;;  %v296_v23 = vld [vmem:[%s6484_s1 + $0x1d8] sm:$0xff]  ;;  %v4379_v25 = vcombine.high %v271_v19, %v275_v20  ;;  %v351_v10 = vld [vmem:[%s6484_s1 + $0x390] sm:$0xff] }
  0xd9   : > { %2431 = vmatprep.subr.bf16.mxu1 %v4441_v27  ;;  %v4474_v27 = vcombine.low %v367_v15, %v371_v16  ;;  %v4405_v31 = vcombine.high %v296_v23, %v300_v24  ;;  %v355_v11 = vld [vmem:[%s6484_s1 + $0x3b0] sm:$0xff]  ;;  %v248_v15 = vld [vmem:[%s6484_s1 + $0x58] sm:$0xff] }
  0xda   : > { %v252_v16 = vld [vmem:[%s6484_s1 + $0x78] sm:$0xff] }
  0xdb   : > { %2356 = vmatpush2.bf16.msra.mxu0 %v4414_v28  ;;  %v263_v28 = vld [vmem:[%s6484_s1 + $0xd0] sm:$0xff] }
  0xdc   : > { %2357 = vmatprep.subr.bf16.mxu0 %v4407_v32  ;;  %2432 = vmatpush2.bf16.msra.mxu1 %v4440_v33  ;;  %v4378_v32 = vcombine.low %v271_v19, %v275_v20  ;;  %v288_v33 = vld [vmem:[%s6484_s1 + $0x198] sm:$0xff]  ;;  %v4371_v37 = vcombine.high %v263_v28, %v267_v30  ;;  %v343_v19 = vld [vmem:[%s6484_s1 + $0x350] sm:$0xff] }
  0xdd   : > { %2433 = vmatprep.subr.bf16.mxu1 %v4433_v38  ;;  %v4404_v38 = vcombine.low %v296_v23, %v300_v24  ;;  %v4397_v56 = vcombine.high %v288_v33, %v292_v36  ;;  %v347_v20 = vld [vmem:[%s6484_s1 + $0x370] sm:$0xff]  ;;  %v240_v23 = vld [vmem:[%s6484_s1 + $0x18] sm:$0xff] }
  0xde   : > { %v5655_v49 = vpop.f32.mrf.mxu1  ;;  %v244_v24 = vld [vmem:[%s6484_s1 + $0x38] sm:$0xff] }
  0xdf   : > { %2358 = vmatpush2.bf16.msra.mxu0 %v4406_v39  ;;  %v255_v39 = vld [vmem:[%s6484_s1 + $0x90] sm:$0xff] }
  0xe0   : > { %2462 = vmatprep.subr.bf16.mxu0 %v4481_v41  ;;  %2434 = vmatpush2.bf16.msra.mxu1 %v4432_v43  ;;  %v5663_v53 = vpop.f32.mrf.mxu1  ;;  %v4370_v41 = vcombine.low %v263_v28, %v267_v30  ;;  %v280_v43 = vld [vmem:[%s6484_s1 + $0x158] sm:$0xff]  ;;  %v4363_v44 = vcombine.high %v255_v39, %v259_v40  ;;  %v335_v28 = vld [vmem:[%s6484_s1 + $0x310] sm:$0xff] }
  0xe1   : > { %2435 = vmatprep.subr.bf16.mxu1 %v4425_v45  ;;  %v4396_v45 = vcombine.low %v288_v33, %v292_v36  ;;  %v4389_v48 = vcombine.high %v280_v43, %v284_v14  ;;  %v339_v30 = vld [vmem:[%s6484_s1 + $0x330] sm:$0xff]  ;;  %v360_v33 = vld [vmem:[%s6484_s1 + $0x3d8] sm:$0xff] }
  0xe2   : > { %2360 = vmatmul.mubr.bf16.vlgmr.msra.gmra.mxu0 %v5647_v42  ;;  %v1355_v60 = vpop.f32.mrf.mxu1  ;;  %v364_v36 = vld [vmem:[%s6484_s1 + $0x3f8] sm:$0xff] }
  0xe3   : > { %2463 = vmatpush1.bf16.msra.mxu0 %v4480_v46  ;;  %2482 = vmatprep.mubr.bf16.mxu0 %v4867_v8  ;;  %v247_v46 = vld [vmem:[%s6484_s1 + $0x50] sm:$0xff]  ;;  %v264_v60 = vld [vmem:[%s6484_s1 + $0xd8] sm:$0xff] }
  0xe4   : > { %2464 = vmatprep.subr.bf16.mxu0 %v4473_v50  ;;  %2436 = vmatpush2.bf16.msra.mxu1 %v4424_v51  ;;  %v1356_v2 = vpop.f32.mrf.mxu1  ;;  %v4362_v50 = vcombine.low %v255_v39, %v259_v40  ;;  %v272_v51 = vld [vmem:[%s6484_s1 + $0x118] sm:$0xff]  ;;  %v4355_v52 = vcombine.high %v247_v46, %v251_v47  ;;  %v4354_v57 = vcombine.low %v247_v46, %v251_v47  ;;  %v327_v39 = vld [vmem:[%s6484_s1 + $0x2d0] sm:$0xff] }
  0xe5   : > { %2437 = vmatprep.subr.bf16.mxu1 %v4417_v54  ;;  %v4388_v54 = vcombine.low %v280_v43, %v284_v14  ;;  %v4381_v34 = vcombine.high %v272_v51, %v276_v59  ;;  %v4380_v0 = vcombine.low %v272_v51, %v276_v59  ;;  %v363_v2 = vld [vmem:[%s6484_s1 + $0x3f0] sm:$0xff]  ;;  %v4442_v14 = vcombine.low %v335_v28, %v339_v30 }
  0xe6   : > { %v331_v40 = vld [vmem:[%s6484_s1 + $0x2f0] sm:$0xff] }
  0xe7   : > { %2465 = vmatpush1.bf16.msra.mxu0 %v4472_v55  ;;  %v243_v55 = vld [vmem:[%s6484_s1 + $0x30] sm:$0xff]  ;;  %v4435_v47 = vcombine.high %v327_v39, %v331_v40 }
  0xe8   : > { %2491 = vmatprep.subr.bf16.mxu0 %v4403_v62  ;;  %2438 = vmatpush2.bf16.msra.mxu1 %v4416_v63  ;;  %v268_v62 = vld [vmem:[%s6484_s1 + $0xf8] sm:$0xff]  ;;  %v323_v51 = vld [vmem:[%s6484_s1 + $0x2b0] sm:$0xff] }
  0xe9   : > { %2439 = vmatprep.subr.bf16.mxu1 %v4409_v26  ;;  %v4373_v26 = vcombine.high %v264_v60, %v268_v62 }
  0xea   : > { %4487 = vmatmul.mubr.msk.bf16.vlgmr.msra.gmra.mxu0 %vm1272_vm0, %v5490_v58 }
  0xeb   : > { %2492 = vmatpush1.bf16.msra.mxu0 %v4402_v4  ;;  %2523 = vmatprep.mubr.bf16.mxu0 %v5445_v35 }
  0xec   : > { %2493 = vmatprep.subr.bf16.mxu0 %v4395_v7  ;;  %2440 = vmatpush2.bf16.msra.mxu1 %v4408_v9  ;;  %v4467_v7 = vcombine.high %v359_v1, %v363_v2  ;;  %v4372_v9 = vcombine.low %v264_v60, %v268_v62  ;;  %v311_v60 = vld [vmem:[%s6484_s1 + $0x250] sm:$0xff] }
  0xed   : > { %2544 = vmatprep.subr.bf16.mxu1 %v4483_v12  ;;  %v4365_v12 = vcombine.high %v256_v5, %v260_v6  ;;  %v315_v62 = vld [vmem:[%s6484_s1 + $0x270] sm:$0xff] }
  0xef   : > { %2494 = vmatpush1.bf16.msra.mxu0 %v4394_v13  ;;  %2442 = vmatmul.mubr.bf16.vlgmr.msra.gmra.mxu1 %v5647_v42  ;;  %v4466_v13 = vcombine.low %v359_v1, %v363_v2  ;;  %v336_v2 = vld [vmem:[%s6484_s1 + $0x318] sm:$0xff] }
  0xf0   : > { %2495 = vmatprep.subr.bf16.mxu0 %v4387_v17  ;;  %2545 = vmatpush1.bf16.msra.mxu1 %v4482_v18  ;;  %v4459_v17 = vcombine.high %v351_v10, %v355_v11  ;;  %v4364_v18 = vcombine.low %v256_v5, %v260_v6  ;;  %v4419_v5 = vcombine.high %v311_v60, %v315_v62 }
  0xf1   : > { %2564 = vmatprep.mubr.bf16.mxu1 %v4867_v8  ;;  %2546 = vmatprep.subr.bf16.mxu1 %v4475_v21  ;;  %v4357_v21 = vcombine.high %v248_v15, %v252_v16 }
  0xf3   : > { %2496 = vmatpush1.bf16.msra.mxu0 %v4386_v22  ;;  %v4458_v22 = vcombine.low %v351_v10, %v355_v11 }
  0xf4   : > { %2497 = vmatprep.subr.bf16.mxu0 %v4379_v25  ;;  %2547 = vmatpush1.bf16.msra.mxu1 %v4474_v27  ;;  %v4451_v25 = vcombine.high %v343_v19, %v347_v20  ;;  %v4356_v27 = vcombine.low %v248_v15, %v252_v16  ;;  %v332_v15 = vld [vmem:[%s6484_s1 + $0x2f8] sm:$0xff] }
  0xf5   : > { %2573 = vmatprep.subr.bf16.mxu1 %v4405_v31  ;;  %v4349_v31 = vcombine.high %v240_v23, %v244_v24 }
  0xf7   : > { %2498 = vmatpush1.bf16.msra.mxu0 %v4378_v32  ;;  %4488 = vmatmul.mubr.msk.bf16.vlgmr.msra.gmra.mxu1 %vm1272_vm0, %v5490_v58  ;;  %v4450_v32 = vcombine.low %v343_v19, %v347_v20 }
  0xf8   : > { %2499 = vmatprep.subr.bf16.mxu0 %v4371_v37  ;;  %2574 = vmatpush1.bf16.msra.mxu1 %v4404_v38  ;;  %v4443_v37 = vcombine.high %v335_v28, %v339_v30  ;;  %v4348_v38 = vcombine.low %v240_v23, %v244_v24  ;;  %v320_v28 = vld [vmem:[%s6484_s1 + $0x298] sm:$0xff] }
  0xf9   : > { %2605 = vmatprep.mubr.bf16.mxu1 %v5445_v35  ;;  %2575 = vmatprep.subr.bf16.mxu1 %v4397_v56  ;;  %v239_v35 = vld [vmem:[%s6484_s1 + $0x10] sm:$0xff]  ;;  %v324_v30 = vld [vmem:[%s6484_s1 + $0x2b8] sm:$0xff] }
  0xfa   : > { %v4347_v63 = vcombine.high %v239_v35, %v243_v55  ;;  %v4346_v4 = vcombine.low %v239_v35, %v243_v55  ;;  %v348_v35 = vld [vmem:[%s6484_s1 + $0x378] sm:$0xff] }
  0xfb   : > { %2500 = vmatpush1.bf16.msra.mxu0 %v4370_v41  ;;  %v4469_v41 = vcombine.high %v360_v33, %v364_v36 }
  0xfc   : > { %2501 = vmatprep.subr.bf16.mxu0 %v4363_v44  ;;  %2576 = vmatpush1.bf16.msra.mxu1 %v4396_v45  ;;  %v352_v44 = vld [vmem:[%s6484_s1 + $0x398] sm:$0xff] }
  0xfd   : > { %2577 = vmatprep.subr.bf16.mxu1 %v4389_v48  ;;  %v356_v45 = vld [vmem:[%s6484_s1 + $0x3b8] sm:$0xff] }
  0xff   : > { %2502 = vmatpush1.bf16.msra.mxu0 %v4362_v50  ;;  %v4468_v50 = vcombine.low %v360_v33, %v364_v36  ;;  %v368_v36 = vld [vmem:[%s6484_s1 + $0x418] sm:$0xff] }
 0x100   : > { %2503 = vmatprep.subr.bf16.mxu0 %v4355_v52  ;;  %2578 = vmatpush1.bf16.msra.mxu1 %v4388_v54  ;;  %v4461_v52 = vcombine.high %v352_v44, %v356_v45  ;;  %v4434_v54 = vcombine.low %v327_v39, %v331_v40  ;;  %v4429_v39 = vcombine.high %v320_v28, %v324_v30 }
 0x101   : > { %2579 = vmatprep.subr.bf16.mxu1 %v4381_v34 }
 0x103   : > { %2504 = vmatpush1.bf16.msra.mxu0 %v4354_v57  ;;  %v4460_v57 = vcombine.low %v352_v44, %v356_v45  ;;  %v4428_v45 = vcombine.low %v320_v28, %v324_v30  ;;  %v5970_v28 = vrot.slane %v4991_v29, 1  ;;  %v4531_v29 = vld [vmem:[%s6484_s1 + $0xa48] sm:$0xff] }
 0x104   : > { %2505 = vmatprep.subr.bf16.mxu0 %v4347_v63  ;;  %2580 = vmatpush1.bf16.msra.mxu1 %v4380_v0 }
 0x105   : > { %2581 = vmatprep.subr.bf16.mxu1 %v4373_v26  ;;  %v340_v26 = vld [vmem:[%s6484_s1 + $0x338] sm:$0xff] }
 0x106   : > { %v4445_v11 = vcombine.high %v336_v2, %v340_v26  ;;  %v4444_v20 = vcombine.low %v336_v2, %v340_v26 }
 0x107   : > { %2506 = vmatpush1.bf16.msra.mxu0 %v4346_v4 }
 0x108   : > { %2507 = vmatprep.subr.bf16.mxu0 %v4467_v7  ;;  %2582 = vmatpush1.bf16.msra.mxu1 %v4372_v9  ;;  %v303_v7 = vld [vmem:[%s6484_s1 + $0x210] sm:$0xff] }
 0x109   : > { %2583 = vmatprep.subr.bf16.mxu1 %v4365_v12  ;;  %v307_v9 = vld [vmem:[%s6484_s1 + $0x230] sm:$0xff]  ;;  %v4418_v12 = vcombine.low %v311_v60, %v315_v62 }
 0x10b   : > { %2508 = vmatpush2.bf16.msra.mxu0 %v4466_v13  ;;  %v328_v13 = vld [vmem:[%s6484_s1 + $0x2d8] sm:$0xff] }
 0x10c   : > { %2509 = vmatprep.subr.bf16.mxu0 %v4459_v17  ;;  %2584 = vmatpush1.bf16.msra.mxu1 %v4364_v18  ;;  %v4411_v18 = vcombine.high %v303_v7, %v307_v9  ;;  %v4437_v24 = vcombine.high %v328_v13, %v332_v15  ;;  %v4436_v33 = vcombine.low %v328_v13, %v332_v15 }
 0x10d   : > { %2585 = vmatprep.subr.bf16.mxu1 %v4357_v21  ;;  %v376_v21 = vld [vmem:[%s6484_s1 + $0x458] sm:$0xff] }
 0x10f   : > { %2510 = vmatpush2.bf16.msra.mxu0 %v4458_v22  ;;  %v380_v22 = vld [vmem:[%s6484_s1 + $0x478] sm:$0xff] }
 0x110   : > { %2511 = vmatprep.subr.bf16.mxu0 %v4451_v25  ;;  %2586 = vmatpush1.bf16.msra.mxu1 %v4356_v27  ;;  %v4410_v27 = vcombine.low %v303_v7, %v307_v9  ;;  %v4484_v40 = vcombine.low %v376_v21, %v380_v22  ;;  %v4618_v7 = vld [vmem:[%s6484_s1 + $0xd00] sm:$0xff] }
 0x111   : > { %2587 = vmatprep.subr.bf16.mxu1 %v4349_v31  ;;  %v4622_v9 = vld [vmem:[%s6484_s1 + $0xd20] sm:$0xff] }
 0x112   : > { %v1310_v56 = vpop.f32.mrf.mxu0  ;;  %v4763_v13 = vcombine.high %v4618_v7, %v4622_v9 }
 0x113   : > { %v5820_v43 = vadd.f32 %v5655_v49, %v1310_v56  ;;  %2512 = vmatpush2.bf16.msra.mxu0 %v4450_v32  ;;  %v319_v49 = vld [vmem:[%s6484_s1 + $0x290] sm:$0xff]  ;;  %v4485_v32 = vcombine.high %v376_v21, %v380_v22  ;;  %v312_v56 = vld [vmem:[%s6484_s1 + $0x258] sm:$0xff]  ;;  %v4514_v21 = vld [vmem:[%s6484_s1 + $0x9c0] sm:$0xff] }
 0x114   : > { %v1312_v46 = vpop.f32.mrf.mxu0  ;;  %2513 = vmatprep.subr.bf16.mxu0 %v4443_v37  ;;  %2588 = vmatpush1.bf16.msra.mxu1 %v4348_v38  ;;  %v4427_v34 = vcombine.high %v319_v49, %v323_v51  ;;  %v4426_v1 = vcombine.low %v319_v49, %v323_v51  ;;  %v372_v37 = vld [vmem:[%s6484_s1 + $0x438] sm:$0xff]  ;;  %v4518_v22 = vld [vmem:[%s6484_s1 + $0x9e0] sm:$0xff] }
 0x115   : > { %v5829_v48 = vadd.f32 %v5663_v53, %v1312_v46  ;;  %2589 = vmatprep.subr.bf16.mxu1 %v4469_v41  ;;  %v344_v53 = vld [vmem:[%s6484_s1 + $0x358] sm:$0xff]  ;;  %v4477_v44 = vcombine.high %v368_v36, %v372_v37  ;;  %v4546_v46 = vld [vmem:[%s6484_s1 + $0xac0] sm:$0xff]  ;;  %v4476_v51 = vcombine.low %v368_v36, %v372_v37  ;;  %v4659_v30 = vcombine.high %v4514_v21, %v4518_v22 }
 0x116   : > { %v1314_v59 = vpop.f32.mrf.mxu0  ;;  %v4453_v0 = vcombine.high %v344_v53, %v348_v35  ;;  %v4452_v6 = vcombine.low %v344_v53, %v348_v35  ;;  %v316_v41 = vld [vmem:[%s6484_s1 + $0x278] sm:$0xff]  ;;  %v4658_v37 = vcombine.low %v4514_v21, %v4518_v22 }
 0x117   : > { %2514 = vmatpush2.bf16.msra.mxu0 %v4442_v14  ;;  %v4421_v49 = vcombine.high %v312_v56, %v316_v41  ;;  %v304_v59 = vld [vmem:[%s6484_s1 + $0x218] sm:$0xff]  ;;  %v4420_v35 = vcombine.low %v312_v56, %v316_v41  ;;  %v4498_v56 = vld [vmem:[%s6484_s1 + $0x940] sm:$0xff] }
 0x118   : > { %v1315_v55 = vpop.f32.mrf.mxu0  ;;  %2515 = vmatprep.subr.bf16.mxu0 %v4435_v47  ;;  %2590 = vmatpush2.bf16.msra.mxu1 %v4468_v50  ;;  %v4550_v47 = vld [vmem:[%s6484_s1 + $0xae0] sm:$0xff] }
 0x119   : > { %2591 = vmatprep.subr.bf16.mxu1 %v4461_v52  ;;  %v308_v52 = vld [vmem:[%s6484_s1 + $0x238] sm:$0xff]  ;;  %v4691_v53 = vcombine.high %v4546_v46, %v4550_v47  ;;  %v4538_v55 = vld [vmem:[%s6484_s1 + $0xa80] sm:$0xff]  ;;  %v4690_v62 = vcombine.low %v4546_v46, %v4550_v47  ;;  %v4523_v46 = vld [vmem:[%s6484_s1 + $0xa08] sm:$0xff] }
 0x11a   : > { %v1433_v63 = vpop.f32.mrf.mxu0  ;;  %v4413_v60 = vcombine.high %v304_v59, %v308_v52  ;;  %v4412_v26 = vcombine.low %v304_v59, %v308_v52  ;;  %v4502_v41 = vld [vmem:[%s6484_s1 + $0x960] sm:$0xff]  ;;  %v4527_v47 = vld [vmem:[%s6484_s1 + $0xa28] sm:$0xff] }
 0x11b   : > { %2516 = vmatpush2.bf16.msra.mxu0 %v4434_v54  ;;  %v4490_v59 = vld [vmem:[%s6484_s1 + $0x900] sm:$0xff] }
 0x11c   : > { %v1435_v4 = vpop.f32.mrf.mxu0  ;;  %2517 = vmatprep.subr.bf16.mxu0 %v4427_v34  ;;  %2592 = vmatpush2.bf16.msra.mxu1 %v4460_v57  ;;  %v4542_v34 = vld [vmem:[%s6484_s1 + $0xaa0] sm:$0xff] }
 0x11d   : > { %2593 = vmatprep.subr.bf16.mxu1 %v4453_v0  ;;  %v4630_v0 = vld [vmem:[%s6484_s1 + $0xd60] sm:$0xff]  ;;  %v4683_v2 = vcombine.high %v4538_v55, %v4542_v34 }
 0x11e   : > { %v1437_v10 = vpop.f32.mrf.mxu0  ;;  %v4494_v52 = vld [vmem:[%s6484_s1 + $0x920] sm:$0xff] }
 0x11f   : > { %2518 = vmatpush2.bf16.msra.mxu0 %v4426_v1  ;;  %v1392_v16 = vpop.f32.mrf.mxu1  ;;  %v5926_v1 = vrot.slane %v5046_v61, 1  ;;  %v4682_v61 = vcombine.low %v4538_v55, %v4542_v34  ;;  %v4519_v55 = vld [vmem:[%s6484_s1 + $0x9e8] sm:$0xff]  ;;  %v4635_v34 = vcombine.high %v4490_v59, %v4494_v52 }
 0x120   : > { %v1438_v17 = vpop.f32.mrf.mxu0  ;;  %2519 = vmatprep.subr.bf16.mxu0 %v4419_v5  ;;  %v5867_v19 = vadd.f32 %v1433_v63, %v1392_v16  ;;  %2594 = vmatpush2.bf16.msra.mxu1 %v4452_v6  ;;  %v4626_v63 = vld [vmem:[%s6484_s1 + $0xd40] sm:$0xff]  ;;  %v4547_v16 = vld [vmem:[%s6484_s1 + $0xac8] sm:$0xff] }
 0x121   : > { %v1394_v23 = vpop.f32.mrf.mxu1  ;;  %2595 = vmatprep.subr.bf16.mxu1 %v4445_v11  ;;  %v4534_v5 = vld [vmem:[%s6484_s1 + $0xa60] sm:$0xff]  ;;  %v4771_v6 = vcombine.high %v4626_v63, %v4630_v0  ;;  %v4770_v11 = vcombine.low %v4626_v63, %v4630_v0  ;;  %v4551_v17 = vld [vmem:[%s6484_s1 + $0xae8] sm:$0xff]  ;;  %v4634_v0 = vcombine.low %v4490_v59, %v4494_v52 }
 0x122   : > { %v5875_v25 = vadd.f32 %v1435_v4, %v1394_v23  ;;  %v4530_v4 = vld [vmem:[%s6484_s1 + $0xa40] sm:$0xff]  ;;  %v4693_v23 = vcombine.high %v4547_v16, %v4551_v17 }
 0x123   : > { %2520 = vmatpush2.bf16.msra.mxu0 %v4418_v12  ;;  %v1396_v31 = vpop.f32.mrf.mxu1  ;;  %v4675_v10 = vcombine.high %v4530_v4, %v4534_v5  ;;  %v4526_v12 = vld [vmem:[%s6484_s1 + $0xa20] sm:$0xff]  ;;  %v4674_v15 = vcombine.low %v4530_v4, %v4534_v5 }
 0x124   : > { %2521 = vmatprep.subr.bf16.mxu0 %v4411_v18  ;;  %2596 = vmatpush2.bf16.msra.mxu1 %v4444_v20  ;;  %v4762_v20 = vcombine.low %v4618_v7, %v4622_v9  ;;  %v4692_v31 = vcombine.low %v4547_v16, %v4551_v17 }
 0x125   : > { %v1397_v38 = vpop.f32.mrf.mxu1  ;;  %2597 = vmatprep.subr.bf16.mxu1 %v4437_v24 }
 0x126   : > { %v4535_v38 = vld [vmem:[%s6484_s1 + $0xa68] sm:$0xff] }
 0x127   : > { %2522 = vmatpush2.bf16.msra.mxu0 %v4410_v27  ;;  %v5895_v14 = vpop.f32.mrf.mxu1  ;;  %v4543_v27 = vld [vmem:[%s6484_s1 + $0xaa8] sm:$0xff] }
 0x128   : > { %2626 = vmatprep.subr.bf16.mxu0 %v4485_v32  ;;  %2598 = vmatpush2.bf16.msra.mxu1 %v4436_v33  ;;  %v4506_v32 = vld [vmem:[%s6484_s1 + $0x980] sm:$0xff] }
 0x129   : > { %v5903_v50 = vpop.f32.mrf.mxu1  ;;  %2599 = vmatprep.subr.bf16.mxu1 %v4429_v39  ;;  %v4510_v33 = vld [vmem:[%s6484_s1 + $0x9a0] sm:$0xff] }
 0x12a   : > { %2524 = vmatmul.mubr.bf16.vlgmr.msra.gmra.mxu0 %v5647_v42  ;;  %v4651_v39 = vcombine.high %v4506_v32, %v4510_v33 }
 0x12b   : > { %2627 = vmatpush1.bf16.msra.mxu0 %v4484_v40  ;;  %2646 = vmatprep.mubr.bf16.mxu0 %v4867_v8  ;;  %v1519_v54 = vpop.f32.mrf.mxu1 }
 0x12c   : > { %2628 = vmatprep.subr.bf16.mxu0 %v4477_v44  ;;  %2600 = vmatpush2.bf16.msra.mxu1 %v4428_v45  ;;  %v4677_v44 = vcombine.high %v4531_v29, %v4535_v38  ;;  %v4650_v45 = vcombine.low %v4506_v32, %v4510_v33  ;;  %v4669_v54 = vcombine.high %v4523_v46, %v4527_v47 }
 0x12d   : > { %v1520_v57 = vpop.f32.mrf.mxu1  ;;  %2601 = vmatprep.subr.bf16.mxu1 %v4421_v49  ;;  %v4643_v49 = vcombine.high %v4498_v56, %v4502_v41 }
 0x12e   : > { %v4668_v57 = vcombine.low %v4523_v46, %v4527_v47 }
 0x12f   : > { %2629 = vmatpush1.bf16.msra.mxu0 %v4476_v51  ;;  %v4676_v51 = vcombine.low %v4531_v29, %v4535_v38 }
 0x130   : > { %3531 = vmatprep.subr.bf16.mxu0 %v4691_v53  ;;  %2602 = vmatpush2.bf16.msra.mxu1 %v4420_v35  ;;  %v4642_v53 = vcombine.low %v4498_v56, %v4502_v41  ;;  %v4515_v35 = vld [vmem:[%s6484_s1 + $0x9c8] sm:$0xff] }
 0x131   : > { %2603 = vmatprep.subr.bf16.mxu1 %v4413_v60  ;;  %v4610_v60 = vld [vmem:[%s6484_s1 + $0xcc0] sm:$0xff]  ;;  %v4661_v63 = vcombine.high %v4515_v35, %v4519_v55  ;;  %v4660_v5 = vcombine.low %v4515_v35, %v4519_v55  ;;  %v4603_v56 = vld [vmem:[%s6484_s1 + $0xc88] sm:$0xff] }
 0x132   : > { %4489 = vmatmul.mubr.msk.bf16.vlgmr.msra.gmra.mxu0 %vm1272_vm0, %v5490_v58  ;;  %v4522_v58 = vld [vmem:[%s6484_s1 + $0xa00] sm:$0xff]  ;;  %v4607_v41 = vld [vmem:[%s6484_s1 + $0xca8] sm:$0xff] }
 0x133   : > { %3532 = vmatpush1.bf16.msra.mxu0 %v4690_v62  ;;  %3563 = vmatprep.mubr.bf16.mxu0 %v5926_v1  ;;  %v4667_v18 = vcombine.high %v4522_v58, %v4526_v12  ;;  %v4666_v24 = vcombine.low %v4522_v58, %v4526_v12  ;;  %v4614_v62 = vld [vmem:[%s6484_s1 + $0xce0] sm:$0xff]  ;;  %v4749_v59 = vcombine.high %v4603_v56, %v4607_v41 }
 0x134   : > { %3533 = vmatprep.subr.bf16.mxu0 %v4683_v2  ;;  %2604 = vmatpush2.bf16.msra.mxu1 %v4412_v26  ;;  %v4507_v2 = vld [vmem:[%s6484_s1 + $0x988] sm:$0xff]  ;;  %v4755_v4 = vcombine.high %v4610_v60, %v4614_v62  ;;  %v4754_v9 = vcombine.low %v4610_v60, %v4614_v62  ;;  %v4748_v55 = vcombine.low %v4603_v56, %v4607_v41 }
 0x135   : > { %3584 = vmatprep.subr.bf16.mxu1 %v4771_v6  ;;  %v4511_v26 = vld [vmem:[%s6484_s1 + $0x9a8] sm:$0xff]  ;;  %v4602_v6 = vld [vmem:[%s6484_s1 + $0xc80] sm:$0xff] }
 0x136   : > { %v4653_v7 = vcombine.high %v4507_v2, %v4511_v26  ;;  %v4652_v12 = vcombine.low %v4507_v2, %v4511_v26  ;;  %v4591_v2 = vld [vmem:[%s6484_s1 + $0xc28] sm:$0xff] }
 0x137   : > { %3534 = vmatpush1.bf16.msra.mxu0 %v4682_v61  ;;  %2606 = vmatmul.mubr.bf16.vlgmr.msra.gmra.mxu1 %v5647_v42  ;;  %v4539_v42 = vld [vmem:[%s6484_s1 + $0xa88] sm:$0xff]  ;;  %v4606_v61 = vld [vmem:[%s6484_s1 + $0xca0] sm:$0xff] }
 0x138   : > { %3535 = vmatprep.subr.bf16.mxu0 %v4675_v10  ;;  %3585 = vmatpush1.bf16.msra.mxu1 %v4770_v11  ;;  %v4685_v36 = vcombine.high %v4539_v42, %v4543_v27  ;;  %v4684_v40 = vcombine.low %v4539_v42, %v4543_v27  ;;  %v4499_v10 = vld [vmem:[%s6484_s1 + $0x948] sm:$0xff]  ;;  %v4747_v58 = vcombine.high %v4602_v6, %v4606_v61 }
 0x139   : > { %3604 = vmatprep.mubr.bf16.mxu1 %v4867_v8  ;;  %3586 = vmatprep.subr.bf16.mxu1 %v4763_v13  ;;  %v4503_v11 = vld [vmem:[%s6484_s1 + $0x968] sm:$0xff]  ;;  %v4594_v13 = vld [vmem:[%s6484_s1 + $0xc40] sm:$0xff]  ;;  %v4746_v17 = vcombine.low %v4602_v6, %v4606_v61 }
 0x13a   : > { %v4645_v16 = vcombine.high %v4499_v10, %v4503_v11  ;;  %v4644_v22 = vcombine.low %v4499_v10, %v4503_v11  ;;  %v4554_v6 = vld [vmem:[%s6484_s1 + $0xb00] sm:$0xff]  ;;  %v4579_v11 = vld [vmem:[%s6484_s1 + $0xbc8] sm:$0xff] }
 0x13b   : > { %3536 = vmatpush1.bf16.msra.mxu0 %v4674_v15  ;;  %v4598_v15 = vld [vmem:[%s6484_s1 + $0xc60] sm:$0xff]  ;;  %v4563_v56 = vld [vmem:[%s6484_s1 + $0xb48] sm:$0xff] }
 0x13c   : > { %3537 = vmatprep.subr.bf16.mxu0 %v4667_v18  ;;  %3587 = vmatpush1.bf16.msra.mxu1 %v4762_v20  ;;  %v4491_v18 = vld [vmem:[%s6484_s1 + $0x908] sm:$0xff]  ;;  %v4739_v21 = vcombine.high %v4594_v13, %v4598_v15  ;;  %v4738_v27 = vcombine.low %v4594_v13, %v4598_v15  ;;  %v4558_v61 = vld [vmem:[%s6484_s1 + $0xb20] sm:$0xff] }
 0x13d   : > { %3613 = vmatprep.subr.bf16.mxu1 %v4693_v23  ;;  %v4495_v20 = vld [vmem:[%s6484_s1 + $0x928] sm:$0xff]  ;;  %v4586_v23 = vld [vmem:[%s6484_s1 + $0xc00] sm:$0xff]  ;;  %v4699_v15 = vcombine.high %v4554_v6, %v4558_v61 }
 0x13e   : > { %v4637_v42 = vcombine.high %v4491_v18, %v4495_v20  ;;  %v4636_v33 = vcombine.low %v4491_v18, %v4495_v20  ;;  %v4627_v18 = vld [vmem:[%s6484_s1 + $0xd48] sm:$0xff] }
 0x13f   : > { %3538 = vmatpush1.bf16.msra.mxu0 %v4666_v24  ;;  %4778 = vmatmul.mubr.msk.bf16.vlgmr.msra.gmra.mxu1 %vm1272_vm0, %v5970_v28  ;;  %v4590_v24 = vld [vmem:[%s6484_s1 + $0xc20] sm:$0xff]  ;;  %v4631_v20 = vld [vmem:[%s6484_s1 + $0xd68] sm:$0xff] }
 0x140   : > { %3539 = vmatprep.subr.bf16.mxu0 %v4659_v30  ;;  %3614 = vmatpush1.bf16.msra.mxu1 %v4692_v31  ;;  %v4611_v30 = vld [vmem:[%s6484_s1 + $0xcc8] sm:$0xff]  ;;  %v4731_v32 = vcombine.high %v4586_v23, %v4590_v24 }
 0x141   : > { %3645 = vmatprep.mubr.bf16.mxu1 %v5926_v1  ;;  %3615 = vmatprep.subr.bf16.mxu1 %v4685_v36  ;;  %v4615_v31 = vld [vmem:[%s6484_s1 + $0xce8] sm:$0xff]  ;;  %v4578_v36 = vld [vmem:[%s6484_s1 + $0xbc0] sm:$0xff] }
 0x142   : > { %v4757_v38 = vcombine.high %v4611_v30, %v4615_v31  ;;  %v4756_v47 = vcombine.low %v4611_v30, %v4615_v31  ;;  %v4773_v31 = vcombine.high %v4627_v18, %v4631_v20  ;;  %v4567_v41 = vld [vmem:[%s6484_s1 + $0xb68] sm:$0xff] }
 0x143   : > { %3540 = vmatpush1.bf16.msra.mxu0 %v4658_v37  ;;  %v4582_v37 = vld [vmem:[%s6484_s1 + $0xbe0] sm:$0xff] }
 0x144   : > { %3541 = vmatprep.subr.bf16.mxu0 %v4651_v39  ;;  %3616 = vmatpush1.bf16.msra.mxu1 %v4684_v40  ;;  %v4730_v40 = vcombine.low %v4586_v23, %v4590_v24  ;;  %v4722_v52 = vcombine.low %v4578_v36, %v4582_v37  ;;  %v4698_v24 = vcombine.low %v4554_v6, %v4558_v61 }
 0x145   : > { %3617 = vmatprep.subr.bf16.mxu1 %v4677_v44 }
 0x147   : > { %3542 = vmatpush1.bf16.msra.mxu0 %v4650_v45  ;;  %v4723_v45 = vcombine.high %v4578_v36, %v4582_v37  ;;  %v4623_v36 = vld [vmem:[%s6484_s1 + $0xd28] sm:$0xff] }
 0x148   : > { %3543 = vmatprep.subr.bf16.mxu0 %v4643_v49  ;;  %3618 = vmatpush1.bf16.msra.mxu1 %v4676_v51  ;;  %v4574_v49 = vld [vmem:[%s6484_s1 + $0xba0] sm:$0xff] }
 0x149   : > { %3619 = vmatprep.subr.bf16.mxu1 %v4669_v54  ;;  %v4599_v54 = vld [vmem:[%s6484_s1 + $0xc68] sm:$0xff] }
 0x14b   : > { %3544 = vmatpush1.bf16.msra.mxu0 %v4642_v53 }
 0x14c   : > { %3545 = vmatprep.subr.bf16.mxu0 %v4635_v34  ;;  %3620 = vmatpush1.bf16.msra.mxu1 %v4668_v57  ;;  %v4562_v34 = vld [vmem:[%s6484_s1 + $0xb40] sm:$0xff] }
 0x14d   : > { %3621 = vmatprep.subr.bf16.mxu1 %v4661_v63  ;;  %v4566_v57 = vld [vmem:[%s6484_s1 + $0xb60] sm:$0xff] }
 0x14e   : > { %v4706_v10 = vcombine.low %v4562_v34, %v4566_v57 }
 0x14f   : > { %3546 = vmatpush1.bf16.msra.mxu0 %v4634_v0  ;;  %v4587_v0 = vld [vmem:[%s6484_s1 + $0xc08] sm:$0xff] }
 0x150   : > { %3547 = vmatprep.subr.bf16.mxu0 %v4755_v4  ;;  %3622 = vmatpush1.bf16.msra.mxu1 %v4660_v5  ;;  %v4707_v4 = vcombine.high %v4562_v34, %v4566_v57  ;;  %v4544_v34 = vld [vmem:[%s6484_s1 + $0xab0] sm:$0xff] }
 0x151   : > { %3623 = vmatprep.subr.bf16.mxu1 %v4653_v7 }
 0x153   : > { %3548 = vmatpush2.bf16.msra.mxu0 %v4754_v9  ;;  %v4733_v9 = vcombine.high %v4587_v0, %v4591_v2 }
 0x154   : > { %3549 = vmatprep.subr.bf16.mxu0 %v4747_v58  ;;  %3624 = vmatpush1.bf16.msra.mxu1 %v4652_v12  ;;  %v4583_v58 = vld [vmem:[%s6484_s1 + $0xbe8] sm:$0xff] }
 0x155   : > { %3625 = vmatprep.subr.bf16.mxu1 %v4645_v16 }
 0x157   : > { %3550 = vmatpush2.bf16.msra.mxu0 %v4746_v17  ;;  %v4732_v17 = vcombine.low %v4587_v0, %v4591_v2  ;;  %v4632_v0 = vld [vmem:[%s6484_s1 + $0xd70] sm:$0xff] }
 0x158   : > { %3551 = vmatprep.subr.bf16.mxu0 %v4739_v21  ;;  %3626 = vmatpush1.bf16.msra.mxu1 %v4644_v22  ;;  %v4725_v22 = vcombine.high %v4579_v11, %v4583_v58 }
 0x159   : > { %3627 = vmatprep.subr.bf16.mxu1 %v4637_v42  ;;  %v4571_v42 = vld [vmem:[%s6484_s1 + $0xb88] sm:$0xff] }
 0x15a   : > { %v1474_v29 = vpop.f32.mrf.mxu0 }
 0x15b   : > { %v6066_v39 = vadd.f32 %v5895_v14, %v1474_v29  ;;  %3552 = vmatpush2.bf16.msra.mxu0 %v4738_v27  ;;  %v4570_v14 = vld [vmem:[%s6484_s1 + $0xb80] sm:$0xff]  ;;  %v4575_v27 = vld [vmem:[%s6484_s1 + $0xba8] sm:$0xff]  ;;  %v6136_v29 = vrot.slane %v5143_v3, 1  ;;  %v4548_v3 = vld [vmem:[%s6484_s1 + $0xad0] sm:$0xff] }
 0x15c   : > { %v1476_v44 = vpop.f32.mrf.mxu0  ;;  %3553 = vmatprep.subr.bf16.mxu0 %v4731_v32  ;;  %3628 = vmatpush1.bf16.msra.mxu1 %v4636_v33  ;;  %v4715_v35 = vcombine.high %v4570_v14, %v4574_v49  ;;  %v4714_v63 = vcombine.low %v4570_v14, %v4574_v49  ;;  %v4724_v32 = vcombine.low %v4579_v11, %v4583_v58  ;;  %v4619_v33 = vld [vmem:[%s6484_s1 + $0xd08] sm:$0xff]  ;;  %v4552_v14 = vld [vmem:[%s6484_s1 + $0xaf0] sm:$0xff] }
 0x15d   : > { %v6075_v46 = vadd.f32 %v5903_v50, %v1476_v44  ;;  %3629 = vmatprep.subr.bf16.mxu1 %v4757_v38  ;;  %v4595_v50 = vld [vmem:[%s6484_s1 + $0xc48] sm:$0xff]  ;;  %v4717_v38 = vcombine.high %v4571_v42, %v4575_v27  ;;  %v4524_v58 = vld [vmem:[%s6484_s1 + $0xa10] sm:$0xff] }
 0x15e   : > { %v1478_v51 = vpop.f32.mrf.mxu0  ;;  %v4741_v62 = vcombine.high %v4595_v50, %v4599_v54  ;;  %v4740_v5 = vcombine.low %v4595_v50, %v4599_v54  ;;  %v4559_v50 = vld [vmem:[%s6484_s1 + $0xb28] sm:$0xff] }
 0x15f   : > { %3554 = vmatpush2.bf16.msra.mxu0 %v4730_v40  ;;  %v4772_v40 = vcombine.low %v4627_v18, %v4631_v20  ;;  %v4709_v51 = vcombine.high %v4563_v56, %v4567_v41  ;;  %v4553_v18 = vld [vmem:[%s6484_s1 + $0xaf8] sm:$0xff] }
 0x160   : > { %v1479_v53 = vpop.f32.mrf.mxu0  ;;  %3555 = vmatprep.subr.bf16.mxu0 %v4723_v45  ;;  %3630 = vmatpush2.bf16.msra.mxu1 %v4756_v47  ;;  %v4765_v45 = vcombine.high %v4619_v33, %v4623_v36  ;;  %v4716_v47 = vcombine.low %v4571_v42, %v4575_v27 }
 0x161   : > { %3631 = vmatprep.subr.bf16.mxu1 %v4749_v59  ;;  %v4764_v59 = vcombine.low %v4619_v33, %v4623_v36  ;;  %v4695_v53 = vcombine.high %v4548_v3, %v4552_v14  ;;  %v4508_v36 = vld [vmem:[%s6484_s1 + $0x990] sm:$0xff] }
 0x162   : > { %v1597_v60 = vpop.f32.mrf.mxu0 }
 0x163   : > { %3556 = vmatpush2.bf16.msra.mxu0 %v4722_v52  ;;  %v4555_v52 = vld [vmem:[%s6484_s1 + $0xb08] sm:$0xff] }
 0x164   : > { %v1599_v26 = vpop.f32.mrf.mxu0  ;;  %3557 = vmatprep.subr.bf16.mxu0 %v4715_v35  ;;  %3632 = vmatpush2.bf16.msra.mxu1 %v4748_v55  ;;  %v4708_v35 = vcombine.low %v4563_v56, %v4567_v41  ;;  %v4540_v55 = vld [vmem:[%s6484_s1 + $0xa90] sm:$0xff]  ;;  %v4533_v56 = vld [vmem:[%s6484_s1 + $0xa58] sm:$0xff] }
 0x165   : > { %3633 = vmatprep.subr.bf16.mxu1 %v4741_v62  ;;  %v4694_v62 = vcombine.low %v4548_v3, %v4552_v14  ;;  %v4687_v2 = vcombine.high %v4540_v55, %v4544_v34  ;;  %v4686_v61 = vcombine.low %v4540_v55, %v4544_v34  ;;  %v4537_v41 = vld [vmem:[%s6484_s1 + $0xa78] sm:$0xff]  ;;  %v4500_v3 = vld [vmem:[%s6484_s1 + $0x950] sm:$0xff] }
 0x166   : > { %v1601_v7 = vpop.f32.mrf.mxu0  ;;  %v4504_v14 = vld [vmem:[%s6484_s1 + $0x970] sm:$0xff] }
 0x167   : > { %3558 = vmatpush2.bf16.msra.mxu0 %v4714_v63  ;;  %v1556_v12 = vpop.f32.mrf.mxu1  ;;  %v4628_v63 = vld [vmem:[%s6484_s1 + $0xd50] sm:$0xff]  ;;  %v4646_v34 = vcombine.low %v4500_v3, %v4504_v14 }
 0x168   : > { %v1602_v13 = vpop.f32.mrf.mxu0  ;;  %3559 = vmatprep.subr.bf16.mxu0 %v4707_v4  ;;  %v6113_v16 = vadd.f32 %v1597_v60, %v1556_v12  ;;  %3634 = vmatpush2.bf16.msra.mxu1 %v4740_v5  ;;  %v4701_v60 = vcombine.high %v4555_v52, %v4559_v50  ;;  %v4532_v4 = vld [vmem:[%s6484_s1 + $0xa50] sm:$0xff]  ;;  %v4775_v6 = vcombine.high %v4628_v63, %v4632_v0 }
 0x169   : > { %v1558_v21 = vpop.f32.mrf.mxu1  ;;  %3635 = vmatprep.subr.bf16.mxu1 %v4733_v9  ;;  %v4536_v5 = vld [vmem:[%s6484_s1 + $0xa70] sm:$0xff]  ;;  %v4774_v11 = vcombine.low %v4628_v63, %v4632_v0 }
 0x16a   : > { %v6121_v23 = vadd.f32 %v1599_v26, %v1558_v21  ;;  %v4700_v26 = vcombine.low %v4555_v52, %v4559_v50  ;;  %v4620_v7 = vld [vmem:[%s6484_s1 + $0xd10] sm:$0xff]  ;;  %v4525_v52 = vld [vmem:[%s6484_s1 + $0xa18] sm:$0xff] }
 0x16b   : > { %3560 = vmatpush2.bf16.msra.mxu0 %v4706_v10  ;;  %v1560_v30 = vpop.f32.mrf.mxu1  ;;  %v4624_v9 = vld [vmem:[%s6484_s1 + $0xd30] sm:$0xff]  ;;  %v4679_v10 = vcombine.high %v4532_v4, %v4536_v5  ;;  %v4529_v50 = vld [vmem:[%s6484_s1 + $0xa38] sm:$0xff] }
 0x16c   : > { %3561 = vmatprep.subr.bf16.mxu0 %v4699_v15  ;;  %3636 = vmatpush2.bf16.msra.mxu1 %v4732_v17  ;;  %v4528_v12 = vld [vmem:[%s6484_s1 + $0xa30] sm:$0xff]  ;;  %v4767_v13 = vcombine.high %v4620_v7, %v4624_v9  ;;  %v4678_v15 = vcombine.low %v4532_v4, %v4536_v5  ;;  %v4549_v17 = vld [vmem:[%s6484_s1 + $0xad8] sm:$0xff]  ;;  %v4766_v21 = vcombine.low %v4620_v7, %v4624_v9 }
 0x16d   : > { %v1561_v37 = vpop.f32.mrf.mxu1  ;;  %3637 = vmatprep.subr.bf16.mxu1 %v4725_v22  ;;  %v4671_v20 = vcombine.high %v4524_v58, %v4528_v12  ;;  %v4516_v22 = vld [vmem:[%s6484_s1 + $0x9d0] sm:$0xff]  ;;  %v4697_v42 = vcombine.high %v4549_v17, %v4553_v18  ;;  %v4670_v27 = vcombine.low %v4524_v58, %v4528_v12  ;;  %v4541_v30 = vld [vmem:[%s6484_s1 + $0xa98] sm:$0xff]  ;;  %v4696_v33 = vcombine.low %v4549_v17, %v4553_v18 }
 0x16e   : > { %v4512_v37 = vld [vmem:[%s6484_s1 + $0x9b0] sm:$0xff]  ;;  %v4673_v55 = vcombine.high %v4525_v52, %v4529_v50  ;;  %v4672_v63 = vcombine.low %v4525_v52, %v4529_v50  ;;  %v4509_v5 = vld [vmem:[%s6484_s1 + $0x998] sm:$0xff] }
 0x16f   : > { %3562 = vmatpush2.bf16.msra.mxu0 %v4698_v24  ;;  %v6144_v44 = vpop.f32.mrf.mxu1  ;;  %v4520_v24 = vld [vmem:[%s6484_s1 + $0x9f0] sm:$0xff]  ;;  %v4501_v12 = vld [vmem:[%s6484_s1 + $0x958] sm:$0xff] }
 0x170   : > { %3666 = vmatprep.subr.bf16.mxu0 %v4773_v31  ;;  %3638 = vmatpush2.bf16.msra.mxu1 %v4724_v32  ;;  %v4545_v31 = vld [vmem:[%s6484_s1 + $0xab8] sm:$0xff]  ;;  %v4663_v32 = vcombine.high %v4516_v22, %v4520_v24  ;;  %v4612_v0 = vld [vmem:[%s6484_s1 + $0xcd0] sm:$0xff] }
 0x171   : > { %v6152_v49 = vpop.f32.mrf.mxu1  ;;  %3639 = vmatprep.subr.bf16.mxu1 %v4717_v38  ;;  %v4689_v38 = vcombine.high %v4541_v30, %v4545_v31  ;;  %v4604_v9 = vld [vmem:[%s6484_s1 + $0xc90] sm:$0xff]  ;;  %v4609_v52 = vld [vmem:[%s6484_s1 + $0xcb8] sm:$0xff] }
 0x172   : > { %3564 = vmatmul.mubr.bf16.vlgmr.msra.gmra.mxu0 %v6136_v29  ;;  %v4596_v18 = vld [vmem:[%s6484_s1 + $0xc50] sm:$0xff] }
 0x173   : > { %3667 = vmatpush1.bf16.msra.mxu0 %v4772_v40  ;;  %3686 = vmatprep.mubr.bf16.mxu0 %v4867_v8  ;;  %v2406_v54 = vpop.f32.mrf.mxu1  ;;  %v4662_v40 = vcombine.low %v4516_v22, %v4520_v24  ;;  %v4493_v24 = vld [vmem:[%s6484_s1 + $0x918] sm:$0xff] }
 0x174   : > { %3668 = vmatprep.subr.bf16.mxu0 %v4765_v45  ;;  %3640 = vmatpush2.bf16.msra.mxu1 %v4716_v47  ;;  %v4655_v45 = vcombine.high %v4508_v36, %v4512_v37  ;;  %v4688_v47 = vcombine.low %v4541_v30, %v4545_v31  ;;  %v4647_v54 = vcombine.high %v4500_v3, %v4504_v14  ;;  %v4588_v31 = vld [vmem:[%s6484_s1 + $0xc10] sm:$0xff] }
 0x175   : > { %v2407_v57 = vpop.f32.mrf.mxu1  ;;  %3641 = vmatprep.subr.bf16.mxu1 %v4709_v51  ;;  %v4681_v51 = vcombine.high %v4533_v56, %v4537_v41 }
 0x176   : > { %v4517_v57 = vld [vmem:[%s6484_s1 + $0x9d8] sm:$0xff] }
 0x177   : > { %3669 = vmatpush1.bf16.msra.mxu0 %v4764_v59  ;;  %v4654_v59 = vcombine.low %v4508_v36, %v4512_v37  ;;  %v4613_v37 = vld [vmem:[%s6484_s1 + $0xcd8] sm:$0xff] }
 0x178   : > { %3695 = vmatprep.subr.bf16.mxu0 %v4695_v53  ;;  %3642 = vmatpush2.bf16.msra.mxu1 %v4708_v35  ;;  %v4680_v53 = vcombine.low %v4533_v56, %v4537_v41  ;;  %v4496_v35 = vld [vmem:[%s6484_s1 + $0x930] sm:$0xff] }
 0x179   : > { %3643 = vmatprep.subr.bf16.mxu1 %v4701_v60  ;;  %v4521_v60 = vld [vmem:[%s6484_s1 + $0x9f8] sm:$0xff]  ;;  %v4580_v41 = vld [vmem:[%s6484_s1 + $0xbd0] sm:$0xff] }
 0x17a   : > { %4779 = vmatmul.mubr.msk.bf16.vlgmr.msra.gmra.mxu0 %vm1272_vm0, %v5970_v28  ;;  %v4664_v7 = vcombine.low %v4517_v57, %v4521_v60 }
 0x17b   : > { %3696 = vmatpush1.bf16.msra.mxu0 %v4694_v62  ;;  %3727 = vmatprep.mubr.bf16.mxu0 %v5926_v1 }
 0x17c   : > { %3697 = vmatprep.subr.bf16.mxu0 %v4687_v2  ;;  %3644 = vmatpush2.bf16.msra.mxu1 %v4700_v26  ;;  %v4616_v2 = vld [vmem:[%s6484_s1 + $0xcf0] sm:$0xff]  ;;  %v4665_v26 = vcombine.high %v4517_v57, %v4521_v60 }
 0x17d   : > { %3748 = vmatprep.subr.bf16.mxu1 %v4775_v6  ;;  %v4513_v6 = vld [vmem:[%s6484_s1 + $0x9b8] sm:$0xff]  ;;  %v4758_v58 = vcombine.low %v4612_v0, %v4616_v2 }
 0x17e   : > { %v4656_v17 = vcombine.low %v4509_v5, %v4513_v6 }
 0x17f   : > { %3698 = vmatpush1.bf16.msra.mxu0 %v4686_v61  ;;  %3646 = vmatmul.mubr.bf16.vlgmr.msra.gmra.mxu1 %v6136_v29  ;;  %v4759_v61 = vcombine.high %v4612_v0, %v4616_v2 }
 0x180   : > { %3699 = vmatprep.subr.bf16.mxu0 %v4679_v10  ;;  %3749 = vmatpush1.bf16.msra.mxu1 %v4774_v11  ;;  %v4608_v10 = vld [vmem:[%s6484_s1 + $0xcb0] sm:$0xff]  ;;  %v4657_v11 = vcombine.high %v4509_v5, %v4513_v6 }
 0x181   : > { %3768 = vmatprep.mubr.bf16.mxu1 %v4867_v8  ;;  %3750 = vmatprep.subr.bf16.mxu1 %v4767_v13  ;;  %v4505_v13 = vld [vmem:[%s6484_s1 + $0x978] sm:$0xff]  ;;  %v4750_v22 = vcombine.low %v4604_v9, %v4608_v10 }
 0x182   : > { %v4648_v30 = vcombine.low %v4501_v12, %v4505_v13 }
 0x183   : > { %3700 = vmatpush1.bf16.msra.mxu0 %v4678_v15  ;;  %v4751_v15 = vcombine.high %v4604_v9, %v4608_v10 }
 0x184   : > { %3701 = vmatprep.subr.bf16.mxu0 %v4671_v20  ;;  %3751 = vmatpush1.bf16.msra.mxu1 %v4766_v21  ;;  %v4600_v20 = vld [vmem:[%s6484_s1 + $0xc70] sm:$0xff]  ;;  %v4649_v21 = vcombine.high %v4501_v12, %v4505_v13 }
 0x185   : > { %3777 = vmatprep.subr.bf16.mxu1 %v4697_v42  ;;  %v4497_v42 = vld [vmem:[%s6484_s1 + $0x938] sm:$0xff]  ;;  %v4742_v36 = vcombine.low %v4596_v18, %v4600_v20  ;;  %v4560_v12 = vld [vmem:[%s6484_s1 + $0xb30] sm:$0xff] }
 0x186   : > { %v4640_v56 = vcombine.low %v4493_v24, %v4497_v42 }
 0x187   : > { %3702 = vmatpush1.bf16.msra.mxu0 %v4670_v27  ;;  %4780 = vmatmul.mubr.msk.bf16.vlgmr.msra.gmra.mxu1 %vm1272_vm0, %v5970_v28  ;;  %v4743_v27 = vcombine.high %v4596_v18, %v4600_v20  ;;  %v4581_v18 = vld [vmem:[%s6484_s1 + $0xbd8] sm:$0xff] }
 0x188   : > { %3703 = vmatprep.subr.bf16.mxu0 %v4663_v32  ;;  %3778 = vmatpush1.bf16.msra.mxu1 %v4696_v33  ;;  %v4592_v32 = vld [vmem:[%s6484_s1 + $0xc30] sm:$0xff]  ;;  %v4641_v33 = vcombine.high %v4493_v24, %v4497_v42  ;;  %v4585_v20 = vld [vmem:[%s6484_s1 + $0xbf8] sm:$0xff] }
 0x189   : > { %3809 = vmatprep.mubr.bf16.mxu1 %v5926_v1  ;;  %3779 = vmatprep.subr.bf16.mxu1 %v4689_v38  ;;  %v4492_v1 = vld [vmem:[%s6484_s1 + $0x910] sm:$0xff]  ;;  %v4617_v38 = vld [vmem:[%s6484_s1 + $0xcf8] sm:$0xff] }
 0x18a   : > { %v4639_v62 = vcombine.high %v4492_v1, %v4496_v35  ;;  %v4638_v4 = vcombine.low %v4492_v1, %v4496_v35  ;;  %v4761_v3 = vcombine.high %v4613_v37, %v4617_v38  ;;  %v4572_v35 = vld [vmem:[%s6484_s1 + $0xb90] sm:$0xff] }
 0x18b   : > { %3704 = vmatpush1.bf16.msra.mxu0 %v4662_v40  ;;  %v4735_v40 = vcombine.high %v4588_v31, %v4592_v32 }
 0x18c   : > { %3705 = vmatprep.subr.bf16.mxu0 %v4655_v45  ;;  %3780 = vmatpush1.bf16.msra.mxu1 %v4688_v47  ;;  %v4584_v45 = vld [vmem:[%s6484_s1 + $0xbf0] sm:$0xff] }
 0x18d   : > { %3781 = vmatprep.subr.bf16.mxu1 %v4681_v51  ;;  %v4734_v51 = vcombine.low %v4588_v31, %v4592_v32  ;;  %v4633_v31 = vld [vmem:[%s6484_s1 + $0xd78] sm:$0xff] }
 0x18f   : > { %3706 = vmatpush1.bf16.msra.mxu0 %v4654_v59  ;;  %v4605_v59 = vld [vmem:[%s6484_s1 + $0xc98] sm:$0xff] }
 0x190   : > { %3707 = vmatprep.subr.bf16.mxu0 %v4647_v54  ;;  %3782 = vmatpush1.bf16.msra.mxu1 %v4680_v53  ;;  %v4727_v54 = vcombine.high %v4580_v41, %v4584_v45  ;;  %v4753_v57 = vcombine.high %v4605_v59, %v4609_v52  ;;  %v4752_v2 = vcombine.low %v4605_v59, %v4609_v52  ;;  %v4565_v52 = vld [vmem:[%s6484_s1 + $0xb58] sm:$0xff] }
 0x191   : > { %3783 = vmatprep.subr.bf16.mxu1 %v4673_v55  ;;  %v4576_v55 = vld [vmem:[%s6484_s1 + $0xbb0] sm:$0xff] }
 0x192   : > { %v4719_v0 = vcombine.high %v4572_v35, %v4576_v55  ;;  %v4718_v6 = vcombine.low %v4572_v35, %v4576_v55 }
 0x193   : > { %3708 = vmatpush1.bf16.msra.mxu0 %v4646_v34 }
 0x194   : > { %3709 = vmatprep.subr.bf16.mxu0 %v4639_v62  ;;  %3784 = vmatpush1.bf16.msra.mxu1 %v4672_v63  ;;  %v4601_v62 = vld [vmem:[%s6484_s1 + $0xc78] sm:$0xff] }
 0x195   : > { %3785 = vmatprep.subr.bf16.mxu1 %v4665_v26  ;;  %v4568_v26 = vld [vmem:[%s6484_s1 + $0xb70] sm:$0xff] }
 0x197   : > { %3710 = vmatpush1.bf16.msra.mxu0 %v4638_v4 }
 0x198   : > { %3711 = vmatprep.subr.bf16.mxu0 %v4759_v61  ;;  %3786 = vmatpush1.bf16.msra.mxu1 %v4664_v7  ;;  %v4589_v61 = vld [vmem:[%s6484_s1 + $0xc18] sm:$0xff] }
 0x199   : > { %3787 = vmatprep.subr.bf16.mxu1 %v4657_v11  ;;  %v4593_v7 = vld [vmem:[%s6484_s1 + $0xc38] sm:$0xff] }
 0x19b   : > { %3712 = vmatpush2.bf16.msra.mxu0 %v4758_v58  ;;  %v4556_v58 = vld [vmem:[%s6484_s1 + $0xb10] sm:$0xff] }
 0x19c   : > { %3713 = vmatprep.subr.bf16.mxu0 %v4751_v15  ;;  %3788 = vmatpush1.bf16.msra.mxu1 %v4656_v17  ;;  %v4737_v15 = vcombine.high %v4589_v61, %v4593_v7  ;;  %v4703_v24 = vcombine.high %v4556_v58, %v4560_v12 }
 0x19d   : > { %3789 = vmatprep.subr.bf16.mxu1 %v4649_v21 }
 0x19f   : > { %3714 = vmatpush2.bf16.msra.mxu0 %v4750_v22 }
 0x1a0   : > { %3715 = vmatprep.subr.bf16.mxu0 %v4743_v27  ;;  %3790 = vmatpush1.bf16.msra.mxu1 %v4648_v30  ;;  %v4736_v27 = vcombine.low %v4589_v61, %v4593_v7  ;;  %v4629_v30 = vld [vmem:[%s6484_s1 + $0xd58] sm:$0xff] }
 0x1a1   : > { %3791 = vmatprep.subr.bf16.mxu1 %v4641_v33  ;;  %v4729_v33 = vcombine.high %v4581_v18, %v4585_v20  ;;  %v4776_v59 = vcombine.low %v4629_v30, %v4633_v31 }
 0x1a2   : > { %v2361_v47 = vpop.f32.mrf.mxu0 }
 0x1a3   : > { %v2362_v14 = vadd.f32 %v2361_v47, %v5820_v43  ;;  %3716 = vmatpush2.bf16.msra.mxu0 %v4742_v36  ;;  %v4760_v43 = vcombine.low %v4613_v37, %v4617_v38  ;;  %v4702_v38 = vcombine.low %v4556_v58, %v4560_v12  ;;  %v4728_v47 = vcombine.low %v4581_v18, %v4585_v20 }
 0x1a4   : > { %v2363_v50 = vpop.f32.mrf.mxu0  ;;  %3717 = vmatprep.subr.bf16.mxu0 %v4735_v40  ;;  %3792 = vmatpush1.bf16.msra.mxu1 %v4640_v56  ;;  %v4577_v40 = vld [vmem:[%s6484_s1 + $0xbb8] sm:$0xff] }
 0x1a5   : > { %v6316_v53 = vadd.f32 %v6144_v44, %v2362_v14  ;;  %v2364_v1 = vadd.f32 %v2363_v50, %v5829_v48  ;;  %3793 = vmatprep.subr.bf16.mxu1 %v4761_v3  ;;  %v4726_v44 = vcombine.low %v4580_v41, %v4584_v45  ;;  %v4597_v48 = vld [vmem:[%s6484_s1 + $0xc58] sm:$0xff]  ;;  %v4777_v41 = vcombine.high %v4629_v30, %v4633_v31 }
 0x1a6   : > { %v2365_v34 = vpop.f32.mrf.mxu0  ;;  %v4745_v5 = vcombine.high %v4597_v48, %v4601_v62  ;;  %v4744_v11 = vcombine.low %v4597_v48, %v4601_v62  ;;  %v4625_v3 = vld [vmem:[%s6484_s1 + $0xd38] sm:$0xff] }
 0x1a7   : > { %v6326_v60 = vadd.f32 %v6152_v49, %v2364_v1  ;;  %3718 = vmatpush2.bf16.msra.mxu0 %v4734_v51  ;;  %v4564_v49 = vld [vmem:[%s6484_s1 + $0xb50] sm:$0xff]  ;;  %v4569_v50 = vld [vmem:[%s6484_s1 + $0xb78] sm:$0xff] }
 0x1a8   : > { %v2366_v63 = vpop.f32.mrf.mxu0  ;;  %3719 = vmatprep.subr.bf16.mxu0 %v4727_v54  ;;  %3794 = vmatpush2.bf16.msra.mxu1 %v4760_v43  ;;  %v4711_v10 = vcombine.high %v4564_v49, %v4568_v26  ;;  %v4710_v17 = vcombine.low %v4564_v49, %v4568_v26  ;;  %v4713_v55 = vcombine.high %v4565_v52, %v4569_v50 }
 0x1a9   : > { %3795 = vmatprep.subr.bf16.mxu1 %v4753_v57  ;;  %v4557_v57 = vld [vmem:[%s6484_s1 + $0xb18] sm:$0xff]  ;;  %v4712_v62 = vcombine.low %v4565_v52, %v4569_v50 }
 0x1aa   : > { %v2484_v4 = vpop.f32.mrf.mxu0 }
 0x1ab   : > { %3720 = vmatpush2.bf16.msra.mxu0 %v4726_v44  ;;  %v4561_v44 = vld [vmem:[%s6484_s1 + $0xb38] sm:$0xff] }
 0x1ac   : > { %v2486_v9 = vpop.f32.mrf.mxu0  ;;  %3721 = vmatprep.subr.bf16.mxu0 %v4719_v0  ;;  %3796 = vmatpush2.bf16.msra.mxu1 %v4752_v2  ;;  %v4705_v0 = vcombine.high %v4557_v57, %v4561_v44  ;;  %v4704_v2 = vcombine.low %v4557_v57, %v4561_v44 }
 0x1ad   : > { %3797 = vmatprep.subr.bf16.mxu1 %v4745_v5 }
 0x1ae   : > { %v2488_v13 = vpop.f32.mrf.mxu0 }
 0x1af   : > { %3722 = vmatpush2.bf16.msra.mxu0 %v4718_v6  ;;  %v2443_v21 = vpop.f32.mrf.mxu1 }
 0x1b0   : > { %v2489_v22 = vpop.f32.mrf.mxu0  ;;  %3723 = vmatprep.subr.bf16.mxu0 %v4711_v10  ;;  %v2444_v42 = vadd.f32 %v2443_v21, %v5867_v19  ;;  %3798 = vmatpush2.bf16.msra.mxu1 %v4744_v11  ;;  %v4573_v19 = vld [vmem:[%s6484_s1 + $0xb98] sm:$0xff] }
 0x1b1   : > { %v2445_v32 = vpop.f32.mrf.mxu1  ;;  %3799 = vmatprep.subr.bf16.mxu1 %v4737_v15  ;;  %v4721_v51 = vcombine.high %v4573_v19, %v4577_v40  ;;  %v4720_v43 = vcombine.low %v4573_v19, %v4577_v40  ;;  %v6426_v40 = vstv %s3917_s13 }
 0x1b2   : > { %v6365_v36 = vadd.f32 %v2484_v4, %v2444_v42  ;;  %v2446_v37 = vadd.f32 %v2445_v32, %v5875_v25  ;;  %v4621_v25 = vld [vmem:[%s6484_s1 + $0xd18] sm:$0xff] }
 0x1b3   : > { %3724 = vmatpush2.bf16.msra.mxu0 %v4710_v17  ;;  %v2447_v56 = vpop.f32.mrf.mxu1  ;;  %v4769_v1 = vcombine.high %v4621_v25, %v4625_v3  ;;  %v4768_v34 = vcombine.low %v4621_v25, %v4625_v3 }
 0x1b4   : > { %3725 = vmatprep.subr.bf16.mxu0 %v4703_v24  ;;  %v6374_v45 = vadd.f32 %v2486_v9, %v2446_v37  ;;  %3800 = vmatpush2.bf16.msra.mxu1 %v4736_v27  ;;  %v3869_v24 = vlaneseq }
 0x1b5   : > { %v2448_v14 = vpop.f32.mrf.mxu1  ;;  %3801 = vmatprep.subr.bf16.mxu1 %v4729_v33 }
 0x1b6   : > { %v6412_v42 = vshrl.u32 %v3869_v24, 7 }
 0x1b7   : > { %3726 = vmatpush2.bf16.msra.mxu0 %v4702_v38  ;;  %v2566_v54 = vpop.f32.mrf.mxu1 }
 0x1b8   : > { %3830 = vmatprep.subr.bf16.mxu0 %v4777_v41  ;;  %3802 = vmatpush2.bf16.msra.mxu1 %v4728_v47  ;;  %v3875_v27 = vsub.s32 1, %v6412_v42  ;;  %v3879_v50 = vsub.s32 2, %v6412_v42 }
 0x1b9   : > { %v2568_v35 = vpop.f32.mrf.mxu1  ;;  %3803 = vmatprep.subr.bf16.mxu1 %v4721_v51 }
 0x1ba   : > { %3728 = vmatmul.mubr.bf16.vlgmr.msra.gmra.mxu0 %v6136_v29 }
 0x1bb   : > { %3831 = vmatpush1.bf16.msra.mxu0 %v4776_v59  ;;  %3850 = vmatprep.mubr.bf16.mxu0 %v4867_v8  ;;  %v2570_v48 = vpop.f32.mrf.mxu1 }
 0x1bc   : > { %3832 = vmatprep.subr.bf16.mxu0 %v4769_v1  ;;  %3804 = vmatpush2.bf16.msra.mxu1 %v4720_v43  ;;  %v3883_v1 = vsub.s32 3, %v6412_v42 }
 0x1bd   : > { %v2571_v63 = vpop.f32.mrf.mxu1  ;;  %3805 = vmatprep.subr.bf16.mxu1 %v4713_v55 }
 0x1bf   : > { %3833 = vmatpush1.bf16.msra.mxu0 %v4768_v34 }
 0x1c0   : > { %3806 = vmatpush2.bf16.msra.mxu1 %v4712_v62 }
 0x1c1   : > { %3807 = vmatprep.subr.bf16.mxu1 %v4705_v0 }
 0x1c2   : > { %4781 = vmatmul.mubr.msk.bf16.vlgmr.msra.gmra.mxu0 %vm1272_vm0, %v5970_v28 }
 0x1c4   : > { %3808 = vmatpush2.bf16.msra.mxu1 %v4704_v2 }
 0x1c7   : > { %3810 = vmatmul.mubr.bf16.vlgmr.msra.gmra.mxu1 %v6136_v29 }
 0x1ea   : > { %v2525_v8 = vpop.f32.mrf.mxu0 }
 0x1eb   : > { %v2526_v49 = vadd.f32 %v2525_v8, %v6066_v39 }
 0x1ec   : > { %v2527_v26 = vpop.f32.mrf.mxu0 }
 0x1ed   : > { %v6400_v4 = vadd.f32 %v2566_v54, %v2526_v49  ;;  %v2528_v5 = vadd.f32 %v2527_v26, %v6075_v46 }
 0x1ee   : > { %v2529_v6 = vpop.f32.mrf.mxu0 }
 0x1ef   : > { %v6403_v61 = vadd.f32 %v2568_v35, %v2528_v5 }
 0x1f0   : > { %v2530_v7 = vpop.f32.mrf.mxu0 }
 0x1f2   : > { %v2648_v9 = vpop.f32.mrf.mxu0 }
 0x1f4   : > { %v2650_v10 = vpop.f32.mrf.mxu0 }
 0x1f6   : > { %v2652_v28 = vpop.f32.mrf.mxu0 }
 0x1f7   : > { %v2607_v11 = vpop.f32.mrf.mxu1 }
 0x1f8   : > { %v2653_v58 = vpop.f32.mrf.mxu0  ;;  %v2608_v29 = vadd.f32 %v2607_v11, %v6113_v16  ;;  %v3871_v16 = vsub.s32 0, %v6412_v42  ;;  %v3887_v11 = vsub.s32 4, %v6412_v42 }
 0x1f9   : > { %v2609_v12 = vpop.f32.mrf.mxu1 }
 0x1fa   : > { %v6406_v39 = vadd.f32 %v2648_v9, %v2608_v29  ;;  %v2610_v13 = vadd.f32 %v2609_v12, %v6121_v23  ;;  %v6420_v23 = vld [vmem:[%s6485_s2] sm:$0xff] }
 0x1fb   : > { %v2611_v46 = vpop.f32.mrf.mxu1  ;;  %v3872_v32 = vrot.slane %v6420_v23, %v3871_v16  ;;  %v3876_v19 = vrot.slane %v6420_v23, %v3875_v27  ;;  %v3880_v34 = vrot.slane %v6420_v23, %v3879_v50  ;;  %v3884_v62 = vrot.slane %v6420_v23, %v3883_v1 }
 0x1fc   : > { %v6409_v15 = vadd.f32 %v2650_v10, %v2610_v13  ;;  %v3888_v12 = vrot.slane %v6420_v23, %v3887_v11 }
 0x1fd   : > { %v2612_v17 = vpop.f32.mrf.mxu1 }
 0x1ff   : > { %v3606_v18 = vpop.f32.mrf.mxu1 }
 0x201   : > { %v3608_v20 = vpop.f32.mrf.mxu1 }
 0x203   : > { %v3610_v21 = vpop.f32.mrf.mxu1 }
 0x205   : > { %v3611_v22 = vpop.f32.mrf.mxu1 }
 0x232   : > { %v3565_v30 = vpop.f32.mrf.mxu0 }
 0x233   : > { %v3607_v31 = vadd.f32 %v3606_v18, %v3565_v30 }
 0x234   : > { %v3567_v33 = vpop.f32.mrf.mxu0 }
 0x235   : > { %v3859_v37 = vadd.f32 %v3607_v31, %v6316_v53  ;;  %v3609_v38 = vadd.f32 %v3608_v20, %v3567_v33 }
 0x236   : > { %v3569_v56 = vpop.f32.mrf.mxu0 }
 0x237   : > { %v3909_v41 = vadd.f32 %v3872_v32, %v3859_v37  ;;  %v3860_v47 = vadd.f32 %v3609_v38, %v6326_v60  ;;  %v3895_v37 = vsub.s32 6, %v6412_v42 }
 0x238   : > { %v3570_v25 = vpop.f32.mrf.mxu0 }
 0x239   : > { %vm3918_vm1 = vcmp.ge.f32.partialorder %v3909_v41, 0.0  ;;  %v3927_v53 = vmul.f32 %v6426_v40, %v3909_v41  ;;  %v3910_v3 = vadd.f32 %v3876_v19, %v3860_v47  ;;  %v3899_v19 = vsub.s32 7, %v6412_v42 }
 0x23a   : > { %v3688_v14 = vpop.f32.mrf.mxu0  ;;  %v3896_v47 = vrot.slane %v6420_v23, %v3895_v37 }
 0x23b   : > { %v3935_v51 = vsel %vm3918_vm1, %v3909_v41, %v3927_v53  ;;  %vm3919_vm2 = vcmp.ge.f32.partialorder %v3910_v3, 0.0  ;;  %v3928_v59 = vmul.f32 %v6426_v40, %v3910_v3 }
 0x23c   : > { %3943 = vst [vmem:[%s6432_s26] sm:$0xff] %v3935_v51  ;;  %v3690_v52 = vpop.f32.mrf.mxu0 }
 0x23d   : > { %v3936_v60 = vsel %vm3919_vm2, %v3910_v3, %v3928_v59 }
 0x23e   : > { %3944 = vst [vmem:[%s6432_s26 + $0x8] sm:$0xff] %v3936_v60  ;;  %v3692_v54 = vpop.f32.mrf.mxu0 }
 0x23f   : > { %v3647_v43 = vpop.f32.mrf.mxu1 }
 0x240   : > { %v3693_v35 = vpop.f32.mrf.mxu0  ;;  %v3689_v55 = vadd.f32 %v3688_v14, %v3647_v43  ;;  %v3900_v14 = vrot.slane %v6420_v23, %v3899_v19 }
 0x241   : > { %v3649_v57 = vpop.f32.mrf.mxu1 }
 0x242   : > { %v3861_v44 = vadd.f32 %v3689_v55, %v6365_v36  ;;  %v3691_v48 = vadd.f32 %v3690_v52, %v3649_v57 }
 0x243   : > { %v3651_v63 = vpop.f32.mrf.mxu1 }
 0x244   : > { %v3911_v0 = vadd.f32 %v3880_v34, %v3861_v44  ;;  %v3862_v2 = vadd.f32 %v3691_v48, %v6374_v45  ;;  %v3891_v45 = vsub.s32 5, %v6412_v42 }
 0x245   : > { %v3652_v8 = vpop.f32.mrf.mxu1 }
 0x246   : > { %vm3920_vm3 = vcmp.ge.f32.partialorder %v3911_v0, 0.0  ;;  %v3929_v49 = vmul.f32 %v6426_v40, %v3911_v0  ;;  %v3912_v26 = vadd.f32 %v3884_v62, %v3862_v2  ;;  %v3892_v18 = vrot.slane %v6420_v23, %v3891_v45 }
 0x247   : > { %v3770_v5 = vpop.f32.mrf.mxu1 }
 0x248   : > { %v3937_v6 = vsel %vm3920_vm3, %v3911_v0, %v3929_v49  ;;  %vm3921_vm4 = vcmp.ge.f32.partialorder %v3912_v26, 0.0  ;;  %v3930_v7 = vmul.f32 %v6426_v40, %v3912_v26 }
 0x249   : > { %3945 = vst [vmem:[%s6432_s26 + $0x10] sm:$0xff] %v3937_v6  ;;  %v3772_v36 = vpop.f32.mrf.mxu1 }
 0x24a   : > { %v3938_v9 = vsel %vm3921_vm4, %v3912_v26, %v3930_v7 }
 0x24b   : > { %3946 = vst [vmem:[%s6432_s26 + $0x18] sm:$0xff] %v3938_v9  ;;  %v3774_v10 = vpop.f32.mrf.mxu1 }
 0x24d   : > { %v3775_v28 = vpop.f32.mrf.mxu1 }
 0x27a   : > { %v3729_v58 = vpop.f32.mrf.mxu0 }
 0x27b   : > { %v3771_v29 = vadd.f32 %v3770_v5, %v3729_v58 }
 0x27c   : > { %v3731_v13 = vpop.f32.mrf.mxu0 }
 0x27d   : > { %v3863_v46 = vadd.f32 %v3771_v29, %v6400_v4  ;;  %v3773_v17 = vadd.f32 %v3772_v36, %v3731_v13 }
 0x27e   : > { %v3733_v20 = vpop.f32.mrf.mxu0 }
 0x27f   : > { %v3913_v21 = vadd.f32 %v3888_v12, %v3863_v46  ;;  %v3864_v22 = vadd.f32 %v3773_v17, %v6403_v61 }
 0x280   : > { %v3734_v24 = vpop.f32.mrf.mxu0 }
 0x281   : > { %vm3922_vm5 = vcmp.ge.f32.partialorder %v3913_v21, 0.0  ;;  %v3931_v16 = vmul.f32 %v6426_v40, %v3913_v21  ;;  %v3914_v27 = vadd.f32 %v3892_v18, %v3864_v22 }
 0x282   : > { %v3852_v30 = vpop.f32.mrf.mxu0 }
 0x283   : > { %v3939_v31 = vsel %vm3922_vm5, %v3913_v21, %v3931_v16  ;;  %vm3923_vm6 = vcmp.ge.f32.partialorder %v3914_v27, 0.0  ;;  %v3932_v32 = vmul.f32 %v6426_v40, %v3914_v27 }
 0x284   : > { %3947 = vst [vmem:[%s6432_s26 + $0x20] sm:$0xff] %v3939_v31  ;;  %v3854_v4 = vpop.f32.mrf.mxu0 }
 0x285   : > { %v3940_v33 = vsel %vm3923_vm6, %v3914_v27, %v3932_v32 }
 0x286   : > { %3948 = vst [vmem:[%s6432_s26 + $0x28] sm:$0xff] %v3940_v33  ;;  %v3856_v38 = vpop.f32.mrf.mxu0 }
 0x287   : > { %v3811_v61 = vpop.f32.mrf.mxu1 }
 0x288   : > { %v3857_v56 = vpop.f32.mrf.mxu0  ;;  %v3853_v41 = vadd.f32 %v3852_v30, %v3811_v61 }
 0x289   : > { %v3813_v25 = vpop.f32.mrf.mxu1 }
 0x28a   : > { %v3865_v53 = vadd.f32 %v3853_v41, %v6406_v39  ;;  %v3855_v3 = vadd.f32 %v3854_v4, %v3813_v25 }
 0x28b   : > { %v3815_v51 = vpop.f32.mrf.mxu1 }
 0x28c   : > { %v3915_v59 = vadd.f32 %v3896_v47, %v3865_v53  ;;  %v3866_v52 = vadd.f32 %v3855_v3, %v6409_v15 }
 0x28d   : > { %v3816_v60 = vpop.f32.mrf.mxu1 }
 0x28e   : > { %vm3924_vm7 = vcmp.ge.f32.partialorder %v3915_v59, 0.0  ;;  %v3933_v42 = vmul.f32 %v6426_v40, %v3915_v59  ;;  %v3916_v50 = vadd.f32 %v3900_v14, %v3866_v52 }
 0x290   : > { %v3941_v54 = vsel %vm3924_vm7, %v3915_v59, %v3933_v42  ;;  %vm3925_vm8 = vcmp.ge.f32.partialorder %v3916_v50, 0.0  ;;  %v3934_v1 = vmul.f32 %v6426_v40, %v3916_v50 }
 0x291   : > { %3949 = vst [vmem:[%s6432_s26 + $0x30] sm:$0xff] %v3941_v54 }
 0x292   : > { %v3942_v43 = vsel %vm3925_vm8, %v3916_v50, %v3934_v1 }
 0x293   : > { %3950 = vst [vmem:[%s6432_s26 + $0x38] sm:$0xff] %v3942_v43 }
 0x294 PF: > { %s15_s21 = sadd.s32 1, %s4865_s21   ;;  %s6488_s17 = smov %s4857_s19 }
 0x295   : > { %p12_p7 = scmp.ge.s32.totalorder %s15_s21, 6   ;;  %s6489_s18 = smov %s4861_s20 }
 0x296   : > { %s6490_s19 = smov %s6493_s3  ;;  %s6491_s20 = smov %s6497_s22 }
 0x297   :  { %14 = sbr.rel (!%p12_p7) target bundleno = 3 (0x3), region = 69 }

// kernel: tile.178
= control target key start
LH: loop header
LB: loop body
LE: loop exit
PB: predicated region body
PF: predicated region fallthrough
CT: control target
= control target key end

     0   :  { %s40_s0 = inlined_call_operand.vmem [shape: f32[8], index: 0, kind: input, shape index: {}]   ;;  %s41_s1 = inlined_call_operand.vmem [shape: f32[32,8], index: 1, kind: output, shape index: {}]  }
   0x1   :  { %v4_v0 = vld [vmem:[%s40_s0] ss:$0 sm:$0xff] }
   0x2   :  { %5 = vst [vmem:[%s41_s1] sm:$0xff] %v4_v0  ;;  %12 = vst [vmem:[%s41_s1 + $0x8] sm:$0xff] %v4_v0 }
   0x3   :  { %13 = vst [vmem:[%s41_s1 + $0x10] sm:$0xff] %v4_v0  ;;  %14 = vst [vmem:[%s41_s1 + $0x18] sm:$0xff] %v4_v0 }

// kernel: tile.179
= control target key start
LH: loop header
LB: loop body
LE: loop exit
PB: predicated region body
PF: predicated region fallthrough
CT: control target
= control target key end

     0   :  { %s7_s6 = smov 3  ;;  %s21_s9 = smov 3  ;;  %vm4_vm0 = vcmask 64512   ;;  %vm11_vm1 = vcmask 1048512   ;;  %vm18_vm2 = vcmask 982912   ;;  %vm25_vm3 = vcmask 917312   ;;  %s235_s0 = inlined_call_operand.vmem [shape: f32[32,8], index: 0, kind: input, shape index: {}]   ;;  %s236_s1 = inlined_call_operand.vmem [shape: f32[1,256], index: 1, kind: output, shape index: {}]  }
   0x1   :  { %v125_v0 = vld [vmem:[%s235_s0 + $0xf] ss:$16 sm:%s7_s6]   ;;  %s156_s10 = smov 120   ;;  %v127_v1 = vld [vmem:[%s235_s0 + $0xd] ss:$16 sm:%s21_s9]   ;;  %s14_s13 = smov 3 }
   0x2   :  { %9 = vrot.lane.b32.xlu0 %v125_v0, %s156_s10  ;;  %s157_s14 = smov 104   ;;  %v126_v2 = vld [vmem:[%s235_s0 + $0xe] ss:$16 sm:%s14_s13]   ;;  %s28_s17 = smov 3  ;;  %vm32_vm4 = vcmask 851712   ;;  %vm39_vm5 = vcmask 786112  }
   0x3   :  { %23 = vrot.lane.b32.xlu1 %v127_v1, %s157_s14  ;;  %v128_v3 = vld [vmem:[%s235_s0 + $0xc] ss:$16 sm:%s28_s17]   ;;  %s35_s20 = smov 3  ;;  %s42_s21 = smov 3  ;;  %vm46_vm6 = vcmask 720512   ;;  %vm53_vm7 = vcmask 654912  }
   0x4   :  { %s158_s22 = smov 112   ;;  %s159_s23 = smov 96   ;;  %v129_v4 = vld [vmem:[%s235_s0 + $0xb] ss:$16 sm:%s35_s20]   ;;  %v130_v5 = vld [vmem:[%s235_s0 + $0xa] ss:$16 sm:%s42_s21]  }
   0x5   :  { %s49_s28 = smov 3  ;;  %s56_s29 = smov 3  ;;  %vm60_vm8 = vcmask 589312   ;;  %vm67_vm9 = vcmask 523712   ;;  %vm74_vm10 = vcmask 458112   ;;  %vm81_vm11 = vcmask 392512  }
   0x6   :  { %16 = vrot.lane.b32.xlu0 %v126_v2, %s158_s22  ;;  %s160_s30 = smov 88   ;;  %s161_s2 = smov 80   ;;  %v131_v6 = vld [vmem:[%s235_s0 + $0x9] ss:$16 sm:%s49_s28]   ;;  %vm88_vm12 = vcmask 326912   ;;  %vm95_vm13 = vcmask 261312  }
   0x7   :  { %30 = vrot.lane.b32.xlu1 %v128_v3, %s159_s23  ;;  %v132_v7 = vld [vmem:[%s235_s0 + $0x8] ss:$16 sm:%s56_s29]   ;;  %s63_s7 = smov 3  ;;  %s70_s8 = smov 3  ;;  %vm102_vm14 = vcmask 195712   ;;  %vm109_vm15 = vcmask 130112  }
   0x8   :  { %s162_s9 = smov 72   ;;  %s163_s10 = smov 64   ;;  %v133_v8 = vld [vmem:[%s235_s0 + $0x7] ss:$16 sm:%s63_s7]   ;;  %v134_v9 = vld [vmem:[%s235_s0 + $0x6] ss:$16 sm:%s70_s8]  }
   0x9   :  { %s2_s13 = smov 3  ;;  %s77_s16 = smov 3 }
   0xa   :  { %37 = vrot.lane.b32.xlu0 %v129_v4, %s160_s30  ;;  %v3_v10 = vld [vmem:[%s235_s0] ss:$16 sm:%s2_s13]   ;;  %s84_s19 = smov 3  ;;  %s164_s20 = smov 56  }
   0xb   :  { %44 = vrot.lane.b32.xlu1 %v130_v5, %s161_s2  ;;  %5 = vst.msk [vmem:[#allocation0] ss:$8 sm:$0x3] %vm4_vm0, %v3_v10   ;;  %s165_s21 = smov 48   ;;  %v135_v11 = vld [vmem:[%s235_s0 + $0x5] ss:$16 sm:%s77_s16]  }
   0xc   :  { %v136_v12 = vld [vmem:[%s235_s0 + $0x4] ss:$16 sm:%s84_s19]   ;;  %s91_s26 = smov 3  ;;  %s98_s27 = smov 3 }
   0xd   :  { %s166_s28 = smov 40   ;;  %s167_s29 = smov 32   ;;  %v137_v13 = vld [vmem:[%s235_s0 + $0x3] ss:$16 sm:%s91_s26]   ;;  %v138_v14 = vld [vmem:[%s235_s0 + $0x2] ss:$16 sm:%s98_s27]  }
   0xe   :  { %51 = vrot.lane.b32.xlu0 %v131_v6, %s162_s9  ;;  %s105_s5 = smov 3  ;;  %s168_s6 = smov 24  }
   0xf   :  { %58 = vrot.lane.b32.xlu1 %v132_v7, %s163_s10  ;;  %s169_s7 = smov 16   ;;  %v139_v15 = vld [vmem:[%s235_s0 + $0x1] ss:$16 sm:%s105_s5]   ;;  %s170_s0 = smov 8  }
  0x12   :  { %65 = vrot.lane.b32.xlu0 %v133_v8, %s164_s20 }
  0x13   :  { %72 = vrot.lane.b32.xlu1 %v134_v9, %s165_s21 }
  0x16   :  { %79 = vrot.lane.b32.xlu0 %v135_v11, %s166_s28 }
  0x17   :  { %86 = vrot.lane.b32.xlu1 %v136_v12, %s167_s29 }
  0x1a   :  { %93 = vrot.lane.b32.xlu0 %v137_v13, %s168_s6 }
  0x1b   :  { %100 = vrot.lane.b32.xlu1 %v138_v14, %s169_s7 }
  0x1e   :  { %107 = vrot.lane.b32.xlu0 %v139_v15, %s170_s0 }
  0x74   :  { %v10_v16 = vpop.permute.xlu0 %9  }
  0x75   :  { %12 = vst.msk [vmem:[#allocation0] ss:$8 sm:$0x3] %vm11_vm1, %v10_v16   ;;  %v24_v17 = vpop.permute.xlu1 %23  }
  0x78   :  { %v17_v18 = vpop.permute.xlu0 %16  }
  0x79   :  { %19 = vst.msk [vmem:[#allocation0] ss:$8 sm:$0x3] %vm18_vm2, %v17_v18   ;;  %v31_v19 = vpop.permute.xlu1 %30  }
  0x7a   :  { %26 = vst.msk [vmem:[#allocation0] ss:$8 sm:$0x3] %vm25_vm3, %v24_v17  }
  0x7b   :  { %33 = vst.msk [vmem:[#allocation0] ss:$8 sm:$0x3] %vm32_vm4, %v31_v19  }
  0x7c   :  { %v38_v20 = vpop.permute.xlu0 %37  }
  0x7d   :  { %40 = vst.msk [vmem:[#allocation0] ss:$8 sm:$0x3] %vm39_vm5, %v38_v20   ;;  %v45_v21 = vpop.permute.xlu1 %44  }
  0x7e   :  { %47 = vst.msk [vmem:[#allocation0] ss:$8 sm:$0x3] %vm46_vm6, %v45_v21  }
  0x80   :  { %v52_v22 = vpop.permute.xlu0 %51  }
  0x81   :  { %54 = vst.msk [vmem:[#allocation0] ss:$8 sm:$0x3] %vm53_vm7, %v52_v22   ;;  %v59_v23 = vpop.permute.xlu1 %58  }
  0x82   :  { %61 = vst.msk [vmem:[#allocation0] ss:$8 sm:$0x3] %vm60_vm8, %v59_v23  }
  0x84   :  { %v66_v24 = vpop.permute.xlu0 %65  }
  0x85   :  { %68 = vst.msk [vmem:[#allocation0] ss:$8 sm:$0x3] %vm67_vm9, %v66_v24   ;;  %v73_v25 = vpop.permute.xlu1 %72  }
  0x86   :  { %75 = vst.msk [vmem:[#allocation0] ss:$8 sm:$0x3] %vm74_vm10, %v73_v25  }
  0x88   :  { %v80_v26 = vpop.permute.xlu0 %79  }
  0x89   :  { %82 = vst.msk [vmem:[#allocation0] ss:$8 sm:$0x3] %vm81_vm11, %v80_v26   ;;  %v87_v27 = vpop.permute.xlu1 %86  }
  0x8a   :  { %89 = vst.msk [vmem:[#allocation0] ss:$8 sm:$0x3] %vm88_vm12, %v87_v27  }
  0x8c   :  { %v94_v28 = vpop.permute.xlu0 %93  }
  0x8d   :  { %96 = vst.msk [vmem:[#allocation0] ss:$8 sm:$0x3] %vm95_vm13, %v94_v28   ;;  %v101_v29 = vpop.permute.xlu1 %100  }
  0x8e   :  { %103 = vst.msk [vmem:[#allocation0] ss:$8 sm:$0x3] %vm102_vm14, %v101_v29  }
  0x90   :  { %v108_v30 = vpop.permute.xlu0 %107  }
  0x91   :  { %110 = vst.msk [vmem:[#allocation0] ss:$8 sm:$0x3] %vm109_vm15, %v108_v30  }
  0x98   :  { %v115_v31 = vld [vmem:[#allocation0] sm:$0x1]  ;;  %v120_v32 = vld [vmem:[#allocation0 + $0x8] sm:$0x1] }
  0x99   :  { %118 = vst [vmem:[%s236_s1] sm:$0x1] %v115_v31  ;;  %140 = vst [vmem:[%s236_s1 + $0x1] sm:$0x1] %v120_v32 }

// kernel: _lambda_.25
= control target key start
LH: loop header
LB: loop body
LE: loop exit
PB: predicated region body
PF: predicated region fallthrough
CT: control target
= control target key end

     0   :  { %s8755_s15 = smov 0   ;;  %s8757_s16 = smov 0   ;;  %s11341_s0 = inlined_call_operand.vmem [shape: f32[2,40,640], index: 0, kind: input, shape index: {}]   ;;  %s11342_s1 = inlined_call_operand.vmem [shape: bf16[9,640,256], index: 1, kind: input, shape index: {}]   ;;  %s11343_s2 = inlined_call_operand.vmem [shape: f32[1,256], index: 2, kind: input, shape index: {}]   ;;  %s11344_s3 = inlined_call_operand.<no memory space> [shape: f32[1,1], index: 3, kind: input, shape index: {}]   ;;  %s11345_s4 = inlined_call_operand.vmem [shape: f32[2,32,256], index: 4, kind: output, shape index: {}]  }
   0x1   :  { %s8759_s17 = smov 0   ;;  %s8761_s18 = smov 0  }
   0x2   :  { %s8763_s19 = smov 0  }
   0x3 LB: > { %s24_s3 = sadd.s32 1, %s8719_s17  ;;  %s27_s20 = sadd.s32 1, %s8723_s18  ;;  %s8727_s19 = sphi %s8763_s19, %s15_s19   ;;  %s8723_s18 = sphi %s8761_s18, %s11381_s18   ;;  %s8719_s17 = sphi %s8759_s17, %s11380_s17   ;;  %s8715_s16 = sphi %s8757_s16, %s11379_s16   ;;  %s8711_s15 = sphi %s8755_s15, %s11378_s15  }
   0x4   : > { %p25_p0 = scmp.ge.s32.totalorder %s24_s3, 2  ;;  %p6178_p1 = scmp.ge.s32.totalorder %s8727_s19, 1 }
   0x5   : > { %p177_p2 = scmp.lt.s32.totalorder %s8727_s19, 5 }
   0x6   : > { %s11383_s3 = smov (%p25_p0, %s24_s3), 0  ;;  %s11385_s20 = smov (!%p25_p0, %s27_s20), %s8723_s18 }
   0x7   : > { %p178_p3 = pnand %p6178_p1, %p177_p2  ;;  %p29_p4 = scmp.ge.s32.totalorder %s11385_s20, 2 }
   0x9   : > { %s11387_s20 = smov (%p29_p4, %s11385_s20), 0  ;;  %181 = sbr.rel (%p178_p3) target bundleno = 975 (0x3cf), region = 36 }
   0xe   : > { %v7591_v0 = vld [vmem:[%s11342_s1 + $0x2f4] ss:$8 sps:$4 sm:$0xff]   ;;  %v7595_v2 = vld [vmem:[%s11342_s1 + $0x2f0] ss:$8 sps:$4 sm:$0xff]   ;;  %v7597_v4 = vld [vmem:[%s11342_s1 + $0x2e4] ss:$8 sps:$4 sm:$0xff]  }
   0xf   : > { %v7593_v1 = vld [vmem:[%s11342_s1 + $0x3f4] ss:$8 sps:$4 sm:$0xff]   ;;  %883 = vmatprep.subr.bf16.mxu0 %v7591_v0  ;;  %v7596_v3 = vld [vmem:[%s11342_s1 + $0x3f0] ss:$8 sps:$4 sm:$0xff]   ;;  %v7599_v5 = vld [vmem:[%s11342_s1 + $0x3e4] ss:$8 sps:$4 sm:$0xff]  }
  0x10   : > { %926 = vmatprep.subr.bf16.mxu1 %v7593_v1  ;;  %884 = vmatpush1.bf16.msra.mxu0 %v7595_v2  ;;  %v7601_v6 = vld [vmem:[%s11342_s1 + $0x2e0] ss:$8 sps:$4 sm:$0xff]   ;;  %v7603_v8 = vld [vmem:[%s11342_s1 + $0x2d4] ss:$8 sps:$4 sm:$0xff]   ;;  %v7607_v10 = vld [vmem:[%s11342_s1 + $0x2d0] ss:$8 sps:$4 sm:$0xff]  }
  0x11   : > { %927 = vmatpush1.bf16.msra.mxu1 %v7596_v3  ;;  %885 = vmatprep.subr.bf16.mxu0 %v7597_v4  ;;  %v7602_v7 = vld [vmem:[%s11342_s1 + $0x3e0] ss:$8 sps:$4 sm:$0xff]   ;;  %v7605_v9 = vld [vmem:[%s11342_s1 + $0x3d4] ss:$8 sps:$4 sm:$0xff]   ;;  %v7608_v11 = vld [vmem:[%s11342_s1 + $0x3d0] ss:$8 sps:$4 sm:$0xff]  }
  0x12   : > { %928 = vmatprep.subr.bf16.mxu1 %v7599_v5  ;;  %v7609_v12 = vld [vmem:[%s11342_s1 + $0x2c4] ss:$8 sps:$4 sm:$0xff]   ;;  %v7613_v14 = vld [vmem:[%s11342_s1 + $0x2c0] ss:$8 sps:$4 sm:$0xff]   ;;  %v7615_v16 = vld [vmem:[%s11342_s1 + $0x2b4] ss:$8 sps:$4 sm:$0xff]  }
  0x13   : > { %v7611_v13 = vld [vmem:[%s11342_s1 + $0x3c4] ss:$8 sps:$4 sm:$0xff]   ;;  %v7614_v15 = vld [vmem:[%s11342_s1 + $0x3c0] ss:$8 sps:$4 sm:$0xff]   ;;  %v7617_v17 = vld [vmem:[%s11342_s1 + $0x3b4] ss:$8 sps:$4 sm:$0xff]  }
  0x14   : > { %886 = vmatpush1.bf16.msra.mxu0 %v7601_v6  ;;  %v7619_v18 = vld [vmem:[%s11342_s1 + $0x2b0] ss:$8 sps:$4 sm:$0xff]   ;;  %v7621_v20 = vld [vmem:[%s11342_s1 + $0x2a4] ss:$8 sps:$4 sm:$0xff]   ;;  %v7625_v22 = vld [vmem:[%s11342_s1 + $0x2a0] ss:$8 sps:$4 sm:$0xff]  }
  0x15   : > { %929 = vmatpush1.bf16.msra.mxu1 %v7602_v7  ;;  %887 = vmatprep.subr.bf16.mxu0 %v7603_v8  ;;  %v7620_v19 = vld [vmem:[%s11342_s1 + $0x3b0] ss:$8 sps:$4 sm:$0xff]   ;;  %v7623_v21 = vld [vmem:[%s11342_s1 + $0x3a4] ss:$8 sps:$4 sm:$0xff]   ;;  %v7626_v23 = vld [vmem:[%s11342_s1 + $0x3a0] ss:$8 sps:$4 sm:$0xff]  }
  0x16   : > { %930 = vmatprep.subr.bf16.mxu1 %v7605_v9  ;;  %v7627_v24 = vld [vmem:[%s11342_s1 + $0x294] ss:$8 sps:$4 sm:$0xff]   ;;  %v7631_v26 = vld [vmem:[%s11342_s1 + $0x290] ss:$8 sps:$4 sm:$0xff]   ;;  %v7633_v28 = vld [vmem:[%s11342_s1 + $0x284] ss:$8 sps:$4 sm:$0xff]  }
  0x17   : > { %v7629_v25 = vld [vmem:[%s11342_s1 + $0x394] ss:$8 sps:$4 sm:$0xff]   ;;  %v7632_v27 = vld [vmem:[%s11342_s1 + $0x390] ss:$8 sps:$4 sm:$0xff]   ;;  %p208_p5 = scmp.lt.s32.totalorder %s8715_s16, 1  ;;  %s6184_s29 = sshll.u32 %s8711_s15, 4 }
  0x18   : > { %888 = vmatpush1.bf16.msra.mxu0 %v7607_v10  ;;  %v7635_v29 = vld [vmem:[%s11342_s1 + $0x384] ss:$8 sps:$4 sm:$0xff]   ;;  %v7637_v30 = vld [vmem:[%s11342_s1 + $0x280] ss:$8 sps:$4 sm:$0xff]   ;;  %v7639_v32 = vld [vmem:[%s11342_s1 + $0x374] ss:$8 sps:$4 sm:$0xff]  }
  0x19   : > { %931 = vmatpush1.bf16.msra.mxu1 %v7608_v11  ;;  %889 = vmatprep.subr.bf16.mxu0 %v7609_v12  ;;  %v7638_v31 = vld [vmem:[%s11342_s1 + $0x380] ss:$8 sps:$4 sm:$0xff]   ;;  %s11389_s16 = smov (!%p208_p5, %s8715_s16), 1  ;;  %v7641_v33 = vld [vmem:[%s11342_s1 + $0x474] ss:$8 sps:$4 sm:$0xff]   ;;  %s226_s11 = sshra.s32 %s6184_s29, 3 }
  0x1a   : > { %932 = vmatprep.subr.bf16.mxu1 %v7611_v13  ;;  %v7643_v34 = vld [vmem:[%s11342_s1 + $0x370] ss:$8 sps:$4 sm:$0xff]   ;;  %v7645_v36 = vld [vmem:[%s11342_s1 + $0x364] ss:$8 sps:$4 sm:$0xff]   ;;  %s7549_s10 = smul.u32 200, %s11389_s16  ;;  %vm1632_vm1 = vcmask 1046528  }
  0x1b   : > { %v7644_v35 = vld [vmem:[%s11342_s1 + $0x470] ss:$8 sps:$4 sm:$0xff]   ;;  %v7647_v37 = vld [vmem:[%s11342_s1 + $0x464] ss:$8 sps:$4 sm:$0xff]   ;;  %v7649_v38 = vld [vmem:[%s11342_s1 + $0x360] ss:$8 sps:$4 sm:$0xff]  }
  0x1c   : > { %890 = vmatpush1.bf16.msra.mxu0 %v7613_v14  ;;  %s7548_s22 = smul.u32 40, %s226_s11  ;;  %v7650_v39 = vld [vmem:[%s11342_s1 + $0x460] ss:$8 sps:$4 sm:$0xff]   ;;  %v7651_v40 = vld [vmem:[%s11342_s1 + $0x354] ss:$8 sps:$4 sm:$0xff]   ;;  %s212_s29 = scalar_lea.vmem %s11341_s0, %s7549_s10  ;;  %vm2932_vm3 = vcmask 1045504  }
  0x1d   : > { %933 = vmatpush1.bf16.msra.mxu1 %v7614_v15  ;;  %891 = vmatprep.subr.bf16.mxu0 %v7615_v16  ;;  %v7653_v41 = vld [vmem:[%s11342_s1 + $0x454] ss:$8 sps:$4 sm:$0xff]   ;;  %v7655_v42 = vld [vmem:[%s11342_s1 + $0x350] ss:$8 sps:$4 sm:$0xff]   ;;  %v7657_v44 = vld [vmem:[%s11342_s1 + $0x344] ss:$8 sps:$4 sm:$0xff]  }
  0x1e   : > { %934 = vmatprep.subr.bf16.mxu1 %v7617_v17  ;;  %v7656_v43 = vld [vmem:[%s11342_s1 + $0x450] ss:$8 sps:$4 sm:$0xff]   ;;  %s8930_s11 = scalar_lea.vmem %s212_s29, %s7548_s22  ;;  %v7659_v45 = vld [vmem:[%s11342_s1 + $0x444] ss:$8 sps:$4 sm:$0xff]   ;;  %v7661_v46 = vld [vmem:[%s11342_s1 + $0x340] ss:$8 sps:$4 sm:$0xff]  }
  0x1f   : > { %v7662_v47 = vld [vmem:[%s11342_s1 + $0x440] ss:$8 sps:$4 sm:$0xff]   ;;  %v237_v49 = vld [vmem:[%s8930_s11 + $0x30] sm:$0xff]  ;;  %v242_v50 = vld [vmem:[%s8930_s11 + $0x58] sm:$0xff]  ;;  %vm417_vm0 = vsmask.f32 7424 }
  0x20   : > { %892 = vmatpush1.bf16.msra.mxu0 %v7619_v18  ;;  %v232_v48 = vld [vmem:[%s8930_s11 + $0x8] sm:$0xff]  ;;  %v234_v51 = vld [vmem:[%s8930_s11 + $0x18] sm:$0xff]  ;;  %v8953_v54 = vpack.c.bf16 %v242_v50, %v242_v50  ;;  %v239_v55 = vld [vmem:[%s8930_s11 + $0x40] sm:$0xff]  ;;  %vm2267_vm2 = vsmask.f32 6400  ;;  %vm4222_vm5 = vcmask 1044480  }
  0x21   : > { %935 = vmatpush1.bf16.msra.mxu1 %v7620_v19  ;;  %893 = vmatprep.subr.bf16.mxu0 %v7621_v20  ;;  %v7663_v52 = vld [vmem:[%s11342_s1 + $0x334] ss:$8 sps:$4 sm:$0xff]   ;;  %v8951_v53 = vpack.c.bf16 %v237_v49, %v232_v48  ;;  %v244_v56 = vld [vmem:[%s8930_s11 + $0x68] sm:$0xff]  ;;  %v8960_v58 = vpack.c.bf16 %v239_v55, %v234_v51  ;;  %v231_v60 = vld [vmem:[%s8930_s11] sm:$0xff]  ;;  %vm3567_vm4 = vsmask.f32 5376 }
  0x22   : > { %936 = vmatprep.subr.bf16.mxu1 %v7623_v21  ;;  %v7665_v57 = vld [vmem:[%s11342_s1 + $0x434] ss:$8 sps:$4 sm:$0xff]   ;;  %v8962_v59 = vpack.c.bf16 %v244_v56, %v244_v56  ;;  %v236_v61 = vld [vmem:[%s8930_s11 + $0x28] sm:$0xff]  ;;  %v7667_v62 = vld [vmem:[%s11342_s1 + $0x330] ss:$8 sps:$4 sm:$0xff]   ;;  %v8979_v2 = vshll.u32 %v8953_v54, 16 }
  0x23   : > { %v7668_v63 = vld [vmem:[%s11342_s1 + $0x430] ss:$8 sps:$4 sm:$0xff]   ;;  %v8973_v0 = vshrl.u32 %v8951_v53, 16  ;;  %v8976_v1 = vshll.u32 %v8951_v53, 16  ;;  %v7669_v5 = vld [vmem:[%s11342_s1 + $0x324] ss:$8 sps:$4 sm:$0xff]   ;;  %v9001_v13 = vpack.c.bf16 %v236_v61, %v231_v60 }
  0x24   : > { %894 = vmatpush1.bf16.msra.mxu0 %v7625_v22  ;;  %v233_v3 = vld [vmem:[%s8930_s11 + $0x10] sm:$0xff]  ;;  %v238_v4 = vld [vmem:[%s8930_s11 + $0x38] sm:$0xff]  ;;  %v8987_v6 = vshrl.u32 %v8960_v58, 16  ;;  %v8990_v7 = vshll.u32 %v8960_v58, 16  ;;  %v8993_v8 = vshll.u32 %v8962_v59, 16  ;;  %v440_v11 = vrot.slane %v8979_v2, 1 }
  0x25   : > { %937 = vmatpush1.bf16.msra.mxu1 %v7626_v23  ;;  %895 = vmatprep.subr.bf16.mxu0 %v7627_v24  ;;  %v7671_v9 = vld [vmem:[%s11342_s1 + $0x424] ss:$8 sps:$4 sm:$0xff]   ;;  %v435_v10 = vrot.slane %v8976_v1, 1  ;;  %v241_v12 = vld [vmem:[%s8930_s11 + $0x50] sm:$0xff]  ;;  %v9006_v17 = vpack.c.bf16 %v238_v4, %v233_v3  ;;  %v7673_v19 = vld [vmem:[%s11342_s1 + $0x320] ss:$8 sps:$4 sm:$0xff]  }
  0x26   : > { %938 = vmatprep.subr.bf16.mxu1 %v7629_v25  ;;  %v243_v14 = vld [vmem:[%s8930_s11 + $0x60] sm:$0xff]  ;;  %v459_v15 = vrot.slane %v8990_v7, 1  ;;  %v464_v16 = vrot.slane %v8993_v8, 1  ;;  %v9016_v22 = vpack.c.bf16 %v241_v12, %v241_v12  ;;  %v7675_v23 = vld [vmem:[%s11342_s1 + $0x314] ss:$8 sps:$4 sm:$0xff]   ;;  %v9023_v25 = vshll.u32 %v9001_v13, 16 }
  0x27   : > { %v436_v18 = vor.u32 %v435_v10, %v8973_v0  ;;  %v7674_v20 = vld [vmem:[%s11342_s1 + $0x420] ss:$8 sps:$4 sm:$0xff]   ;;  %v7687_v48 = vld [vmem:[%s11342_s1 + $0x4f0] ss:$8 sps:$4 sm:$0xff]   ;;  %v7698_v55 = vld [vmem:[%s11342_s1 + $0x64] ss:$8 sps:$4 sm:$0xff]  }
  0x28   : > { %896 = vmatpush1.bf16.msra.mxu0 %v7631_v26  ;;  %v460_v21 = vor.u32 %v459_v15, %v8987_v6  ;;  %v9025_v26 = vpack.c.bf16 %v243_v14, %v243_v14  ;;  %v7690_v49 = vld [vmem:[%s11342_s1 + $0x70] ss:$8 sps:$4 sm:$0xff]   ;;  %v7693_v56 = vld [vmem:[%s11342_s1 + $0x4e0] ss:$8 sps:$4 sm:$0xff]   ;;  %v7701_v60 = vld [vmem:[%s11342_s1 + $0x4d4] ss:$8 sps:$4 sm:$0xff]  }
  0x29   : > { %939 = vmatpush1.bf16.msra.mxu1 %v7632_v27  ;;  %897 = vmatprep.subr.bf16.mxu0 %v7633_v28  ;;  %v441_v24 = vsel %vm417_vm0, %v436_v18, %v440_v11  ;;  %v9028_v27 = vshll.u32 %v9006_v17, 16  ;;  %v7677_v28 = vld [vmem:[%s11342_s1 + $0x414] ss:$8 sps:$4 sm:$0xff]   ;;  %v7702_v3 = vld [vmem:[%s11342_s1 + $0x50] ss:$8 sps:$4 sm:$0xff]   ;;  %v235_v14 = vld [vmem:[%s8930_s11 + $0x20] sm:$0xff] }
  0x2a   : > { %940 = vmatprep.subr.bf16.mxu1 %v7635_v29  ;;  %v465_v29 = vsel %vm417_vm0, %v460_v21, %v464_v16  ;;  %915 = vmatprep.mubr.bf16.mxu0 %v441_v24  ;;  %v7704_v61 = vld [vmem:[%s11342_s1 + $0x54] ss:$8 sps:$4 sm:$0xff]   ;;  %v7707_v4 = vld [vmem:[%s11342_s1 + $0x4c4] ss:$8 sps:$4 sm:$0xff]   ;;  %v7708_v10 = vld [vmem:[%s11342_s1 + $0x40] ss:$8 sps:$4 sm:$0xff]  }
  0x2b   : > { %958 = vmatprep.mubr.bf16.mxu1 %v465_v29  ;;  %v7713_v11 = vld [vmem:[%s11342_s1 + $0x4b4] ss:$8 sps:$4 sm:$0xff]   ;;  %v240_v15 = vld [vmem:[%s8930_s11 + $0x48] sm:$0xff]  ;;  %v7711_v16 = vld [vmem:[%s11342_s1 + $0x4b0] ss:$8 sps:$4 sm:$0xff]   ;;  %s6180_s21 = sshll.u32 %s8711_s15, 1 }
  0x2c   : > { %898 = vmatpush1.bf16.msra.mxu0 %v7637_v30  ;;  %v7679_v30 = vld [vmem:[%s11342_s1 + $0x310] ss:$8 sps:$4 sm:$0xff]   ;;  %v7716_v12 = vld [vmem:[%s11342_s1 + $0x34] ss:$8 sps:$4 sm:$0xff]   ;;  %v9142_v21 = vpack.c.bf16 %v240_v15, %v235_v14  ;;  %v7717_v24 = vld [vmem:[%s11342_s1 + $0x4a0] ss:$8 sps:$4 sm:$0xff]  }
  0x2d   : > { %941 = vmatpush1.bf16.msra.mxu1 %v7638_v31  ;;  %899 = vmatprep.subr.bf16.mxu0 %v7639_v32  ;;  %v7680_v31 = vld [vmem:[%s11342_s1 + $0x410] ss:$8 sps:$4 sm:$0xff]   ;;  %v7681_v32 = vld [vmem:[%s11342_s1 + $0x304] ss:$8 sps:$4 sm:$0xff]   ;;  %v7725_v29 = vld [vmem:[%s11342_s1 + $0x494] ss:$8 sps:$4 sm:$0xff]  }
  0x2e   : > { %942 = vmatprep.subr.bf16.mxu1 %v7641_v33  ;;  %v9044_v33 = vshrl.u32 %v9001_v13, 16  ;;  %v7714_v18 = vld [vmem:[%s11342_s1 + $0x30] ss:$8 sps:$4 sm:$0xff]   ;;  %v7764_v14 = vld [vmem:[%s11342_s1 + $0x134] ss:$8 sps:$4 sm:$0xff]   ;;  %p216_p6 = scmp.lt.s32.totalorder %s6180_s21, 3 }
  0x2f   : > { %v7759_v15 = vld [vmem:[%s11342_s1 + $0xb0] ss:$8 sps:$4 sm:$0xff]   ;;  %vm4857_vm6 = vsmask.f32 4352  ;;  %s6182_s22 = sshll.u32 %s11389_s16, 3 }
  0x30   : > { %900 = vmatpush2.bf16.msra.mxu0 %v7643_v34  ;;  %v9047_v34 = vshll.u32 %v9016_v22, 16  ;;  %s11391_s21 = smov (!%p216_p6, %s6180_s21), 3 }
  0x31   : > { %943 = vmatpush2.bf16.msra.mxu1 %v7644_v35  ;;  %901 = vmatprep.subr.bf16.mxu0 %v7645_v36  ;;  %v423_v35 = vrot.slane %v9023_v25, 1  ;;  %v9051_v36 = vshrl.u32 %v9006_v17, 16  ;;  %s6181_s15 = sshll.u32 %s11391_s21, 1 }
  0x32   : > { %944 = vmatprep.subr.bf16.mxu1 %v7647_v37  ;;  %v447_v37 = vrot.slane %v9028_v27, 1  ;;  %s220_s23 = sadd.s32 %s6182_s22, %s6181_s15 }
  0x33   : > { %s6183_s24 = sshll.u32 %s220_s23, 3 }
  0x34   : > { %902 = vmatpush2.bf16.msra.mxu0 %v7649_v38  ;;  %v9055_v38 = vshll.u32 %v9025_v26, 16  ;;  %s222_s27 = scalar_lea.vmem %s11345_s4, %s6183_s24 }
  0x35   : > { %945 = vmatpush2.bf16.msra.mxu1 %v7650_v39  ;;  %903 = vmatprep.subr.bf16.mxu0 %v7651_v40  ;;  %v7683_v39 = vld [vmem:[%s11342_s1 + $0x404] ss:$8 sps:$4 sm:$0xff]   ;;  %v7685_v40 = vld [vmem:[%s11342_s1 + $0x300] ss:$8 sps:$4 sm:$0xff]  }
  0x36   : > { %946 = vmatprep.subr.bf16.mxu1 %v7653_v41  ;;  %v7686_v41 = vld [vmem:[%s11342_s1 + $0x400] ss:$8 sps:$4 sm:$0xff]  }
  0x38   : > { %904 = vmatpush2.bf16.msra.mxu0 %v7655_v42  ;;  %v424_v42 = vor.u32 %v423_v35, %v9044_v33  ;;  %v7723_v35 = vld [vmem:[%s11342_s1 + $0x490] ss:$8 sps:$4 sm:$0xff]  }
  0x39   : > { %947 = vmatpush2.bf16.msra.mxu1 %v7656_v43  ;;  %905 = vmatprep.subr.bf16.mxu0 %v7657_v44  ;;  %v428_v43 = vrot.slane %v9047_v34, 1  ;;  %v448_v44 = vor.u32 %v447_v37, %v9051_v36  ;;  %v7726_v37 = vld [vmem:[%s11342_s1 + $0x10] ss:$8 sps:$4 sm:$0xff]  }
  0x3a   : > { %948 = vmatprep.subr.bf16.mxu1 %v7659_v45  ;;  %v452_v45 = vrot.slane %v9055_v38, 1 }
  0x3b   : > { %v429_v50 = vsel %vm417_vm0, %v424_v42, %v428_v43  ;;  %v7734_v43 = vld [vmem:[%s11342_s1 + $0x4] ss:$8 sps:$4 sm:$0xff]  }
  0x3c   : > { %906 = vmatpush2.bf16.msra.mxu0 %v7661_v46  ;;  %v7689_v46 = vld [vmem:[%s11342_s1 + $0x4f4] ss:$8 sps:$4 sm:$0xff]   ;;  %v453_v51 = vsel %vm417_vm0, %v448_v44, %v452_v45  ;;  %v7729_v44 = vld [vmem:[%s11342_s1 + $0x480] ss:$8 sps:$4 sm:$0xff]  }
  0x3d   : > { %949 = vmatpush2.bf16.msra.mxu1 %v7662_v47  ;;  %907 = vmatprep.subr.bf16.mxu0 %v7663_v52  ;;  %v7692_v47 = vld [vmem:[%s11342_s1 + $0x74] ss:$8 sps:$4 sm:$0xff]   ;;  %v7695_v52 = vld [vmem:[%s11342_s1 + $0x4e4] ss:$8 sps:$4 sm:$0xff]   ;;  %v7732_v45 = vld [vmem:[%s11342_s1] ss:$8 sps:$4 sm:$0xff]  }
  0x3e   : > { %950 = vmatprep.subr.bf16.mxu1 %v7665_v57  ;;  %v7696_v57 = vld [vmem:[%s11342_s1 + $0x60] ss:$8 sps:$4 sm:$0xff]  }
  0x40   : > { %908 = vmatpush2.bf16.msra.mxu0 %v7667_v62  ;;  %v8729_v62 = vmov 0  }
  0x41   : > { %951 = vmatpush2.bf16.msra.mxu1 %v7668_v63  ;;  %909 = vmatprep.subr.bf16.mxu0 %v7669_v5  ;;  %v7699_v63 = vld [vmem:[%s11342_s1 + $0x4d0] ss:$8 sps:$4 sm:$0xff]   ;;  %v7710_v5 = vld [vmem:[%s11342_s1 + $0x44] ss:$8 sps:$4 sm:$0xff]  }
  0x42   : > { %952 = vmatprep.subr.bf16.mxu1 %v7671_v9  ;;  %v7705_v9 = vld [vmem:[%s11342_s1 + $0x4c0] ss:$8 sps:$4 sm:$0xff]  }
  0x44   : > { %910 = vmatpush2.bf16.msra.mxu0 %v7673_v19  ;;  %v7719_v19 = vld [vmem:[%s11342_s1 + $0x4a4] ss:$8 sps:$4 sm:$0xff]  }
  0x45   : > { %953 = vmatpush2.bf16.msra.mxu1 %v7674_v20  ;;  %911 = vmatprep.subr.bf16.mxu0 %v7675_v23  ;;  %v7722_v20 = vld [vmem:[%s11342_s1 + $0x24] ss:$8 sps:$4 sm:$0xff]   ;;  %v245_v23 = vld [vmem:[%s8930_s11 + $0x70] sm:$0xff] }
  0x46   : > { %954 = vmatprep.subr.bf16.mxu1 %v7677_v28  ;;  %v7720_v28 = vld [vmem:[%s11342_s1 + $0x20] ss:$8 sps:$4 sm:$0xff]  }
  0x48   : > { %912 = vmatpush2.bf16.msra.mxu0 %v7679_v30  ;;  %v9154_v30 = vpack.c.bf16 %v245_v23, %v245_v23  ;;  %v7768_v23 = vld [vmem:[%s11342_s1 + $0x120] ss:$8 sps:$4 sm:$0xff]  }
  0x49   : > { %955 = vmatpush2.bf16.msra.mxu1 %v7680_v31  ;;  %913 = vmatprep.subr.bf16.mxu0 %v7681_v32  ;;  %v9157_v31 = vshll.u32 %v9142_v21, 16  ;;  %v7728_v32 = vld [vmem:[%s11342_s1 + $0x14] ss:$8 sps:$4 sm:$0xff]  }
  0x4a   : > { %956 = vmatprep.subr.bf16.mxu1 %v7683_v39  ;;  %v7731_v39 = vld [vmem:[%s11342_s1 + $0x484] ss:$8 sps:$4 sm:$0xff]   ;;  %v9176_v42 = vshll.u32 %v9154_v30, 16 }
  0x4c   : > { %914 = vmatpush2.bf16.msra.mxu0 %v7685_v40  ;;  %v9172_v40 = vshrl.u32 %v9142_v21, 16 }
  0x4d   : > { %957 = vmatpush2.bf16.msra.mxu1 %v7686_v41  ;;  %969 = vmatprep.subr.bf16.mxu0 %v7689_v46  ;;  %v471_v41 = vrot.slane %v9157_v31, 1 }
  0x4e   : > { %1412 = vmatprep.subr.bf16.mxu1 %v7692_v47  ;;  %v476_v47 = vrot.slane %v9176_v42, 1 }
  0x4f   : > { %916 = vmatmul.mubr.bf16.vlgmr.msra.gmra.mxu0 %v429_v50  ;;  %v472_v46 = vor.u32 %v471_v41, %v9172_v40  ;;  %v7735_v50 = vld [vmem:[%s11342_s1 + $0xf0] ss:$8 sps:$4 sm:$0xff]   ;;  %v7780_v41 = vld [vmem:[%s11342_s1 + $0x100] ss:$8 sps:$4 sm:$0xff]  }
  0x50   : > { %959 = vmatmul.mubr.bf16.vlgmr.msra.gmra.mxu1 %v453_v51  ;;  %970 = vmatpush1.bf16.msra.mxu0 %v7687_v48  ;;  %v7737_v48 = vld [vmem:[%s11342_s1 + $0xf4] ss:$8 sps:$4 sm:$0xff]  }
  0x51   : > { %1413 = vmatpush1.bf16.msra.mxu1 %v7690_v49  ;;  %971 = vmatprep.subr.bf16.mxu0 %v7695_v52  ;;  %v7740_v49 = vld [vmem:[%s11342_s1 + $0x174] ss:$8 sps:$4 sm:$0xff]   ;;  %v477_v51 = vsel %vm417_vm0, %v472_v46, %v476_v47  ;;  %v7738_v52 = vld [vmem:[%s11342_s1 + $0x170] ss:$8 sps:$4 sm:$0xff]   ;;  %v7791_v47 = vld [vmem:[%s11342_s1 + $0x1e4] ss:$8 sps:$4 sm:$0xff]  }
  0x52   : > { %1414 = vmatprep.subr.bf16.mxu1 %v7698_v55  ;;  %1001 = vmatprep.mubr.bf16.mxu0 %v8729_v62  ;;  %v7743_v55 = vld [vmem:[%s11342_s1 + $0xe4] ss:$8 sps:$4 sm:$0xff]   ;;  %v7786_v46 = vld [vmem:[%s11342_s1 + $0x270] ss:$8 sps:$4 sm:$0xff]  }
  0x53   : > { %1444 = vmatprep.mubr.bf16.mxu1 %v8951_v53 }
  0x54   : > { %972 = vmatpush1.bf16.msra.mxu0 %v7693_v56  ;;  %v7746_v56 = vld [vmem:[%s11342_s1 + $0x164] ss:$8 sps:$4 sm:$0xff]  }
  0x55   : > { %1415 = vmatpush1.bf16.msra.mxu1 %v7696_v57  ;;  %973 = vmatprep.subr.bf16.mxu0 %v7701_v60  ;;  %v7741_v57 = vld [vmem:[%s11342_s1 + $0xe0] ss:$8 sps:$4 sm:$0xff]  }
  0x56   : > { %1416 = vmatprep.subr.bf16.mxu1 %v7704_v61  ;;  %v7744_v60 = vld [vmem:[%s11342_s1 + $0x160] ss:$8 sps:$4 sm:$0xff]   ;;  %v7749_v61 = vld [vmem:[%s11342_s1 + $0xd4] ss:$8 sps:$4 sm:$0xff]  }
  0x58   : > { %974 = vmatpush1.bf16.msra.mxu0 %v7699_v63  ;;  %v7752_v63 = vld [vmem:[%s11342_s1 + $0x154] ss:$8 sps:$4 sm:$0xff]  }
  0x59   : > { %1417 = vmatpush1.bf16.msra.mxu1 %v7702_v3  ;;  %975 = vmatprep.subr.bf16.mxu0 %v7707_v4  ;;  %v7747_v3 = vld [vmem:[%s11342_s1 + $0xd0] ss:$8 sps:$4 sm:$0xff]  }
  0x5a   : > { %1418 = vmatprep.subr.bf16.mxu1 %v7710_v5  ;;  %v7750_v4 = vld [vmem:[%s11342_s1 + $0x150] ss:$8 sps:$4 sm:$0xff]   ;;  %v7755_v5 = vld [vmem:[%s11342_s1 + $0xc4] ss:$8 sps:$4 sm:$0xff]  }
  0x5c   : > { %976 = vmatpush1.bf16.msra.mxu0 %v7705_v9  ;;  %v7758_v9 = vld [vmem:[%s11342_s1 + $0x144] ss:$8 sps:$4 sm:$0xff]  }
  0x5d   : > { %1419 = vmatpush1.bf16.msra.mxu1 %v7708_v10  ;;  %977 = vmatprep.subr.bf16.mxu0 %v7713_v11  ;;  %v7753_v10 = vld [vmem:[%s11342_s1 + $0xc0] ss:$8 sps:$4 sm:$0xff]  }
  0x5e   : > { %1420 = vmatprep.subr.bf16.mxu1 %v7716_v12  ;;  %v7756_v11 = vld [vmem:[%s11342_s1 + $0x140] ss:$8 sps:$4 sm:$0xff]   ;;  %v7761_v12 = vld [vmem:[%s11342_s1 + $0xb4] ss:$8 sps:$4 sm:$0xff]  }
  0x60   : > { %978 = vmatpush1.bf16.msra.mxu0 %v7711_v16  ;;  %v7762_v16 = vld [vmem:[%s11342_s1 + $0x130] ss:$8 sps:$4 sm:$0xff]  }
  0x61   : > { %1421 = vmatpush1.bf16.msra.mxu1 %v7714_v18  ;;  %979 = vmatprep.subr.bf16.mxu0 %v7719_v19  ;;  %v7767_v18 = vld [vmem:[%s11342_s1 + $0xa4] ss:$8 sps:$4 sm:$0xff]  }
  0x62   : > { %1422 = vmatprep.subr.bf16.mxu1 %v7722_v20  ;;  %v7770_v19 = vld [vmem:[%s11342_s1 + $0x124] ss:$8 sps:$4 sm:$0xff]   ;;  %v7765_v20 = vld [vmem:[%s11342_s1 + $0xa0] ss:$8 sps:$4 sm:$0xff]  }
  0x64   : > { %980 = vmatpush1.bf16.msra.mxu0 %v7717_v24  ;;  %v7773_v24 = vld [vmem:[%s11342_s1 + $0x94] ss:$8 sps:$4 sm:$0xff]  }
  0x65   : > { %1423 = vmatpush1.bf16.msra.mxu1 %v7720_v28  ;;  %981 = vmatprep.subr.bf16.mxu0 %v7725_v29  ;;  %v7776_v28 = vld [vmem:[%s11342_s1 + $0x114] ss:$8 sps:$4 sm:$0xff]   ;;  %v7771_v29 = vld [vmem:[%s11342_s1 + $0x90] ss:$8 sps:$4 sm:$0xff]  }
  0x66   : > { %1424 = vmatprep.subr.bf16.mxu1 %v7728_v32  ;;  %v7774_v32 = vld [vmem:[%s11342_s1 + $0x110] ss:$8 sps:$4 sm:$0xff]  }
  0x68   : > { %982 = vmatpush1.bf16.msra.mxu0 %v7723_v35  ;;  %v7779_v35 = vld [vmem:[%s11342_s1 + $0x84] ss:$8 sps:$4 sm:$0xff]  }
  0x69   : > { %1425 = vmatpush1.bf16.msra.mxu1 %v7726_v37  ;;  %983 = vmatprep.subr.bf16.mxu0 %v7731_v39  ;;  %v7782_v37 = vld [vmem:[%s11342_s1 + $0x104] ss:$8 sps:$4 sm:$0xff]   ;;  %v7777_v39 = vld [vmem:[%s11342_s1 + $0x80] ss:$8 sps:$4 sm:$0xff]  }
  0x6a   : > { %1426 = vmatprep.subr.bf16.mxu1 %v7734_v43  ;;  %v7785_v43 = vld [vmem:[%s11342_s1 + $0x1f4] ss:$8 sps:$4 sm:$0xff]  }
  0x6c   : > { %984 = vmatpush1.bf16.msra.mxu0 %v7729_v44  ;;  %v7788_v44 = vld [vmem:[%s11342_s1 + $0x274] ss:$8 sps:$4 sm:$0xff]  }
  0x6d   : > { %1427 = vmatpush1.bf16.msra.mxu1 %v7732_v45  ;;  %1455 = vmatprep.subr.bf16.mxu0 %v7740_v49  ;;  %v7783_v45 = vld [vmem:[%s11342_s1 + $0x1f0] ss:$8 sps:$4 sm:$0xff]   ;;  %v7789_v49 = vld [vmem:[%s11342_s1 + $0x1e0] ss:$8 sps:$4 sm:$0xff]  }
  0x6e   : > { %1428 = vmatprep.subr.bf16.mxu1 %v7737_v48  ;;  %v7794_v48 = vld [vmem:[%s11342_s1 + $0x264] ss:$8 sps:$4 sm:$0xff]  }
  0x6f   : > { %1002 = vmatmul.mubr.bf16.vlgmr.msra.gmra.mxu0 %v477_v51  ;;  %v7797_v51 = vld [vmem:[%s11342_s1 + $0x1d4] ss:$8 sps:$4 sm:$0xff]  }
  0x70   : > { %1456 = vmatpush1.bf16.msra.mxu0 %v7738_v52  ;;  %1487 = vmatprep.mubr.bf16.mxu0 %v8960_v58  ;;  %v7800_v52 = vld [vmem:[%s11342_s1 + $0x254] ss:$8 sps:$4 sm:$0xff]  }
  0x71   : > { %1429 = vmatpush2.bf16.msra.mxu1 %v7735_v50  ;;  %1457 = vmatprep.subr.bf16.mxu0 %v7746_v56  ;;  %v7792_v50 = vld [vmem:[%s11342_s1 + $0x260] ss:$8 sps:$4 sm:$0xff]   ;;  %v7798_v56 = vld [vmem:[%s11342_s1 + $0x250] ss:$8 sps:$4 sm:$0xff]  }
  0x72   : > { %1430 = vmatprep.subr.bf16.mxu1 %v7743_v55  ;;  %v7795_v55 = vld [vmem:[%s11342_s1 + $0x1d0] ss:$8 sps:$4 sm:$0xff]  }
  0x74   : > { %1458 = vmatpush1.bf16.msra.mxu0 %v7744_v60  ;;  %v7806_v60 = vld [vmem:[%s11342_s1 + $0x244] ss:$8 sps:$4 sm:$0xff]  }
  0x75   : > { %1431 = vmatpush2.bf16.msra.mxu1 %v7741_v57  ;;  %1459 = vmatprep.subr.bf16.mxu0 %v7752_v63  ;;  %v7803_v57 = vld [vmem:[%s11342_s1 + $0x1c4] ss:$8 sps:$4 sm:$0xff]   ;;  %v7804_v63 = vld [vmem:[%s11342_s1 + $0x240] ss:$8 sps:$4 sm:$0xff]  }
  0x76   : > { %1432 = vmatprep.subr.bf16.mxu1 %v7749_v61  ;;  %v7801_v61 = vld [vmem:[%s11342_s1 + $0x1c0] ss:$8 sps:$4 sm:$0xff]  }
  0x78   : > { %1460 = vmatpush1.bf16.msra.mxu0 %v7750_v4  ;;  %v7812_v4 = vld [vmem:[%s11342_s1 + $0x234] ss:$8 sps:$4 sm:$0xff]  }
  0x79   : > { %1433 = vmatpush2.bf16.msra.mxu1 %v7747_v3  ;;  %1461 = vmatprep.subr.bf16.mxu0 %v7758_v9  ;;  %v7809_v3 = vld [vmem:[%s11342_s1 + $0x1b4] ss:$8 sps:$4 sm:$0xff]   ;;  %v7810_v9 = vld [vmem:[%s11342_s1 + $0x230] ss:$8 sps:$4 sm:$0xff]  }
  0x7a   : > { %1434 = vmatprep.subr.bf16.mxu1 %v7755_v5  ;;  %v7807_v5 = vld [vmem:[%s11342_s1 + $0x1b0] ss:$8 sps:$4 sm:$0xff]  }
  0x7c   : > { %1462 = vmatpush1.bf16.msra.mxu0 %v7756_v11  ;;  %v7818_v11 = vld [vmem:[%s11342_s1 + $0x224] ss:$8 sps:$4 sm:$0xff]  }
  0x7d   : > { %1435 = vmatpush2.bf16.msra.mxu1 %v7753_v10  ;;  %1463 = vmatprep.subr.bf16.mxu0 %v7764_v14  ;;  %v7815_v10 = vld [vmem:[%s11342_s1 + $0x1a4] ss:$8 sps:$4 sm:$0xff]   ;;  %v7816_v14 = vld [vmem:[%s11342_s1 + $0x220] ss:$8 sps:$4 sm:$0xff]  }
  0x7e   : > { %1436 = vmatprep.subr.bf16.mxu1 %v7761_v12  ;;  %v7813_v12 = vld [vmem:[%s11342_s1 + $0x1a0] ss:$8 sps:$4 sm:$0xff]  }
  0x80   : > { %1464 = vmatpush1.bf16.msra.mxu0 %v7762_v16  ;;  %v7824_v16 = vld [vmem:[%s11342_s1 + $0x214] ss:$8 sps:$4 sm:$0xff]  }
  0x81   : > { %1437 = vmatpush2.bf16.msra.mxu1 %v7759_v15  ;;  %1465 = vmatprep.subr.bf16.mxu0 %v7770_v19  ;;  %v7821_v15 = vld [vmem:[%s11342_s1 + $0x194] ss:$8 sps:$4 sm:$0xff]   ;;  %v7822_v19 = vld [vmem:[%s11342_s1 + $0x210] ss:$8 sps:$4 sm:$0xff]  }
  0x82   : > { %1438 = vmatprep.subr.bf16.mxu1 %v7767_v18  ;;  %v7819_v18 = vld [vmem:[%s11342_s1 + $0x190] ss:$8 sps:$4 sm:$0xff]  }
  0x84   : > { %1466 = vmatpush1.bf16.msra.mxu0 %v7768_v23  ;;  %v7830_v23 = vld [vmem:[%s11342_s1 + $0x204] ss:$8 sps:$4 sm:$0xff]  }
  0x85   : > { %1439 = vmatpush2.bf16.msra.mxu1 %v7765_v20  ;;  %1467 = vmatprep.subr.bf16.mxu0 %v7776_v28  ;;  %v7827_v20 = vld [vmem:[%s11342_s1 + $0x184] ss:$8 sps:$4 sm:$0xff]   ;;  %v7828_v28 = vld [vmem:[%s11342_s1 + $0x200] ss:$8 sps:$4 sm:$0xff]  }
  0x86   : > { %1440 = vmatprep.subr.bf16.mxu1 %v7773_v24  ;;  %v7825_v24 = vld [vmem:[%s11342_s1 + $0x180] ss:$8 sps:$4 sm:$0xff]  }
  0x88   : > { %1468 = vmatpush1.bf16.msra.mxu0 %v7774_v32  ;;  %v7836_v32 = vld [vmem:[%s11342_s1 + $0x674] ss:$8 sps:$4 sm:$0xff]  }
  0x89   : > { %1441 = vmatpush2.bf16.msra.mxu1 %v7771_v29  ;;  %1469 = vmatprep.subr.bf16.mxu0 %v7782_v37  ;;  %v7833_v29 = vld [vmem:[%s11342_s1 + $0x574] ss:$8 sps:$4 sm:$0xff]   ;;  %v7831_v37 = vld [vmem:[%s11342_s1 + $0x570] ss:$8 sps:$4 sm:$0xff]  }
  0x8a   : > { %1442 = vmatprep.subr.bf16.mxu1 %v7779_v35  ;;  %v1636_v35 = vrot.slane %v8951_v53, 1 }
  0x8c   : > { %1470 = vmatpush1.bf16.msra.mxu0 %v7780_v41  ;;  %v1642_v41 = vrot.slane %v8960_v58, 1 }
  0x8d   : > { %1443 = vmatpush2.bf16.msra.mxu1 %v7777_v39  ;;  %1471 = vmatprep.subr.bf16.mxu0 %v7785_v43  ;;  %v1637_v39 = vrot.slane %v8953_v54, 1  ;;  %v1643_v43 = vrot.slane %v8962_v59, 1 }
  0x8e   : > { %1498 = vmatprep.subr.bf16.mxu1 %v7788_v44  ;;  %v7834_v44 = vld [vmem:[%s11342_s1 + $0x670] ss:$8 sps:$4 sm:$0xff]  }
  0x90   : > { %1445 = vmatmul.mubr.bf16.vlgmr.msra.gmra.mxu1 %v9001_v13  ;;  %1472 = vmatpush2.bf16.msra.mxu0 %v7783_v45  ;;  %v7839_v45 = vld [vmem:[%s11342_s1 + $0x564] ss:$8 sps:$4 sm:$0xff]  }
  0x91   : > { %1499 = vmatpush1.bf16.msra.mxu1 %v7786_v46  ;;  %1473 = vmatprep.subr.bf16.mxu0 %v7791_v47  ;;  %v7842_v46 = vld [vmem:[%s11342_s1 + $0x664] ss:$8 sps:$4 sm:$0xff]   ;;  %v7837_v47 = vld [vmem:[%s11342_s1 + $0x560] ss:$8 sps:$4 sm:$0xff]  }
  0x92   : > { %1500 = vmatprep.subr.bf16.mxu1 %v7794_v48  ;;  %1530 = vmatprep.mubr.bf16.mxu1 %v8729_v62  ;;  %v1638_v48 = vsel %vm1632_vm1, %v1636_v35, %v1637_v39  ;;  %v7879_v35 = vld [vmem:[%s11342_s1 + $0x5f0] ss:$8 sps:$4 sm:$0xff]   ;;  %v7887_v39 = vld [vmem:[%s11342_s1 + $0x5e4] ss:$8 sps:$4 sm:$0xff]  }
  0x94   : > { %1474 = vmatpush2.bf16.msra.mxu0 %v7789_v49  ;;  %v1644_v49 = vsel %vm1632_vm1, %v1642_v41, %v1643_v43  ;;  %v7890_v41 = vld [vmem:[%s11342_s1 + $0x6e4] ss:$8 sps:$4 sm:$0xff]   ;;  %v7885_v43 = vld [vmem:[%s11342_s1 + $0x5e0] ss:$8 sps:$4 sm:$0xff]  }
  0x95   : > { %1501 = vmatpush1.bf16.msra.mxu1 %v7792_v50  ;;  %1475 = vmatprep.subr.bf16.mxu0 %v7797_v51  ;;  %v7840_v50 = vld [vmem:[%s11342_s1 + $0x660] ss:$8 sps:$4 sm:$0xff]   ;;  %v7845_v51 = vld [vmem:[%s11342_s1 + $0x554] ss:$8 sps:$4 sm:$0xff]  }
  0x96   : > { %1502 = vmatprep.subr.bf16.mxu1 %v7800_v52  ;;  %v7848_v52 = vld [vmem:[%s11342_s1 + $0x654] ss:$8 sps:$4 sm:$0xff]  }
  0x98   : > { %1476 = vmatpush2.bf16.msra.mxu0 %v7795_v55  ;;  %v7843_v55 = vld [vmem:[%s11342_s1 + $0x550] ss:$8 sps:$4 sm:$0xff]  }
  0x99   : > { %1503 = vmatpush1.bf16.msra.mxu1 %v7798_v56  ;;  %1477 = vmatprep.subr.bf16.mxu0 %v7803_v57  ;;  %v7846_v56 = vld [vmem:[%s11342_s1 + $0x650] ss:$8 sps:$4 sm:$0xff]   ;;  %v7851_v57 = vld [vmem:[%s11342_s1 + $0x544] ss:$8 sps:$4 sm:$0xff]  }
  0x9a   : > { %1504 = vmatprep.subr.bf16.mxu1 %v7806_v60  ;;  %v7854_v60 = vld [vmem:[%s11342_s1 + $0x644] ss:$8 sps:$4 sm:$0xff]  }
  0x9c   : > { %1478 = vmatpush2.bf16.msra.mxu0 %v7801_v61  ;;  %v7849_v61 = vld [vmem:[%s11342_s1 + $0x540] ss:$8 sps:$4 sm:$0xff]  }
  0x9d   : > { %1505 = vmatpush1.bf16.msra.mxu1 %v7804_v63  ;;  %1479 = vmatprep.subr.bf16.mxu0 %v7809_v3  ;;  %v7852_v63 = vld [vmem:[%s11342_s1 + $0x640] ss:$8 sps:$4 sm:$0xff]   ;;  %v7857_v3 = vld [vmem:[%s11342_s1 + $0x534] ss:$8 sps:$4 sm:$0xff]  }
  0x9e   : > { %1506 = vmatprep.subr.bf16.mxu1 %v7812_v4  ;;  %v7860_v4 = vld [vmem:[%s11342_s1 + $0x634] ss:$8 sps:$4 sm:$0xff]  }
  0xa0   : > { %1480 = vmatpush2.bf16.msra.mxu0 %v7807_v5  ;;  %v7855_v5 = vld [vmem:[%s11342_s1 + $0x530] ss:$8 sps:$4 sm:$0xff]  }
  0xa1   : > { %1507 = vmatpush1.bf16.msra.mxu1 %v7810_v9  ;;  %1481 = vmatprep.subr.bf16.mxu0 %v7815_v10  ;;  %v7858_v9 = vld [vmem:[%s11342_s1 + $0x630] ss:$8 sps:$4 sm:$0xff]   ;;  %v7863_v10 = vld [vmem:[%s11342_s1 + $0x524] ss:$8 sps:$4 sm:$0xff]  }
  0xa2   : > { %1508 = vmatprep.subr.bf16.mxu1 %v7818_v11  ;;  %v7866_v11 = vld [vmem:[%s11342_s1 + $0x624] ss:$8 sps:$4 sm:$0xff]  }
  0xa4   : > { %1482 = vmatpush2.bf16.msra.mxu0 %v7813_v12  ;;  %v7861_v12 = vld [vmem:[%s11342_s1 + $0x520] ss:$8 sps:$4 sm:$0xff]  }
  0xa5   : > { %1509 = vmatpush1.bf16.msra.mxu1 %v7816_v14  ;;  %1483 = vmatprep.subr.bf16.mxu0 %v7821_v15  ;;  %v7864_v14 = vld [vmem:[%s11342_s1 + $0x620] ss:$8 sps:$4 sm:$0xff]   ;;  %v7869_v15 = vld [vmem:[%s11342_s1 + $0x514] ss:$8 sps:$4 sm:$0xff]  }
  0xa6   : > { %1510 = vmatprep.subr.bf16.mxu1 %v7824_v16  ;;  %v7872_v16 = vld [vmem:[%s11342_s1 + $0x614] ss:$8 sps:$4 sm:$0xff]  }
  0xa8   : > { %1484 = vmatpush2.bf16.msra.mxu0 %v7819_v18  ;;  %v7867_v18 = vld [vmem:[%s11342_s1 + $0x510] ss:$8 sps:$4 sm:$0xff]  }
  0xa9   : > { %1511 = vmatpush1.bf16.msra.mxu1 %v7822_v19  ;;  %1485 = vmatprep.subr.bf16.mxu0 %v7827_v20  ;;  %v7870_v19 = vld [vmem:[%s11342_s1 + $0x610] ss:$8 sps:$4 sm:$0xff]   ;;  %v7875_v20 = vld [vmem:[%s11342_s1 + $0x504] ss:$8 sps:$4 sm:$0xff]  }
  0xaa   : > { %1512 = vmatprep.subr.bf16.mxu1 %v7830_v23  ;;  %v7878_v23 = vld [vmem:[%s11342_s1 + $0x604] ss:$8 sps:$4 sm:$0xff]  }
  0xac   : > { %1486 = vmatpush2.bf16.msra.mxu0 %v7825_v24  ;;  %v7873_v24 = vld [vmem:[%s11342_s1 + $0x500] ss:$8 sps:$4 sm:$0xff]  }
  0xad   : > { %1513 = vmatpush1.bf16.msra.mxu1 %v7828_v28  ;;  %2053 = vmatprep.subr.bf16.mxu0 %v7833_v29  ;;  %v7876_v28 = vld [vmem:[%s11342_s1 + $0x600] ss:$8 sps:$4 sm:$0xff]   ;;  %v7881_v29 = vld [vmem:[%s11342_s1 + $0x5f4] ss:$8 sps:$4 sm:$0xff]  }
  0xae   : > { %2096 = vmatprep.subr.bf16.mxu1 %v7836_v32  ;;  %v7884_v32 = vld [vmem:[%s11342_s1 + $0x6f4] ss:$8 sps:$4 sm:$0xff]  }
  0xaf   : > { %1488 = vmatmul.mubr.bf16.vlgmr.msra.gmra.mxu0 %v9006_v17 }
  0xb0   : > { %1531 = vmatmul.mubr.bf16.vlgmr.msra.gmra.mxu1 %v9142_v21  ;;  %2054 = vmatpush1.bf16.msra.mxu0 %v7831_v37  ;;  %v7882_v37 = vld [vmem:[%s11342_s1 + $0x6f0] ss:$8 sps:$4 sm:$0xff]  }
  0xb1   : > { %2097 = vmatpush1.bf16.msra.mxu1 %v7834_v44  ;;  %2055 = vmatprep.subr.bf16.mxu0 %v7839_v45  ;;  %v7888_v44 = vld [vmem:[%s11342_s1 + $0x6e0] ss:$8 sps:$4 sm:$0xff]   ;;  %v7893_v45 = vld [vmem:[%s11342_s1 + $0x5d4] ss:$8 sps:$4 sm:$0xff]  }
  0xb2   : > { %2098 = vmatprep.subr.bf16.mxu1 %v7842_v46  ;;  %2085 = vmatprep.mubr.bf16.mxu0 %v1638_v48  ;;  %v7896_v46 = vld [vmem:[%s11342_s1 + $0x6d4] ss:$8 sps:$4 sm:$0xff]   ;;  %v7894_v48 = vld [vmem:[%s11342_s1 + $0x6d0] ss:$8 sps:$4 sm:$0xff]  }
  0xb3   : > { %2128 = vmatprep.mubr.bf16.mxu1 %v1644_v49  ;;  %v7899_v49 = vld [vmem:[%s11342_s1 + $0x5c4] ss:$8 sps:$4 sm:$0xff]  }
  0xb4   : > { %2056 = vmatpush1.bf16.msra.mxu0 %v7837_v47  ;;  %v7891_v47 = vld [vmem:[%s11342_s1 + $0x5d0] ss:$8 sps:$4 sm:$0xff]  }
  0xb5   : > { %2099 = vmatpush1.bf16.msra.mxu1 %v7840_v50  ;;  %2057 = vmatprep.subr.bf16.mxu0 %v7845_v51  ;;  %v7902_v50 = vld [vmem:[%s11342_s1 + $0x6c4] ss:$8 sps:$4 sm:$0xff]   ;;  %v7897_v51 = vld [vmem:[%s11342_s1 + $0x5c0] ss:$8 sps:$4 sm:$0xff]  }
  0xb6   : > { %2100 = vmatprep.subr.bf16.mxu1 %v7848_v52  ;;  %v7900_v52 = vld [vmem:[%s11342_s1 + $0x6c0] ss:$8 sps:$4 sm:$0xff]  }
  0xb8   : > { %2058 = vmatpush1.bf16.msra.mxu0 %v7843_v55  ;;  %v7905_v55 = vld [vmem:[%s11342_s1 + $0x5b4] ss:$8 sps:$4 sm:$0xff]  }
  0xb9   : > { %2101 = vmatpush1.bf16.msra.mxu1 %v7846_v56  ;;  %2059 = vmatprep.subr.bf16.mxu0 %v7851_v57  ;;  %v7908_v56 = vld [vmem:[%s11342_s1 + $0x6b4] ss:$8 sps:$4 sm:$0xff]   ;;  %v7903_v57 = vld [vmem:[%s11342_s1 + $0x5b0] ss:$8 sps:$4 sm:$0xff]  }
  0xba   : > { %2102 = vmatprep.subr.bf16.mxu1 %v7854_v60  ;;  %v7906_v60 = vld [vmem:[%s11342_s1 + $0x6b0] ss:$8 sps:$4 sm:$0xff]  }
  0xbc   : > { %2060 = vmatpush1.bf16.msra.mxu0 %v7849_v61  ;;  %v7911_v61 = vld [vmem:[%s11342_s1 + $0x5a4] ss:$8 sps:$4 sm:$0xff]  }
  0xbd   : > { %2103 = vmatpush1.bf16.msra.mxu1 %v7852_v63  ;;  %2061 = vmatprep.subr.bf16.mxu0 %v7857_v3  ;;  %v7914_v63 = vld [vmem:[%s11342_s1 + $0x6a4] ss:$8 sps:$4 sm:$0xff]   ;;  %v7909_v3 = vld [vmem:[%s11342_s1 + $0x5a0] ss:$8 sps:$4 sm:$0xff]  }
  0xbe   : > { %2104 = vmatprep.subr.bf16.mxu1 %v7860_v4  ;;  %v7912_v4 = vld [vmem:[%s11342_s1 + $0x6a0] ss:$8 sps:$4 sm:$0xff]  }
  0xc0   : > { %2062 = vmatpush1.bf16.msra.mxu0 %v7855_v5  ;;  %v7917_v5 = vld [vmem:[%s11342_s1 + $0x594] ss:$8 sps:$4 sm:$0xff]  }
  0xc1   : > { %2105 = vmatpush1.bf16.msra.mxu1 %v7858_v9  ;;  %2063 = vmatprep.subr.bf16.mxu0 %v7863_v10  ;;  %v7920_v9 = vld [vmem:[%s11342_s1 + $0x694] ss:$8 sps:$4 sm:$0xff]   ;;  %v7915_v10 = vld [vmem:[%s11342_s1 + $0x590] ss:$8 sps:$4 sm:$0xff]  }
  0xc2   : > { %2106 = vmatprep.subr.bf16.mxu1 %v7866_v11  ;;  %v9571_v11 = vshrl.u32 %v8953_v54, 16 }
  0xc4   : > { %2064 = vmatpush1.bf16.msra.mxu0 %v7861_v12  ;;  %v7918_v12 = vld [vmem:[%s11342_s1 + $0x690] ss:$8 sps:$4 sm:$0xff]  }
  0xc5   : > { %2107 = vmatpush1.bf16.msra.mxu1 %v7864_v14  ;;  %2065 = vmatprep.subr.bf16.mxu0 %v7869_v15  ;;  %v7923_v14 = vld [vmem:[%s11342_s1 + $0x584] ss:$8 sps:$4 sm:$0xff]  }
  0xc6   : > { %2108 = vmatprep.subr.bf16.mxu1 %v7872_v16  ;;  %v7926_v15 = vld [vmem:[%s11342_s1 + $0x684] ss:$8 sps:$4 sm:$0xff]   ;;  %v1633_v16 = vrot.slane %v9001_v13, 1 }
  0xc8   : > { %2066 = vmatpush1.bf16.msra.mxu0 %v7867_v18  ;;  %v7921_v18 = vld [vmem:[%s11342_s1 + $0x580] ss:$8 sps:$4 sm:$0xff]  }
  0xc9   : > { %2109 = vmatpush1.bf16.msra.mxu1 %v7870_v19  ;;  %2067 = vmatprep.subr.bf16.mxu0 %v7875_v20  ;;  %v1634_v19 = vrot.slane %v9016_v22, 1  ;;  %v1639_v20 = vrot.slane %v9006_v17, 1 }
  0xca   : > { %2110 = vmatprep.subr.bf16.mxu1 %v7878_v23  ;;  %v2277_v23 = vrot.slane %v8973_v0, 1 }
  0xcc   : > { %2068 = vmatpush1.bf16.msra.mxu0 %v7873_v24  ;;  %v2278_v24 = vrot.slane %v8976_v1, 2 }
  0xcd   : > { %2111 = vmatpush1.bf16.msra.mxu1 %v7876_v28  ;;  %2069 = vmatprep.subr.bf16.mxu0 %v7881_v29  ;;  %v2282_v28 = vrot.slane %v9571_v11, 1  ;;  %v2283_v29 = vrot.slane %v8979_v2, 2 }
  0xce   : > { %2112 = vmatprep.subr.bf16.mxu1 %v7884_v32  ;;  %v7924_v32 = vld [vmem:[%s11342_s1 + $0x680] ss:$8 sps:$4 sm:$0xff]  }
  0xd0   : > { %2070 = vmatpush2.bf16.msra.mxu0 %v7879_v35  ;;  %v1640_v35 = vrot.slane %v9025_v26, 1 }
  0xd1   : > { %2113 = vmatpush2.bf16.msra.mxu1 %v7882_v37  ;;  %2071 = vmatprep.subr.bf16.mxu0 %v7887_v39  ;;  %v7929_v37 = vld [vmem:[%s11342_s1 + $0x774] ss:$8 sps:$4 sm:$0xff]  }
  0xd2   : > { %2114 = vmatprep.subr.bf16.mxu1 %v7890_v41  ;;  %v7932_v39 = vld [vmem:[%s11342_s1 + $0x7f4] ss:$8 sps:$4 sm:$0xff]   ;;  %v7927_v41 = vld [vmem:[%s11342_s1 + $0x770] ss:$8 sps:$4 sm:$0xff]  }
  0xd4   : > { %2072 = vmatpush2.bf16.msra.mxu0 %v7885_v43  ;;  %v7930_v43 = vld [vmem:[%s11342_s1 + $0x7f0] ss:$8 sps:$4 sm:$0xff]  }
  0xd5   : > { %2115 = vmatpush2.bf16.msra.mxu1 %v7888_v44  ;;  %2073 = vmatprep.subr.bf16.mxu0 %v7893_v45  ;;  %v2279_v44 = vor.u32 %v2278_v24, %v2277_v23  ;;  %v2284_v45 = vor.u32 %v2283_v29, %v2282_v28  ;;  %v7963_v23 = vld [vmem:[%s11342_s1 + $0x710] ss:$8 sps:$4 sm:$0xff]   ;;  %v9682_v24 = vshrl.u32 %v8962_v59, 16  ;;  %v7971_v29 = vld [vmem:[%s11342_s1 + $0x704] ss:$8 sps:$4 sm:$0xff]  }
  0xd6   : > { %2116 = vmatprep.subr.bf16.mxu1 %v7896_v46  ;;  %v1635_v46 = vsel %vm1632_vm1, %v1633_v16, %v1634_v19  ;;  %v7957_v16 = vld [vmem:[%s11342_s1 + $0x720] ss:$8 sps:$4 sm:$0xff]   ;;  %v7965_v19 = vld [vmem:[%s11342_s1 + $0x714] ss:$8 sps:$4 sm:$0xff]   ;;  %v7966_v28 = vld [vmem:[%s11342_s1 + $0x790] ss:$8 sps:$4 sm:$0xff]  }
  0xd8   : > { %2074 = vmatpush2.bf16.msra.mxu0 %v7891_v47  ;;  %v1641_v47 = vsel %vm1632_vm1, %v1639_v20, %v1640_v35  ;;  %v7968_v20 = vld [vmem:[%s11342_s1 + $0x794] ss:$8 sps:$4 sm:$0xff]   ;;  %v7969_v35 = vld [vmem:[%s11342_s1 + $0x700] ss:$8 sps:$4 sm:$0xff]  }
  0xd9   : > { %2117 = vmatpush2.bf16.msra.mxu1 %v7894_v48  ;;  %2075 = vmatprep.subr.bf16.mxu0 %v7899_v49  ;;  %v7935_v48 = vld [vmem:[%s11342_s1 + $0x764] ss:$8 sps:$4 sm:$0xff]  }
  0xda   : > { %2118 = vmatprep.subr.bf16.mxu1 %v7902_v50  ;;  %v7938_v49 = vld [vmem:[%s11342_s1 + $0x7e4] ss:$8 sps:$4 sm:$0xff]   ;;  %v7933_v50 = vld [vmem:[%s11342_s1 + $0x760] ss:$8 sps:$4 sm:$0xff]  }
  0xdc   : > { %2076 = vmatpush2.bf16.msra.mxu0 %v7897_v51  ;;  %v2285_v51 = vsel %vm2267_vm2, %v2279_v44, %v2284_v45  ;;  %v2301_v44 = vrot.slane %v8993_v8, 2  ;;  %v7972_v45 = vld [vmem:[%s11342_s1 + $0x780] ss:$8 sps:$4 sm:$0xff]  }
  0xdd   : > { %2119 = vmatpush2.bf16.msra.mxu1 %v7900_v52  ;;  %2077 = vmatprep.subr.bf16.mxu0 %v7905_v55  ;;  %v7936_v52 = vld [vmem:[%s11342_s1 + $0x7e0] ss:$8 sps:$4 sm:$0xff]   ;;  %v7941_v55 = vld [vmem:[%s11342_s1 + $0x754] ss:$8 sps:$4 sm:$0xff]  }
  0xde   : > { %2120 = vmatprep.subr.bf16.mxu1 %v7908_v56  ;;  %v7944_v56 = vld [vmem:[%s11342_s1 + $0x7d4] ss:$8 sps:$4 sm:$0xff]  }
  0xe0   : > { %2078 = vmatpush2.bf16.msra.mxu0 %v7903_v57  ;;  %v7939_v57 = vld [vmem:[%s11342_s1 + $0x750] ss:$8 sps:$4 sm:$0xff]  }
  0xe1   : > { %2121 = vmatpush2.bf16.msra.mxu1 %v7906_v60  ;;  %2079 = vmatprep.subr.bf16.mxu0 %v7911_v61  ;;  %v7942_v60 = vld [vmem:[%s11342_s1 + $0x7d0] ss:$8 sps:$4 sm:$0xff]   ;;  %v7947_v61 = vld [vmem:[%s11342_s1 + $0x744] ss:$8 sps:$4 sm:$0xff]  }
  0xe2   : > { %2122 = vmatprep.subr.bf16.mxu1 %v7914_v63  ;;  %v7950_v63 = vld [vmem:[%s11342_s1 + $0x7c4] ss:$8 sps:$4 sm:$0xff]  }
  0xe4   : > { %2080 = vmatpush2.bf16.msra.mxu0 %v7909_v3  ;;  %v7945_v3 = vld [vmem:[%s11342_s1 + $0x740] ss:$8 sps:$4 sm:$0xff]  }
  0xe5   : > { %2123 = vmatpush2.bf16.msra.mxu1 %v7912_v4  ;;  %2081 = vmatprep.subr.bf16.mxu0 %v7917_v5  ;;  %v7948_v4 = vld [vmem:[%s11342_s1 + $0x7c0] ss:$8 sps:$4 sm:$0xff]   ;;  %v7953_v5 = vld [vmem:[%s11342_s1 + $0x734] ss:$8 sps:$4 sm:$0xff]  }
  0xe6   : > { %2124 = vmatprep.subr.bf16.mxu1 %v7920_v9  ;;  %v7956_v9 = vld [vmem:[%s11342_s1 + $0x7b4] ss:$8 sps:$4 sm:$0xff]  }
  0xe8   : > { %2082 = vmatpush2.bf16.msra.mxu0 %v7915_v10  ;;  %v7951_v10 = vld [vmem:[%s11342_s1 + $0x730] ss:$8 sps:$4 sm:$0xff]  }
  0xe9   : > { %2125 = vmatpush2.bf16.msra.mxu1 %v7918_v12  ;;  %2083 = vmatprep.subr.bf16.mxu0 %v7923_v14  ;;  %v7954_v12 = vld [vmem:[%s11342_s1 + $0x7b0] ss:$8 sps:$4 sm:$0xff]   ;;  %v7959_v14 = vld [vmem:[%s11342_s1 + $0x724] ss:$8 sps:$4 sm:$0xff]  }
  0xea   : > { %2126 = vmatprep.subr.bf16.mxu1 %v7926_v15  ;;  %v7962_v15 = vld [vmem:[%s11342_s1 + $0x7a4] ss:$8 sps:$4 sm:$0xff]  }
  0xec   : > { %2084 = vmatpush2.bf16.msra.mxu0 %v7921_v18  ;;  %v7960_v18 = vld [vmem:[%s11342_s1 + $0x7a0] ss:$8 sps:$4 sm:$0xff]  }
  0xed   : > { %2127 = vmatpush2.bf16.msra.mxu1 %v7924_v32  ;;  %2139 = vmatprep.subr.bf16.mxu0 %v7929_v37  ;;  %v7974_v32 = vld [vmem:[%s11342_s1 + $0x784] ss:$8 sps:$4 sm:$0xff]   ;;  %v1645_v37 = vrot.slane %v9142_v21, 1 }
  0xee   : > { %2718 = vmatprep.subr.bf16.mxu1 %v7932_v39  ;;  %v2295_v39 = vrot.slane %v8987_v6, 1 }
  0xef   : > { %2086 = vmatmul.mubr.bf16.vlgmr.msra.gmra.mxu0 %v1635_v46  ;;  %v1646_v46 = vrot.slane %v9154_v30, 1 }
  0xf0   : > { %2129 = vmatmul.mubr.bf16.vlgmr.msra.gmra.mxu1 %v1641_v47  ;;  %2140 = vmatpush1.bf16.msra.mxu0 %v7927_v41  ;;  %v2296_v41 = vrot.slane %v8990_v7, 2  ;;  %v7977_v47 = vld [vmem:[%s11342_s1 + $0x874] ss:$8 sps:$4 sm:$0xff]  }
  0xf1   : > { %2719 = vmatpush1.bf16.msra.mxu1 %v7930_v43  ;;  %2141 = vmatprep.subr.bf16.mxu0 %v7935_v48  ;;  %v2300_v43 = vrot.slane %v9682_v24, 1  ;;  %v7980_v48 = vld [vmem:[%s11342_s1 + $0x8f4] ss:$8 sps:$4 sm:$0xff]  }
  0xf2   : > { %2720 = vmatprep.subr.bf16.mxu1 %v7938_v49  ;;  %2171 = vmatprep.mubr.bf16.mxu0 %v8729_v62  ;;  %v7975_v49 = vld [vmem:[%s11342_s1 + $0x870] ss:$8 sps:$4 sm:$0xff]  }
  0xf3   : > { %2750 = vmatprep.mubr.bf16.mxu1 %v2285_v51  ;;  %v2302_v51 = vor.u32 %v2301_v44, %v2300_v43  ;;  %v8001_v43 = vld [vmem:[%s11342_s1 + $0x834] ss:$8 sps:$4 sm:$0xff]  }
  0xf4   : > { %2142 = vmatpush1.bf16.msra.mxu0 %v7933_v50  ;;  %v2297_v50 = vor.u32 %v2296_v41, %v2295_v39  ;;  %v7993_v39 = vld [vmem:[%s11342_s1 + $0x840] ss:$8 sps:$4 sm:$0xff]   ;;  %v8004_v44 = vld [vmem:[%s11342_s1 + $0x8b4] ss:$8 sps:$4 sm:$0xff]  }
  0xf5   : > { %2721 = vmatpush1.bf16.msra.mxu1 %v7936_v52  ;;  %2143 = vmatprep.subr.bf16.mxu0 %v7941_v55  ;;  %v1647_v52 = vsel %vm1632_vm1, %v1645_v37, %v1646_v46  ;;  %v7978_v55 = vld [vmem:[%s11342_s1 + $0x8f0] ss:$8 sps:$4 sm:$0xff]   ;;  %v7996_v41 = vld [vmem:[%s11342_s1 + $0x8c0] ss:$8 sps:$4 sm:$0xff]  }
  0xf6   : > { %2722 = vmatprep.subr.bf16.mxu1 %v7944_v56  ;;  %v7983_v56 = vld [vmem:[%s11342_s1 + $0x864] ss:$8 sps:$4 sm:$0xff]   ;;  %v8002_v46 = vld [vmem:[%s11342_s1 + $0x8b0] ss:$8 sps:$4 sm:$0xff]  }
  0xf8   : > { %2144 = vmatpush1.bf16.msra.mxu0 %v7939_v57  ;;  %v7986_v57 = vld [vmem:[%s11342_s1 + $0x8e4] ss:$8 sps:$4 sm:$0xff]  }
  0xf9   : > { %2723 = vmatpush1.bf16.msra.mxu1 %v7942_v60  ;;  %2145 = vmatprep.subr.bf16.mxu0 %v7947_v61 }
  0xfa   : > { %2724 = vmatprep.subr.bf16.mxu1 %v7950_v63  ;;  %v7981_v63 = vld [vmem:[%s11342_s1 + $0x860] ss:$8 sps:$4 sm:$0xff]  }
  0xfc   : > { %2146 = vmatpush1.bf16.msra.mxu0 %v7945_v3  ;;  %v2303_v3 = vsel %vm2267_vm2, %v2297_v50, %v2302_v51  ;;  %v9785_v50 = vshrl.u32 %v9016_v22, 16  ;;  %v8008_v51 = vld [vmem:[%s11342_s1 + $0x8a0] ss:$8 sps:$4 sm:$0xff]  }
  0xfd   : > { %2725 = vmatpush1.bf16.msra.mxu1 %v7948_v4  ;;  %2147 = vmatprep.subr.bf16.mxu0 %v7953_v5  ;;  %v7984_v5 = vld [vmem:[%s11342_s1 + $0x8e0] ss:$8 sps:$4 sm:$0xff]  }
  0xfe   : > { %2726 = vmatprep.subr.bf16.mxu1 %v7956_v9  ;;  %v7989_v9 = vld [vmem:[%s11342_s1 + $0x854] ss:$8 sps:$4 sm:$0xff]  }
 0x100   : > { %2148 = vmatpush1.bf16.msra.mxu0 %v7951_v10 }
 0x101   : > { %2727 = vmatpush1.bf16.msra.mxu1 %v7954_v12  ;;  %2149 = vmatprep.subr.bf16.mxu0 %v7959_v14  ;;  %v7992_v14 = vld [vmem:[%s11342_s1 + $0x8d4] ss:$8 sps:$4 sm:$0xff]  }
 0x102   : > { %2728 = vmatprep.subr.bf16.mxu1 %v7962_v15 }
 0x104   : > { %2150 = vmatpush1.bf16.msra.mxu0 %v7957_v16 }
 0x105   : > { %2729 = vmatpush1.bf16.msra.mxu1 %v7960_v18  ;;  %2151 = vmatprep.subr.bf16.mxu0 %v7965_v19  ;;  %v7987_v19 = vld [vmem:[%s11342_s1 + $0x850] ss:$8 sps:$4 sm:$0xff]  }
 0x106   : > { %2730 = vmatprep.subr.bf16.mxu1 %v7968_v20 }
 0x108   : > { %2152 = vmatpush1.bf16.msra.mxu0 %v7963_v23  ;;  %v7990_v23 = vld [vmem:[%s11342_s1 + $0x8d0] ss:$8 sps:$4 sm:$0xff]  }
 0x109   : > { %2731 = vmatpush1.bf16.msra.mxu1 %v7966_v28  ;;  %2153 = vmatprep.subr.bf16.mxu0 %v7971_v29  ;;  %v7995_v28 = vld [vmem:[%s11342_s1 + $0x844] ss:$8 sps:$4 sm:$0xff]  }
 0x10a   : > { %2732 = vmatprep.subr.bf16.mxu1 %v7974_v32 }
 0x10c   : > { %2154 = vmatpush1.bf16.msra.mxu0 %v7969_v35  ;;  %v7998_v35 = vld [vmem:[%s11342_s1 + $0x8c4] ss:$8 sps:$4 sm:$0xff]  }
 0x10d   : > { %2733 = vmatpush1.bf16.msra.mxu1 %v7972_v45  ;;  %2761 = vmatprep.subr.bf16.mxu0 %v7980_v48  ;;  %v7999_v45 = vld [vmem:[%s11342_s1 + $0x830] ss:$8 sps:$4 sm:$0xff]   ;;  %v8010_v48 = vld [vmem:[%s11342_s1 + $0x8a4] ss:$8 sps:$4 sm:$0xff]  }
 0x10e   : > { %2734 = vmatprep.subr.bf16.mxu1 %v7977_v47  ;;  %v8007_v47 = vld [vmem:[%s11342_s1 + $0x824] ss:$8 sps:$4 sm:$0xff]  }
 0x10f   : > { %v917_v60 = vpop.f32.mrf.mxu0  ;;  %2172 = vmatmul.mubr.bf16.vlgmr.msra.gmra.mxu0 %v1647_v52  ;;  %v8013_v52 = vld [vmem:[%s11342_s1 + $0x814] ss:$8 sps:$4 sm:$0xff]  }
 0x110   : > { %v960_v61 = vpop.f32.mrf.mxu1  ;;  %2762 = vmatpush1.bf16.msra.mxu0 %v7978_v55  ;;  %2793 = vmatprep.mubr.bf16.mxu0 %v2303_v3  ;;  %v8016_v55 = vld [vmem:[%s11342_s1 + $0x894] ss:$8 sps:$4 sm:$0xff]   ;;  %v2274_v3 = vrot.slane %v9047_v34, 2 }
 0x111   : > { %v9728_v4 = vadd.f32 %v960_v61, %v917_v60  ;;  %2735 = vmatpush2.bf16.msra.mxu1 %v7975_v49  ;;  %v919_v10 = vpop.f32.mrf.mxu0  ;;  %2763 = vmatprep.subr.bf16.mxu0 %v7986_v57  ;;  %v8005_v49 = vld [vmem:[%s11342_s1 + $0x820] ss:$8 sps:$4 sm:$0xff]   ;;  %v2269_v57 = vrot.slane %v9023_v25, 2  ;;  %v2273_v60 = vrot.slane %v9785_v50, 1  ;;  %v8011_v61 = vld [vmem:[%s11342_s1 + $0x810] ss:$8 sps:$4 sm:$0xff]  }
 0x112   : > { %v962_v12 = vpop.f32.mrf.mxu1  ;;  %2736 = vmatprep.subr.bf16.mxu1 %v7983_v56  ;;  %v2268_v56 = vrot.slane %v9044_v33, 1 }
 0x113   : > { %v9739_v15 = vadd.f32 %v962_v12, %v919_v10  ;;  %v921_v16 = vpop.f32.mrf.mxu0  ;;  %v8017_v10 = vld [vmem:[%s11342_s1 + $0x800] ss:$8 sps:$4 sm:$0xff]  }
 0x114   : > { %v964_v18 = vpop.f32.mrf.mxu1  ;;  %2764 = vmatpush1.bf16.msra.mxu0 %v7984_v5  ;;  %v8019_v5 = vld [vmem:[%s11342_s1 + $0x804] ss:$8 sps:$4 sm:$0xff]   ;;  %v8020_v12 = vld [vmem:[%s11342_s1 + $0x880] ss:$8 sps:$4 sm:$0xff]  }
 0x115   : > { %v9744_v20 = vadd.f32 %v964_v18, %v921_v16  ;;  %2737 = vmatpush2.bf16.msra.mxu1 %v7981_v63  ;;  %v923_v29 = vpop.f32.mrf.mxu0  ;;  %2765 = vmatprep.subr.bf16.mxu0 %v7992_v14  ;;  %v8014_v63 = vld [vmem:[%s11342_s1 + $0x890] ss:$8 sps:$4 sm:$0xff]   ;;  %v2270_v14 = vor.u32 %v2269_v57, %v2268_v56  ;;  %v2275_v16 = vor.u32 %v2274_v3, %v2273_v60  ;;  %v8025_v18 = vld [vmem:[%s11342_s1 + $0x974] ss:$8 sps:$4 sm:$0xff]   ;;  %v8046_v56 = vld [vmem:[%s11342_s1 + $0x9c4] ss:$8 sps:$4 sm:$0xff]  }
 0x116   : > { %v966_v32 = vpop.f32.mrf.mxu1  ;;  %2738 = vmatprep.subr.bf16.mxu1 %v7989_v9  ;;  %v8022_v9 = vld [vmem:[%s11342_s1 + $0x884] ss:$8 sps:$4 sm:$0xff]   ;;  %v8044_v60 = vld [vmem:[%s11342_s1 + $0x9c0] ss:$8 sps:$4 sm:$0xff]   ;;  %v8050_v3 = vld [vmem:[%s11342_s1 + $0x9b0] ss:$8 sps:$4 sm:$0xff]  }
 0x117   : > { %v9755_v37 = vadd.f32 %v966_v32, %v923_v29  ;;  %v2276_v29 = vsel %vm2267_vm2, %v2270_v14, %v2275_v16  ;;  %v8031_v32 = vld [vmem:[%s11342_s1 + $0x964] ss:$8 sps:$4 sm:$0xff]   ;;  %v8056_v14 = vld [vmem:[%s11342_s1 + $0x9a0] ss:$8 sps:$4 sm:$0xff]   ;;  %v9908_v16 = vshrl.u32 %v9154_v30, 16 }
 0x118   : > { %2766 = vmatpush1.bf16.msra.mxu0 %v7990_v23  ;;  %v8023_v23 = vld [vmem:[%s11342_s1 + $0x970] ss:$8 sps:$4 sm:$0xff]  }
 0x119   : > { %2739 = vmatpush2.bf16.msra.mxu1 %v7987_v19  ;;  %2767 = vmatprep.subr.bf16.mxu0 %v7998_v35  ;;  %v8028_v19 = vld [vmem:[%s11342_s1 + $0x9f4] ss:$8 sps:$4 sm:$0xff]   ;;  %v8034_v35 = vld [vmem:[%s11342_s1 + $0x9e4] ss:$8 sps:$4 sm:$0xff]  }
 0x11a   : > { %2740 = vmatprep.subr.bf16.mxu1 %v7995_v28  ;;  %v8026_v28 = vld [vmem:[%s11342_s1 + $0x9f0] ss:$8 sps:$4 sm:$0xff]  }
 0x11c   : > { %2768 = vmatpush1.bf16.msra.mxu0 %v7996_v41  ;;  %v8032_v41 = vld [vmem:[%s11342_s1 + $0x9e0] ss:$8 sps:$4 sm:$0xff]  }
 0x11d   : > { %2741 = vmatpush2.bf16.msra.mxu1 %v7993_v39  ;;  %2769 = vmatprep.subr.bf16.mxu0 %v8004_v44  ;;  %v8029_v39 = vld [vmem:[%s11342_s1 + $0x960] ss:$8 sps:$4 sm:$0xff]  }
 0x11e   : > { %2742 = vmatprep.subr.bf16.mxu1 %v8001_v43 }
 0x120   : > { %2770 = vmatpush1.bf16.msra.mxu0 %v8002_v46  ;;  %v8037_v46 = vld [vmem:[%s11342_s1 + $0x954] ss:$8 sps:$4 sm:$0xff]  }
 0x121   : > { %2743 = vmatpush2.bf16.msra.mxu1 %v7999_v45  ;;  %2771 = vmatprep.subr.bf16.mxu0 %v8010_v48 }
 0x122   : > { %2744 = vmatprep.subr.bf16.mxu1 %v8007_v47  ;;  %v8040_v47 = vld [vmem:[%s11342_s1 + $0x9d4] ss:$8 sps:$4 sm:$0xff]  }
 0x124   : > { %2772 = vmatpush1.bf16.msra.mxu0 %v8008_v51 }
 0x125   : > { %2745 = vmatpush2.bf16.msra.mxu1 %v8005_v49  ;;  %2773 = vmatprep.subr.bf16.mxu0 %v8016_v55  ;;  %v8038_v49 = vld [vmem:[%s11342_s1 + $0x9d0] ss:$8 sps:$4 sm:$0xff]  }
 0x126   : > { %2746 = vmatprep.subr.bf16.mxu1 %v8013_v52 }
 0x128   : > { %2774 = vmatpush1.bf16.msra.mxu0 %v8014_v63  ;;  %v8047_v63 = vld [vmem:[%s11342_s1 + $0x930] ss:$8 sps:$4 sm:$0xff]  }
 0x129   : > { %2747 = vmatpush2.bf16.msra.mxu1 %v8011_v61  ;;  %2775 = vmatprep.subr.bf16.mxu0 %v8022_v9  ;;  %v8049_v61 = vld [vmem:[%s11342_s1 + $0x934] ss:$8 sps:$4 sm:$0xff]   ;;  %v8058_v9 = vld [vmem:[%s11342_s1 + $0x9a4] ss:$8 sps:$4 sm:$0xff]  }
 0x12a   : > { %2748 = vmatprep.subr.bf16.mxu1 %v8019_v5  ;;  %v8055_v5 = vld [vmem:[%s11342_s1 + $0x924] ss:$8 sps:$4 sm:$0xff]  }
 0x12c   : > { %2776 = vmatpush1.bf16.msra.mxu0 %v8020_v12  ;;  %v8053_v12 = vld [vmem:[%s11342_s1 + $0x920] ss:$8 sps:$4 sm:$0xff]  }
 0x12d   : > { %2749 = vmatpush2.bf16.msra.mxu1 %v8017_v10  ;;  %2777 = vmatprep.subr.bf16.mxu0 %v8025_v18  ;;  %v9899_v10 = vshrl.u32 %v9025_v26, 16  ;;  %v8061_v18 = vld [vmem:[%s11342_s1 + $0x914] ss:$8 sps:$4 sm:$0xff]  }
 0x12e   : > { %2804 = vmatprep.subr.bf16.mxu1 %v8028_v19  ;;  %v8064_v19 = vld [vmem:[%s11342_s1 + $0x994] ss:$8 sps:$4 sm:$0xff]  }
 0x12f   : > { %v1003_v43 = vpop.f32.mrf.mxu0 }
 0x130   : > { %2751 = vmatmul.mubr.bf16.vlgmr.msra.gmra.mxu1 %v2276_v29  ;;  %v9844_v44 = vadd.f32 %v1003_v43, %v9728_v4  ;;  %2778 = vmatpush2.bf16.msra.mxu0 %v8023_v23  ;;  %v8035_v4 = vld [vmem:[%s11342_s1 + $0x950] ss:$8 sps:$4 sm:$0xff]   ;;  %v2286_v23 = vrot.slane %v9051_v36, 1  ;;  %v2291_v29 = vrot.slane %v9899_v10, 1 }
 0x131   : > { %2805 = vmatpush1.bf16.msra.mxu1 %v8026_v28  ;;  %v1005_v45 = vpop.f32.mrf.mxu0  ;;  %2779 = vmatprep.subr.bf16.mxu0 %v8031_v32  ;;  %v2287_v28 = vrot.slane %v9028_v27, 2  ;;  %v2292_v32 = vrot.slane %v9055_v38, 2  ;;  %v8059_v43 = vld [vmem:[%s11342_s1 + $0x910] ss:$8 sps:$4 sm:$0xff]  }
 0x132   : > { %2806 = vmatprep.subr.bf16.mxu1 %v8034_v35  ;;  %v9853_v48 = vadd.f32 %v1005_v45, %v9739_v15  ;;  %2836 = vmatprep.mubr.bf16.mxu1 %v8729_v62  ;;  %v8043_v15 = vld [vmem:[%s11342_s1 + $0x944] ss:$8 sps:$4 sm:$0xff]   ;;  %v2304_v35 = vrot.slane %v9172_v40, 1  ;;  %v8062_v45 = vld [vmem:[%s11342_s1 + $0x990] ss:$8 sps:$4 sm:$0xff]  }
 0x133   : > { %v1007_v51 = vpop.f32.mrf.mxu0 }
 0x134   : > { %v9863_v52 = vadd.f32 %v1007_v51, %v9744_v20  ;;  %2780 = vmatpush2.bf16.msra.mxu0 %v8029_v39  ;;  %v8041_v20 = vld [vmem:[%s11342_s1 + $0x940] ss:$8 sps:$4 sm:$0xff]   ;;  %v2305_v39 = vrot.slane %v9157_v31, 2 }
 0x135   : > { %2807 = vmatpush1.bf16.msra.mxu1 %v8032_v41  ;;  %v1009_v55 = vpop.f32.mrf.mxu0  ;;  %2781 = vmatprep.subr.bf16.mxu0 %v8037_v46  ;;  %v2310_v41 = vrot.slane %v9176_v42, 2  ;;  %v2309_v46 = vrot.slane %v9908_v16, 1  ;;  %v8065_v51 = vld [vmem:[%s11342_s1 + $0x900] ss:$8 sps:$4 sm:$0xff]  }
 0x136   : > { %2808 = vmatprep.subr.bf16.mxu1 %v8040_v47  ;;  %v9872_v57 = vadd.f32 %v1009_v55, %v9755_v37  ;;  %v8052_v37 = vld [vmem:[%s11342_s1 + $0x9b4] ss:$8 sps:$4 sm:$0xff]   ;;  %v8067_v47 = vld [vmem:[%s11342_s1 + $0x904] ss:$8 sps:$4 sm:$0xff]   ;;  %v8068_v55 = vld [vmem:[%s11342_s1 + $0x980] ss:$8 sps:$4 sm:$0xff]  }
 0x138   : > { %2782 = vmatpush2.bf16.msra.mxu0 %v8035_v4  ;;  %v8070_v4 = vld [vmem:[%s11342_s1 + $0x984] ss:$8 sps:$4 sm:$0xff]  }
 0x139   : > { %2809 = vmatpush1.bf16.msra.mxu1 %v8038_v49  ;;  %2783 = vmatprep.subr.bf16.mxu0 %v8043_v15  ;;  %v2288_v49 = vor.u32 %v2287_v28, %v2286_v23  ;;  %v2293_v15 = vor.u32 %v2292_v32, %v2291_v29  ;;  %v8082_v23 = vld [vmem:[%s11342_s1 + $0xb64] ss:$8 sps:$4 sm:$0xff]   ;;  %v8077_v28 = vld [vmem:[%s11342_s1 + $0xa60] ss:$8 sps:$4 sm:$0xff]  }
 0x13a   : > { %2810 = vmatprep.subr.bf16.mxu1 %v8046_v56  ;;  %v2306_v56 = vor.u32 %v2305_v39, %v2304_v35  ;;  %v8080_v29 = vld [vmem:[%s11342_s1 + $0xb60] ss:$8 sps:$4 sm:$0xff]  }
 0x13c   : > { %2784 = vmatpush2.bf16.msra.mxu0 %v8041_v20  ;;  %v2311_v20 = vor.u32 %v2310_v41, %v2309_v46  ;;  %v8088_v46 = vld [vmem:[%s11342_s1 + $0xb54] ss:$8 sps:$4 sm:$0xff]  }
 0x13d   : > { %2811 = vmatpush1.bf16.msra.mxu1 %v8044_v60  ;;  %2785 = vmatprep.subr.bf16.mxu0 %v8049_v61  ;;  %v8073_v60 = vld [vmem:[%s11342_s1 + $0xa74] ss:$8 sps:$4 sm:$0xff]  }
 0x13e   : > { %2812 = vmatprep.subr.bf16.mxu1 %v8052_v37  ;;  %v8076_v61 = vld [vmem:[%s11342_s1 + $0xb74] ss:$8 sps:$4 sm:$0xff]   ;;  %v8071_v37 = vld [vmem:[%s11342_s1 + $0xa70] ss:$8 sps:$4 sm:$0xff]  }
 0x140   : > { %2786 = vmatpush2.bf16.msra.mxu0 %v8047_v63  ;;  %v8074_v63 = vld [vmem:[%s11342_s1 + $0xb70] ss:$8 sps:$4 sm:$0xff]  }
 0x141   : > { %2813 = vmatpush1.bf16.msra.mxu1 %v8050_v3  ;;  %2787 = vmatprep.subr.bf16.mxu0 %v8055_v5  ;;  %v2936_v3 = vrot.slane %v8951_v53, 2  ;;  %v2937_v5 = vrot.slane %v8953_v54, 2 }
 0x142   : > { %2814 = vmatprep.subr.bf16.mxu1 %v8058_v9  ;;  %v2942_v9 = vrot.slane %v8960_v58, 2 }
 0x143   : > { %v2938_v35 = vsel %vm2932_vm3, %v2936_v3, %v2937_v5  ;;  %v8106_v3 = vld [vmem:[%s11342_s1 + $0xb24] ss:$8 sps:$4 sm:$0xff]   ;;  %v8101_v5 = vld [vmem:[%s11342_s1 + $0xa20] ss:$8 sps:$4 sm:$0xff]  }
 0x144   : > { %2788 = vmatpush2.bf16.msra.mxu0 %v8053_v12  ;;  %v2943_v12 = vrot.slane %v8962_v59, 2 }
 0x145   : > { %2815 = vmatpush1.bf16.msra.mxu1 %v8056_v14  ;;  %2789 = vmatprep.subr.bf16.mxu0 %v8061_v18  ;;  %v2294_v14 = vsel %vm2267_vm2, %v2288_v49, %v2293_v15  ;;  %v2312_v18 = vsel %vm2267_vm2, %v2306_v56, %v2311_v20  ;;  %v8094_v15 = vld [vmem:[%s11342_s1 + $0xb44] ss:$8 sps:$4 sm:$0xff]   ;;  %v8092_v20 = vld [vmem:[%s11342_s1 + $0xb40] ss:$8 sps:$4 sm:$0xff]  }
 0x146   : > { %2816 = vmatprep.subr.bf16.mxu1 %v8064_v19  ;;  %v8079_v19 = vld [vmem:[%s11342_s1 + $0xa64] ss:$8 sps:$4 sm:$0xff]   ;;  %v2944_v39 = vsel %vm2932_vm3, %v2942_v9, %v2943_v12  ;;  %v8104_v9 = vld [vmem:[%s11342_s1 + $0xb20] ss:$8 sps:$4 sm:$0xff]   ;;  %v8109_v12 = vld [vmem:[%s11342_s1 + $0xa14] ss:$8 sps:$4 sm:$0xff]  }
 0x148   : > { %2790 = vmatpush2.bf16.msra.mxu0 %v8059_v43 }
 0x149   : > { %2817 = vmatpush1.bf16.msra.mxu1 %v8062_v45  ;;  %2791 = vmatprep.subr.bf16.mxu0 %v8067_v47  ;;  %v8085_v45 = vld [vmem:[%s11342_s1 + $0xa54] ss:$8 sps:$4 sm:$0xff]  }
 0x14a   : > { %2818 = vmatprep.subr.bf16.mxu1 %v8070_v4  ;;  %v8086_v4 = vld [vmem:[%s11342_s1 + $0xb50] ss:$8 sps:$4 sm:$0xff]  }
 0x14c   : > { %2792 = vmatpush2.bf16.msra.mxu0 %v8065_v51 }
 0x14d   : > { %2819 = vmatpush1.bf16.msra.mxu1 %v8068_v55  ;;  %3353 = vmatprep.subr.bf16.mxu0 %v8073_v60  ;;  %v8097_v60 = vld [vmem:[%s11342_s1 + $0xa34] ss:$8 sps:$4 sm:$0xff]  }
 0x14e   : > { %3396 = vmatprep.subr.bf16.mxu1 %v8076_v61  ;;  %v8095_v61 = vld [vmem:[%s11342_s1 + $0xa30] ss:$8 sps:$4 sm:$0xff]  }
 0x14f   : > { %2794 = vmatmul.mubr.bf16.vlgmr.msra.gmra.mxu0 %v2294_v14  ;;  %v8112_v14 = vld [vmem:[%s11342_s1 + $0xb14] ss:$8 sps:$4 sm:$0xff]  }
 0x150   : > { %v1446_v32 = vpop.f32.mrf.mxu1  ;;  %2837 = vmatmul.mubr.bf16.vlgmr.msra.gmra.mxu1 %v2312_v18  ;;  %3354 = vmatpush1.bf16.msra.mxu0 %v8071_v37  ;;  %v8098_v37 = vld [vmem:[%s11342_s1 + $0xb30] ss:$8 sps:$4 sm:$0xff]  }
 0x151   : > { %v9975_v41 = vadd.f32 %v1446_v32, %v9844_v44  ;;  %3397 = vmatpush1.bf16.msra.mxu1 %v8074_v63  ;;  %3355 = vmatprep.subr.bf16.mxu0 %v8079_v19  ;;  %v8083_v44 = vld [vmem:[%s11342_s1 + $0xa50] ss:$8 sps:$4 sm:$0xff]   ;;  %v8103_v63 = vld [vmem:[%s11342_s1 + $0xa24] ss:$8 sps:$4 sm:$0xff]   ;;  %v8116_v32 = vld [vmem:[%s11342_s1 + $0xb00] ss:$8 sps:$4 sm:$0xff]  }
 0x152   : > { %v1448_v43 = vpop.f32.mrf.mxu1  ;;  %3398 = vmatprep.subr.bf16.mxu1 %v8082_v23  ;;  %3385 = vmatprep.mubr.bf16.mxu0 %v2938_v35  ;;  %v8107_v18 = vld [vmem:[%s11342_s1 + $0xa10] ss:$8 sps:$4 sm:$0xff]   ;;  %v8115_v23 = vld [vmem:[%s11342_s1 + $0xa04] ss:$8 sps:$4 sm:$0xff]   ;;  %v8121_v35 = vld [vmem:[%s11342_s1 + $0xaf4] ss:$8 sps:$4 sm:$0xff]  }
 0x153   : > { %v9984_v47 = vadd.f32 %v1448_v43, %v9853_v48  ;;  %3428 = vmatprep.mubr.bf16.mxu1 %v2944_v39  ;;  %v8091_v48 = vld [vmem:[%s11342_s1 + $0xa44] ss:$8 sps:$4 sm:$0xff]   ;;  %v8110_v19 = vld [vmem:[%s11342_s1 + $0xb10] ss:$8 sps:$4 sm:$0xff]   ;;  %v8124_v39 = vld [vmem:[%s11342_s1 + $0xbf4] ss:$8 sps:$4 sm:$0xff]  }
 0x154   : > { %v1450_v49 = vpop.f32.mrf.mxu1  ;;  %3356 = vmatpush1.bf16.msra.mxu0 %v8077_v28  ;;  %v8118_v28 = vld [vmem:[%s11342_s1 + $0xb04] ss:$8 sps:$4 sm:$0xff]   ;;  %v8119_v43 = vld [vmem:[%s11342_s1 + $0xaf0] ss:$8 sps:$4 sm:$0xff]  }
 0x155   : > { %v9993_v51 = vadd.f32 %v1450_v49, %v9863_v52  ;;  %3399 = vmatpush1.bf16.msra.mxu1 %v8080_v29  ;;  %3357 = vmatprep.subr.bf16.mxu0 %v8085_v45  ;;  %v8089_v52 = vld [vmem:[%s11342_s1 + $0xa40] ss:$8 sps:$4 sm:$0xff]   ;;  %v8122_v45 = vld [vmem:[%s11342_s1 + $0xbf0] ss:$8 sps:$4 sm:$0xff]  }
 0x156   : > { %v1452_v55 = vpop.f32.mrf.mxu1  ;;  %3400 = vmatprep.subr.bf16.mxu1 %v8088_v46  ;;  %v8113_v29 = vld [vmem:[%s11342_s1 + $0xa00] ss:$8 sps:$4 sm:$0xff]   ;;  %v8127_v46 = vld [vmem:[%s11342_s1 + $0xae4] ss:$8 sps:$4 sm:$0xff]  }
 0x157   : > { %v10002_v56 = vadd.f32 %v1452_v55, %v9872_v57  ;;  %v8100_v57 = vld [vmem:[%s11342_s1 + $0xb34] ss:$8 sps:$4 sm:$0xff]  }
 0x158   : > { %3358 = vmatpush1.bf16.msra.mxu0 %v8083_v44  ;;  %v8130_v44 = vld [vmem:[%s11342_s1 + $0xbe4] ss:$8 sps:$4 sm:$0xff]  }
 0x159   : > { %3401 = vmatpush1.bf16.msra.mxu1 %v8086_v4  ;;  %3359 = vmatprep.subr.bf16.mxu0 %v8091_v48  ;;  %v8125_v48 = vld [vmem:[%s11342_s1 + $0xae0] ss:$8 sps:$4 sm:$0xff]  }
 0x15a   : > { %3402 = vmatprep.subr.bf16.mxu1 %v8094_v15  ;;  %v8128_v15 = vld [vmem:[%s11342_s1 + $0xbe0] ss:$8 sps:$4 sm:$0xff]  }
 0x15c   : > { %3360 = vmatpush1.bf16.msra.mxu0 %v8089_v52 }
 0x15d   : > { %3403 = vmatpush1.bf16.msra.mxu1 %v8092_v20  ;;  %3361 = vmatprep.subr.bf16.mxu0 %v8097_v60  ;;  %v8133_v60 = vld [vmem:[%s11342_s1 + $0xad4] ss:$8 sps:$4 sm:$0xff]  }
 0x15e   : > { %3404 = vmatprep.subr.bf16.mxu1 %v8100_v57 }
 0x160   : > { %3362 = vmatpush1.bf16.msra.mxu0 %v8095_v61 }
 0x161   : > { %3405 = vmatpush1.bf16.msra.mxu1 %v8098_v37  ;;  %3363 = vmatprep.subr.bf16.mxu0 %v8103_v63 }
 0x162   : > { %3406 = vmatprep.subr.bf16.mxu1 %v8106_v3 }
 0x164   : > { %3364 = vmatpush1.bf16.msra.mxu0 %v8101_v5 }
 0x165   : > { %3407 = vmatpush1.bf16.msra.mxu1 %v8104_v9  ;;  %3365 = vmatprep.subr.bf16.mxu0 %v8109_v12  ;;  %v8131_v9 = vld [vmem:[%s11342_s1 + $0xad0] ss:$8 sps:$4 sm:$0xff]  }
 0x166   : > { %3408 = vmatprep.subr.bf16.mxu1 %v8112_v14  ;;  %v8134_v12 = vld [vmem:[%s11342_s1 + $0xbd0] ss:$8 sps:$4 sm:$0xff]  }
 0x168   : > { %3366 = vmatpush1.bf16.msra.mxu0 %v8107_v18  ;;  %v8142_v18 = vld [vmem:[%s11342_s1 + $0xbc4] ss:$8 sps:$4 sm:$0xff]  }
 0x169   : > { %3409 = vmatpush1.bf16.msra.mxu1 %v8110_v19  ;;  %3367 = vmatprep.subr.bf16.mxu0 %v8115_v23 }
 0x16a   : > { %3410 = vmatprep.subr.bf16.mxu1 %v8118_v28 }
 0x16c   : > { %3368 = vmatpush1.bf16.msra.mxu0 %v8113_v29  ;;  %v8137_v29 = vld [vmem:[%s11342_s1 + $0xac0] ss:$8 sps:$4 sm:$0xff]  }
 0x16d   : > { %3411 = vmatpush1.bf16.msra.mxu1 %v8116_v32  ;;  %3369 = vmatprep.subr.bf16.mxu0 %v8121_v35  ;;  %v8140_v32 = vld [vmem:[%s11342_s1 + $0xbc0] ss:$8 sps:$4 sm:$0xff]   ;;  %v8148_v35 = vld [vmem:[%s11342_s1 + $0xbb4] ss:$8 sps:$4 sm:$0xff]  }
 0x16e   : > { %3412 = vmatprep.subr.bf16.mxu1 %v8124_v39  ;;  %v8143_v39 = vld [vmem:[%s11342_s1 + $0xab0] ss:$8 sps:$4 sm:$0xff]  }
 0x16f   : > { %v1489_v4 = vpop.f32.mrf.mxu0 }
 0x170   : > { %v1532_v49 = vpop.f32.mrf.mxu1  ;;  %v1490_v55 = vadd.f32 %v1489_v4, %v9975_v41  ;;  %3370 = vmatpush2.bf16.msra.mxu0 %v8119_v43  ;;  %v8136_v41 = vld [vmem:[%s11342_s1 + $0xbd4] ss:$8 sps:$4 sm:$0xff]   ;;  %v8146_v43 = vld [vmem:[%s11342_s1 + $0xbb0] ss:$8 sps:$4 sm:$0xff]   ;;  %v8152_v4 = vld [vmem:[%s11342_s1 + $0xba0] ss:$8 sps:$4 sm:$0xff]  }
 0x171   : > { %3413 = vmatpush2.bf16.msra.mxu1 %v8122_v45  ;;  %v1491_v52 = vpop.f32.mrf.mxu0  ;;  %3371 = vmatprep.subr.bf16.mxu0 %v8127_v46  ;;  %v8151_v45 = vld [vmem:[%s11342_s1 + $0xaa4] ss:$8 sps:$4 sm:$0xff]  }
 0x172   : > { %v1534_v20 = vpop.f32.mrf.mxu1  ;;  %3414 = vmatprep.subr.bf16.mxu1 %v8130_v44  ;;  %v1492_v57 = vadd.f32 %v1491_v52, %v9984_v47  ;;  %v10090_v61 = vadd.f32 %v1532_v49, %v1490_v55  ;;  %v8154_v46 = vld [vmem:[%s11342_s1 + $0xba4] ss:$8 sps:$4 sm:$0xff]   ;;  %v8149_v44 = vld [vmem:[%s11342_s1 + $0xaa0] ss:$8 sps:$4 sm:$0xff]   ;;  %v8157_v49 = vld [vmem:[%s11342_s1 + $0xa94] ss:$8 sps:$4 sm:$0xff]  }
 0x173   : > { %v1493_v37 = vpop.f32.mrf.mxu0  ;;  %v8160_v55 = vld [vmem:[%s11342_s1 + $0xb94] ss:$8 sps:$4 sm:$0xff]   ;;  %v8163_v52 = vld [vmem:[%s11342_s1 + $0xa84] ss:$8 sps:$4 sm:$0xff]  }
 0x174   : > { %v1536_v63 = vpop.f32.mrf.mxu1  ;;  %v1494_v3 = vadd.f32 %v1493_v37, %v9993_v51  ;;  %v10093_v5 = vadd.f32 %v1534_v20, %v1492_v57  ;;  %3372 = vmatpush2.bf16.msra.mxu0 %v8125_v48  ;;  %v8139_v51 = vld [vmem:[%s11342_s1 + $0xac4] ss:$8 sps:$4 sm:$0xff]   ;;  %v8155_v48 = vld [vmem:[%s11342_s1 + $0xa90] ss:$8 sps:$4 sm:$0xff]   ;;  %v3575_v57 = vrot.slane %v8973_v0, 2  ;;  %v3576_v37 = vrot.slane %v8976_v1, 3 }
 0x175   : > { %3415 = vmatpush2.bf16.msra.mxu1 %v8128_v15  ;;  %v1495_v14 = vpop.f32.mrf.mxu0  ;;  %3373 = vmatprep.subr.bf16.mxu0 %v8133_v60  ;;  %v8158_v15 = vld [vmem:[%s11342_s1 + $0xb90] ss:$8 sps:$4 sm:$0xff]   ;;  %v8166_v20 = vld [vmem:[%s11342_s1 + $0xb84] ss:$8 sps:$4 sm:$0xff]   ;;  %v8161_v60 = vld [vmem:[%s11342_s1 + $0xa80] ss:$8 sps:$4 sm:$0xff]  }
 0x176   : > { %v1538_v47 = vpop.f32.mrf.mxu1  ;;  %3416 = vmatprep.subr.bf16.mxu1 %v8136_v41  ;;  %v1496_v19 = vadd.f32 %v1495_v14, %v10002_v56  ;;  %v10108_v23 = vadd.f32 %v1536_v63, %v1494_v3  ;;  %v8145_v56 = vld [vmem:[%s11342_s1 + $0xab4] ss:$8 sps:$4 sm:$0xff]   ;;  %v2933_v41 = vrot.slane %v9001_v13, 2  ;;  %v3578_v63 = vrot.slane %v9571_v11, 2 }
 0x177   : > { %v3579_v3 = vrot.slane %v8979_v2, 3  ;;  %v2939_v14 = vrot.slane %v9006_v17, 2 }
 0x178   : > { %v10110_v28 = vadd.f32 %v1538_v47, %v1496_v19  ;;  %3374 = vmatpush2.bf16.msra.mxu0 %v8131_v9  ;;  %v8164_v9 = vld [vmem:[%s11342_s1 + $0xb80] ss:$8 sps:$4 sm:$0xff]   ;;  %v2940_v47 = vrot.slane %v9025_v26, 2  ;;  %v8167_v19 = vld [vmem:[%s11342_s1 + $0xc70] ss:$8 sps:$4 sm:$0xff]  }
 0x179   : > { %3417 = vmatpush2.bf16.msra.mxu1 %v8134_v12  ;;  %3375 = vmatprep.subr.bf16.mxu0 %v8139_v51  ;;  %v2934_v12 = vrot.slane %v9016_v22, 2  ;;  %v8169_v51 = vld [vmem:[%s11342_s1 + $0xc74] ss:$8 sps:$4 sm:$0xff]  }
 0x17a   : > { %3418 = vmatprep.subr.bf16.mxu1 %v8142_v18  ;;  %v8172_v18 = vld [vmem:[%s11342_s1 + $0xcf4] ss:$8 sps:$4 sm:$0xff]  }
 0x17c   : > { %3376 = vmatpush2.bf16.msra.mxu0 %v8137_v29  ;;  %v8170_v29 = vld [vmem:[%s11342_s1 + $0xcf0] ss:$8 sps:$4 sm:$0xff]  }
 0x17d   : > { %3419 = vmatpush2.bf16.msra.mxu1 %v8140_v32  ;;  %3377 = vmatprep.subr.bf16.mxu0 %v8145_v56  ;;  %v3577_v32 = vor.u32 %v3576_v37, %v3575_v57  ;;  %v3580_v56 = vor.u32 %v3579_v3, %v3578_v63  ;;  %v8193_v57 = vld [vmem:[%s11342_s1 + $0xc34] ss:$8 sps:$4 sm:$0xff]   ;;  %v8191_v63 = vld [vmem:[%s11342_s1 + $0xc30] ss:$8 sps:$4 sm:$0xff]  }
 0x17e   : > { %3420 = vmatprep.subr.bf16.mxu1 %v8148_v35  ;;  %v2935_v35 = vsel %vm2932_vm3, %v2933_v41, %v2934_v12  ;;  %v8188_v41 = vld [vmem:[%s11342_s1 + $0xcc0] ss:$8 sps:$4 sm:$0xff]   ;;  %v8196_v37 = vld [vmem:[%s11342_s1 + $0xcb4] ss:$8 sps:$4 sm:$0xff]   ;;  %v8194_v3 = vld [vmem:[%s11342_s1 + $0xcb0] ss:$8 sps:$4 sm:$0xff]  }
 0x17f   : > { %v8202_v12 = vld [vmem:[%s11342_s1 + $0xca4] ss:$8 sps:$4 sm:$0xff]  }
 0x180   : > { %3378 = vmatpush2.bf16.msra.mxu0 %v8143_v39  ;;  %v2941_v39 = vsel %vm2932_vm3, %v2939_v14, %v2940_v47  ;;  %v8197_v14 = vld [vmem:[%s11342_s1 + $0xc20] ss:$8 sps:$4 sm:$0xff]  }
 0x181   : > { %3421 = vmatpush2.bf16.msra.mxu1 %v8146_v43  ;;  %3379 = vmatprep.subr.bf16.mxu0 %v8151_v45  ;;  %v8175_v43 = vld [vmem:[%s11342_s1 + $0xc64] ss:$8 sps:$4 sm:$0xff]   ;;  %v8200_v47 = vld [vmem:[%s11342_s1 + $0xca0] ss:$8 sps:$4 sm:$0xff]  }
 0x182   : > { %3422 = vmatprep.subr.bf16.mxu1 %v8154_v46  ;;  %v8178_v45 = vld [vmem:[%s11342_s1 + $0xce4] ss:$8 sps:$4 sm:$0xff]   ;;  %v8173_v46 = vld [vmem:[%s11342_s1 + $0xc60] ss:$8 sps:$4 sm:$0xff]  }
 0x184   : > { %3380 = vmatpush2.bf16.msra.mxu0 %v8149_v44  ;;  %v8176_v44 = vld [vmem:[%s11342_s1 + $0xce0] ss:$8 sps:$4 sm:$0xff]  }
 0x185   : > { %3423 = vmatpush2.bf16.msra.mxu1 %v8152_v4  ;;  %3381 = vmatprep.subr.bf16.mxu0 %v8157_v49  ;;  %v3581_v4 = vsel %vm3567_vm4, %v3577_v32, %v3580_v56  ;;  %v8181_v49 = vld [vmem:[%s11342_s1 + $0xc54] ss:$8 sps:$4 sm:$0xff]   ;;  %v8211_v32 = vld [vmem:[%s11342_s1 + $0xc04] ss:$8 sps:$4 sm:$0xff]  }
 0x186   : > { %3424 = vmatprep.subr.bf16.mxu1 %v8160_v55  ;;  %v8184_v55 = vld [vmem:[%s11342_s1 + $0xcd4] ss:$8 sps:$4 sm:$0xff]   ;;  %v8214_v56 = vld [vmem:[%s11342_s1 + $0xc84] ss:$8 sps:$4 sm:$0xff]  }
 0x188   : > { %3382 = vmatpush2.bf16.msra.mxu0 %v8155_v48  ;;  %v8179_v48 = vld [vmem:[%s11342_s1 + $0xc50] ss:$8 sps:$4 sm:$0xff]  }
 0x189   : > { %3425 = vmatpush2.bf16.msra.mxu1 %v8158_v15  ;;  %3383 = vmatprep.subr.bf16.mxu0 %v8163_v52  ;;  %v8182_v15 = vld [vmem:[%s11342_s1 + $0xcd0] ss:$8 sps:$4 sm:$0xff]   ;;  %v8187_v52 = vld [vmem:[%s11342_s1 + $0xc44] ss:$8 sps:$4 sm:$0xff]  }
 0x18a   : > { %3426 = vmatprep.subr.bf16.mxu1 %v8166_v20  ;;  %v8190_v20 = vld [vmem:[%s11342_s1 + $0xcc4] ss:$8 sps:$4 sm:$0xff]  }
 0x18c   : > { %3384 = vmatpush2.bf16.msra.mxu0 %v8161_v60  ;;  %v8185_v60 = vld [vmem:[%s11342_s1 + $0xc40] ss:$8 sps:$4 sm:$0xff]  }
 0x18d   : > { %3427 = vmatpush2.bf16.msra.mxu1 %v8164_v9  ;;  %3439 = vmatprep.subr.bf16.mxu0 %v8169_v51  ;;  %v8199_v9 = vld [vmem:[%s11342_s1 + $0xc24] ss:$8 sps:$4 sm:$0xff]   ;;  %v8205_v51 = vld [vmem:[%s11342_s1 + $0xc14] ss:$8 sps:$4 sm:$0xff]  }
 0x18e   : > { %4008 = vmatprep.subr.bf16.mxu1 %v8172_v18  ;;  %v8208_v18 = vld [vmem:[%s11342_s1 + $0xc94] ss:$8 sps:$4 sm:$0xff]  }
 0x18f   : > { %3386 = vmatmul.mubr.bf16.vlgmr.msra.gmra.mxu0 %v2935_v35  ;;  %v8209_v35 = vld [vmem:[%s11342_s1 + $0xc00] ss:$8 sps:$4 sm:$0xff]  }
 0x190   : > { %3429 = vmatmul.mubr.bf16.vlgmr.msra.gmra.mxu1 %v2941_v39  ;;  %3440 = vmatpush1.bf16.msra.mxu0 %v8167_v19  ;;  %v8203_v19 = vld [vmem:[%s11342_s1 + $0xc10] ss:$8 sps:$4 sm:$0xff]   ;;  %v3589_v39 = vrot.slane %v8987_v6, 2 }
 0x191   : > { %4009 = vmatpush1.bf16.msra.mxu1 %v8170_v29  ;;  %3441 = vmatprep.subr.bf16.mxu0 %v8175_v43  ;;  %v8206_v29 = vld [vmem:[%s11342_s1 + $0xc90] ss:$8 sps:$4 sm:$0xff]   ;;  %v3590_v43 = vrot.slane %v8990_v7, 3 }
 0x192   : > { %4010 = vmatprep.subr.bf16.mxu1 %v8178_v45  ;;  %3471 = vmatprep.mubr.bf16.mxu0 %v8729_v62  ;;  %v3592_v45 = vrot.slane %v9682_v24, 2 }
 0x193   : > { %4040 = vmatprep.mubr.bf16.mxu1 %v3581_v4  ;;  %v2945_v4 = vrot.slane %v9142_v21, 2 }
 0x194   : > { %3442 = vmatpush1.bf16.msra.mxu0 %v8173_v46  ;;  %v3593_v46 = vrot.slane %v8993_v8, 3 }
 0x195   : > { %4011 = vmatpush1.bf16.msra.mxu1 %v8176_v44  ;;  %3443 = vmatprep.subr.bf16.mxu0 %v8181_v49  ;;  %v8212_v44 = vld [vmem:[%s11342_s1 + $0xc80] ss:$8 sps:$4 sm:$0xff]   ;;  %v2946_v49 = vrot.slane %v9154_v30, 2 }
 0x196   : > { %4012 = vmatprep.subr.bf16.mxu1 %v8184_v55  ;;  %v8217_v55 = vld [vmem:[%s11342_s1 + $0xd74] ss:$8 sps:$4 sm:$0xff]  }
 0x198   : > { %3444 = vmatpush1.bf16.msra.mxu0 %v8179_v48  ;;  %v8220_v48 = vld [vmem:[%s11342_s1 + $0xdf4] ss:$8 sps:$4 sm:$0xff]  }
 0x199   : > { %4013 = vmatpush1.bf16.msra.mxu1 %v8182_v15  ;;  %3445 = vmatprep.subr.bf16.mxu0 %v8187_v52  ;;  %v8215_v15 = vld [vmem:[%s11342_s1 + $0xd70] ss:$8 sps:$4 sm:$0xff]   ;;  %v3591_v52 = vor.u32 %v3590_v43, %v3589_v39 }
 0x19a   : > { %4014 = vmatprep.subr.bf16.mxu1 %v8190_v20  ;;  %v3594_v20 = vor.u32 %v3593_v46, %v3592_v45  ;;  %v8239_v39 = vld [vmem:[%s11342_s1 + $0xd30] ss:$8 sps:$4 sm:$0xff]   ;;  %v8247_v45 = vld [vmem:[%s11342_s1 + $0xd24] ss:$8 sps:$4 sm:$0xff]  }
 0x19b   : > { %v8242_v43 = vld [vmem:[%s11342_s1 + $0xdb0] ss:$8 sps:$4 sm:$0xff]   ;;  %v8250_v46 = vld [vmem:[%s11342_s1 + $0xda4] ss:$8 sps:$4 sm:$0xff]  }
 0x19c   : > { %3446 = vmatpush1.bf16.msra.mxu0 %v8185_v60  ;;  %v2947_v60 = vsel %vm2932_vm3, %v2945_v4, %v2946_v49  ;;  %v8248_v4 = vld [vmem:[%s11342_s1 + $0xda0] ss:$8 sps:$4 sm:$0xff]  }
 0x19d   : > { %4015 = vmatpush1.bf16.msra.mxu1 %v8188_v41  ;;  %3447 = vmatprep.subr.bf16.mxu0 %v8193_v57  ;;  %v8218_v41 = vld [vmem:[%s11342_s1 + $0xdf0] ss:$8 sps:$4 sm:$0xff]   ;;  %v8223_v57 = vld [vmem:[%s11342_s1 + $0xd64] ss:$8 sps:$4 sm:$0xff]  }
 0x19e   : > { %4016 = vmatprep.subr.bf16.mxu1 %v8196_v37  ;;  %v8226_v37 = vld [vmem:[%s11342_s1 + $0xde4] ss:$8 sps:$4 sm:$0xff]  }
 0x1a0   : > { %3448 = vmatpush1.bf16.msra.mxu0 %v8191_v63  ;;  %v3595_v63 = vsel %vm3567_vm4, %v3591_v52, %v3594_v20  ;;  %v8254_v52 = vld [vmem:[%s11342_s1 + $0xd90] ss:$8 sps:$4 sm:$0xff]   ;;  %v3568_v20 = vrot.slane %v9044_v33, 2 }
 0x1a1   : > { %4017 = vmatpush1.bf16.msra.mxu1 %v8194_v3  ;;  %3449 = vmatprep.subr.bf16.mxu0 %v8199_v9  ;;  %v8221_v3 = vld [vmem:[%s11342_s1 + $0xd60] ss:$8 sps:$4 sm:$0xff]  }
 0x1a2   : > { %4018 = vmatprep.subr.bf16.mxu1 %v8202_v12  ;;  %v8224_v9 = vld [vmem:[%s11342_s1 + $0xde0] ss:$8 sps:$4 sm:$0xff]   ;;  %v8229_v12 = vld [vmem:[%s11342_s1 + $0xd54] ss:$8 sps:$4 sm:$0xff]  }
 0x1a4   : > { %3450 = vmatpush1.bf16.msra.mxu0 %v8197_v14  ;;  %v8232_v14 = vld [vmem:[%s11342_s1 + $0xdd4] ss:$8 sps:$4 sm:$0xff]  }
 0x1a5   : > { %4019 = vmatpush1.bf16.msra.mxu1 %v8200_v47  ;;  %3451 = vmatprep.subr.bf16.mxu0 %v8205_v51  ;;  %v8227_v47 = vld [vmem:[%s11342_s1 + $0xd50] ss:$8 sps:$4 sm:$0xff]  }
 0x1a6   : > { %4020 = vmatprep.subr.bf16.mxu1 %v8208_v18  ;;  %v8230_v51 = vld [vmem:[%s11342_s1 + $0xdd0] ss:$8 sps:$4 sm:$0xff]   ;;  %v8235_v18 = vld [vmem:[%s11342_s1 + $0xd44] ss:$8 sps:$4 sm:$0xff]  }
 0x1a8   : > { %3452 = vmatpush1.bf16.msra.mxu0 %v8203_v19  ;;  %v8238_v19 = vld [vmem:[%s11342_s1 + $0xdc4] ss:$8 sps:$4 sm:$0xff]  }
 0x1a9   : > { %4021 = vmatpush1.bf16.msra.mxu1 %v8206_v29  ;;  %3453 = vmatprep.subr.bf16.mxu0 %v8211_v32  ;;  %v8233_v29 = vld [vmem:[%s11342_s1 + $0xd40] ss:$8 sps:$4 sm:$0xff]  }
 0x1aa   : > { %4022 = vmatprep.subr.bf16.mxu1 %v8214_v56  ;;  %v8236_v32 = vld [vmem:[%s11342_s1 + $0xdc0] ss:$8 sps:$4 sm:$0xff]   ;;  %v8241_v56 = vld [vmem:[%s11342_s1 + $0xd34] ss:$8 sps:$4 sm:$0xff]  }
 0x1ac   : > { %3454 = vmatpush1.bf16.msra.mxu0 %v8209_v35  ;;  %v8244_v35 = vld [vmem:[%s11342_s1 + $0xdb4] ss:$8 sps:$4 sm:$0xff]  }
 0x1ad   : > { %4023 = vmatpush1.bf16.msra.mxu1 %v8212_v44  ;;  %4051 = vmatprep.subr.bf16.mxu0 %v8220_v48  ;;  %v8245_v44 = vld [vmem:[%s11342_s1 + $0xd20] ss:$8 sps:$4 sm:$0xff]   ;;  %v8256_v48 = vld [vmem:[%s11342_s1 + $0xd94] ss:$8 sps:$4 sm:$0xff]  }
 0x1ae   : > { %4024 = vmatprep.subr.bf16.mxu1 %v8217_v55  ;;  %v8253_v55 = vld [vmem:[%s11342_s1 + $0xd14] ss:$8 sps:$4 sm:$0xff]  }
 0x1af   : > { %3472 = vmatmul.mubr.bf16.vlgmr.msra.gmra.mxu0 %v2947_v60  ;;  %v2087_v49 = vpop.f32.mrf.mxu0  ;;  %v3569_v60 = vrot.slane %v9023_v25, 3 }
 0x1b0   : > { %4052 = vmatpush1.bf16.msra.mxu0 %v8218_v41  ;;  %4083 = vmatprep.mubr.bf16.mxu0 %v3595_v63  ;;  %v3571_v41 = vrot.slane %v9785_v50, 2 }
 0x1b1   : > { %4025 = vmatpush2.bf16.msra.mxu1 %v8215_v15  ;;  %4053 = vmatprep.subr.bf16.mxu0 %v8226_v37  ;;  %v8251_v15 = vld [vmem:[%s11342_s1 + $0xd10] ss:$8 sps:$4 sm:$0xff]   ;;  %v2130_v37 = vpop.f32.mrf.mxu1  ;;  %v2089_v63 = vpop.f32.mrf.mxu0 }
 0x1b2   : > { %4026 = vmatprep.subr.bf16.mxu1 %v8223_v57  ;;  %v3572_v57 = vrot.slane %v9047_v34, 3 }
 0x1b4   : > { %4054 = vmatpush1.bf16.msra.mxu0 %v8224_v9  ;;  %v8262_v9 = vld [vmem:[%s11342_s1 + $0xd84] ss:$8 sps:$4 sm:$0xff]  }
 0x1b5   : > { %4027 = vmatpush2.bf16.msra.mxu1 %v8221_v3  ;;  %4055 = vmatprep.subr.bf16.mxu0 %v8232_v14  ;;  %v8259_v3 = vld [vmem:[%s11342_s1 + $0xd04] ss:$8 sps:$4 sm:$0xff]   ;;  %v8260_v14 = vld [vmem:[%s11342_s1 + $0xd80] ss:$8 sps:$4 sm:$0xff]  }
 0x1b6   : > { %4028 = vmatprep.subr.bf16.mxu1 %v8229_v12  ;;  %v8257_v12 = vld [vmem:[%s11342_s1 + $0xd00] ss:$8 sps:$4 sm:$0xff]  }
 0x1b8   : > { %4056 = vmatpush1.bf16.msra.mxu0 %v8230_v51  ;;  %v3573_v51 = vor.u32 %v3572_v57, %v3571_v41  ;;  %v8280_v57 = vld [vmem:[%s11342_s1 + $0xed4] ss:$8 sps:$4 sm:$0xff]  }
 0x1b9   : > { %4029 = vmatpush2.bf16.msra.mxu1 %v8227_v47  ;;  %4057 = vmatprep.subr.bf16.mxu0 %v8238_v19  ;;  %v3570_v47 = vor.u32 %v3569_v60, %v3568_v20  ;;  %v2091_v19 = vpop.f32.mrf.mxu0  ;;  %v8272_v20 = vld [vmem:[%s11342_s1 + $0xee0] ss:$8 sps:$4 sm:$0xff]  }
 0x1ba   : > { %4030 = vmatprep.subr.bf16.mxu1 %v8235_v18  ;;  %v2132_v18 = vpop.f32.mrf.mxu1 }
 0x1bc   : > { %4058 = vmatpush1.bf16.msra.mxu0 %v8236_v32  ;;  %v8268_v32 = vld [vmem:[%s11342_s1 + $0xef4] ss:$8 sps:$4 sm:$0xff]  }
 0x1bd   : > { %4031 = vmatpush2.bf16.msra.mxu1 %v8233_v29  ;;  %4059 = vmatprep.subr.bf16.mxu0 %v8244_v35  ;;  %v8265_v29 = vld [vmem:[%s11342_s1 + $0xe74] ss:$8 sps:$4 sm:$0xff]   ;;  %v8266_v35 = vld [vmem:[%s11342_s1 + $0xef0] ss:$8 sps:$4 sm:$0xff]  }
 0x1be   : > { %4032 = vmatprep.subr.bf16.mxu1 %v8241_v56  ;;  %v8263_v56 = vld [vmem:[%s11342_s1 + $0xe70] ss:$8 sps:$4 sm:$0xff]  }
 0x1c0   : > { %4060 = vmatpush1.bf16.msra.mxu0 %v8242_v43  ;;  %v2134_v43 = vpop.f32.mrf.mxu1 }
 0x1c1   : > { %4033 = vmatpush2.bf16.msra.mxu1 %v8239_v39  ;;  %4061 = vmatprep.subr.bf16.mxu0 %v8250_v46  ;;  %v3574_v39 = vsel %vm3567_vm4, %v3570_v47, %v3573_v51  ;;  %v8271_v46 = vld [vmem:[%s11342_s1 + $0xe64] ss:$8 sps:$4 sm:$0xff]   ;;  %v8275_v51 = vld [vmem:[%s11342_s1 + $0xe50] ss:$8 sps:$4 sm:$0xff]  }
 0x1c2   : > { %4034 = vmatprep.subr.bf16.mxu1 %v8247_v45  ;;  %v2093_v45 = vpop.f32.mrf.mxu0  ;;  %v2136_v60 = vpop.f32.mrf.mxu1 }
 0x1c4   : > { %4062 = vmatpush1.bf16.msra.mxu0 %v8248_v4  ;;  %v2131_v4 = vadd.f32 %v2130_v37, %v2087_v49  ;;  %v8277_v49 = vld [vmem:[%s11342_s1 + $0xe54] ss:$8 sps:$4 sm:$0xff]   ;;  %v2135_v37 = vadd.f32 %v2134_v43, %v2091_v19  ;;  %v8283_v19 = vld [vmem:[%s11342_s1 + $0xe44] ss:$8 sps:$4 sm:$0xff]   ;;  %v8287_v43 = vld [vmem:[%s11342_s1 + $0xe30] ss:$8 sps:$4 sm:$0xff]  }
 0x1c5   : > { %4035 = vmatpush2.bf16.msra.mxu1 %v8245_v44  ;;  %4063 = vmatprep.subr.bf16.mxu0 %v8256_v48  ;;  %v8274_v44 = vld [vmem:[%s11342_s1 + $0xee4] ss:$8 sps:$4 sm:$0xff]   ;;  %v2133_v48 = vadd.f32 %v2132_v18, %v2089_v63 }
 0x1c6   : > { %4036 = vmatprep.subr.bf16.mxu1 %v8253_v55 }
 0x1c8   : > { %4064 = vmatpush1.bf16.msra.mxu0 %v8254_v52  ;;  %v8269_v52 = vld [vmem:[%s11342_s1 + $0xe60] ss:$8 sps:$4 sm:$0xff]  }
 0x1c9   : > { %4037 = vmatpush2.bf16.msra.mxu1 %v8251_v15  ;;  %4065 = vmatprep.subr.bf16.mxu0 %v8262_v9 }
 0x1ca   : > { %4038 = vmatprep.subr.bf16.mxu1 %v8259_v3 }
 0x1cc   : > { %4066 = vmatpush1.bf16.msra.mxu0 %v8260_v14 }
 0x1cd   : > { %4039 = vmatpush2.bf16.msra.mxu1 %v8257_v12  ;;  %4067 = vmatprep.subr.bf16.mxu0 %v8265_v29  ;;  %v2137_v12 = vadd.f32 %v2136_v60, %v2093_v45  ;;  %v8290_v45 = vld [vmem:[%s11342_s1 + $0xeb0] ss:$8 sps:$4 sm:$0xff]   ;;  %v3583_v60 = vrot.slane %v9028_v27, 3 }
 0x1ce   : > { %4094 = vmatprep.subr.bf16.mxu1 %v8268_v32 }
 0x1cf   : > { %v2173_v55 = vpop.f32.mrf.mxu0 }
 0x1d0   : > { %4041 = vmatmul.mubr.bf16.vlgmr.msra.gmra.mxu1 %v3574_v39  ;;  %v2174_v15 = vadd.f32 %v2173_v55, %v2131_v4  ;;  %4068 = vmatpush2.bf16.msra.mxu0 %v8263_v56  ;;  %v8284_v39 = vld [vmem:[%s11342_s1 + $0xec0] ss:$8 sps:$4 sm:$0xff]  }
 0x1d1   : > { %4095 = vmatpush1.bf16.msra.mxu1 %v8266_v35  ;;  %v2175_v41 = vpop.f32.mrf.mxu0  ;;  %4069 = vmatprep.subr.bf16.mxu0 %v8271_v46  ;;  %v8281_v35 = vld [vmem:[%s11342_s1 + $0xe40] ss:$8 sps:$4 sm:$0xff]   ;;  %v8295_v46 = vld [vmem:[%s11342_s1 + $0xe24] ss:$8 sps:$4 sm:$0xff]  }
 0x1d2   : > { %4096 = vmatprep.subr.bf16.mxu1 %v8274_v44  ;;  %v10414_v63 = vadd.f32 %v2174_v15, %v10090_v61  ;;  %v2176_v3 = vadd.f32 %v2175_v41, %v2133_v48  ;;  %4126 = vmatprep.mubr.bf16.mxu1 %v8729_v62  ;;  %v8278_v61 = vld [vmem:[%s11342_s1 + $0xed0] ss:$8 sps:$4 sm:$0xff]   ;;  %v8298_v44 = vld [vmem:[%s11342_s1 + $0xea4] ss:$8 sps:$4 sm:$0xff]   ;;  %v8293_v4 = vld [vmem:[%s11342_s1 + $0xe20] ss:$8 sps:$4 sm:$0xff]  }
 0x1d3   : > { %v2177_v9 = vpop.f32.mrf.mxu0  ;;  %v8296_v55 = vld [vmem:[%s11342_s1 + $0xea0] ss:$8 sps:$4 sm:$0xff]   ;;  %v8301_v48 = vld [vmem:[%s11342_s1 + $0xe14] ss:$8 sps:$4 sm:$0xff]   ;;  %v3585_v41 = vrot.slane %v9899_v10, 2 }
 0x1d4   : > { %11346 = vst [vmem:[#allocation3_spill] sm:$0xff] %v10414_v63  ;;  %v10418_v14 = vadd.f32 %v2176_v3, %v10093_v5  ;;  %v2178_v47 = vadd.f32 %v2177_v9, %v2135_v37  ;;  %4070 = vmatpush2.bf16.msra.mxu0 %v8269_v52  ;;  %v8286_v5 = vld [vmem:[%s11342_s1 + $0xec4] ss:$8 sps:$4 sm:$0xff]   ;;  %v8304_v15 = vld [vmem:[%s11342_s1 + $0xe94] ss:$8 sps:$4 sm:$0xff]   ;;  %v3596_v37 = vrot.slane %v9172_v40, 2  ;;  %v6052_v63 = vlaneseq }
 0x1d5   : > { %4097 = vmatpush1.bf16.msra.mxu1 %v8272_v20  ;;  %v2179_v18 = vpop.f32.mrf.mxu0  ;;  %4071 = vmatprep.subr.bf16.mxu0 %v8277_v49  ;;  %v8299_v52 = vld [vmem:[%s11342_s1 + $0xe10] ss:$8 sps:$4 sm:$0xff]   ;;  %v3582_v20 = vrot.slane %v9051_v36, 2  ;;  %v3586_v49 = vrot.slane %v9055_v38, 3  ;;  %v3597_v3 = vrot.slane %v9157_v31, 3  ;;  %v3599_v9 = vrot.slane %v9908_v16, 2 }
 0x1d6   : > { %11347 = vst [vmem:[#allocation4_spill] sm:$0xff] %v10418_v14  ;;  %4098 = vmatprep.subr.bf16.mxu1 %v8280_v57  ;;  %v10433_v29 = vadd.f32 %v2178_v47, %v10108_v23  ;;  %v2180_v32 = vadd.f32 %v2179_v18, %v2137_v12  ;;  %v8289_v23 = vld [vmem:[%s11342_s1 + $0xe34] ss:$8 sps:$4 sm:$0xff]   ;;  %v8302_v57 = vld [vmem:[%s11342_s1 + $0xe90] ss:$8 sps:$4 sm:$0xff]   ;;  %v3600_v12 = vrot.slane %v9176_v42, 3 }
 0x1d7   : > { %v8307_v47 = vld [vmem:[%s11342_s1 + $0xe04] ss:$8 sps:$4 sm:$0xff]   ;;  %v8305_v18 = vld [vmem:[%s11342_s1 + $0xe00] ss:$8 sps:$4 sm:$0xff]  }
 0x1d8   : > { %11348 = vst [vmem:[#allocation5_spill] sm:$0xff] %v10433_v29  ;;  %v10436_v56 = vadd.f32 %v2180_v32, %v10110_v28  ;;  %4072 = vmatpush2.bf16.msra.mxu0 %v8275_v51  ;;  %v8292_v28 = vld [vmem:[%s11342_s1 + $0xeb4] ss:$8 sps:$4 sm:$0xff]   ;;  %v8310_v51 = vld [vmem:[%s11342_s1 + $0xe84] ss:$8 sps:$4 sm:$0xff]   ;;  %v3598_v32 = vor.u32 %v3597_v3, %v3596_v37 }
 0x1d9   : > { %4099 = vmatpush1.bf16.msra.mxu1 %v8278_v61  ;;  %4073 = vmatprep.subr.bf16.mxu0 %v8283_v19  ;;  %v3584_v61 = vor.u32 %v3583_v60, %v3582_v20  ;;  %v8308_v19 = vld [vmem:[%s11342_s1 + $0xe80] ss:$8 sps:$4 sm:$0xff]   ;;  %v8325_v20 = vld [vmem:[%s11342_s1 + $0xf54] ss:$8 sps:$4 sm:$0xff]   ;;  %v8334_v37 = vld [vmem:[%s11342_s1 + $0x1044] ss:$8 sps:$4 sm:$0xff]  }
 0x1da   : > { %11349 = vst [vmem:[#allocation6_spill] sm:$0xff] %v10436_v56  ;;  %4100 = vmatprep.subr.bf16.mxu1 %v8286_v5  ;;  %v3587_v5 = vor.u32 %v3586_v49, %v3585_v41  ;;  %v8328_v60 = vld [vmem:[%s11342_s1 + $0x1054] ss:$8 sps:$4 sm:$0xff]   ;;  %v8323_v41 = vld [vmem:[%s11342_s1 + $0xf50] ss:$8 sps:$4 sm:$0xff]  }
 0x1db   : > { %v8326_v49 = vld [vmem:[%s11342_s1 + $0x1050] ss:$8 sps:$4 sm:$0xff]   ;;  %v8329_v3 = vld [vmem:[%s11342_s1 + $0xf40] ss:$8 sps:$4 sm:$0xff]  }
 0x1dc   : > { %4074 = vmatpush2.bf16.msra.mxu0 %v8281_v35  ;;  %v3601_v35 = vor.u32 %v3600_v12, %v3599_v9  ;;  %v8332_v9 = vld [vmem:[%s11342_s1 + $0x1040] ss:$8 sps:$4 sm:$0xff]   ;;  %v8337_v12 = vld [vmem:[%s11342_s1 + $0xf34] ss:$8 sps:$4 sm:$0xff]  }
 0x1dd   : > { %4101 = vmatpush1.bf16.msra.mxu1 %v8284_v39  ;;  %4075 = vmatprep.subr.bf16.mxu0 %v8289_v23  ;;  %v8313_v39 = vld [vmem:[%s11342_s1 + $0xf74] ss:$8 sps:$4 sm:$0xff]  }
 0x1de   : > { %4102 = vmatprep.subr.bf16.mxu1 %v8292_v28  ;;  %v8316_v23 = vld [vmem:[%s11342_s1 + $0x1074] ss:$8 sps:$4 sm:$0xff]   ;;  %v4226_v28 = vrot.slane %v8951_v53, 3  ;;  %v3602_v53 = vsel %vm3567_vm4, %v3598_v32, %v3601_v35  ;;  %v8344_v32 = vld [vmem:[%s11342_s1 + $0x1020] ss:$8 sps:$4 sm:$0xff]  }
 0x1df   : > { %v8349_v35 = vld [vmem:[%s11342_s1 + $0xf14] ss:$8 sps:$4 sm:$0xff]  }
 0x1e0   : > { %4076 = vmatpush2.bf16.msra.mxu0 %v8287_v43  ;;  %v4227_v43 = vrot.slane %v8953_v54, 3  ;;  %v8319_v54 = vld [vmem:[%s11342_s1 + $0xf64] ss:$8 sps:$4 sm:$0xff]  }
 0x1e1   : > { %4103 = vmatpush1.bf16.msra.mxu1 %v8290_v45  ;;  %4077 = vmatprep.subr.bf16.mxu0 %v8295_v46  ;;  %v4232_v45 = vrot.slane %v8960_v58, 3  ;;  %v4233_v46 = vrot.slane %v8962_v59, 3  ;;  %v8322_v58 = vld [vmem:[%s11342_s1 + $0x1064] ss:$8 sps:$4 sm:$0xff]  }
 0x1e2   : > { %4104 = vmatprep.subr.bf16.mxu1 %v8298_v44  ;;  %v3588_v44 = vsel %vm3567_vm4, %v3584_v61, %v3587_v5  ;;  %v4228_v59 = vsel %vm4222_vm5, %v4226_v28, %v4227_v43  ;;  %v8338_v61 = vld [vmem:[%s11342_s1 + $0x1030] ss:$8 sps:$4 sm:$0xff]   ;;  %v8341_v5 = vld [vmem:[%s11342_s1 + $0xf20] ss:$8 sps:$4 sm:$0xff]   ;;  %v8355_v43 = vld [vmem:[%s11342_s1 + $0xf04] ss:$8 sps:$4 sm:$0xff]  }
 0x1e3   : > { %v8350_v28 = vld [vmem:[%s11342_s1 + $0x1010] ss:$8 sps:$4 sm:$0xff]  }
 0x1e4   : > { %4078 = vmatpush2.bf16.msra.mxu0 %v8293_v4  ;;  %v8311_v4 = vld [vmem:[%s11342_s1 + $0xf70] ss:$8 sps:$4 sm:$0xff]  }
 0x1e5   : > { %4105 = vmatpush1.bf16.msra.mxu1 %v8296_v55  ;;  %4079 = vmatprep.subr.bf16.mxu0 %v8301_v48  ;;  %v8314_v55 = vld [vmem:[%s11342_s1 + $0x1070] ss:$8 sps:$4 sm:$0xff]   ;;  %v4234_v48 = vsel %vm4222_vm5, %v4232_v45, %v4233_v46  ;;  %v8358_v45 = vld [vmem:[%s11342_s1 + $0x1004] ss:$8 sps:$4 sm:$0xff]   ;;  %v8353_v46 = vld [vmem:[%s11342_s1 + $0xf00] ss:$8 sps:$4 sm:$0xff]  }
 0x1e6   : > { %4106 = vmatprep.subr.bf16.mxu1 %v8304_v15  ;;  %v8317_v15 = vld [vmem:[%s11342_s1 + $0xf60] ss:$8 sps:$4 sm:$0xff]  }
 0x1e8   : > { %4080 = vmatpush2.bf16.msra.mxu0 %v8299_v52  ;;  %v8320_v52 = vld [vmem:[%s11342_s1 + $0x1060] ss:$8 sps:$4 sm:$0xff]  }
 0x1e9   : > { %4107 = vmatpush1.bf16.msra.mxu1 %v8302_v57  ;;  %4081 = vmatprep.subr.bf16.mxu0 %v8307_v47  ;;  %v8331_v57 = vld [vmem:[%s11342_s1 + $0xf44] ss:$8 sps:$4 sm:$0xff]   ;;  %v8340_v47 = vld [vmem:[%s11342_s1 + $0x1034] ss:$8 sps:$4 sm:$0xff]  }
 0x1ea   : > { %4108 = vmatprep.subr.bf16.mxu1 %v8310_v51  ;;  %v8335_v51 = vld [vmem:[%s11342_s1 + $0xf30] ss:$8 sps:$4 sm:$0xff]  }
 0x1ec   : > { %4082 = vmatpush2.bf16.msra.mxu0 %v8305_v18  ;;  %v8343_v18 = vld [vmem:[%s11342_s1 + $0xf24] ss:$8 sps:$4 sm:$0xff]  }
 0x1ed   : > { %4109 = vmatpush1.bf16.msra.mxu1 %v8308_v19  ;;  %4643 = vmatprep.subr.bf16.mxu0 %v8313_v39  ;;  %v8346_v19 = vld [vmem:[%s11342_s1 + $0x1024] ss:$8 sps:$4 sm:$0xff]   ;;  %v8352_v39 = vld [vmem:[%s11342_s1 + $0x1014] ss:$8 sps:$4 sm:$0xff]  }
 0x1ee   : > { %4686 = vmatprep.subr.bf16.mxu1 %v8316_v23  ;;  %v8347_v23 = vld [vmem:[%s11342_s1 + $0xf10] ss:$8 sps:$4 sm:$0xff]  }
 0x1ef   : > { %4084 = vmatmul.mubr.bf16.vlgmr.msra.gmra.mxu0 %v3588_v44  ;;  %v8356_v44 = vld [vmem:[%s11342_s1 + $0x1000] ss:$8 sps:$4 sm:$0xff]  }
 0x1f0   : > { %4127 = vmatmul.mubr.bf16.vlgmr.msra.gmra.mxu1 %v3602_v53  ;;  %4644 = vmatpush1.bf16.msra.mxu0 %v8311_v4  ;;  %v8361_v4 = vld [vmem:[%s11342_s1 + $0xff4] ss:$8 sps:$4 sm:$0xff]   ;;  %v8359_v53 = vld [vmem:[%s11342_s1 + $0xff0] ss:$8 sps:$4 sm:$0xff]  }
 0x1f1   : > { %4687 = vmatpush1.bf16.msra.mxu1 %v8314_v55  ;;  %4645 = vmatprep.subr.bf16.mxu0 %v8319_v54  ;;  %v8364_v55 = vld [vmem:[%s11342_s1 + $0x10f4] ss:$8 sps:$4 sm:$0xff]   ;;  %v8362_v54 = vld [vmem:[%s11342_s1 + $0x10f0] ss:$8 sps:$4 sm:$0xff]  }
 0x1f2   : > { %4688 = vmatprep.subr.bf16.mxu1 %v8322_v58  ;;  %4675 = vmatprep.mubr.bf16.mxu0 %v4228_v59  ;;  %v8367_v58 = vld [vmem:[%s11342_s1 + $0xfe4] ss:$8 sps:$4 sm:$0xff]  }
 0x1f3   : > { %4718 = vmatprep.mubr.bf16.mxu1 %v4234_v48  ;;  %v8370_v59 = vld [vmem:[%s11342_s1 + $0x10e4] ss:$8 sps:$4 sm:$0xff]   ;;  %v8365_v48 = vld [vmem:[%s11342_s1 + $0xfe0] ss:$8 sps:$4 sm:$0xff]  }
 0x1f4   : > { %4646 = vmatpush1.bf16.msra.mxu0 %v8317_v15  ;;  %v8368_v15 = vld [vmem:[%s11342_s1 + $0x10e0] ss:$8 sps:$4 sm:$0xff]  }
 0x1f5   : > { %4689 = vmatpush1.bf16.msra.mxu1 %v8320_v52  ;;  %4647 = vmatprep.subr.bf16.mxu0 %v8325_v20  ;;  %v8373_v52 = vld [vmem:[%s11342_s1 + $0xfd4] ss:$8 sps:$4 sm:$0xff]  }
 0x1f6   : > { %4690 = vmatprep.subr.bf16.mxu1 %v8328_v60  ;;  %v8376_v20 = vld [vmem:[%s11342_s1 + $0x10d4] ss:$8 sps:$4 sm:$0xff]   ;;  %v8371_v60 = vld [vmem:[%s11342_s1 + $0xfd0] ss:$8 sps:$4 sm:$0xff]  }
 0x1f8   : > { %4648 = vmatpush1.bf16.msra.mxu0 %v8323_v41  ;;  %v8374_v41 = vld [vmem:[%s11342_s1 + $0x10d0] ss:$8 sps:$4 sm:$0xff]  }
 0x1f9   : > { %4691 = vmatpush1.bf16.msra.mxu1 %v8326_v49  ;;  %4649 = vmatprep.subr.bf16.mxu0 %v8331_v57  ;;  %v8379_v49 = vld [vmem:[%s11342_s1 + $0xfc4] ss:$8 sps:$4 sm:$0xff]  }
 0x1fa   : > { %4692 = vmatprep.subr.bf16.mxu1 %v8334_v37  ;;  %v8382_v57 = vld [vmem:[%s11342_s1 + $0x10c4] ss:$8 sps:$4 sm:$0xff]   ;;  %v8377_v37 = vld [vmem:[%s11342_s1 + $0xfc0] ss:$8 sps:$4 sm:$0xff]  }
 0x1fc   : > { %4650 = vmatpush1.bf16.msra.mxu0 %v8329_v3  ;;  %v8380_v3 = vld [vmem:[%s11342_s1 + $0x10c0] ss:$8 sps:$4 sm:$0xff]  }
 0x1fd   : > { %4693 = vmatpush1.bf16.msra.mxu1 %v8332_v9  ;;  %4651 = vmatprep.subr.bf16.mxu0 %v8337_v12  ;;  %v8385_v9 = vld [vmem:[%s11342_s1 + $0xfb4] ss:$8 sps:$4 sm:$0xff]  }
 0x1fe   : > { %4694 = vmatprep.subr.bf16.mxu1 %v8340_v47  ;;  %v8388_v12 = vld [vmem:[%s11342_s1 + $0x10b4] ss:$8 sps:$4 sm:$0xff]   ;;  %v8383_v47 = vld [vmem:[%s11342_s1 + $0xfb0] ss:$8 sps:$4 sm:$0xff]  }
 0x200   : > { %4652 = vmatpush1.bf16.msra.mxu0 %v8335_v51  ;;  %v8386_v51 = vld [vmem:[%s11342_s1 + $0x10b0] ss:$8 sps:$4 sm:$0xff]  }
 0x201   : > { %4695 = vmatpush1.bf16.msra.mxu1 %v8338_v61  ;;  %4653 = vmatprep.subr.bf16.mxu0 %v8343_v18  ;;  %v8391_v61 = vld [vmem:[%s11342_s1 + $0xfa4] ss:$8 sps:$4 sm:$0xff]  }
 0x202   : > { %4696 = vmatprep.subr.bf16.mxu1 %v8346_v19  ;;  %v8394_v18 = vld [vmem:[%s11342_s1 + $0x10a4] ss:$8 sps:$4 sm:$0xff]   ;;  %v8389_v19 = vld [vmem:[%s11342_s1 + $0xfa0] ss:$8 sps:$4 sm:$0xff]  }
 0x204   : > { %4654 = vmatpush1.bf16.msra.mxu0 %v8341_v5  ;;  %v8392_v5 = vld [vmem:[%s11342_s1 + $0x10a0] ss:$8 sps:$4 sm:$0xff]  }
 0x205   : > { %4697 = vmatpush1.bf16.msra.mxu1 %v8344_v32  ;;  %4655 = vmatprep.subr.bf16.mxu0 %v8349_v35  ;;  %v8397_v32 = vld [vmem:[%s11342_s1 + $0xf94] ss:$8 sps:$4 sm:$0xff]  }
 0x206   : > { %4698 = vmatprep.subr.bf16.mxu1 %v8352_v39  ;;  %v8400_v35 = vld [vmem:[%s11342_s1 + $0x1094] ss:$8 sps:$4 sm:$0xff]   ;;  %v8395_v39 = vld [vmem:[%s11342_s1 + $0xf90] ss:$8 sps:$4 sm:$0xff]  }
 0x208   : > { %4656 = vmatpush1.bf16.msra.mxu0 %v8347_v23  ;;  %v8398_v23 = vld [vmem:[%s11342_s1 + $0x1090] ss:$8 sps:$4 sm:$0xff]  }
 0x209   : > { %4699 = vmatpush1.bf16.msra.mxu1 %v8350_v28  ;;  %4657 = vmatprep.subr.bf16.mxu0 %v8355_v43  ;;  %v8403_v28 = vld [vmem:[%s11342_s1 + $0xf84] ss:$8 sps:$4 sm:$0xff]  }
 0x20a   : > { %4700 = vmatprep.subr.bf16.mxu1 %v8358_v45  ;;  %v8406_v43 = vld [vmem:[%s11342_s1 + $0x1084] ss:$8 sps:$4 sm:$0xff]   ;;  %v8401_v45 = vld [vmem:[%s11342_s1 + $0xf80] ss:$8 sps:$4 sm:$0xff]  }
 0x20c   : > { %4658 = vmatpush1.bf16.msra.mxu0 %v8353_v46  ;;  %v4865_v46 = vrot.slane %v8973_v0, 3  ;;  %v4230_v0 = vrot.slane %v9025_v26, 3  ;;  %v8410_v26 = vld [vmem:[%s11342_s1 + $0x11f0] ss:$8 sps:$4 sm:$0xff]  }
 0x20d   : > { %4701 = vmatpush1.bf16.msra.mxu1 %v8356_v44  ;;  %4659 = vmatprep.subr.bf16.mxu0 %v8361_v4  ;;  %v4866_v44 = vrot.slane %v8976_v1, 4  ;;  %v4868_v4 = vrot.slane %v9571_v11, 3  ;;  %v8409_v1 = vld [vmem:[%s11342_s1 + $0x1174] ss:$8 sps:$4 sm:$0xff]  }
 0x20e   : > { %4702 = vmatprep.subr.bf16.mxu1 %v8364_v55  ;;  %v4869_v55 = vrot.slane %v8979_v2, 4  ;;  %v8412_v2 = vld [vmem:[%s11342_s1 + $0x11f4] ss:$8 sps:$4 sm:$0xff]  }
 0x20f   : > { %v4867_v11 = vor.u32 %v4866_v44, %v4865_v46  ;;  %v8446_v46 = vld [vmem:[%s11342_s1 + $0x1190] ss:$8 sps:$4 sm:$0xff]   ;;  %v8451_v44 = vld [vmem:[%s11342_s1 + $0x1104] ss:$8 sps:$4 sm:$0xff]  }
 0x210   : > { %4660 = vmatpush2.bf16.msra.mxu0 %v8359_v53  ;;  %v8404_v53 = vld [vmem:[%s11342_s1 + $0x1080] ss:$8 sps:$4 sm:$0xff]  }
 0x211   : > { %4703 = vmatpush2.bf16.msra.mxu1 %v8362_v54  ;;  %4661 = vmatprep.subr.bf16.mxu0 %v8367_v58  ;;  %v4223_v54 = vrot.slane %v9001_v13, 3  ;;  %v4224_v58 = vrot.slane %v9016_v22, 3  ;;  %v8407_v22 = vld [vmem:[%s11342_s1 + $0x1170] ss:$8 sps:$4 sm:$0xff]  }
 0x212   : > { %4704 = vmatprep.subr.bf16.mxu1 %v8370_v59  ;;  %v4229_v59 = vrot.slane %v9006_v17, 3 }
 0x213   : > { %v4225_v13 = vsel %vm4222_vm5, %v4223_v54, %v4224_v58  ;;  %v4882_v54 = vrot.slane %v9682_v24, 3  ;;  %v4883_v58 = vrot.slane %v8993_v8, 4  ;;  %v8460_v8 = vld [vmem:[%s11342_s1 + $0x12f4] ss:$8 sps:$4 sm:$0xff]  }
 0x214   : > { %4662 = vmatpush2.bf16.msra.mxu0 %v8365_v48  ;;  %v4870_v48 = vor.u32 %v4869_v55, %v4868_v4  ;;  %v4231_v17 = vsel %vm4222_vm5, %v4229_v59, %v4230_v0  ;;  %v8454_v4 = vld [vmem:[%s11342_s1 + $0x1184] ss:$8 sps:$4 sm:$0xff]   ;;  %v4879_v55 = vrot.slane %v8987_v6, 3  ;;  %v8449_v59 = vld [vmem:[%s11342_s1 + $0x1100] ss:$8 sps:$4 sm:$0xff]   ;;  %v4236_v6 = vrot.slane %v9154_v30, 3 }
 0x215   : > { %4705 = vmatpush2.bf16.msra.mxu1 %v8368_v15  ;;  %4663 = vmatprep.subr.bf16.mxu0 %v8373_v52  ;;  %v8415_v15 = vld [vmem:[%s11342_s1 + $0x1164] ss:$8 sps:$4 sm:$0xff]   ;;  %v8452_v0 = vld [vmem:[%s11342_s1 + $0x1180] ss:$8 sps:$4 sm:$0xff]   ;;  %v8458_v30 = vld [vmem:[%s11342_s1 + $0x12f0] ss:$8 sps:$4 sm:$0xff]  }
 0x216   : > { %4706 = vmatprep.subr.bf16.mxu1 %v8376_v20  ;;  %v8418_v52 = vld [vmem:[%s11342_s1 + $0x11e4] ss:$8 sps:$4 sm:$0xff]   ;;  %v4871_v20 = vsel %vm4857_vm6, %v4867_v11, %v4870_v48 }
 0x217   : > { %v8463_v48 = vld [vmem:[%s11342_s1 + $0x1264] ss:$8 sps:$4 sm:$0xff]  }
 0x218   : > { %4664 = vmatpush2.bf16.msra.mxu0 %v8371_v60  ;;  %v8413_v60 = vld [vmem:[%s11342_s1 + $0x1160] ss:$8 sps:$4 sm:$0xff]  }
 0x219   : > { %4707 = vmatpush2.bf16.msra.mxu1 %v8374_v41  ;;  %4665 = vmatprep.subr.bf16.mxu0 %v8379_v49  ;;  %v8416_v41 = vld [vmem:[%s11342_s1 + $0x11e0] ss:$8 sps:$4 sm:$0xff]   ;;  %v8421_v49 = vld [vmem:[%s11342_s1 + $0x1154] ss:$8 sps:$4 sm:$0xff]  }
 0x21a   : > { %4708 = vmatprep.subr.bf16.mxu1 %v8382_v57  ;;  %v8424_v57 = vld [vmem:[%s11342_s1 + $0x11d4] ss:$8 sps:$4 sm:$0xff]  }
 0x21c   : > { %4666 = vmatpush2.bf16.msra.mxu0 %v8377_v37  ;;  %v8419_v37 = vld [vmem:[%s11342_s1 + $0x1150] ss:$8 sps:$4 sm:$0xff]  }
 0x21d   : > { %4709 = vmatpush2.bf16.msra.mxu1 %v8380_v3  ;;  %4667 = vmatprep.subr.bf16.mxu0 %v8385_v9  ;;  %v8422_v3 = vld [vmem:[%s11342_s1 + $0x11d0] ss:$8 sps:$4 sm:$0xff]   ;;  %v8427_v9 = vld [vmem:[%s11342_s1 + $0x1144] ss:$8 sps:$4 sm:$0xff]  }
 0x21e   : > { %4710 = vmatprep.subr.bf16.mxu1 %v8388_v12  ;;  %v8430_v12 = vld [vmem:[%s11342_s1 + $0x11c4] ss:$8 sps:$4 sm:$0xff]  }
 0x220   : > { %4668 = vmatpush2.bf16.msra.mxu0 %v8383_v47  ;;  %v8425_v47 = vld [vmem:[%s11342_s1 + $0x1140] ss:$8 sps:$4 sm:$0xff]  }
 0x221   : > { %4711 = vmatpush2.bf16.msra.mxu1 %v8386_v51  ;;  %4669 = vmatprep.subr.bf16.mxu0 %v8391_v61  ;;  %v8428_v51 = vld [vmem:[%s11342_s1 + $0x11c0] ss:$8 sps:$4 sm:$0xff]   ;;  %v8433_v61 = vld [vmem:[%s11342_s1 + $0x1134] ss:$8 sps:$4 sm:$0xff]  }
 0x222   : > { %4712 = vmatprep.subr.bf16.mxu1 %v8394_v18  ;;  %v8436_v18 = vld [vmem:[%s11342_s1 + $0x11b4] ss:$8 sps:$4 sm:$0xff]  }
 0x224   : > { %4670 = vmatpush2.bf16.msra.mxu0 %v8389_v19  ;;  %v8431_v19 = vld [vmem:[%s11342_s1 + $0x1130] ss:$8 sps:$4 sm:$0xff]  }
 0x225   : > { %4713 = vmatpush2.bf16.msra.mxu1 %v8392_v5  ;;  %4671 = vmatprep.subr.bf16.mxu0 %v8397_v32  ;;  %v8434_v5 = vld [vmem:[%s11342_s1 + $0x11b0] ss:$8 sps:$4 sm:$0xff]   ;;  %v8439_v32 = vld [vmem:[%s11342_s1 + $0x1124] ss:$8 sps:$4 sm:$0xff]  }
 0x226   : > { %4714 = vmatprep.subr.bf16.mxu1 %v8400_v35  ;;  %v8442_v35 = vld [vmem:[%s11342_s1 + $0x11a4] ss:$8 sps:$4 sm:$0xff]  }
 0x228   : > { %4672 = vmatpush2.bf16.msra.mxu0 %v8395_v39  ;;  %v8437_v39 = vld [vmem:[%s11342_s1 + $0x1120] ss:$8 sps:$4 sm:$0xff]  }
 0x229   : > { %4715 = vmatpush2.bf16.msra.mxu1 %v8398_v23  ;;  %4673 = vmatprep.subr.bf16.mxu0 %v8403_v28  ;;  %v8440_v23 = vld [vmem:[%s11342_s1 + $0x11a0] ss:$8 sps:$4 sm:$0xff]   ;;  %v8445_v28 = vld [vmem:[%s11342_s1 + $0x1114] ss:$8 sps:$4 sm:$0xff]  }
 0x22a   : > { %4716 = vmatprep.subr.bf16.mxu1 %v8406_v43  ;;  %v8448_v43 = vld [vmem:[%s11342_s1 + $0x1194] ss:$8 sps:$4 sm:$0xff]  }
 0x22c   : > { %4674 = vmatpush2.bf16.msra.mxu0 %v8401_v45  ;;  %v8443_v45 = vld [vmem:[%s11342_s1 + $0x1110] ss:$8 sps:$4 sm:$0xff]  }
 0x22d   : > { %4717 = vmatpush2.bf16.msra.mxu1 %v8404_v53  ;;  %4729 = vmatprep.subr.bf16.mxu0 %v8409_v1  ;;  %v4880_v53 = vrot.slane %v8990_v7, 4  ;;  %v4235_v1 = vrot.slane %v9142_v21, 3  ;;  %v8457_v7 = vld [vmem:[%s11342_s1 + $0x1274] ss:$8 sps:$4 sm:$0xff]   ;;  %v8455_v21 = vld [vmem:[%s11342_s1 + $0x1270] ss:$8 sps:$4 sm:$0xff]  }
 0x22e   : > { %5298 = vmatprep.subr.bf16.mxu1 %v8412_v2  ;;  %v4884_v2 = vor.u32 %v4883_v58, %v4882_v54  ;;  %v8506_v54 = vld [vmem:[%s11342_s1 + $0x13f0] ss:$8 sps:$4 sm:$0xff]  }
 0x22f   : > { %4676 = vmatmul.mubr.bf16.vlgmr.msra.gmra.mxu0 %v4225_v13  ;;  %v4881_v24 = vor.u32 %v4880_v53, %v4879_v55  ;;  %v4237_v11 = vsel %vm4222_vm5, %v4235_v1, %v4236_v6  ;;  %v8466_v13 = vld [vmem:[%s11342_s1 + $0x12e4] ss:$8 sps:$4 sm:$0xff]   ;;  %v8508_v55 = vld [vmem:[%s11342_s1 + $0x13f4] ss:$8 sps:$4 sm:$0xff]   ;;  %v8503_v53 = vld [vmem:[%s11342_s1 + $0x1370] ss:$8 sps:$4 sm:$0xff]  }
 0x230   : > { %4719 = vmatmul.mubr.bf16.vlgmr.msra.gmra.mxu1 %v4231_v17  ;;  %4730 = vmatpush1.bf16.msra.mxu0 %v8407_v22  ;;  %v8461_v22 = vld [vmem:[%s11342_s1 + $0x1260] ss:$8 sps:$4 sm:$0xff]  }
 0x231   : > { %5299 = vmatpush1.bf16.msra.mxu1 %v8410_v26  ;;  %4731 = vmatprep.subr.bf16.mxu0 %v8415_v15  ;;  %v4885_v17 = vsel %vm4857_vm6, %v4881_v24, %v4884_v2  ;;  %v8464_v26 = vld [vmem:[%s11342_s1 + $0x12e0] ss:$8 sps:$4 sm:$0xff]   ;;  %v8469_v15 = vld [vmem:[%s11342_s1 + $0x1254] ss:$8 sps:$4 sm:$0xff]   ;;  %v8515_v24 = vld [vmem:[%s11342_s1 + $0x1350] ss:$8 sps:$4 sm:$0xff]  }
 0x232   : > { %5300 = vmatprep.subr.bf16.mxu1 %v8418_v52  ;;  %4761 = vmatprep.mubr.bf16.mxu0 %v8729_v62  ;;  %v8472_v52 = vld [vmem:[%s11342_s1 + $0x12d4] ss:$8 sps:$4 sm:$0xff]   ;;  %v8509_v1 = vld [vmem:[%s11342_s1 + $0x1360] ss:$8 sps:$4 sm:$0xff]   ;;  %v8518_v2 = vld [vmem:[%s11342_s1 + $0x13d0] ss:$8 sps:$4 sm:$0xff]  }
 0x233   : > { %5330 = vmatprep.mubr.bf16.mxu1 %v4871_v20  ;;  %v8467_v20 = vld [vmem:[%s11342_s1 + $0x1250] ss:$8 sps:$4 sm:$0xff]   ;;  %v8512_v6 = vld [vmem:[%s11342_s1 + $0x13e0] ss:$8 sps:$4 sm:$0xff]  }
 0x234   : > { %4732 = vmatpush1.bf16.msra.mxu0 %v8413_v60  ;;  %v8470_v60 = vld [vmem:[%s11342_s1 + $0x12d0] ss:$8 sps:$4 sm:$0xff]  }
 0x235   : > { %5301 = vmatpush1.bf16.msra.mxu1 %v8416_v41  ;;  %4733 = vmatprep.subr.bf16.mxu0 %v8421_v49  ;;  %v8475_v41 = vld [vmem:[%s11342_s1 + $0x1244] ss:$8 sps:$4 sm:$0xff]  }
 0x236   : > { %5302 = vmatprep.subr.bf16.mxu1 %v8424_v57  ;;  %v8478_v49 = vld [vmem:[%s11342_s1 + $0x12c4] ss:$8 sps:$4 sm:$0xff]   ;;  %v8473_v57 = vld [vmem:[%s11342_s1 + $0x1240] ss:$8 sps:$4 sm:$0xff]  }
 0x238   : > { %4734 = vmatpush1.bf16.msra.mxu0 %v8419_v37  ;;  %v8476_v37 = vld [vmem:[%s11342_s1 + $0x12c0] ss:$8 sps:$4 sm:$0xff]  }
 0x239   : > { %5303 = vmatpush1.bf16.msra.mxu1 %v8422_v3  ;;  %4735 = vmatprep.subr.bf16.mxu0 %v8427_v9  ;;  %v8481_v3 = vld [vmem:[%s11342_s1 + $0x1234] ss:$8 sps:$4 sm:$0xff]  }
 0x23a   : > { %5304 = vmatprep.subr.bf16.mxu1 %v8430_v12  ;;  %v8484_v9 = vld [vmem:[%s11342_s1 + $0x12b4] ss:$8 sps:$4 sm:$0xff]   ;;  %v8479_v12 = vld [vmem:[%s11342_s1 + $0x1230] ss:$8 sps:$4 sm:$0xff]  }
 0x23c   : > { %4736 = vmatpush1.bf16.msra.mxu0 %v8425_v47  ;;  %v8482_v47 = vld [vmem:[%s11342_s1 + $0x12b0] ss:$8 sps:$4 sm:$0xff]  }
 0x23d   : > { %5305 = vmatpush1.bf16.msra.mxu1 %v8428_v51  ;;  %4737 = vmatprep.subr.bf16.mxu0 %v8433_v61  ;;  %v8487_v51 = vld [vmem:[%s11342_s1 + $0x1224] ss:$8 sps:$4 sm:$0xff]  }
 0x23e   : > { %5306 = vmatprep.subr.bf16.mxu1 %v8436_v18  ;;  %v8490_v61 = vld [vmem:[%s11342_s1 + $0x12a4] ss:$8 sps:$4 sm:$0xff]   ;;  %v8485_v18 = vld [vmem:[%s11342_s1 + $0x1220] ss:$8 sps:$4 sm:$0xff]  }
 0x240   : > { %4738 = vmatpush1.bf16.msra.mxu0 %v8431_v19  ;;  %v8488_v19 = vld [vmem:[%s11342_s1 + $0x12a0] ss:$8 sps:$4 sm:$0xff]  }
 0x241   : > { %5307 = vmatpush1.bf16.msra.mxu1 %v8434_v5  ;;  %4739 = vmatprep.subr.bf16.mxu0 %v8439_v32  ;;  %v8493_v5 = vld [vmem:[%s11342_s1 + $0x1214] ss:$8 sps:$4 sm:$0xff]  }
 0x242   : > { %5308 = vmatprep.subr.bf16.mxu1 %v8442_v35  ;;  %v8496_v32 = vld [vmem:[%s11342_s1 + $0x1294] ss:$8 sps:$4 sm:$0xff]   ;;  %v8491_v35 = vld [vmem:[%s11342_s1 + $0x1210] ss:$8 sps:$4 sm:$0xff]  }
 0x244   : > { %4740 = vmatpush1.bf16.msra.mxu0 %v8437_v39  ;;  %v8494_v39 = vld [vmem:[%s11342_s1 + $0x1290] ss:$8 sps:$4 sm:$0xff]  }
 0x245   : > { %5309 = vmatpush1.bf16.msra.mxu1 %v8440_v23  ;;  %4741 = vmatprep.subr.bf16.mxu0 %v8445_v28  ;;  %v4858_v23 = vrot.slane %v9044_v33, 3  ;;  %v4859_v28 = vrot.slane %v9023_v25, 4  ;;  %v8497_v25 = vld [vmem:[%s11342_s1 + $0x1200] ss:$8 sps:$4 sm:$0xff]  }
 0x246   : > { %5310 = vmatprep.subr.bf16.mxu1 %v8448_v43  ;;  %v4861_v43 = vrot.slane %v9785_v50, 3  ;;  %v8500_v33 = vld [vmem:[%s11342_s1 + $0x1280] ss:$8 sps:$4 sm:$0xff]  }
 0x248   : > { %4742 = vmatpush1.bf16.msra.mxu0 %v8443_v45  ;;  %v4862_v45 = vrot.slane %v9047_v34, 4  ;;  %v4860_v34 = vor.u32 %v4859_v28, %v4858_v23  ;;  %v8554_v23 = vld [vmem:[%s11342_s1 + $0x1570] ss:$8 sps:$4 sm:$0xff]  }
 0x249   : > { %5311 = vmatpush1.bf16.msra.mxu1 %v8446_v46  ;;  %4743 = vmatprep.subr.bf16.mxu0 %v8451_v44  ;;  %v8499_v46 = vld [vmem:[%s11342_s1 + $0x1204] ss:$8 sps:$4 sm:$0xff]  }
 0x24a   : > { %5312 = vmatprep.subr.bf16.mxu1 %v8454_v4  ;;  %v8502_v44 = vld [vmem:[%s11342_s1 + $0x1284] ss:$8 sps:$4 sm:$0xff]   ;;  %v4863_v50 = vor.u32 %v4862_v45, %v4861_v43  ;;  %v8505_v4 = vld [vmem:[%s11342_s1 + $0x1374] ss:$8 sps:$4 sm:$0xff]  }
 0x24b   : > { %v8559_v43 = vld [vmem:[%s11342_s1 + $0x1464] ss:$8 sps:$4 sm:$0xff]  }
 0x24c   : > { %4744 = vmatpush1.bf16.msra.mxu0 %v8449_v59  ;;  %v4864_v58 = vsel %vm4857_vm6, %v4860_v34, %v4863_v50  ;;  %v8511_v59 = vld [vmem:[%s11342_s1 + $0x1364] ss:$8 sps:$4 sm:$0xff]  }
 0x24d   : > { %5313 = vmatpush1.bf16.msra.mxu1 %v8452_v0  ;;  %5341 = vmatprep.subr.bf16.mxu0 %v8460_v8  ;;  %v8514_v0 = vld [vmem:[%s11342_s1 + $0x13e4] ss:$8 sps:$4 sm:$0xff]   ;;  %v8520_v8 = vld [vmem:[%s11342_s1 + $0x13d4] ss:$8 sps:$4 sm:$0xff]  }
 0x24e   : > { %5314 = vmatprep.subr.bf16.mxu1 %v8457_v7  ;;  %v8517_v7 = vld [vmem:[%s11342_s1 + $0x1354] ss:$8 sps:$4 sm:$0xff]   ;;  %v8562_v45 = vld [vmem:[%s11342_s1 + $0x1564] ss:$8 sps:$4 sm:$0xff]  }
 0x24f   : > { %4762 = vmatmul.mubr.bf16.vlgmr.msra.gmra.mxu0 %v4237_v11  ;;  %v8523_v11 = vld [vmem:[%s11342_s1 + $0x1344] ss:$8 sps:$4 sm:$0xff]  }
 0x250   : > { %5342 = vmatpush1.bf16.msra.mxu0 %v8458_v30  ;;  %5373 = vmatprep.mubr.bf16.mxu0 %v4885_v17  ;;  %v8521_v30 = vld [vmem:[%s11342_s1 + $0x1340] ss:$8 sps:$4 sm:$0xff]   ;;  %v8532_v17 = vld [vmem:[%s11342_s1 + $0x13b4] ss:$8 sps:$4 sm:$0xff]  }
 0x251   : > { %5315 = vmatpush2.bf16.msra.mxu1 %v8455_v21  ;;  %5343 = vmatprep.subr.bf16.mxu0 %v8466_v13  ;;  %v8526_v21 = vld [vmem:[%s11342_s1 + $0x13c4] ss:$8 sps:$4 sm:$0xff]   ;;  %v8529_v13 = vld [vmem:[%s11342_s1 + $0x1334] ss:$8 sps:$4 sm:$0xff]  }
 0x252   : > { %5316 = vmatprep.subr.bf16.mxu1 %v8463_v48  ;;  %v8524_v48 = vld [vmem:[%s11342_s1 + $0x13c0] ss:$8 sps:$4 sm:$0xff]  }
 0x253   : > { %v8682_v34 = vld [vmem:[%s8930_s11 + $0x68] sm:$0xff] }
 0x254   : > { %5344 = vmatpush1.bf16.msra.mxu0 %v8464_v26  ;;  %v8530_v26 = vld [vmem:[%s11342_s1 + $0x13b0] ss:$8 sps:$4 sm:$0xff]  }
 0x255   : > { %5317 = vmatpush2.bf16.msra.mxu1 %v8461_v22  ;;  %5345 = vmatprep.subr.bf16.mxu0 %v8472_v52  ;;  %v8527_v22 = vld [vmem:[%s11342_s1 + $0x1330] ss:$8 sps:$4 sm:$0xff]   ;;  %v8538_v52 = vld [vmem:[%s11342_s1 + $0x13a4] ss:$8 sps:$4 sm:$0xff]  }
 0x256   : > { %5318 = vmatprep.subr.bf16.mxu1 %v8469_v15  ;;  %v8535_v15 = vld [vmem:[%s11342_s1 + $0x1324] ss:$8 sps:$4 sm:$0xff]  }
 0x258   : > { %5346 = vmatpush1.bf16.msra.mxu0 %v8470_v60  ;;  %v8536_v60 = vld [vmem:[%s11342_s1 + $0x13a0] ss:$8 sps:$4 sm:$0xff]  }
 0x259   : > { %5319 = vmatpush2.bf16.msra.mxu1 %v8467_v20  ;;  %5347 = vmatprep.subr.bf16.mxu0 %v8478_v49  ;;  %v8533_v20 = vld [vmem:[%s11342_s1 + $0x1320] ss:$8 sps:$4 sm:$0xff]   ;;  %v8544_v49 = vld [vmem:[%s11342_s1 + $0x1394] ss:$8 sps:$4 sm:$0xff]  }
 0x25a   : > { %5320 = vmatprep.subr.bf16.mxu1 %v8475_v41  ;;  %v8541_v41 = vld [vmem:[%s11342_s1 + $0x1314] ss:$8 sps:$4 sm:$0xff]  }
 0x25c   : > { %5348 = vmatpush1.bf16.msra.mxu0 %v8476_v37  ;;  %v4872_v37 = vrot.slane %v9051_v36, 3  ;;  %v4890_v36 = vrot.slane %v9176_v42, 4 }
 0x25d   : > { %5321 = vmatpush2.bf16.msra.mxu1 %v8473_v57  ;;  %5349 = vmatprep.subr.bf16.mxu0 %v8484_v9  ;;  %v8539_v57 = vld [vmem:[%s11342_s1 + $0x1310] ss:$8 sps:$4 sm:$0xff]   ;;  %v4875_v9 = vrot.slane %v9899_v10, 3 }
 0x25e   : > { %5322 = vmatprep.subr.bf16.mxu1 %v8481_v3  ;;  %v4873_v3 = vrot.slane %v9028_v27, 4  ;;  %v8547_v27 = vld [vmem:[%s11342_s1 + $0x1304] ss:$8 sps:$4 sm:$0xff]  }
 0x260   : > { %5350 = vmatpush1.bf16.msra.mxu0 %v8482_v47  ;;  %v8542_v47 = vld [vmem:[%s11342_s1 + $0x1390] ss:$8 sps:$4 sm:$0xff]   ;;  %v4874_v10 = vor.u32 %v4873_v3, %v4872_v37 }
 0x261   : > { %5323 = vmatpush2.bf16.msra.mxu1 %v8479_v12  ;;  %5351 = vmatprep.subr.bf16.mxu0 %v8490_v61  ;;  %v4876_v12 = vrot.slane %v9055_v38, 4  ;;  %v4887_v61 = vrot.slane %v9157_v31, 4  ;;  %v8550_v38 = vld [vmem:[%s11342_s1 + $0x1384] ss:$8 sps:$4 sm:$0xff]   ;;  %v8545_v31 = vld [vmem:[%s11342_s1 + $0x1300] ss:$8 sps:$4 sm:$0xff]  }
 0x262   : > { %5324 = vmatprep.subr.bf16.mxu1 %v8487_v51  ;;  %v4886_v51 = vrot.slane %v9172_v40, 3  ;;  %v8548_v40 = vld [vmem:[%s11342_s1 + $0x1380] ss:$8 sps:$4 sm:$0xff]   ;;  %v8599_v37 = vld [vmem:[%s11342_s1 + $0x14f0] ss:$8 sps:$4 sm:$0xff]  }
 0x263   : > { %v4877_v42 = vor.u32 %v4876_v12, %v4875_v9  ;;  %v8602_v3 = vld [vmem:[%s11342_s1 + $0x15f0] ss:$8 sps:$4 sm:$0xff]   ;;  %v8607_v9 = vld [vmem:[%s11342_s1 + $0x14e4] ss:$8 sps:$4 sm:$0xff]  }
 0x264   : > { %5352 = vmatpush1.bf16.msra.mxu0 %v8488_v19  ;;  %v8610_v12 = vld [vmem:[%s11342_s1 + $0x15e4] ss:$8 sps:$4 sm:$0xff]  }
 0x265   : > { %5325 = vmatpush2.bf16.msra.mxu1 %v8485_v18  ;;  %5353 = vmatprep.subr.bf16.mxu0 %v8496_v32  ;;  %v4889_v18 = vrot.slane %v9908_v16, 3  ;;  %v4888_v16 = vor.u32 %v4887_v61, %v4886_v51  ;;  %v8556_v32 = vld [vmem:[%s11342_s1 + $0x1574] ss:$8 sps:$4 sm:$0xff]   ;;  %v8608_v51 = vld [vmem:[%s11342_s1 + $0x15e0] ss:$8 sps:$4 sm:$0xff]  }
 0x266   : > { %5326 = vmatprep.subr.bf16.mxu1 %v8493_v5  ;;  %v8553_v5 = vld [vmem:[%s11342_s1 + $0x1474] ss:$8 sps:$4 sm:$0xff]  }
 0x267   : > { %v4891_v19 = vor.u32 %v4890_v36, %v4889_v18  ;;  %v8613_v61 = vld [vmem:[%s11342_s1 + $0x14d4] ss:$8 sps:$4 sm:$0xff]   ;;  %v8611_v36 = vld [vmem:[%s11342_s1 + $0x14d0] ss:$8 sps:$4 sm:$0xff]  }
 0x268   : > { %5354 = vmatpush1.bf16.msra.mxu0 %v8494_v39  ;;  %v8551_v39 = vld [vmem:[%s11342_s1 + $0x1470] ss:$8 sps:$4 sm:$0xff]   ;;  %v8616_v18 = vld [vmem:[%s11342_s1 + $0x15d4] ss:$8 sps:$4 sm:$0xff]  }
 0x269   : > { %5327 = vmatpush2.bf16.msra.mxu1 %v8491_v35  ;;  %5355 = vmatprep.subr.bf16.mxu0 %v8502_v44  ;;  %v4878_v35 = vsel %vm4857_vm6, %v4874_v10, %v4877_v42  ;;  %v4892_v28 = vsel %vm4857_vm6, %v4888_v16, %v4891_v19  ;;  %v8680_v44 = vld [vmem:[%s8930_s11 + $0x58] sm:$0xff]  ;;  %v8622_v10 = vld [vmem:[%s11342_s1 + $0x15c4] ss:$8 sps:$4 sm:$0xff]  }
 0x26a   : > { %5328 = vmatprep.subr.bf16.mxu1 %v8499_v46  ;;  %v8679_v46 = vld [vmem:[%s8930_s11 + $0x30] sm:$0xff] }
 0x26b   : > { %v8625_v42 = vld [vmem:[%s11342_s1 + $0x14b4] ss:$8 sps:$4 sm:$0xff]   ;;  %v8623_v19 = vld [vmem:[%s11342_s1 + $0x14b0] ss:$8 sps:$4 sm:$0xff]  }
 0x26c   : > { %5356 = vmatpush1.bf16.msra.mxu0 %v8500_v33  ;;  %v8681_v33 = vld [vmem:[%s8930_s11 + $0x40] sm:$0xff]  ;;  %v8628_v16 = vld [vmem:[%s11342_s1 + $0x15b4] ss:$8 sps:$4 sm:$0xff]  }
 0x26d   : > { %5329 = vmatpush2.bf16.msra.mxu1 %v8497_v25  ;;  %5357 = vmatprep.subr.bf16.mxu0 %v8505_v4  ;;  %v5432_v25 = vpack.c.bf16 %v8680_v44, %v8679_v46  ;;  %v5434_v50 = vpack.c.bf16 %v8682_v34, %v8681_v33  ;;  %v8557_v4 = vld [vmem:[%s11342_s1 + $0x1460] ss:$8 sps:$4 sm:$0xff]   ;;  %v8638_v46 = vld [vmem:[%s11342_s1 + $0x1590] ss:$8 sps:$4 sm:$0xff]   ;;  %v8643_v44 = vld [vmem:[%s11342_s1 + $0x1484] ss:$8 sps:$4 sm:$0xff]  }
 0x26e   : > { %5384 = vmatprep.subr.bf16.mxu1 %v8508_v55  ;;  %v8560_v55 = vld [vmem:[%s11342_s1 + $0x1560] ss:$8 sps:$4 sm:$0xff]  }
 0x26f   : > { %v8641_v33 = vld [vmem:[%s11342_s1 + $0x1480] ss:$8 sps:$4 sm:$0xff]  }
 0x270   : > { %5331 = vmatmul.mubr.bf16.vlgmr.msra.gmra.mxu1 %v4864_v58  ;;  %5358 = vmatpush2.bf16.msra.mxu0 %v8503_v53  ;;  %v8565_v53 = vld [vmem:[%s11342_s1 + $0x1454] ss:$8 sps:$4 sm:$0xff]   ;;  %v8563_v58 = vld [vmem:[%s11342_s1 + $0x1450] ss:$8 sps:$4 sm:$0xff]   ;;  %v8644_v34 = vld [vmem:[%s11342_s1 + $0x1580] ss:$8 sps:$4 sm:$0xff]  }
 0x271   : > { %5385 = vmatpush1.bf16.msra.mxu1 %v8506_v54  ;;  %5359 = vmatprep.subr.bf16.mxu0 %v8511_v59  ;;  %v8568_v54 = vld [vmem:[%s11342_s1 + $0x1554] ss:$8 sps:$4 sm:$0xff]   ;;  %v8566_v59 = vld [vmem:[%s11342_s1 + $0x1550] ss:$8 sps:$4 sm:$0xff]  }
 0x272   : > { %5386 = vmatprep.subr.bf16.mxu1 %v8514_v0  ;;  %5416 = vmatprep.mubr.bf16.mxu1 %v8729_v62  ;;  %v8571_v0 = vld [vmem:[%s11342_s1 + $0x1444] ss:$8 sps:$4 sm:$0xff]  }
 0x274   : > { %5360 = vmatpush2.bf16.msra.mxu0 %v8509_v1  ;;  %v8574_v1 = vld [vmem:[%s11342_s1 + $0x1544] ss:$8 sps:$4 sm:$0xff]  }
 0x275   : > { %5387 = vmatpush1.bf16.msra.mxu1 %v8512_v6  ;;  %5361 = vmatprep.subr.bf16.mxu0 %v8517_v7  ;;  %v8569_v6 = vld [vmem:[%s11342_s1 + $0x1440] ss:$8 sps:$4 sm:$0xff]  }
 0x276   : > { %5388 = vmatprep.subr.bf16.mxu1 %v8520_v8  ;;  %v8572_v7 = vld [vmem:[%s11342_s1 + $0x1540] ss:$8 sps:$4 sm:$0xff]   ;;  %v8577_v8 = vld [vmem:[%s11342_s1 + $0x1434] ss:$8 sps:$4 sm:$0xff]  }
 0x278   : > { %5362 = vmatpush2.bf16.msra.mxu0 %v8515_v24  ;;  %v8580_v24 = vld [vmem:[%s11342_s1 + $0x1534] ss:$8 sps:$4 sm:$0xff]  }
 0x279   : > { %5389 = vmatpush1.bf16.msra.mxu1 %v8518_v2  ;;  %5363 = vmatprep.subr.bf16.mxu0 %v8523_v11  ;;  %v8575_v2 = vld [vmem:[%s11342_s1 + $0x1430] ss:$8 sps:$4 sm:$0xff]  }
 0x27a   : > { %5390 = vmatprep.subr.bf16.mxu1 %v8526_v21  ;;  %v8578_v11 = vld [vmem:[%s11342_s1 + $0x1530] ss:$8 sps:$4 sm:$0xff]   ;;  %v8583_v21 = vld [vmem:[%s11342_s1 + $0x1424] ss:$8 sps:$4 sm:$0xff]  }
 0x27c   : > { %5364 = vmatpush2.bf16.msra.mxu0 %v8521_v30  ;;  %v8586_v30 = vld [vmem:[%s11342_s1 + $0x1524] ss:$8 sps:$4 sm:$0xff]  }
 0x27d   : > { %5391 = vmatpush1.bf16.msra.mxu1 %v8524_v48  ;;  %5365 = vmatprep.subr.bf16.mxu0 %v8529_v13  ;;  %v8581_v48 = vld [vmem:[%s11342_s1 + $0x1420] ss:$8 sps:$4 sm:$0xff]  }
 0x27e   : > { %5392 = vmatprep.subr.bf16.mxu1 %v8532_v17  ;;  %v8584_v13 = vld [vmem:[%s11342_s1 + $0x1520] ss:$8 sps:$4 sm:$0xff]   ;;  %v8589_v17 = vld [vmem:[%s11342_s1 + $0x1414] ss:$8 sps:$4 sm:$0xff]  }
 0x280   : > { %5366 = vmatpush2.bf16.msra.mxu0 %v8527_v22  ;;  %v8592_v22 = vld [vmem:[%s11342_s1 + $0x1514] ss:$8 sps:$4 sm:$0xff]  }
 0x281   : > { %5393 = vmatpush1.bf16.msra.mxu1 %v8530_v26  ;;  %5367 = vmatprep.subr.bf16.mxu0 %v8535_v15  ;;  %v8587_v26 = vld [vmem:[%s11342_s1 + $0x1410] ss:$8 sps:$4 sm:$0xff]  }
 0x282   : > { %5394 = vmatprep.subr.bf16.mxu1 %v8538_v52  ;;  %v8590_v15 = vld [vmem:[%s11342_s1 + $0x1510] ss:$8 sps:$4 sm:$0xff]   ;;  %v8595_v52 = vld [vmem:[%s11342_s1 + $0x1404] ss:$8 sps:$4 sm:$0xff]  }
 0x284   : > { %5368 = vmatpush2.bf16.msra.mxu0 %v8533_v20  ;;  %v8598_v20 = vld [vmem:[%s11342_s1 + $0x1504] ss:$8 sps:$4 sm:$0xff]  }
 0x285   : > { %5395 = vmatpush1.bf16.msra.mxu1 %v8536_v60  ;;  %5369 = vmatprep.subr.bf16.mxu0 %v8541_v41  ;;  %v8593_v60 = vld [vmem:[%s11342_s1 + $0x1400] ss:$8 sps:$4 sm:$0xff]  }
 0x286   : > { %5396 = vmatprep.subr.bf16.mxu1 %v8544_v49  ;;  %v8596_v41 = vld [vmem:[%s11342_s1 + $0x1500] ss:$8 sps:$4 sm:$0xff]   ;;  %v8601_v49 = vld [vmem:[%s11342_s1 + $0x14f4] ss:$8 sps:$4 sm:$0xff]  }
 0x288   : > { %5370 = vmatpush2.bf16.msra.mxu0 %v8539_v57  ;;  %v8604_v57 = vld [vmem:[%s11342_s1 + $0x15f4] ss:$8 sps:$4 sm:$0xff]  }
 0x289   : > { %5397 = vmatpush1.bf16.msra.mxu1 %v8542_v47  ;;  %5371 = vmatprep.subr.bf16.mxu0 %v8547_v27  ;;  %v8605_v47 = vld [vmem:[%s11342_s1 + $0x14e0] ss:$8 sps:$4 sm:$0xff]   ;;  %v8614_v27 = vld [vmem:[%s11342_s1 + $0x15d0] ss:$8 sps:$4 sm:$0xff]  }
 0x28a   : > { %5398 = vmatprep.subr.bf16.mxu1 %v8550_v38  ;;  %v8619_v38 = vld [vmem:[%s11342_s1 + $0x14c4] ss:$8 sps:$4 sm:$0xff]  }
 0x28c   : > { %5372 = vmatpush2.bf16.msra.mxu0 %v8545_v31  ;;  %v8617_v31 = vld [vmem:[%s11342_s1 + $0x14c0] ss:$8 sps:$4 sm:$0xff]  }
 0x28d   : > { %5399 = vmatpush1.bf16.msra.mxu1 %v8548_v40  ;;  %5917 = vmatprep.subr.bf16.mxu0 %v8553_v5  ;;  %v8620_v40 = vld [vmem:[%s11342_s1 + $0x15c0] ss:$8 sps:$4 sm:$0xff]   ;;  %v8626_v5 = vld [vmem:[%s11342_s1 + $0x15b0] ss:$8 sps:$4 sm:$0xff]  }
 0x28e   : > { %5960 = vmatprep.subr.bf16.mxu1 %v8556_v32  ;;  %v8631_v32 = vld [vmem:[%s11342_s1 + $0x14a4] ss:$8 sps:$4 sm:$0xff]  }
 0x28f   : > { %5374 = vmatmul.mubr.bf16.vlgmr.msra.gmra.mxu0 %v4878_v35  ;;  %v8634_v35 = vld [vmem:[%s11342_s1 + $0x15a4] ss:$8 sps:$4 sm:$0xff]  }
 0x290   : > { %5417 = vmatmul.mubr.bf16.vlgmr.msra.gmra.mxu1 %v4892_v28  ;;  %5918 = vmatpush1.bf16.msra.mxu0 %v8551_v39  ;;  %v8629_v39 = vld [vmem:[%s11342_s1 + $0x14a0] ss:$8 sps:$4 sm:$0xff]   ;;  %v8637_v28 = vld [vmem:[%s11342_s1 + $0x1494] ss:$8 sps:$4 sm:$0xff]  }
 0x291   : > { %5961 = vmatpush1.bf16.msra.mxu1 %v8554_v23  ;;  %5919 = vmatprep.subr.bf16.mxu0 %v8559_v43  ;;  %v8632_v23 = vld [vmem:[%s11342_s1 + $0x15a0] ss:$8 sps:$4 sm:$0xff]   ;;  %v8640_v43 = vld [vmem:[%s11342_s1 + $0x1594] ss:$8 sps:$4 sm:$0xff]  }
 0x292   : > { %5962 = vmatprep.subr.bf16.mxu1 %v8562_v45  ;;  %5949 = vmatprep.mubr.bf16.mxu0 %v5432_v25  ;;  %v8635_v45 = vld [vmem:[%s11342_s1 + $0x1490] ss:$8 sps:$4 sm:$0xff]   ;;  %v8646_v25 = vld [vmem:[%s11342_s1 + $0x1584] ss:$8 sps:$4 sm:$0xff]  }
 0x293   : > { %5992 = vmatprep.mubr.bf16.mxu1 %v5434_v50  ;;  %v8649_v50 = vld [vmem:[%s11342_s1 + $0x1674] ss:$8 sps:$4 sm:$0xff]  }
 0x294   : > { %5920 = vmatpush1.bf16.msra.mxu0 %v8557_v4  ;;  %v8683_v4 = vld [vmem:[%s8930_s11 + $0x28] sm:$0xff] }
 0x295   : > { %5963 = vmatpush1.bf16.msra.mxu1 %v8560_v55  ;;  %5921 = vmatprep.subr.bf16.mxu0 %v8565_v53  ;;  %v8684_v55 = vld [vmem:[%s8930_s11 + $0x50] sm:$0xff] }
 0x296   : > { %5964 = vmatprep.subr.bf16.mxu1 %v8568_v54  ;;  %v5431_v53 = vpack.c.bf16 %v8684_v55, %v8683_v4  ;;  %v8685_v54 = vld [vmem:[%s8930_s11 + $0x38] sm:$0xff] }
 0x298   : > { %5922 = vmatpush1.bf16.msra.mxu0 %v8563_v58  ;;  %v8686_v58 = vld [vmem:[%s8930_s11 + $0x60] sm:$0xff] }
 0x299   : > { %5965 = vmatpush1.bf16.msra.mxu1 %v8566_v59  ;;  %5923 = vmatprep.subr.bf16.mxu0 %v8571_v0  ;;  %v5433_v59 = vpack.c.bf16 %v8686_v58, %v8685_v54  ;;  %v8647_v0 = vld [vmem:[%s11342_s1 + $0x1670] ss:$8 sps:$4 sm:$0xff]  }
 0x29a   : > { %5966 = vmatprep.subr.bf16.mxu1 %v8574_v1  ;;  %v8652_v1 = vld [vmem:[%s11342_s1 + $0x1664] ss:$8 sps:$4 sm:$0xff]  }
 0x29c   : > { %5924 = vmatpush1.bf16.msra.mxu0 %v8569_v6  ;;  %v8650_v6 = vld [vmem:[%s11342_s1 + $0x1660] ss:$8 sps:$4 sm:$0xff]  }
 0x29d   : > { %5967 = vmatpush1.bf16.msra.mxu1 %v8572_v7  ;;  %5925 = vmatprep.subr.bf16.mxu0 %v8577_v8  ;;  %v8655_v7 = vld [vmem:[%s11342_s1 + $0x1654] ss:$8 sps:$4 sm:$0xff]   ;;  %v8653_v8 = vld [vmem:[%s11342_s1 + $0x1650] ss:$8 sps:$4 sm:$0xff]  }
 0x29e   : > { %5968 = vmatprep.subr.bf16.mxu1 %v8580_v24  ;;  %v8658_v24 = vld [vmem:[%s11342_s1 + $0x1644] ss:$8 sps:$4 sm:$0xff]  }
 0x2a0   : > { %5926 = vmatpush1.bf16.msra.mxu0 %v8575_v2  ;;  %v8661_v2 = vld [vmem:[%s11342_s1 + $0x1634] ss:$8 sps:$4 sm:$0xff]  }
 0x2a1   : > { %5969 = vmatpush1.bf16.msra.mxu1 %v8578_v11  ;;  %5927 = vmatprep.subr.bf16.mxu0 %v8583_v21  ;;  %v8659_v11 = vld [vmem:[%s11342_s1 + $0x1630] ss:$8 sps:$4 sm:$0xff]   ;;  %v8664_v21 = vld [vmem:[%s11342_s1 + $0x1624] ss:$8 sps:$4 sm:$0xff]  }
 0x2a2   : > { %5970 = vmatprep.subr.bf16.mxu1 %v8586_v30  ;;  %v8662_v30 = vld [vmem:[%s11342_s1 + $0x1620] ss:$8 sps:$4 sm:$0xff]  }
 0x2a4   : > { %5928 = vmatpush1.bf16.msra.mxu0 %v8581_v48  ;;  %v8667_v48 = vld [vmem:[%s11342_s1 + $0x1614] ss:$8 sps:$4 sm:$0xff]  }
 0x2a5   : > { %5971 = vmatpush1.bf16.msra.mxu1 %v8584_v13  ;;  %5929 = vmatprep.subr.bf16.mxu0 %v8589_v17  ;;  %v8665_v13 = vld [vmem:[%s11342_s1 + $0x1610] ss:$8 sps:$4 sm:$0xff]   ;;  %v8670_v17 = vld [vmem:[%s11342_s1 + $0x1604] ss:$8 sps:$4 sm:$0xff]  }
 0x2a6   : > { %5972 = vmatprep.subr.bf16.mxu1 %v8592_v22  ;;  %v8668_v22 = vld [vmem:[%s11342_s1 + $0x1600] ss:$8 sps:$4 sm:$0xff]  }
 0x2a8   : > { %5930 = vmatpush1.bf16.msra.mxu0 %v8587_v26  ;;  %v8687_v26 = vld [vmem:[%s8930_s11 + $0x48] sm:$0xff] }
 0x2a9   : > { %5973 = vmatpush1.bf16.msra.mxu1 %v8590_v15  ;;  %5931 = vmatprep.subr.bf16.mxu0 %v8595_v52  ;;  %v8688_v15 = vld [vmem:[%s8930_s11 + $0x70] sm:$0xff] }
 0x2aa   : > { %5974 = vmatprep.subr.bf16.mxu1 %v8598_v20  ;;  %v5435_v52 = vpack.c.bf16 %v8688_v15, %v8687_v26  ;;  %v2752_v20 = vpop.f32.mrf.mxu1 }
 0x2ac   : > { %5932 = vmatpush1.bf16.msra.mxu0 %v8593_v60  ;;  %v2754_v60 = vpop.f32.mrf.mxu1 }
 0x2ad   : > { %5975 = vmatpush1.bf16.msra.mxu1 %v8596_v41  ;;  %5933 = vmatprep.subr.bf16.mxu0 %v8601_v49 }
 0x2ae   : > { %5976 = vmatprep.subr.bf16.mxu1 %v8604_v57  ;;  %v2756_v41 = vpop.f32.mrf.mxu1  ;;  %v2795_v57 = vpop.f32.mrf.mxu0 }
 0x2af   : > { %v2796_v26 = vadd.f32 %v2795_v57, %v2752_v20 }
 0x2b0   : > { %5934 = vmatpush2.bf16.msra.mxu0 %v8599_v37  ;;  %v2758_v49 = vpop.f32.mrf.mxu1 }
 0x2b1   : > { %5977 = vmatpush2.bf16.msra.mxu1 %v8602_v3  ;;  %5935 = vmatprep.subr.bf16.mxu0 %v8607_v9  ;;  %v2797_v3 = vpop.f32.mrf.mxu0 }
 0x2b2   : > { %5978 = vmatprep.subr.bf16.mxu1 %v8610_v12  ;;  %v2838_v37 = vpop.f32.mrf.mxu1  ;;  %v2798_v15 = vadd.f32 %v2797_v3, %v2754_v60 }
 0x2b3   : > { %v2799_v12 = vpop.f32.mrf.mxu0 }
 0x2b4   : > { %5936 = vmatpush2.bf16.msra.mxu0 %v8605_v47  ;;  %v2840_v9 = vpop.f32.mrf.mxu1 }
 0x2b5   : > { %5979 = vmatpush2.bf16.msra.mxu1 %v8608_v51  ;;  %5937 = vmatprep.subr.bf16.mxu0 %v8613_v61  ;;  %v2801_v51 = vpop.f32.mrf.mxu0 }
 0x2b6   : > { %5980 = vmatprep.subr.bf16.mxu1 %v8616_v18  ;;  %v2842_v47 = vpop.f32.mrf.mxu1 }
 0x2b7   : > { %v3387_v18 = vpop.f32.mrf.mxu0 }
 0x2b8   : > { %5938 = vmatpush2.bf16.msra.mxu0 %v8611_v36  ;;  %v11275_v61 = vpop.f32.mrf.mxu1 }
 0x2b9   : > { %5981 = vmatpush2.bf16.msra.mxu1 %v8614_v27  ;;  %5939 = vmatprep.subr.bf16.mxu0 %v8619_v38  ;;  %11350 = vst [vmem:[#allocation7_spill] sm:$0xff] %v11275_v61  ;;  %v3389_v27 = vpop.f32.mrf.mxu0 }
 0x2ba   : > { %5982 = vmatprep.subr.bf16.mxu1 %v8622_v10  ;;  %v3430_v36 = vpop.f32.mrf.mxu1 }
 0x2bb   : > { %v3391_v10 = vpop.f32.mrf.mxu0 }
 0x2bc   : > { %5940 = vmatpush2.bf16.msra.mxu0 %v8617_v31  ;;  %v3432_v38 = vpop.f32.mrf.mxu1 }
 0x2bd   : > { %5983 = vmatpush2.bf16.msra.mxu1 %v8620_v40  ;;  %5941 = vmatprep.subr.bf16.mxu0 %v8625_v42  ;;  %v11277_v40 = vpop.f32.mrf.mxu0 }
 0x2be   : > { %5984 = vmatprep.subr.bf16.mxu1 %v8628_v16  ;;  %v3434_v31 = vpop.f32.mrf.mxu1  ;;  %11351 = vst [vmem:[#allocation8_spill] sm:$0xff] %v11277_v40 }
 0x2bf   : > { %v3473_v16 = vpop.f32.mrf.mxu0  ;;  %v3435_v40 = vadd.f32 %v3434_v31, %v3391_v10 }
 0x2c0   : > { %5942 = vmatpush2.bf16.msra.mxu0 %v8623_v19  ;;  %v11279_v42 = vpop.f32.mrf.mxu1  ;;  %v11363_v60 = vld [vmem:[#allocation7_spill] sm:$0xff] }
 0x2c1   : > { %5985 = vmatpush2.bf16.msra.mxu1 %v8626_v5  ;;  %5943 = vmatprep.subr.bf16.mxu0 %v8631_v32  ;;  %11352 = vst [vmem:[#allocation9_spill] sm:$0xff] %v11279_v42  ;;  %v3475_v5 = vpop.f32.mrf.mxu0  ;;  %v3433_v42 = vadd.f32 %v3432_v38, %v3389_v27 }
 0x2c2   : > { %5986 = vmatprep.subr.bf16.mxu1 %v8634_v35  ;;  %v4042_v19 = vpop.f32.mrf.mxu1 }
 0x2c3   : > { %v3477_v35 = vpop.f32.mrf.mxu0  ;;  %v3476_v57 = vadd.f32 %v3475_v5, %v3433_v42 }
 0x2c4   : > { %5944 = vmatpush2.bf16.msra.mxu0 %v8629_v39  ;;  %v4044_v32 = vpop.f32.mrf.mxu1  ;;  %v3478_v3 = vadd.f32 %v3477_v35, %v3435_v40 }
 0x2c5   : > { %5987 = vmatpush2.bf16.msra.mxu1 %v8632_v23  ;;  %5945 = vmatprep.subr.bf16.mxu0 %v8637_v28  ;;  %v11281_v23 = vpop.f32.mrf.mxu0 }
 0x2c6   : > { %5988 = vmatprep.subr.bf16.mxu1 %v8640_v43  ;;  %v4046_v39 = vpop.f32.mrf.mxu1  ;;  %11353 = vst [vmem:[#allocation10_spill] sm:$0xff] %v11281_v23  ;;  %v2841_v23 = vadd.f32 %v2840_v9, %v2798_v15 }
 0x2c7   : > { %v4085_v43 = vpop.f32.mrf.mxu0 }
 0x2c8   : > { %5946 = vmatpush2.bf16.msra.mxu0 %v8635_v45  ;;  %v4048_v28 = vpop.f32.mrf.mxu1  ;;  %v11367_v27 = vld [vmem:[#allocation9_spill] sm:$0xff] }
 0x2c9   : > { %5989 = vmatpush2.bf16.msra.mxu1 %v8638_v46  ;;  %5947 = vmatprep.subr.bf16.mxu0 %v8643_v44  ;;  %v4087_v46 = vpop.f32.mrf.mxu0 }
 0x2ca   : > { %5990 = vmatprep.subr.bf16.mxu1 %v8646_v25  ;;  %v4128_v45 = vpop.f32.mrf.mxu1  ;;  %v4088_v14 = vadd.f32 %v4087_v46, %v4044_v32  ;;  %v6053_v46 = vshrl.u32 %v6052_v63, 7 }
 0x2cb   : > { %v4089_v25 = vpop.f32.mrf.mxu0 }
 0x2cc   : > { %5948 = vmatpush2.bf16.msra.mxu0 %v8641_v33  ;;  %v4130_v44 = vpop.f32.mrf.mxu1  ;;  %v4090_v31 = vadd.f32 %v4089_v25, %v4046_v39 }
 0x2cd   : > { %5991 = vmatpush2.bf16.msra.mxu1 %v8644_v34  ;;  %6003 = vmatprep.subr.bf16.mxu0 %v8649_v50  ;;  %v4091_v34 = vpop.f32.mrf.mxu0 }
 0x2ce   : > { %v11283_v33 = vpop.f32.mrf.mxu1 }
 0x2cf   : > { %5950 = vmatmul.mubr.bf16.vlgmr.msra.gmra.mxu0 %v5431_v53  ;;  %11354 = vst [vmem:[#allocation11_spill] sm:$0xff] %v11283_v33  ;;  %v3431_v33 = vadd.f32 %v3430_v36, %v3387_v18  ;;  %v11365_v18 = vld [vmem:[#allocation5_spill] sm:$0xff]  ;;  %v11366_v36 = vld [vmem:[#allocation8_spill] sm:$0xff] }
 0x2d0   : > { %5993 = vmatmul.mubr.bf16.vlgmr.msra.gmra.mxu1 %v5433_v59  ;;  %6004 = vmatpush1.bf16.msra.mxu0 %v8647_v0  ;;  %v11285_v50 = vpop.f32.mrf.mxu1  ;;  %v3437_v38 = vadd.f32 %v11367_v27, %v11366_v36 }
 0x2d1   : > { %6035 = vmatprep.mubr.bf16.mxu0 %v8729_v62  ;;  %6005 = vmatprep.subr.bf16.mxu0 %v8652_v1  ;;  %v8656_v62 = vld [vmem:[%s11342_s1 + $0x1640] ss:$8 sps:$4 sm:$0xff]   ;;  %11355 = vst [vmem:[#allocation12_spill] sm:$0xff] %v11285_v50  ;;  %v2839_v50 = vadd.f32 %v2838_v37, %v2796_v26  ;;  %v3474_v29 = vadd.f32 %v3473_v16, %v3431_v33  ;;  %v11368_v33 = vld [vmem:[#allocation6_spill] sm:$0xff] }
 0x2d2   : > { %v4131_v16 = vadd.f32 %v4130_v44, %v4088_v14 }
 0x2d4   : > { %6006 = vmatpush1.bf16.msra.mxu0 %v8650_v6 }
 0x2d5   : > { %6007 = vmatprep.subr.bf16.mxu0 %v8655_v7 }
 0x2d6   : > { %v11370_v26 = vld [vmem:[#allocation11_spill] sm:$0xff] }
 0x2d8   : > { %6008 = vmatpush1.bf16.msra.mxu0 %v8653_v8  ;;  %v11372_v63 = vld [vmem:[#allocation12_spill] sm:$0xff] }
 0x2d9   : > { %6009 = vmatprep.subr.bf16.mxu0 %v8658_v24 }
 0x2dc   : > { %6010 = vmatpush1.bf16.msra.mxu0 %v8656_v62 }
 0x2dd   : > { %6011 = vmatprep.subr.bf16.mxu0 %v8661_v2 }
 0x2e0   : > { %6012 = vmatpush1.bf16.msra.mxu0 %v8659_v11 }
 0x2e1   : > { %6013 = vmatprep.subr.bf16.mxu0 %v8664_v21 }
 0x2e4   : > { %6014 = vmatpush1.bf16.msra.mxu0 %v8662_v30 }
 0x2e5   : > { %6015 = vmatprep.subr.bf16.mxu0 %v8667_v48 }
 0x2e8   : > { %6016 = vmatpush1.bf16.msra.mxu0 %v8665_v13 }
 0x2e9   : > { %6017 = vmatprep.subr.bf16.mxu0 %v8670_v17 }
 0x2ec   : > { %6018 = vmatpush1.bf16.msra.mxu0 %v8668_v22 }
 0x2ef   : > { %6036 = vmatmul.mubr.bf16.vlgmr.msra.gmra.mxu0 %v5435_v52  ;;  %v4677_v4 = vpop.f32.mrf.mxu0  ;;  %v2800_v52 = vadd.f32 %v2799_v12, %v2756_v41 }
 0x2f0   : > { %v4720_v55 = vpop.f32.mrf.mxu1 }
 0x2f1   : > { %v4679_v53 = vpop.f32.mrf.mxu0  ;;  %v2843_v56 = vadd.f32 %v2842_v47, %v2800_v52  ;;  %v4721_v32 = vadd.f32 %v4720_v55, %v4677_v4  ;;  %v6054_v55 = vsub.s32 0, %v6053_v46 }
 0x2f2   : > { %v4722_v54 = vpop.f32.mrf.mxu1 }
 0x2f3   : > { %v11287_v58 = vpop.f32.mrf.mxu0  ;;  %v2849_v9 = vadd.f32 %v2843_v56, %v11365_v18  ;;  %v4723_v35 = vadd.f32 %v4722_v54, %v4679_v53 }
 0x2f4   : > { %11356 = vst [vmem:[#allocation13_spill] sm:$0xff] %v11287_v58  ;;  %v4724_v59 = vpop.f32.mrf.mxu1  ;;  %v2802_v58 = vadd.f32 %v2801_v51, %v2758_v49  ;;  %v11364_v49 = vld [vmem:[#allocation4_spill] sm:$0xff] }
 0x2f5   : > { %v11289_v0 = vpop.f32.mrf.mxu0  ;;  %v2848_v51 = vadd.f32 %v2841_v23, %v11364_v49  ;;  %v3484_v5 = vadd.f32 %v3478_v3, %v2849_v9 }
 0x2f6   : > { %11357 = vst [vmem:[#allocation14_spill] sm:$0xff] %v11289_v0  ;;  %v11291_v1 = vpop.f32.mrf.mxu1  ;;  %v2845_v41 = vadd.f32 %v11363_v60, %v2802_v58  ;;  %v11369_v58 = vld [vmem:[#allocation10_spill] sm:$0xff] }
 0x2f7   : > { %11358 = vst [vmem:[#allocation15_spill] sm:$0xff] %v11291_v1  ;;  %v3483_v40 = vadd.f32 %v3476_v57, %v2848_v51  ;;  %v3480_v56 = vadd.f32 %v11369_v58, %v3437_v38 }
 0x2f8   : > { %v2850_v42 = vadd.f32 %v2845_v41, %v11368_v33 }
 0x2f9   : > { %v4138_v25 = vadd.f32 %v4131_v16, %v3483_v40 }
 0x2fb   : > { %v11371_v39 = vld [vmem:[#allocation13_spill] sm:$0xff] }
 0x2fc   : > { %v4725_v14 = vadd.f32 %v4724_v59, %v11371_v39  ;;  %v6058_v59 = vsub.s32 1, %v6053_v46 }
 0x2fe   : > { %v11374_v53 = vld [vmem:[#allocation15_spill] sm:$0xff] }
 0x30f   : > { %v4763_v6 = vpop.f32.mrf.mxu0 }
 0x311   : > { %v4765_v8 = vpop.f32.mrf.mxu0 }
 0x313   : > { %v11293_v62 = vpop.f32.mrf.mxu0 }
 0x314   : > { %11359 = vst [vmem:[#allocation16_spill] sm:$0xff] %v11293_v62 }
 0x315   : > { %v11295_v11 = vpop.f32.mrf.mxu0 }
 0x316   : > { %11360 = vst [vmem:[#allocation17_spill] sm:$0xff] %v11295_v11  ;;  %v4086_v11 = vadd.f32 %v4085_v43, %v4042_v19  ;;  %v4092_v19 = vadd.f32 %v4091_v34, %v4048_v28  ;;  %v4766_v28 = vadd.f32 %v4765_v8, %v4723_v35  ;;  %v3485_v8 = vadd.f32 %v3480_v56, %v2850_v42 }
 0x318   : > { %v4129_v47 = vadd.f32 %v4128_v45, %v4086_v11  ;;  %v4764_v11 = vadd.f32 %v4763_v6, %v4721_v32  ;;  %v4135_v34 = vadd.f32 %v11372_v63, %v4092_v19  ;;  %v4773_v41 = vadd.f32 %v4766_v28, %v4138_v25 }
 0x31d   : > { %v11377_v57 = vld [vmem:[#allocation17_spill] sm:$0xff] }
 0x330   : > { %v5332_v7 = vpop.f32.mrf.mxu1 }
 0x332   : > { %v5334_v24 = vpop.f32.mrf.mxu1 }
 0x334   : > { %v5336_v2 = vpop.f32.mrf.mxu1 }
 0x336   : > { %v5338_v21 = vpop.f32.mrf.mxu1 }
 0x34f   : > { %v5375_v30 = vpop.f32.mrf.mxu0 }
 0x350   : > { %v5418_v13 = vpop.f32.mrf.mxu1  ;;  %v5376_v43 = vadd.f32 %v5375_v30, %v5332_v7  ;;  %v11373_v7 = vld [vmem:[#allocation14_spill] sm:$0xff]  ;;  %v11375_v30 = vld [vmem:[#allocation16_spill] sm:$0xff] }
 0x351   : > { %v5377_v48 = vpop.f32.mrf.mxu0  ;;  %v4727_v54 = vadd.f32 %v11374_v53, %v11373_v7  ;;  %v4768_v15 = vadd.f32 %v11375_v30, %v4725_v14 }
 0x352   : > { %v11297_v22 = vpop.f32.mrf.mxu1  ;;  %v5419_v4 = vadd.f32 %v5418_v13, %v5376_v43 }
 0x353   : > { %v5379_v17 = vpop.f32.mrf.mxu0  ;;  %11361 = vst [vmem:[#allocation18_spill] sm:$0xff] %v11297_v22  ;;  %v11362_v22 = vld [vmem:[#allocation3_spill] sm:$0xff]  ;;  %v4770_v3 = vadd.f32 %v11377_v57, %v4727_v54 }
 0x354   : > { %v11299_v0 = vpop.f32.mrf.mxu1  ;;  %v2847_v20 = vadd.f32 %v2839_v50, %v11362_v22  ;;  %v5378_v22 = vadd.f32 %v5377_v48, %v5334_v24  ;;  %v5380_v44 = vadd.f32 %v5379_v17, %v5336_v2  ;;  %v6050_v24 = vld [vmem:[%s11343_s2] sm:$0x3] }
 0x355   : > { %v5381_v1 = vpop.f32.mrf.mxu0  ;;  %v6055_v9 = vrot.slane %v6050_v24, %v6054_v55 }
 0x356   : > { %v5424_v61 = vpop.f32.mrf.mxu1  ;;  %v3482_v10 = vadd.f32 %v3474_v29, %v2847_v20  ;;  %v4133_v29 = vadd.f32 %v11370_v26, %v4090_v31  ;;  %v5382_v52 = vadd.f32 %v5381_v1, %v5338_v21  ;;  %v5423_v49 = vadd.f32 %v11299_v0, %v5380_v44 }
 0x357   : > { %v6059_v31 = vrot.slane %v6050_v24, %v6058_v59 }
 0x358   : > { %v4137_v45 = vadd.f32 %v4129_v47, %v3482_v10  ;;  %v4139_v60 = vadd.f32 %v4133_v29, %v3484_v5  ;;  %v4140_v47 = vadd.f32 %v4135_v34, %v3485_v8  ;;  %v5425_v27 = vadd.f32 %v5424_v61, %v5382_v52 }
 0x35a   : > { %v4772_v2 = vadd.f32 %v4764_v11, %v4137_v45  ;;  %v11376_v48 = vld [vmem:[#allocation18_spill] sm:$0xff]  ;;  %v4774_v36 = vadd.f32 %v4768_v15, %v4139_v60  ;;  %v4775_v32 = vadd.f32 %v4770_v3, %v4140_v47 }
 0x35b   : > { %v5421_v17 = vadd.f32 %v11376_v48, %v5378_v22 }
 0x35c   : > { %v5427_v21 = vadd.f32 %v5419_v4, %v4772_v2  ;;  %v5429_v43 = vadd.f32 %v5423_v49, %v4774_v36  ;;  %v5430_v40 = vadd.f32 %v5425_v27, %v4775_v32 }
 0x35d   : > { %v5428_v16 = vadd.f32 %v5421_v17, %v4773_v41 }
 0x38f   : > { %v5951_v62 = vpop.f32.mrf.mxu0 }
 0x390   : > { %v5994_v12 = vpop.f32.mrf.mxu1 }
 0x391   : > { %v5953_v37 = vpop.f32.mrf.mxu0  ;;  %v5995_v13 = vadd.f32 %v5994_v12, %v5951_v62 }
 0x392   : > { %v5996_v50 = vpop.f32.mrf.mxu1 }
 0x393   : > { %v5955_v23 = vpop.f32.mrf.mxu0  ;;  %v5997_v51 = vadd.f32 %v5996_v50, %v5953_v37 }
 0x394   : > { %v5998_v20 = vpop.f32.mrf.mxu1 }
 0x395   : > { %v5957_v6 = vpop.f32.mrf.mxu0  ;;  %v5999_v62 = vadd.f32 %v5998_v20, %v5955_v23 }
 0x396   : > { %v6000_v38 = vpop.f32.mrf.mxu1 }
 0x397   : > { %v6001_v0 = vadd.f32 %v6000_v38, %v5957_v6 }
 0x3af   : > { %v6037_v1 = vpop.f32.mrf.mxu0 }
 0x3b0   : > { %v6038_v18 = vadd.f32 %v6037_v1, %v5995_v13 }
 0x3b1   : > { %v6039_v10 = vpop.f32.mrf.mxu0 }
 0x3b2   : > { %v6046_v12 = vadd.f32 %v6038_v18, %v5427_v21  ;;  %v6040_v19 = vadd.f32 %v6039_v10, %v5997_v51 }
 0x3b3   : > { %v6041_v46 = vpop.f32.mrf.mxu0 }
 0x3b4   : > { %v6062_v33 = vadd.f32 %v6055_v9, %v6046_v12  ;;  %v6047_v37 = vadd.f32 %v6040_v19, %v5428_v16  ;;  %v6042_v42 = vadd.f32 %v6041_v46, %v5999_v62 }
 0x3b5   : > { %v6043_v5 = vpop.f32.mrf.mxu0 }
 0x3b6   : > { %8671 = vtanh.f32 %v6062_v33  ;;  %v6063_v61 = vadd.f32 %v6059_v31, %v6047_v37  ;;  %v6048_v35 = vadd.f32 %v6042_v42, %v5429_v43  ;;  %v6044_v50 = vadd.f32 %v6043_v5, %v6001_v0 }
 0x3b8   : > { %8673 = vtanh.f32 %v6063_v61  ;;  %v6064_v23 = vadd.f32 %v6055_v9, %v6048_v35  ;;  %v6049_v58 = vadd.f32 %v6044_v50, %v5430_v40 }
 0x3ba   : > { %8675 = vtanh.f32 %v6064_v23  ;;  %v6065_v56 = vadd.f32 %v6059_v31, %v6049_v58 }
 0x3bc   : > { %8677 = vtanh.f32 %v6065_v56 }
 0x3c3   : > { %v8672_v45 = vpop.eup %8671 }
 0x3c4   : > { %v6070_v11 = vadd.f32 1.0, %v8672_v45 }
 0x3c5   : > { %v8674_v22 = vpop.eup %8673 }
 0x3c6   : > { %v6074_v26 = vmul.f32 0.5, %v6070_v11  ;;  %v6071_v29 = vadd.f32 1.0, %v8674_v22 }
 0x3c7   : > { %v8676_v39 = vpop.eup %8675 }
 0x3c8   : > { %6078 = vst [vmem:[%s222_s27] sm:$0xff] %v6074_v26  ;;  %v6075_v14 = vmul.f32 0.5, %v6071_v29  ;;  %v6072_v28 = vadd.f32 1.0, %v8676_v39 }
 0x3c9   : > { %v8678_v44 = vpop.eup %8677 }
 0x3ca   : > { %6079 = vst [vmem:[%s222_s27 + $0x8] sm:$0xff] %v6075_v14  ;;  %v6076_v25 = vmul.f32 0.5, %v6072_v28  ;;  %v6073_v63 = vadd.f32 1.0, %v8678_v44 }
 0x3cc   : > { %6080 = vst [vmem:[%s222_s27 + $0x10] sm:$0xff] %v6076_v25  ;;  %v6077_v34 = vmul.f32 0.5, %v6073_v63 }
 0x3ce   : > { %6081 = vst [vmem:[%s222_s27 + $0x18] sm:$0xff] %v6077_v34 }
 0x3cf PF: > { %s15_s19 = sadd.s32 1, %s8727_s19   ;;  %s11378_s15 = smov %s8719_s17 }
 0x3d0   : > { %p12_p7 = scmp.ge.s32.totalorder %s15_s19, 6   ;;  %s11379_s16 = smov %s8723_s18 }
 0x3d1   : > { %s11380_s17 = smov %s11383_s3  ;;  %s11381_s18 = smov %s11387_s20 }
 0x3d2   :  { %14 = sbr.rel (!%p12_p7) target bundleno = 3 (0x3), region = 75 }

</bundles_post_ra>
